<compile_context>
chip_gen: v6e
topology: v6e:2x2x1
jax: 0.10.0
libtpu: 0.0.40
codegen_flags: <defaults>
</compile_context>

<pallas_src>
import functools

import jax
import jax.numpy as jnp
from jax import lax
from jax.experimental import pallas as pl
from jax.experimental.pallas import tpu as pltpu


# ----------------------------------------------------------------------------
# Conv kernels (per-batch-element grid step, row-looped).
# ----------------------------------------------------------------------------
def _conv_relu_kernel(x_ref, w_ref, b_ref, o_ref):
    # x_ref: (1, H, 3*Cin, Wo)  (kx taps folded into channels by wrapper glue)
    # w_ref: (3, Cout, 3*Cin)   (ky-major)   b_ref: (Cout, 1)
    # o_ref: (1, Ho, Cout, Wo)
    Ho, Cout, Wo = o_ref.shape[1], o_ref.shape[2], o_ref.shape[3]
    w0, w1, w2 = w_ref[0], w_ref[1], w_ref[2]                 # hoisted weight loads
    bias = jnp.broadcast_to(b_ref[...], (Cout, Wo))           # hoisted broadcast

    def conv_row(h):
        acc = jnp.dot(w0, x_ref[0, h], preferred_element_type=jnp.float32)
        acc = acc + jnp.dot(w1, x_ref[0, h + 1], preferred_element_type=jnp.float32)
        acc = acc + jnp.dot(w2, x_ref[0, h + 2], preferred_element_type=jnp.float32)
        return jnp.maximum(acc + bias, 0.0)

    def body(i, carry):                                       # 2 rows / iteration
        h = 2 * i
        o_ref[0, h] = conv_row(h)
        o_ref[0, h + 1] = conv_row(h + 1)
        return carry

    lax.fori_loop(0, Ho // 2, body, 0)
    if Ho % 2:                                                # static epilogue (odd Ho)
        o_ref[0, Ho - 1] = conv_row(Ho - 1)


def _conv_relu_pool_kernel(x_ref, w_ref, b_ref, o_ref):
    # Fused conv + bias + relu + 2x2/2 max-pool.  Input columns are pre-permuted to
    # [even output cols | odd output cols], so column pooling is a max of two halves.
    # x_ref: (1, H, 3*Cin, 2*Wp)   o_ref: (1, Hp, Cout, Wp)
    Hp, Cout, Wp = o_ref.shape[1], o_ref.shape[2], o_ref.shape[3]
    Wo = 2 * Wp
    w0, w1, w2 = w_ref[0], w_ref[1], w_ref[2]
    bias = jnp.broadcast_to(b_ref[...], (Cout, Wo))

    def conv_row(h):
        acc = jnp.dot(w0, x_ref[0, h], preferred_element_type=jnp.float32)
        acc = acc + jnp.dot(w1, x_ref[0, h + 1], preferred_element_type=jnp.float32)
        acc = acc + jnp.dot(w2, x_ref[0, h + 2], preferred_element_type=jnp.float32)
        return jnp.maximum(acc + bias, 0.0)

    def body(hp, carry):
        r = jnp.maximum(conv_row(2 * hp), conv_row(2 * hp + 1))   # row-pair max (VPU)
        o_ref[0, hp] = jnp.maximum(r[:, :Wp], r[:, Wp:])          # column-pair max (VPU)
        return carry

    lax.fori_loop(0, Hp, body, 0)


def conv_relu(x_im, w3, b2, *, pool=False):
    # x_im: (N, H, 3*Cin, Wc) kx-folded input; w3: (3, Cout, 3*Cin); b2: (Cout, 1)
    N, H, C3, Wc = x_im.shape
    Cout = w3.shape[1]
    Ho, Wo = H - 2, Wc
    if pool:
        Ho, Wo = Ho // 2, Wo // 2
    kernel = _conv_relu_pool_kernel if pool else _conv_relu_kernel
    return pl.pallas_call(
        kernel,
        out_shape=jax.ShapeDtypeStruct((N, Ho, Cout, Wo), jnp.float32),
        grid_spec=pltpu.PrefetchScalarGridSpec(
            num_scalar_prefetch=0,
            grid=(N,),
            in_specs=[
                pl.BlockSpec((1, H, C3, Wc), lambda n: (n, 0, 0, 0)),
                pl.BlockSpec((3, Cout, C3), lambda n: (0, 0, 0)),
                pl.BlockSpec((Cout, 1), lambda n: (0, 0)),
            ],
            out_specs=pl.BlockSpec((1, Ho, Cout, Wo), lambda n: (n, 0, 0, 0)),
        ),
        compiler_params=pltpu.CompilerParams(dimension_semantics=("parallel",)),
    )(x_im, w3, b2)


# ----------------------------------------------------------------------------
# XLA glue for the conv inputs (tiny tensors; layout plumbing only).
# ----------------------------------------------------------------------------
def _fold_kx(x):
    # (N, H, C, W) -> (N, H, 3*C, W-2);  out[:, h, kx*C + c, w] = x[:, h, c, w + kx]
    W = x.shape[3]
    return jnp.concatenate([x[..., 0:W - 2], x[..., 1:W - 1], x[..., 2:W]], axis=2)


def _deinterleave_cols(x):
    # Reorder the last dim to [0,2,4,... | 1,3,5,...] so the fused 2x2 pool can take
    # the column max as max(left_half, right_half).
    return jnp.concatenate([x[..., 0::2], x[..., 1::2]], axis=-1)


# ----------------------------------------------------------------------------
# Linear (fully-connected) kernel: K-tiled matmul with f32 VMEM accumulator.
# Weights arrive pre-transposed/padded (and optionally bf16) from prepare_params.
# ----------------------------------------------------------------------------
def _round_up(v, m):
    return ((v + m - 1) // m) * m


def _fc_tiles(K, Nout, tk, tn):
    return min(tk, _round_up(K, 128)), min(tn, _round_up(Nout, 128))


def _linear_kernel(x_ref, w_ref, b_ref, o_ref, acc_ref, *, relu):
    k = pl.program_id(1)

    @pl.when(k == 0)
    def _():
        acc_ref[...] = jnp.zeros_like(acc_ref)

    acc_ref[...] += jnp.dot(x_ref[...], w_ref[...],
                            preferred_element_type=jnp.float32)

    @pl.when(k == pl.num_programs(1) - 1)
    def _():
        r = acc_ref[...] + b_ref[...]
        if relu:
            r = jnp.maximum(r, 0.0)
        o_ref[...] = r


def linear(x, wp, bp, *, nout, relu, tk, tn):
    # x: (B, K) f32.  wp: (Kp, Np) pre-prepared weight.  bp: (1, Np) f32 bias.
    B, K = x.shape
    Kp, Np = wp.shape
    tk, tn = _fc_tiles(K, nout, tk, tn)
    if Kp != K:
        x = jnp.pad(x, ((0, 0), (0, Kp - K)))
    x = x.astype(wp.dtype)

    out = pl.pallas_call(
        functools.partial(_linear_kernel, relu=relu),
        out_shape=jax.ShapeDtypeStruct((B, Np), jnp.float32),
        grid_spec=pltpu.PrefetchScalarGridSpec(
            num_scalar_prefetch=0,
            grid=(Np // tn, Kp // tk),
            in_specs=[
                pl.BlockSpec((B, tk), lambda j, k: (0, k)),
                pl.BlockSpec((tk, tn), lambda j, k: (k, j)),
                pl.BlockSpec((1, tn), lambda j, k: (0, j)),
            ],
            out_specs=pl.BlockSpec((B, tn), lambda j, k: (0, j)),
            scratch_shapes=[pltpu.VMEM((B, tn), jnp.float32)],
        ),
        compiler_params=pltpu.CompilerParams(
            dimension_semantics=("parallel", "arbitrary")),
    )(x, wp, bp)
    return out[:, :nout] if Np != nout else out


# FC tiling / streaming-dtype config (tk/tn are clamped per layer in _fc_tiles).
_FC_CFG = {
    "fc1": dict(tk=1024, tn=2048, dtype=jnp.bfloat16),  # 20886 -> 4096 (dominant, bf16 stream)
    "fc2": dict(tk=1024, tn=256,  dtype=jnp.bfloat16),  # 4096  -> 512  (>=2 N-tiles for v7x)
    "fc3": dict(tk=1024, tn=2048, dtype=jnp.float32),   # 512   -> 128
    "fc4": dict(tk=1024, tn=2048, dtype=jnp.float32),   # 128   -> 7
}


# ----------------------------------------------------------------------------
# Parameters (deterministic, PyTorch-style uniform(-1/sqrt(fan_in), +)) & prep
# ----------------------------------------------------------------------------
def _uniform(key, shape, bound):
    return jax.random.uniform(key, shape, jnp.float32, -bound, bound)


def init_params(key):
    ks = jax.random.split(key, 14)

    def conv_p(kw, kb, cout, cin):
        bound = (cin * 9) ** -0.5
        return _uniform(kw, (cout, cin, 3, 3), bound), _uniform(kb, (cout,), bound)

    def lin_p(kw, kb, nout, nin):
        bound = nin ** -0.5
        return _uniform(kw, (nout, nin), bound), _uniform(kb, (nout,), bound)

    w1, b1 = conv_p(ks[0], ks[1], 24, 3)
    w2, b2 = conv_p(ks[2], ks[3], 18, 24)
    w3, b3 = conv_p(ks[4], ks[5], 6, 18)
    lw1, lb1 = lin_p(ks[6], ks[7], 4096, 6 * 59 * 59)
    lw2, lb2 = lin_p(ks[8], ks[9], 512, 4096)
    lw3, lb3 = lin_p(ks[10], ks[11], 128, 512)
    lw4, lb4 = lin_p(ks[12], ks[13], 7, 128)
    return (w1, b1, w2, b2, w3, b3, lw1, lb1, lw2, lb2, lw3, lb3, lw4, lb4)


def prepare_params(params):
    """One-time weight layout prep (outside the jitted forward)."""
    (w1, b1, w2, b2, w3, b3, lw1, lb1, lw2, lb2, lw3, lb3, lw4, lb4) = params

    def prep_conv(w, b):
        # torch (Cout, Cin, Kh, Kw) -> (Kh, Cout, Kw*Cin) matching the kx-folded input.
        cout, cin = w.shape[0], w.shape[1]
        wk = jnp.transpose(w, (2, 0, 3, 1)).reshape(3, cout, 3 * cin)
        return wk, b.reshape(cout, 1)

    def prep_lin(w, b, cfg):
        # torch (Nout, K) -> transposed (Kp, Np), zero-padded, optional bf16 stream dtype.
        nout, K = w.shape
        tk, tn = _fc_tiles(K, nout, cfg["tk"], cfg["tn"])
        Kp, Np = _round_up(K, tk), _round_up(nout, tn)
        wp = jnp.zeros((Kp, Np), cfg["dtype"]).at[:K, :nout].set(w.T.astype(cfg["dtype"]))
        bp = jnp.zeros((1, Np), jnp.float32).at[0, :nout].set(b)
        return wp, bp

    return (prep_conv(w1, b1), prep_conv(w2, b2), prep_conv(w3, b3),
            prep_lin(lw1, lb1, _FC_CFG["fc1"]), prep_lin(lw2, lb2, _FC_CFG["fc2"]),
            prep_lin(lw3, lb3, _FC_CFG["fc3"]), prep_lin(lw4, lb4, _FC_CFG["fc4"]))


def cnn_forward(prepped, x_nchw):
    (c1, c2, c3, f1, f2, f3, f4) = prepped
    N = x_nchw.shape[0]

    # glue: NCHW -> N,H,C,W ; fold kx taps into channels ; column de-interleave for pool.
    x = jnp.transpose(x_nchw, (0, 2, 1, 3))            # (N, 128, 3, 128)
    xi = _deinterleave_cols(_fold_kx(x))               # (N, 128, 9, 126)

    y = conv_relu(xi, *c1, pool=True)                  # (N, 63, 24, 63)
    y = conv_relu(_fold_kx(y), *c2)                    # (N, 61, 18, 61)
    y = conv_relu(_fold_kx(y), *c3)                    # (N, 59,  6, 59)

    # glue: N,H,C,W -> N,C,H,W -> flatten (matches torch.flatten(x, 1) on NCHW)
    feat = jnp.transpose(y, (0, 2, 1, 3)).reshape(N, 6 * 59 * 59)

    h = linear(feat, *f1, nout=4096, relu=True,
               tk=_FC_CFG["fc1"]["tk"], tn=_FC_CFG["fc1"]["tn"])
    h = linear(h, *f2, nout=512, relu=True,
               tk=_FC_CFG["fc2"]["tk"], tn=_FC_CFG["fc2"]["tn"])
    h = linear(h, *f3, nout=128, relu=True,
               tk=_FC_CFG["fc3"]["tk"], tn=_FC_CFG["fc3"]["tn"])
    out = linear(h, *f4, nout=7, relu=False,
                 tk=_FC_CFG["fc4"]["tk"], tn=_FC_CFG["fc4"]["tn"])
    return out


if __name__ == "__main__":
    key = jax.random.PRNGKey(0)
    pkey, xkey = jax.random.split(key)
    params = init_params(pkey)
    prepped = prepare_params(params)          # one-time layout/padding/bf16 prep
    # batch=2; 128x128 spatial is required by the module's 6*59*59 linear1 input.
    x = jax.random.normal(xkey, (2, 3, 128, 128), jnp.float32)

    fwd = jax.jit(cnn_forward)
    out = fwd(prepped, x)
    jax.block_until_ready(out)
    assert out.shape == (2, 7) and out.dtype == jnp.float32
    print("KERNEL_OK")
</pallas_src>

<mosaic_0001>
module attributes {stable_mosaic.version = 11 : i64} {
  func.func @_conv_relu_pool_kernel(%arg0: i32, %arg1: memref<1x128x9x126xf32, #tpu.memory_space<vmem>>, %arg2: memref<3x24x9xf32, #tpu.memory_space<vmem>>, %arg3: memref<24x1xf32, #tpu.memory_space<vmem>>, %arg4: memref<1x63x24x63xf32, #tpu.memory_space<vmem>>) attributes {dimension_semantics = [#tpu.dimension_semantics<parallel>], iteration_bounds = array<i64: 2>, scalar_prefetch = 0 : i64, scratch_operands = 0 : i64, tpu.core_type = #tpu.core_type<tc>, window_params = [{transform_indices = @transform_0, window_bounds = array<i64: 1, 128, 9, 126>}, {pipeline_mode = #tpu.pipeline_mode<synchronous>, transform_indices = @transform_1, window_bounds = array<i64: 3, 24, 9>}, {pipeline_mode = #tpu.pipeline_mode<synchronous>, transform_indices = @transform_2, window_bounds = array<i64: 24, 1>}, {transform_indices = @transform_3, window_bounds = array<i64: 1, 63, 24, 63>}]} {
    %c0 = arith.constant 0 : index
    %c0_0 = arith.constant 0 : index
    %c0_1 = arith.constant 0 : index
    %0 = vector.load %arg2[%c0, %c0_0, %c0_1] : memref<3x24x9xf32, #tpu.memory_space<vmem>>, vector<1x24x9xf32>
    %1 = vector.shape_cast %0 : vector<1x24x9xf32> to vector<24x9xf32>
    %c1 = arith.constant 1 : index
    %c0_2 = arith.constant 0 : index
    %c0_3 = arith.constant 0 : index
    %2 = vector.load %arg2[%c1, %c0_2, %c0_3] : memref<3x24x9xf32, #tpu.memory_space<vmem>>, vector<1x24x9xf32>
    %3 = vector.shape_cast %2 : vector<1x24x9xf32> to vector<24x9xf32>
    %c2 = arith.constant 2 : index
    %c0_4 = arith.constant 0 : index
    %c0_5 = arith.constant 0 : index
    %4 = vector.load %arg2[%c2, %c0_4, %c0_5] : memref<3x24x9xf32, #tpu.memory_space<vmem>>, vector<1x24x9xf32>
    %5 = vector.shape_cast %4 : vector<1x24x9xf32> to vector<24x9xf32>
    %c0_6 = arith.constant 0 : index
    %c0_7 = arith.constant 0 : index
    %6 = vector.load %arg3[%c0_6, %c0_7] : memref<24x1xf32, #tpu.memory_space<vmem>>, vector<24x1xf32>
    %7 = vector.shape_cast %6 : vector<24x1xf32> to vector<24x1xf32>
    %8 = vector.broadcast %7 : vector<24x1xf32> to vector<24x126xf32>
    %c0_i32 = arith.constant 0 : i32
    %c63_i32 = arith.constant 63 : i32
    %9 = arith.addi %c0_i32, %c63_i32 : i32
    %c1_i32 = arith.constant 1 : i32
    scf.for %arg5 = %c0_i32 to %9 step %c1_i32  : i32 {
      %c2_i32 = arith.constant 2 : i32
      %10 = arith.muli %c2_i32, %arg5 : i32
      %c0_9 = arith.constant 0 : index
      %11 = arith.index_cast %10 : i32 to index
      %c0_10 = arith.constant 0 : index
      %c0_11 = arith.constant 0 : index
      %12 = vector.load %arg1[%c0_9, %11, %c0_10, %c0_11] : memref<1x128x9x126xf32, #tpu.memory_space<vmem>>, vector<1x1x9x126xf32>
      %13 = vector.shape_cast %12 : vector<1x1x9x126xf32> to vector<9x126xf32>
      %cst = arith.constant dense<0.000000e+00> : vector<24x126xf32>
      %14 = tpu.matmul %1, %13, %cst {dimension_numbers = #tpu.dot_dimension_numbers<[1], [0], [0], [1], [0, 0, 1, 1], [], []>} : vector<24x9xf32>, vector<9x126xf32>, vector<24x126xf32> -> vector<24x126xf32>
      %c1_i32_12 = arith.constant 1 : i32
      %15 = arith.addi %10, %c1_i32_12 : i32
      %c0_13 = arith.constant 0 : index
      %16 = arith.index_cast %15 : i32 to index
      %c0_14 = arith.constant 0 : index
      %c0_15 = arith.constant 0 : index
      %17 = vector.load %arg1[%c0_13, %16, %c0_14, %c0_15] : memref<1x128x9x126xf32, #tpu.memory_space<vmem>>, vector<1x1x9x126xf32>
      %18 = vector.shape_cast %17 : vector<1x1x9x126xf32> to vector<9x126xf32>
      %cst_16 = arith.constant dense<0.000000e+00> : vector<24x126xf32>
      %19 = tpu.matmul %3, %18, %cst_16 {dimension_numbers = #tpu.dot_dimension_numbers<[1], [0], [0], [1], [0, 0, 1, 1], [], []>} : vector<24x9xf32>, vector<9x126xf32>, vector<24x126xf32> -> vector<24x126xf32>
      %20 = arith.addf %14, %19 : vector<24x126xf32>
      %c2_i32_17 = arith.constant 2 : i32
      %21 = arith.addi %10, %c2_i32_17 : i32
      %c0_18 = arith.constant 0 : index
      %22 = arith.index_cast %21 : i32 to index
      %c0_19 = arith.constant 0 : index
      %c0_20 = arith.constant 0 : index
      %23 = vector.load %arg1[%c0_18, %22, %c0_19, %c0_20] : memref<1x128x9x126xf32, #tpu.memory_space<vmem>>, vector<1x1x9x126xf32>
      %24 = vector.shape_cast %23 : vector<1x1x9x126xf32> to vector<9x126xf32>
      %cst_21 = arith.constant dense<0.000000e+00> : vector<24x126xf32>
      %25 = tpu.matmul %5, %24, %cst_21 {dimension_numbers = #tpu.dot_dimension_numbers<[1], [0], [0], [1], [0, 0, 1, 1], [], []>} : vector<24x9xf32>, vector<9x126xf32>, vector<24x126xf32> -> vector<24x126xf32>
      %26 = arith.addf %20, %25 : vector<24x126xf32>
      %27 = arith.addf %26, %8 : vector<24x126xf32>
      %cst_22 = arith.constant 0.000000e+00 : f32
      %28 = vector.broadcast %cst_22 : f32 to vector<24x126xf32>
      %29 = arith.maximumf %27, %28 : vector<24x126xf32>
      %c2_i32_23 = arith.constant 2 : i32
      %30 = arith.muli %c2_i32_23, %arg5 : i32
      %c1_i32_24 = arith.constant 1 : i32
      %31 = arith.addi %30, %c1_i32_24 : i32
      %c0_25 = arith.constant 0 : index
      %32 = arith.index_cast %31 : i32 to index
      %c0_26 = arith.constant 0 : index
      %c0_27 = arith.constant 0 : index
      %33 = vector.load %arg1[%c0_25, %32, %c0_26, %c0_27] : memref<1x128x9x126xf32, #tpu.memory_space<vmem>>, vector<1x1x9x126xf32>
      %34 = vector.shape_cast %33 : vector<1x1x9x126xf32> to vector<9x126xf32>
      %cst_28 = arith.constant dense<0.000000e+00> : vector<24x126xf32>
      %35 = tpu.matmul %1, %34, %cst_28 {dimension_numbers = #tpu.dot_dimension_numbers<[1], [0], [0], [1], [0, 0, 1, 1], [], []>} : vector<24x9xf32>, vector<9x126xf32>, vector<24x126xf32> -> vector<24x126xf32>
      %c1_i32_29 = arith.constant 1 : i32
      %36 = arith.addi %31, %c1_i32_29 : i32
      %c0_30 = arith.constant 0 : index
      %37 = arith.index_cast %36 : i32 to index
      %c0_31 = arith.constant 0 : index
      %c0_32 = arith.constant 0 : index
      %38 = vector.load %arg1[%c0_30, %37, %c0_31, %c0_32] : memref<1x128x9x126xf32, #tpu.memory_space<vmem>>, vector<1x1x9x126xf32>
      %39 = vector.shape_cast %38 : vector<1x1x9x126xf32> to vector<9x126xf32>
      %cst_33 = arith.constant dense<0.000000e+00> : vector<24x126xf32>
      %40 = tpu.matmul %3, %39, %cst_33 {dimension_numbers = #tpu.dot_dimension_numbers<[1], [0], [0], [1], [0, 0, 1, 1], [], []>} : vector<24x9xf32>, vector<9x126xf32>, vector<24x126xf32> -> vector<24x126xf32>
      %41 = arith.addf %35, %40 : vector<24x126xf32>
      %c2_i32_34 = arith.constant 2 : i32
      %42 = arith.addi %31, %c2_i32_34 : i32
      %c0_35 = arith.constant 0 : index
      %43 = arith.index_cast %42 : i32 to index
      %c0_36 = arith.constant 0 : index
      %c0_37 = arith.constant 0 : index
      %44 = vector.load %arg1[%c0_35, %43, %c0_36, %c0_37] : memref<1x128x9x126xf32, #tpu.memory_space<vmem>>, vector<1x1x9x126xf32>
      %45 = vector.shape_cast %44 : vector<1x1x9x126xf32> to vector<9x126xf32>
      %cst_38 = arith.constant dense<0.000000e+00> : vector<24x126xf32>
      %46 = tpu.matmul %5, %45, %cst_38 {dimension_numbers = #tpu.dot_dimension_numbers<[1], [0], [0], [1], [0, 0, 1, 1], [], []>} : vector<24x9xf32>, vector<9x126xf32>, vector<24x126xf32> -> vector<24x126xf32>
      %47 = arith.addf %41, %46 : vector<24x126xf32>
      %48 = arith.addf %47, %8 : vector<24x126xf32>
      %cst_39 = arith.constant 0.000000e+00 : f32
      %49 = vector.broadcast %cst_39 : f32 to vector<24x126xf32>
      %50 = arith.maximumf %48, %49 : vector<24x126xf32>
      %51 = arith.maximumf %29, %50 : vector<24x126xf32>
      %52 = vector.extract_strided_slice %51 {offsets = [0, 0], sizes = [24, 63], strides = [1, 1]} : vector<24x126xf32> to vector<24x63xf32>
      %53 = vector.extract_strided_slice %51 {offsets = [0, 63], sizes = [24, 63], strides = [1, 1]} : vector<24x126xf32> to vector<24x63xf32>
      %54 = arith.maximumf %52, %53 : vector<24x63xf32>
      %c0_40 = arith.constant 0 : index
      %55 = arith.index_cast %arg5 : i32 to index
      %c0_41 = arith.constant 0 : index
      %c0_42 = arith.constant 0 : index
      %56 = vector.load %arg4[%c0_40, %55, %c0_41, %c0_42] : memref<1x63x24x63xf32, #tpu.memory_space<vmem>>, vector<1x1x24x63xf32>
      %57 = vector.shape_cast %56 : vector<1x1x24x63xf32> to vector<24x63xf32>
      %58 = vector.shape_cast %54 : vector<24x63xf32> to vector<1x1x24x63xf32>
      tpu.vector_store %arg4[%c0_40, %55, %c0_41, %c0_42], %58 {strides = array<i32>} : memref<1x63x24x63xf32, #tpu.memory_space<vmem>>, vector<1x1x24x63xf32>,
    }
    %c63_i32_8 = arith.constant 63 : i32
    return
  }
  func.func @transform_0(%arg0: i32) -> (i32, i32, i32, i32) {
    %c0_i32 = arith.constant 0 : i32
    %c0_i32_0 = arith.constant 0 : i32
    %c0_i32_1 = arith.constant 0 : i32
    %c0_i32_2 = arith.constant 0 : i32
    return %arg0, %c0_i32, %c0_i32_0, %c0_i32_1 : i32, i32, i32, i32
  }
  func.func @transform_1(%arg0: i32) -> (i32, i32, i32) {
    %c0_i32 = arith.constant 0 : i32
    %c0_i32_0 = arith.constant 0 : i32
    %c0_i32_1 = arith.constant 0 : i32
    %c0_i32_2 = arith.constant 0 : i32
    return %c0_i32, %c0_i32_0, %c0_i32_1 : i32, i32, i32
  }
  func.func @transform_2(%arg0: i32) -> (i32, i32) {
    %c0_i32 = arith.constant 0 : i32
    %c0_i32_0 = arith.constant 0 : i32
    %c0_i32_1 = arith.constant 0 : i32
    return %c0_i32, %c0_i32_0 : i32, i32
  }
  func.func @transform_3(%arg0: i32) -> (i32, i32, i32, i32) {
    %c0_i32 = arith.constant 0 : i32
    %c0_i32_0 = arith.constant 0 : i32
    %c0_i32_1 = arith.constant 0 : i32
    %c0_i32_2 = arith.constant 0 : i32
    return %arg0, %c0_i32, %c0_i32_0, %c0_i32_1 : i32, i32, i32, i32
  }
}

module attributes {stable_mosaic.version = 11 : i64} {
  func.func @_conv_relu_kernel(%arg0: i32, %arg1: memref<1x63x72x61xf32, #tpu.memory_space<vmem>>, %arg2: memref<3x18x72xf32, #tpu.memory_space<vmem>>, %arg3: memref<18x1xf32, #tpu.memory_space<vmem>>, %arg4: memref<1x61x18x61xf32, #tpu.memory_space<vmem>>) attributes {dimension_semantics = [#tpu.dimension_semantics<parallel>], iteration_bounds = array<i64: 2>, scalar_prefetch = 0 : i64, scratch_operands = 0 : i64, tpu.core_type = #tpu.core_type<tc>, window_params = [{transform_indices = @transform_0, window_bounds = array<i64: 1, 63, 72, 61>}, {pipeline_mode = #tpu.pipeline_mode<synchronous>, transform_indices = @transform_1, window_bounds = array<i64: 3, 18, 72>}, {pipeline_mode = #tpu.pipeline_mode<synchronous>, transform_indices = @transform_2, window_bounds = array<i64: 18, 1>}, {transform_indices = @transform_3, window_bounds = array<i64: 1, 61, 18, 61>}]} {
    %c0 = arith.constant 0 : index
    %c0_0 = arith.constant 0 : index
    %c0_1 = arith.constant 0 : index
    %0 = vector.load %arg2[%c0, %c0_0, %c0_1] : memref<3x18x72xf32, #tpu.memory_space<vmem>>, vector<1x18x72xf32>
    %1 = vector.shape_cast %0 : vector<1x18x72xf32> to vector<18x72xf32>
    %c1 = arith.constant 1 : index
    %c0_2 = arith.constant 0 : index
    %c0_3 = arith.constant 0 : index
    %2 = vector.load %arg2[%c1, %c0_2, %c0_3] : memref<3x18x72xf32, #tpu.memory_space<vmem>>, vector<1x18x72xf32>
    %3 = vector.shape_cast %2 : vector<1x18x72xf32> to vector<18x72xf32>
    %c2 = arith.constant 2 : index
    %c0_4 = arith.constant 0 : index
    %c0_5 = arith.constant 0 : index
    %4 = vector.load %arg2[%c2, %c0_4, %c0_5] : memref<3x18x72xf32, #tpu.memory_space<vmem>>, vector<1x18x72xf32>
    %5 = vector.shape_cast %4 : vector<1x18x72xf32> to vector<18x72xf32>
    %c0_6 = arith.constant 0 : index
    %c0_7 = arith.constant 0 : index
    %6 = vector.load %arg3[%c0_6, %c0_7] : memref<18x1xf32, #tpu.memory_space<vmem>>, vector<18x1xf32>
    %7 = vector.shape_cast %6 : vector<18x1xf32> to vector<18x1xf32>
    %8 = vector.broadcast %7 : vector<18x1xf32> to vector<18x61xf32>
    %c0_i32 = arith.constant 0 : i32
    %c30_i32 = arith.constant 30 : i32
    %9 = arith.addi %c0_i32, %c30_i32 : i32
    %c1_i32 = arith.constant 1 : i32
    scf.for %arg5 = %c0_i32 to %9 step %c1_i32  : i32 {
      %c2_i32 = arith.constant 2 : i32
      %27 = arith.muli %c2_i32, %arg5 : i32
      %c0_25 = arith.constant 0 : index
      %28 = arith.index_cast %27 : i32 to index
      %c0_26 = arith.constant 0 : index
      %c0_27 = arith.constant 0 : index
      %29 = vector.load %arg1[%c0_25, %28, %c0_26, %c0_27] : memref<1x63x72x61xf32, #tpu.memory_space<vmem>>, vector<1x1x72x61xf32>
      %30 = vector.shape_cast %29 : vector<1x1x72x61xf32> to vector<72x61xf32>
      %cst_28 = arith.constant dense<0.000000e+00> : vector<18x61xf32>
      %31 = tpu.matmul %1, %30, %cst_28 {dimension_numbers = #tpu.dot_dimension_numbers<[1], [0], [0], [1], [0, 0, 1, 1], [], []>} : vector<18x72xf32>, vector<72x61xf32>, vector<18x61xf32> -> vector<18x61xf32>
      %c1_i32_29 = arith.constant 1 : i32
      %32 = arith.addi %27, %c1_i32_29 : i32
      %c0_30 = arith.constant 0 : index
      %33 = arith.index_cast %32 : i32 to index
      %c0_31 = arith.constant 0 : index
      %c0_32 = arith.constant 0 : index
      %34 = vector.load %arg1[%c0_30, %33, %c0_31, %c0_32] : memref<1x63x72x61xf32, #tpu.memory_space<vmem>>, vector<1x1x72x61xf32>
      %35 = vector.shape_cast %34 : vector<1x1x72x61xf32> to vector<72x61xf32>
      %cst_33 = arith.constant dense<0.000000e+00> : vector<18x61xf32>
      %36 = tpu.matmul %3, %35, %cst_33 {dimension_numbers = #tpu.dot_dimension_numbers<[1], [0], [0], [1], [0, 0, 1, 1], [], []>} : vector<18x72xf32>, vector<72x61xf32>, vector<18x61xf32> -> vector<18x61xf32>
      %37 = arith.addf %31, %36 : vector<18x61xf32>
      %c2_i32_34 = arith.constant 2 : i32
      %38 = arith.addi %27, %c2_i32_34 : i32
      %c0_35 = arith.constant 0 : index
      %39 = arith.index_cast %38 : i32 to index
      %c0_36 = arith.constant 0 : index
      %c0_37 = arith.constant 0 : index
      %40 = vector.load %arg1[%c0_35, %39, %c0_36, %c0_37] : memref<1x63x72x61xf32, #tpu.memory_space<vmem>>, vector<1x1x72x61xf32>
      %41 = vector.shape_cast %40 : vector<1x1x72x61xf32> to vector<72x61xf32>
      %cst_38 = arith.constant dense<0.000000e+00> : vector<18x61xf32>
      %42 = tpu.matmul %5, %41, %cst_38 {dimension_numbers = #tpu.dot_dimension_numbers<[1], [0], [0], [1], [0, 0, 1, 1], [], []>} : vector<18x72xf32>, vector<72x61xf32>, vector<18x61xf32> -> vector<18x61xf32>
      %43 = arith.addf %37, %42 : vector<18x61xf32>
      %44 = arith.addf %43, %8 : vector<18x61xf32>
      %cst_39 = arith.constant 0.000000e+00 : f32
      %45 = vector.broadcast %cst_39 : f32 to vector<18x61xf32>
      %46 = arith.maximumf %44, %45 : vector<18x61xf32>
      %c0_40 = arith.constant 0 : index
      %47 = arith.index_cast %27 : i32 to index
      %c0_41 = arith.constant 0 : index
      %c0_42 = arith.constant 0 : index
      %48 = vector.load %arg4[%c0_40, %47, %c0_41, %c0_42] : memref<1x61x18x61xf32, #tpu.memory_space<vmem>>, vector<1x1x18x61xf32>
      %49 = vector.shape_cast %48 : vector<1x1x18x61xf32> to vector<18x61xf32>
      %50 = vector.shape_cast %46 : vector<18x61xf32> to vector<1x1x18x61xf32>
      tpu.vector_store %arg4[%c0_40, %47, %c0_41, %c0_42], %50 {strides = array<i32>} : memref<1x61x18x61xf32, #tpu.memory_space<vmem>>, vector<1x1x18x61xf32>,
      %c1_i32_43 = arith.constant 1 : i32
      %51 = arith.addi %27, %c1_i32_43 : i32
      %c0_44 = arith.constant 0 : index
      %52 = arith.index_cast %51 : i32 to index
      %c0_45 = arith.constant 0 : index
      %c0_46 = arith.constant 0 : index
      %53 = vector.load %arg1[%c0_44, %52, %c0_45, %c0_46] : memref<1x63x72x61xf32, #tpu.memory_space<vmem>>, vector<1x1x72x61xf32>
      %54 = vector.shape_cast %53 : vector<1x1x72x61xf32> to vector<72x61xf32>
      %cst_47 = arith.constant dense<0.000000e+00> : vector<18x61xf32>
      %55 = tpu.matmul %1, %54, %cst_47 {dimension_numbers = #tpu.dot_dimension_numbers<[1], [0], [0], [1], [0, 0, 1, 1], [], []>} : vector<18x72xf32>, vector<72x61xf32>, vector<18x61xf32> -> vector<18x61xf32>
      %c1_i32_48 = arith.constant 1 : i32
      %56 = arith.addi %51, %c1_i32_48 : i32
      %c0_49 = arith.constant 0 : index
      %57 = arith.index_cast %56 : i32 to index
      %c0_50 = arith.constant 0 : index
      %c0_51 = arith.constant 0 : index
      %58 = vector.load %arg1[%c0_49, %57, %c0_50, %c0_51] : memref<1x63x72x61xf32, #tpu.memory_space<vmem>>, vector<1x1x72x61xf32>
      %59 = vector.shape_cast %58 : vector<1x1x72x61xf32> to vector<72x61xf32>
      %cst_52 = arith.constant dense<0.000000e+00> : vector<18x61xf32>
      %60 = tpu.matmul %3, %59, %cst_52 {dimension_numbers = #tpu.dot_dimension_numbers<[1], [0], [0], [1], [0, 0, 1, 1], [], []>} : vector<18x72xf32>, vector<72x61xf32>, vector<18x61xf32> -> vector<18x61xf32>
      %61 = arith.addf %55, %60 : vector<18x61xf32>
      %c2_i32_53 = arith.constant 2 : i32
      %62 = arith.addi %51, %c2_i32_53 : i32
      %c0_54 = arith.constant 0 : index
      %63 = arith.index_cast %62 : i32 to index
      %c0_55 = arith.constant 0 : index
      %c0_56 = arith.constant 0 : index
      %64 = vector.load %arg1[%c0_54, %63, %c0_55, %c0_56] : memref<1x63x72x61xf32, #tpu.memory_space<vmem>>, vector<1x1x72x61xf32>
      %65 = vector.shape_cast %64 : vector<1x1x72x61xf32> to vector<72x61xf32>
      %cst_57 = arith.constant dense<0.000000e+00> : vector<18x61xf32>
      %66 = tpu.matmul %5, %65, %cst_57 {dimension_numbers = #tpu.dot_dimension_numbers<[1], [0], [0], [1], [0, 0, 1, 1], [], []>} : vector<18x72xf32>, vector<72x61xf32>, vector<18x61xf32> -> vector<18x61xf32>
      %67 = arith.addf %61, %66 : vector<18x61xf32>
      %68 = arith.addf %67, %8 : vector<18x61xf32>
      %cst_58 = arith.constant 0.000000e+00 : f32
      %69 = vector.broadcast %cst_58 : f32 to vector<18x61xf32>
      %70 = arith.maximumf %68, %69 : vector<18x61xf32>
      %c1_i32_59 = arith.constant 1 : i32
      %71 = arith.addi %27, %c1_i32_59 : i32
      %c0_60 = arith.constant 0 : index
      %72 = arith.index_cast %71 : i32 to index
      %c0_61 = arith.constant 0 : index
      %c0_62 = arith.constant 0 : index
      %73 = vector.load %arg4[%c0_60, %72, %c0_61, %c0_62] : memref<1x61x18x61xf32, #tpu.memory_space<vmem>>, vector<1x1x18x61xf32>
      %74 = vector.shape_cast %73 : vector<1x1x18x61xf32> to vector<18x61xf32>
      %75 = vector.shape_cast %70 : vector<18x61xf32> to vector<1x1x18x61xf32>
      tpu.vector_store %arg4[%c0_60, %72, %c0_61, %c0_62], %75 {strides = array<i32>} : memref<1x61x18x61xf32, #tpu.memory_space<vmem>>, vector<1x1x18x61xf32>,
    }
    %c30_i32_8 = arith.constant 30 : i32
    %c0_9 = arith.constant 0 : index
    %c60 = arith.constant 60 : index
    %c0_10 = arith.constant 0 : index
    %c0_11 = arith.constant 0 : index
    %10 = vector.load %arg1[%c0_9, %c60, %c0_10, %c0_11] : memref<1x63x72x61xf32, #tpu.memory_space<vmem>>, vector<1x1x72x61xf32>
    %11 = vector.shape_cast %10 : vector<1x1x72x61xf32> to vector<72x61xf32>
    %cst = arith.constant dense<0.000000e+00> : vector<18x61xf32>
    %12 = tpu.matmul %1, %11, %cst {dimension_numbers = #tpu.dot_dimension_numbers<[1], [0], [0], [1], [0, 0, 1, 1], [], []>} : vector<18x72xf32>, vector<72x61xf32>, vector<18x61xf32> -> vector<18x61xf32>
    %c0_12 = arith.constant 0 : index
    %c61 = arith.constant 61 : index
    %c0_13 = arith.constant 0 : index
    %c0_14 = arith.constant 0 : index
    %13 = vector.load %arg1[%c0_12, %c61, %c0_13, %c0_14] : memref<1x63x72x61xf32, #tpu.memory_space<vmem>>, vector<1x1x72x61xf32>
    %14 = vector.shape_cast %13 : vector<1x1x72x61xf32> to vector<72x61xf32>
    %cst_15 = arith.constant dense<0.000000e+00> : vector<18x61xf32>
    %15 = tpu.matmul %3, %14, %cst_15 {dimension_numbers = #tpu.dot_dimension_numbers<[1], [0], [0], [1], [0, 0, 1, 1], [], []>} : vector<18x72xf32>, vector<72x61xf32>, vector<18x61xf32> -> vector<18x61xf32>
    %16 = arith.addf %12, %15 : vector<18x61xf32>
    %c0_16 = arith.constant 0 : index
    %c62 = arith.constant 62 : index
    %c0_17 = arith.constant 0 : index
    %c0_18 = arith.constant 0 : index
    %17 = vector.load %arg1[%c0_16, %c62, %c0_17, %c0_18] : memref<1x63x72x61xf32, #tpu.memory_space<vmem>>, vector<1x1x72x61xf32>
    %18 = vector.shape_cast %17 : vector<1x1x72x61xf32> to vector<72x61xf32>
    %cst_19 = arith.constant dense<0.000000e+00> : vector<18x61xf32>
    %19 = tpu.matmul %5, %18, %cst_19 {dimension_numbers = #tpu.dot_dimension_numbers<[1], [0], [0], [1], [0, 0, 1, 1], [], []>} : vector<18x72xf32>, vector<72x61xf32>, vector<18x61xf32> -> vector<18x61xf32>
    %20 = arith.addf %16, %19 : vector<18x61xf32>
    %21 = arith.addf %20, %8 : vector<18x61xf32>
    %cst_20 = arith.constant 0.000000e+00 : f32
    %22 = vector.broadcast %cst_20 : f32 to vector<18x61xf32>
    %23 = arith.maximumf %21, %22 : vector<18x61xf32>
    %c0_21 = arith.constant 0 : index
    %c60_22 = arith.constant 60 : index
    %c0_23 = arith.constant 0 : index
    %c0_24 = arith.constant 0 : index
    %24 = vector.load %arg4[%c0_21, %c60_22, %c0_23, %c0_24] : memref<1x61x18x61xf32, #tpu.memory_space<vmem>>, vector<1x1x18x61xf32>
    %25 = vector.shape_cast %24 : vector<1x1x18x61xf32> to vector<18x61xf32>
    %26 = vector.shape_cast %23 : vector<18x61xf32> to vector<1x1x18x61xf32>
    tpu.vector_store %arg4[%c0_21, %c60_22, %c0_23, %c0_24], %26 {strides = array<i32>} : memref<1x61x18x61xf32, #tpu.memory_space<vmem>>, vector<1x1x18x61xf32>,
    return
  }
  func.func @transform_0(%arg0: i32) -> (i32, i32, i32, i32) {
    %c0_i32 = arith.constant 0 : i32
    %c0_i32_0 = arith.constant 0 : i32
    %c0_i32_1 = arith.constant 0 : i32
    %c0_i32_2 = arith.constant 0 : i32
    return %arg0, %c0_i32, %c0_i32_0, %c0_i32_1 : i32, i32, i32, i32
  }
  func.func @transform_1(%arg0: i32) -> (i32, i32, i32) {
    %c0_i32 = arith.constant 0 : i32
    %c0_i32_0 = arith.constant 0 : i32
    %c0_i32_1 = arith.constant 0 : i32
    %c0_i32_2 = arith.constant 0 : i32
    return %c0_i32, %c0_i32_0, %c0_i32_1 : i32, i32, i32
  }
  func.func @transform_2(%arg0: i32) -> (i32, i32) {
    %c0_i32 = arith.constant 0 : i32
    %c0_i32_0 = arith.constant 0 : i32
    %c0_i32_1 = arith.constant 0 : i32
    return %c0_i32, %c0_i32_0 : i32, i32
  }
  func.func @transform_3(%arg0: i32) -> (i32, i32, i32, i32) {
    %c0_i32 = arith.constant 0 : i32
    %c0_i32_0 = arith.constant 0 : i32
    %c0_i32_1 = arith.constant 0 : i32
    %c0_i32_2 = arith.constant 0 : i32
    return %arg0, %c0_i32, %c0_i32_0, %c0_i32_1 : i32, i32, i32, i32
  }
}

module attributes {stable_mosaic.version = 11 : i64} {
  func.func @_conv_relu_kernel(%arg0: i32, %arg1: memref<1x61x54x59xf32, #tpu.memory_space<vmem>>, %arg2: memref<3x6x54xf32, #tpu.memory_space<vmem>>, %arg3: memref<6x1xf32, #tpu.memory_space<vmem>>, %arg4: memref<1x59x6x59xf32, #tpu.memory_space<vmem>>) attributes {dimension_semantics = [#tpu.dimension_semantics<parallel>], iteration_bounds = array<i64: 2>, scalar_prefetch = 0 : i64, scratch_operands = 0 : i64, tpu.core_type = #tpu.core_type<tc>, window_params = [{transform_indices = @transform_0, window_bounds = array<i64: 1, 61, 54, 59>}, {pipeline_mode = #tpu.pipeline_mode<synchronous>, transform_indices = @transform_1, window_bounds = array<i64: 3, 6, 54>}, {pipeline_mode = #tpu.pipeline_mode<synchronous>, transform_indices = @transform_2, window_bounds = array<i64: 6, 1>}, {transform_indices = @transform_3, window_bounds = array<i64: 1, 59, 6, 59>}]} {
    %c0 = arith.constant 0 : index
    %c0_0 = arith.constant 0 : index
    %c0_1 = arith.constant 0 : index
    %0 = vector.load %arg2[%c0, %c0_0, %c0_1] : memref<3x6x54xf32, #tpu.memory_space<vmem>>, vector<1x6x54xf32>
    %1 = vector.shape_cast %0 : vector<1x6x54xf32> to vector<6x54xf32>
    %c1 = arith.constant 1 : index
    %c0_2 = arith.constant 0 : index
    %c0_3 = arith.constant 0 : index
    %2 = vector.load %arg2[%c1, %c0_2, %c0_3] : memref<3x6x54xf32, #tpu.memory_space<vmem>>, vector<1x6x54xf32>
    %3 = vector.shape_cast %2 : vector<1x6x54xf32> to vector<6x54xf32>
    %c2 = arith.constant 2 : index
    %c0_4 = arith.constant 0 : index
    %c0_5 = arith.constant 0 : index
    %4 = vector.load %arg2[%c2, %c0_4, %c0_5] : memref<3x6x54xf32, #tpu.memory_space<vmem>>, vector<1x6x54xf32>
    %5 = vector.shape_cast %4 : vector<1x6x54xf32> to vector<6x54xf32>
    %c0_6 = arith.constant 0 : index
    %c0_7 = arith.constant 0 : index
    %6 = vector.load %arg3[%c0_6, %c0_7] : memref<6x1xf32, #tpu.memory_space<vmem>>, vector<6x1xf32>
    %7 = vector.shape_cast %6 : vector<6x1xf32> to vector<6x1xf32>
    %8 = vector.broadcast %7 : vector<6x1xf32> to vector<6x59xf32>
    %c0_i32 = arith.constant 0 : i32
    %c29_i32 = arith.constant 29 : i32
    %9 = arith.addi %c0_i32, %c29_i32 : i32
    %c1_i32 = arith.constant 1 : i32
    scf.for %arg5 = %c0_i32 to %9 step %c1_i32  : i32 {
      %c2_i32 = arith.constant 2 : i32
      %27 = arith.muli %c2_i32, %arg5 : i32
      %c0_25 = arith.constant 0 : index
      %28 = arith.index_cast %27 : i32 to index
      %c0_26 = arith.constant 0 : index
      %c0_27 = arith.constant 0 : index
      %29 = vector.load %arg1[%c0_25, %28, %c0_26, %c0_27] : memref<1x61x54x59xf32, #tpu.memory_space<vmem>>, vector<1x1x54x59xf32>
      %30 = vector.shape_cast %29 : vector<1x1x54x59xf32> to vector<54x59xf32>
      %cst_28 = arith.constant dense<0.000000e+00> : vector<6x59xf32>
      %31 = tpu.matmul %1, %30, %cst_28 {dimension_numbers = #tpu.dot_dimension_numbers<[1], [0], [0], [1], [0, 0, 1, 1], [], []>} : vector<6x54xf32>, vector<54x59xf32>, vector<6x59xf32> -> vector<6x59xf32>
      %c1_i32_29 = arith.constant 1 : i32
      %32 = arith.addi %27, %c1_i32_29 : i32
      %c0_30 = arith.constant 0 : index
      %33 = arith.index_cast %32 : i32 to index
      %c0_31 = arith.constant 0 : index
      %c0_32 = arith.constant 0 : index
      %34 = vector.load %arg1[%c0_30, %33, %c0_31, %c0_32] : memref<1x61x54x59xf32, #tpu.memory_space<vmem>>, vector<1x1x54x59xf32>
      %35 = vector.shape_cast %34 : vector<1x1x54x59xf32> to vector<54x59xf32>
      %cst_33 = arith.constant dense<0.000000e+00> : vector<6x59xf32>
      %36 = tpu.matmul %3, %35, %cst_33 {dimension_numbers = #tpu.dot_dimension_numbers<[1], [0], [0], [1], [0, 0, 1, 1], [], []>} : vector<6x54xf32>, vector<54x59xf32>, vector<6x59xf32> -> vector<6x59xf32>
      %37 = arith.addf %31, %36 : vector<6x59xf32>
      %c2_i32_34 = arith.constant 2 : i32
      %38 = arith.addi %27, %c2_i32_34 : i32
      %c0_35 = arith.constant 0 : index
      %39 = arith.index_cast %38 : i32 to index
      %c0_36 = arith.constant 0 : index
      %c0_37 = arith.constant 0 : index
      %40 = vector.load %arg1[%c0_35, %39, %c0_36, %c0_37] : memref<1x61x54x59xf32, #tpu.memory_space<vmem>>, vector<1x1x54x59xf32>
      %41 = vector.shape_cast %40 : vector<1x1x54x59xf32> to vector<54x59xf32>
      %cst_38 = arith.constant dense<0.000000e+00> : vector<6x59xf32>
      %42 = tpu.matmul %5, %41, %cst_38 {dimension_numbers = #tpu.dot_dimension_numbers<[1], [0], [0], [1], [0, 0, 1, 1], [], []>} : vector<6x54xf32>, vector<54x59xf32>, vector<6x59xf32> -> vector<6x59xf32>
      %43 = arith.addf %37, %42 : vector<6x59xf32>
      %44 = arith.addf %43, %8 : vector<6x59xf32>
      %cst_39 = arith.constant 0.000000e+00 : f32
      %45 = vector.broadcast %cst_39 : f32 to vector<6x59xf32>
      %46 = arith.maximumf %44, %45 : vector<6x59xf32>
      %c0_40 = arith.constant 0 : index
      %47 = arith.index_cast %27 : i32 to index
      %c0_41 = arith.constant 0 : index
      %c0_42 = arith.constant 0 : index
      %48 = vector.load %arg4[%c0_40, %47, %c0_41, %c0_42] : memref<1x59x6x59xf32, #tpu.memory_space<vmem>>, vector<1x1x6x59xf32>
      %49 = vector.shape_cast %48 : vector<1x1x6x59xf32> to vector<6x59xf32>
      %50 = vector.shape_cast %46 : vector<6x59xf32> to vector<1x1x6x59xf32>
      tpu.vector_store %arg4[%c0_40, %47, %c0_41, %c0_42], %50 {strides = array<i32>} : memref<1x59x6x59xf32, #tpu.memory_space<vmem>>, vector<1x1x6x59xf32>,
      %c1_i32_43 = arith.constant 1 : i32
      %51 = arith.addi %27, %c1_i32_43 : i32
      %c0_44 = arith.constant 0 : index
      %52 = arith.index_cast %51 : i32 to index
      %c0_45 = arith.constant 0 : index
      %c0_46 = arith.constant 0 : index
      %53 = vector.load %arg1[%c0_44, %52, %c0_45, %c0_46] : memref<1x61x54x59xf32, #tpu.memory_space<vmem>>, vector<1x1x54x59xf32>
      %54 = vector.shape_cast %53 : vector<1x1x54x59xf32> to vector<54x59xf32>
      %cst_47 = arith.constant dense<0.000000e+00> : vector<6x59xf32>
      %55 = tpu.matmul %1, %54, %cst_47 {dimension_numbers = #tpu.dot_dimension_numbers<[1], [0], [0], [1], [0, 0, 1, 1], [], []>} : vector<6x54xf32>, vector<54x59xf32>, vector<6x59xf32> -> vector<6x59xf32>
      %c1_i32_48 = arith.constant 1 : i32
      %56 = arith.addi %51, %c1_i32_48 : i32
      %c0_49 = arith.constant 0 : index
      %57 = arith.index_cast %56 : i32 to index
      %c0_50 = arith.constant 0 : index
      %c0_51 = arith.constant 0 : index
      %58 = vector.load %arg1[%c0_49, %57, %c0_50, %c0_51] : memref<1x61x54x59xf32, #tpu.memory_space<vmem>>, vector<1x1x54x59xf32>
      %59 = vector.shape_cast %58 : vector<1x1x54x59xf32> to vector<54x59xf32>
      %cst_52 = arith.constant dense<0.000000e+00> : vector<6x59xf32>
      %60 = tpu.matmul %3, %59, %cst_52 {dimension_numbers = #tpu.dot_dimension_numbers<[1], [0], [0], [1], [0, 0, 1, 1], [], []>} : vector<6x54xf32>, vector<54x59xf32>, vector<6x59xf32> -> vector<6x59xf32>
      %61 = arith.addf %55, %60 : vector<6x59xf32>
      %c2_i32_53 = arith.constant 2 : i32
      %62 = arith.addi %51, %c2_i32_53 : i32
      %c0_54 = arith.constant 0 : index
      %63 = arith.index_cast %62 : i32 to index
      %c0_55 = arith.constant 0 : index
      %c0_56 = arith.constant 0 : index
      %64 = vector.load %arg1[%c0_54, %63, %c0_55, %c0_56] : memref<1x61x54x59xf32, #tpu.memory_space<vmem>>, vector<1x1x54x59xf32>
      %65 = vector.shape_cast %64 : vector<1x1x54x59xf32> to vector<54x59xf32>
      %cst_57 = arith.constant dense<0.000000e+00> : vector<6x59xf32>
      %66 = tpu.matmul %5, %65, %cst_57 {dimension_numbers = #tpu.dot_dimension_numbers<[1], [0], [0], [1], [0, 0, 1, 1], [], []>} : vector<6x54xf32>, vector<54x59xf32>, vector<6x59xf32> -> vector<6x59xf32>
      %67 = arith.addf %61, %66 : vector<6x59xf32>
      %68 = arith.addf %67, %8 : vector<6x59xf32>
      %cst_58 = arith.constant 0.000000e+00 : f32
      %69 = vector.broadcast %cst_58 : f32 to vector<6x59xf32>
      %70 = arith.maximumf %68, %69 : vector<6x59xf32>
      %c1_i32_59 = arith.constant 1 : i32
      %71 = arith.addi %27, %c1_i32_59 : i32
      %c0_60 = arith.constant 0 : index
      %72 = arith.index_cast %71 : i32 to index
      %c0_61 = arith.constant 0 : index
      %c0_62 = arith.constant 0 : index
      %73 = vector.load %arg4[%c0_60, %72, %c0_61, %c0_62] : memref<1x59x6x59xf32, #tpu.memory_space<vmem>>, vector<1x1x6x59xf32>
      %74 = vector.shape_cast %73 : vector<1x1x6x59xf32> to vector<6x59xf32>
      %75 = vector.shape_cast %70 : vector<6x59xf32> to vector<1x1x6x59xf32>
      tpu.vector_store %arg4[%c0_60, %72, %c0_61, %c0_62], %75 {strides = array<i32>} : memref<1x59x6x59xf32, #tpu.memory_space<vmem>>, vector<1x1x6x59xf32>,
    }
    %c29_i32_8 = arith.constant 29 : i32
    %c0_9 = arith.constant 0 : index
    %c58 = arith.constant 58 : index
    %c0_10 = arith.constant 0 : index
    %c0_11 = arith.constant 0 : index
    %10 = vector.load %arg1[%c0_9, %c58, %c0_10, %c0_11] : memref<1x61x54x59xf32, #tpu.memory_space<vmem>>, vector<1x1x54x59xf32>
    %11 = vector.shape_cast %10 : vector<1x1x54x59xf32> to vector<54x59xf32>
    %cst = arith.constant dense<0.000000e+00> : vector<6x59xf32>
    %12 = tpu.matmul %1, %11, %cst {dimension_numbers = #tpu.dot_dimension_numbers<[1], [0], [0], [1], [0, 0, 1, 1], [], []>} : vector<6x54xf32>, vector<54x59xf32>, vector<6x59xf32> -> vector<6x59xf32>
    %c0_12 = arith.constant 0 : index
    %c59 = arith.constant 59 : index
    %c0_13 = arith.constant 0 : index
    %c0_14 = arith.constant 0 : index
    %13 = vector.load %arg1[%c0_12, %c59, %c0_13, %c0_14] : memref<1x61x54x59xf32, #tpu.memory_space<vmem>>, vector<1x1x54x59xf32>
    %14 = vector.shape_cast %13 : vector<1x1x54x59xf32> to vector<54x59xf32>
    %cst_15 = arith.constant dense<0.000000e+00> : vector<6x59xf32>
    %15 = tpu.matmul %3, %14, %cst_15 {dimension_numbers = #tpu.dot_dimension_numbers<[1], [0], [0], [1], [0, 0, 1, 1], [], []>} : vector<6x54xf32>, vector<54x59xf32>, vector<6x59xf32> -> vector<6x59xf32>
    %16 = arith.addf %12, %15 : vector<6x59xf32>
    %c0_16 = arith.constant 0 : index
    %c60 = arith.constant 60 : index
    %c0_17 = arith.constant 0 : index
    %c0_18 = arith.constant 0 : index
    %17 = vector.load %arg1[%c0_16, %c60, %c0_17, %c0_18] : memref<1x61x54x59xf32, #tpu.memory_space<vmem>>, vector<1x1x54x59xf32>
    %18 = vector.shape_cast %17 : vector<1x1x54x59xf32> to vector<54x59xf32>
    %cst_19 = arith.constant dense<0.000000e+00> : vector<6x59xf32>
    %19 = tpu.matmul %5, %18, %cst_19 {dimension_numbers = #tpu.dot_dimension_numbers<[1], [0], [0], [1], [0, 0, 1, 1], [], []>} : vector<6x54xf32>, vector<54x59xf32>, vector<6x59xf32> -> vector<6x59xf32>
    %20 = arith.addf %16, %19 : vector<6x59xf32>
    %21 = arith.addf %20, %8 : vector<6x59xf32>
    %cst_20 = arith.constant 0.000000e+00 : f32
    %22 = vector.broadcast %cst_20 : f32 to vector<6x59xf32>
    %23 = arith.maximumf %21, %22 : vector<6x59xf32>
    %c0_21 = arith.constant 0 : index
    %c58_22 = arith.constant 58 : index
    %c0_23 = arith.constant 0 : index
    %c0_24 = arith.constant 0 : index
    %24 = vector.load %arg4[%c0_21, %c58_22, %c0_23, %c0_24] : memref<1x59x6x59xf32, #tpu.memory_space<vmem>>, vector<1x1x6x59xf32>
    %25 = vector.shape_cast %24 : vector<1x1x6x59xf32> to vector<6x59xf32>
    %26 = vector.shape_cast %23 : vector<6x59xf32> to vector<1x1x6x59xf32>
    tpu.vector_store %arg4[%c0_21, %c58_22, %c0_23, %c0_24], %26 {strides = array<i32>} : memref<1x59x6x59xf32, #tpu.memory_space<vmem>>, vector<1x1x6x59xf32>,
    return
  }
  func.func @transform_0(%arg0: i32) -> (i32, i32, i32, i32) {
    %c0_i32 = arith.constant 0 : i32
    %c0_i32_0 = arith.constant 0 : i32
    %c0_i32_1 = arith.constant 0 : i32
    %c0_i32_2 = arith.constant 0 : i32
    return %arg0, %c0_i32, %c0_i32_0, %c0_i32_1 : i32, i32, i32, i32
  }
  func.func @transform_1(%arg0: i32) -> (i32, i32, i32) {
    %c0_i32 = arith.constant 0 : i32
    %c0_i32_0 = arith.constant 0 : i32
    %c0_i32_1 = arith.constant 0 : i32
    %c0_i32_2 = arith.constant 0 : i32
    return %c0_i32, %c0_i32_0, %c0_i32_1 : i32, i32, i32
  }
  func.func @transform_2(%arg0: i32) -> (i32, i32) {
    %c0_i32 = arith.constant 0 : i32
    %c0_i32_0 = arith.constant 0 : i32
    %c0_i32_1 = arith.constant 0 : i32
    return %c0_i32, %c0_i32_0 : i32, i32
  }
  func.func @transform_3(%arg0: i32) -> (i32, i32, i32, i32) {
    %c0_i32 = arith.constant 0 : i32
    %c0_i32_0 = arith.constant 0 : i32
    %c0_i32_1 = arith.constant 0 : i32
    %c0_i32_2 = arith.constant 0 : i32
    return %arg0, %c0_i32, %c0_i32_0, %c0_i32_1 : i32, i32, i32, i32
  }
}

module attributes {stable_mosaic.version = 11 : i64} {
  func.func @_linear_kernel(%arg0: i32, %arg1: i32, %arg2: memref<2x1024xbf16, #tpu.memory_space<vmem>>, %arg3: memref<1024x2048xbf16, #tpu.memory_space<vmem>>, %arg4: memref<1x2048xf32, #tpu.memory_space<vmem>>, %arg5: memref<2x2048xf32, #tpu.memory_space<vmem>>, %arg6: memref<2x2048xf32, #tpu.memory_space<vmem>>) attributes {dimension_semantics = [#tpu.dimension_semantics<parallel>, #tpu.dimension_semantics<arbitrary>], iteration_bounds = array<i64: 2, 21>, scalar_prefetch = 0 : i64, scratch_operands = 1 : i64, tpu.core_type = #tpu.core_type<tc>, window_params = [{transform_indices = @transform_0, window_bounds = array<i64: 2, 1024>}, {transform_indices = @transform_1, window_bounds = array<i64: 1024, 2048>}, {transform_indices = @transform_2, window_bounds = array<i64: 1, 2048>}, {transform_indices = @transform_3, window_bounds = array<i64: 2, 2048>}]} {
    %c0_i32 = arith.constant 0 : i32
    %0 = arith.cmpi eq, %arg1, %c0_i32 : i32
    %1 = arith.extui %0 : i1 to i32
    %c0_i32_0 = arith.constant 0 : i32
    %2 = arith.cmpi ne, %1, %c0_i32_0 : i32
    scf.if %2 {
      %cst_9 = arith.constant 0.000000e+00 : f32
      %12 = vector.broadcast %cst_9 : f32 to vector<2x2048xf32>
      %c0_10 = arith.constant 0 : index
      %c0_11 = arith.constant 0 : index
      %13 = vector.load %arg6[%c0_10, %c0_11] : memref<2x2048xf32, #tpu.memory_space<vmem>>, vector<2x2048xf32>
      tpu.vector_store %arg6[%c0_10, %c0_11], %12 {strides = array<i32>} : memref<2x2048xf32, #tpu.memory_space<vmem>>, vector<2x2048xf32>,
    } else {
    }
    %c0 = arith.constant 0 : index
    %c0_1 = arith.constant 0 : index
    %3 = vector.load %arg6[%c0, %c0_1] : memref<2x2048xf32, #tpu.memory_space<vmem>>, vector<2x2048xf32>
    %c0_2 = arith.constant 0 : index
    %c0_3 = arith.constant 0 : index
    %4 = vector.load %arg2[%c0_2, %c0_3] : memref<2x1024xbf16, #tpu.memory_space<vmem>>, vector<2x1024xbf16>
    %c0_4 = arith.constant 0 : index
    %c0_5 = arith.constant 0 : index
    %5 = vector.load %arg3[%c0_4, %c0_5] : memref<1024x2048xbf16, #tpu.memory_space<vmem>>, vector<1024x2048xbf16>
    %cst = arith.constant dense<0.000000e+00> : vector<2x2048xf32>
    %6 = tpu.matmul %4, %5, %cst {dimension_numbers = #tpu.dot_dimension_numbers<[1], [0], [0], [1], [0, 0, 1, 1], [], []>} : vector<2x1024xbf16>, vector<1024x2048xbf16>, vector<2x2048xf32> -> vector<2x2048xf32>
    %7 = arith.addf %3, %6 : vector<2x2048xf32>
    %c0_6 = arith.constant 0 : index
    %c0_7 = arith.constant 0 : index
    %8 = vector.load %arg6[%c0_6, %c0_7] : memref<2x2048xf32, #tpu.memory_space<vmem>>, vector<2x2048xf32>
    tpu.vector_store %arg6[%c0_6, %c0_7], %7 {strides = array<i32>} : memref<2x2048xf32, #tpu.memory_space<vmem>>, vector<2x2048xf32>,
    %c20_i32 = arith.constant 20 : i32
    %9 = arith.cmpi eq, %arg1, %c20_i32 : i32
    %10 = arith.extui %9 : i1 to i32
    %c0_i32_8 = arith.constant 0 : i32
    %11 = arith.cmpi ne, %10, %c0_i32_8 : i32
    scf.if %11 {
      %c0_9 = arith.constant 0 : index
      %c0_10 = arith.constant 0 : index
      %12 = vector.load %arg6[%c0_9, %c0_10] : memref<2x2048xf32, #tpu.memory_space<vmem>>, vector<2x2048xf32>
      %c0_11 = arith.constant 0 : index
      %c0_12 = arith.constant 0 : index
      %13 = vector.load %arg4[%c0_11, %c0_12] : memref<1x2048xf32, #tpu.memory_space<vmem>>, vector<1x2048xf32>
      %14 = vector.broadcast %13 : vector<1x2048xf32> to vector<2x2048xf32>
      %15 = arith.addf %12, %14 : vector<2x2048xf32>
      %cst_13 = arith.constant 0.000000e+00 : f32
      %16 = vector.broadcast %cst_13 : f32 to vector<2x2048xf32>
      %17 = arith.maximumf %15, %16 : vector<2x2048xf32>
      %c0_14 = arith.constant 0 : index
      %c0_15 = arith.constant 0 : index
      %18 = vector.load %arg5[%c0_14, %c0_15] : memref<2x2048xf32, #tpu.memory_space<vmem>>, vector<2x2048xf32>
      tpu.vector_store %arg5[%c0_14, %c0_15], %17 {strides = array<i32>} : memref<2x2048xf32, #tpu.memory_space<vmem>>, vector<2x2048xf32>,
    } else {
    }
    return
  }
  func.func @transform_0(%arg0: i32, %arg1: i32) -> (i32, i32) {
    %c0_i32 = arith.constant 0 : i32
    %c0_i32_0 = arith.constant 0 : i32
    return %c0_i32, %arg1 : i32, i32
  }
  func.func @transform_1(%arg0: i32, %arg1: i32) -> (i32, i32) {
    %c0_i32 = arith.constant 0 : i32
    return %arg1, %arg0 : i32, i32
  }
  func.func @transform_2(%arg0: i32, %arg1: i32) -> (i32, i32) {
    %c0_i32 = arith.constant 0 : i32
    %c0_i32_0 = arith.constant 0 : i32
    return %c0_i32, %arg0 : i32, i32
  }
  func.func @transform_3(%arg0: i32, %arg1: i32) -> (i32, i32) {
    %c0_i32 = arith.constant 0 : i32
    %c0_i32_0 = arith.constant 0 : i32
    return %c0_i32, %arg0 : i32, i32
  }
}

module attributes {stable_mosaic.version = 11 : i64} {
  func.func @_linear_kernel(%arg0: i32, %arg1: i32, %arg2: memref<2x1024xbf16, #tpu.memory_space<vmem>>, %arg3: memref<1024x256xbf16, #tpu.memory_space<vmem>>, %arg4: memref<1x256xf32, #tpu.memory_space<vmem>>, %arg5: memref<2x256xf32, #tpu.memory_space<vmem>>, %arg6: memref<2x256xf32, #tpu.memory_space<vmem>>) attributes {dimension_semantics = [#tpu.dimension_semantics<parallel>, #tpu.dimension_semantics<arbitrary>], iteration_bounds = array<i64: 2, 4>, scalar_prefetch = 0 : i64, scratch_operands = 1 : i64, tpu.core_type = #tpu.core_type<tc>, window_params = [{transform_indices = @transform_0, window_bounds = array<i64: 2, 1024>}, {transform_indices = @transform_1, window_bounds = array<i64: 1024, 256>}, {transform_indices = @transform_2, window_bounds = array<i64: 1, 256>}, {transform_indices = @transform_3, window_bounds = array<i64: 2, 256>}]} {
    %c0_i32 = arith.constant 0 : i32
    %0 = arith.cmpi eq, %arg1, %c0_i32 : i32
    %1 = arith.extui %0 : i1 to i32
    %c0_i32_0 = arith.constant 0 : i32
    %2 = arith.cmpi ne, %1, %c0_i32_0 : i32
    scf.if %2 {
      %cst_9 = arith.constant 0.000000e+00 : f32
      %12 = vector.broadcast %cst_9 : f32 to vector<2x256xf32>
      %c0_10 = arith.constant 0 : index
      %c0_11 = arith.constant 0 : index
      %13 = vector.load %arg6[%c0_10, %c0_11] : memref<2x256xf32, #tpu.memory_space<vmem>>, vector<2x256xf32>
      tpu.vector_store %arg6[%c0_10, %c0_11], %12 {strides = array<i32>} : memref<2x256xf32, #tpu.memory_space<vmem>>, vector<2x256xf32>,
    } else {
    }
    %c0 = arith.constant 0 : index
    %c0_1 = arith.constant 0 : index
    %3 = vector.load %arg6[%c0, %c0_1] : memref<2x256xf32, #tpu.memory_space<vmem>>, vector<2x256xf32>
    %c0_2 = arith.constant 0 : index
    %c0_3 = arith.constant 0 : index
    %4 = vector.load %arg2[%c0_2, %c0_3] : memref<2x1024xbf16, #tpu.memory_space<vmem>>, vector<2x1024xbf16>
    %c0_4 = arith.constant 0 : index
    %c0_5 = arith.constant 0 : index
    %5 = vector.load %arg3[%c0_4, %c0_5] : memref<1024x256xbf16, #tpu.memory_space<vmem>>, vector<1024x256xbf16>
    %cst = arith.constant dense<0.000000e+00> : vector<2x256xf32>
    %6 = tpu.matmul %4, %5, %cst {dimension_numbers = #tpu.dot_dimension_numbers<[1], [0], [0], [1], [0, 0, 1, 1], [], []>} : vector<2x1024xbf16>, vector<1024x256xbf16>, vector<2x256xf32> -> vector<2x256xf32>
    %7 = arith.addf %3, %6 : vector<2x256xf32>
    %c0_6 = arith.constant 0 : index
    %c0_7 = arith.constant 0 : index
    %8 = vector.load %arg6[%c0_6, %c0_7] : memref<2x256xf32, #tpu.memory_space<vmem>>, vector<2x256xf32>
    tpu.vector_store %arg6[%c0_6, %c0_7], %7 {strides = array<i32>} : memref<2x256xf32, #tpu.memory_space<vmem>>, vector<2x256xf32>,
    %c3_i32 = arith.constant 3 : i32
    %9 = arith.cmpi eq, %arg1, %c3_i32 : i32
    %10 = arith.extui %9 : i1 to i32
    %c0_i32_8 = arith.constant 0 : i32
    %11 = arith.cmpi ne, %10, %c0_i32_8 : i32
    scf.if %11 {
      %c0_9 = arith.constant 0 : index
      %c0_10 = arith.constant 0 : index
      %12 = vector.load %arg6[%c0_9, %c0_10] : memref<2x256xf32, #tpu.memory_space<vmem>>, vector<2x256xf32>
      %c0_11 = arith.constant 0 : index
      %c0_12 = arith.constant 0 : index
      %13 = vector.load %arg4[%c0_11, %c0_12] : memref<1x256xf32, #tpu.memory_space<vmem>>, vector<1x256xf32>
      %14 = vector.broadcast %13 : vector<1x256xf32> to vector<2x256xf32>
      %15 = arith.addf %12, %14 : vector<2x256xf32>
      %cst_13 = arith.constant 0.000000e+00 : f32
      %16 = vector.broadcast %cst_13 : f32 to vector<2x256xf32>
      %17 = arith.maximumf %15, %16 : vector<2x256xf32>
      %c0_14 = arith.constant 0 : index
      %c0_15 = arith.constant 0 : index
      %18 = vector.load %arg5[%c0_14, %c0_15] : memref<2x256xf32, #tpu.memory_space<vmem>>, vector<2x256xf32>
      tpu.vector_store %arg5[%c0_14, %c0_15], %17 {strides = array<i32>} : memref<2x256xf32, #tpu.memory_space<vmem>>, vector<2x256xf32>,
    } else {
    }
    return
  }
  func.func @transform_0(%arg0: i32, %arg1: i32) -> (i32, i32) {
    %c0_i32 = arith.constant 0 : i32
    %c0_i32_0 = arith.constant 0 : i32
    return %c0_i32, %arg1 : i32, i32
  }
  func.func @transform_1(%arg0: i32, %arg1: i32) -> (i32, i32) {
    %c0_i32 = arith.constant 0 : i32
    return %arg1, %arg0 : i32, i32
  }
  func.func @transform_2(%arg0: i32, %arg1: i32) -> (i32, i32) {
    %c0_i32 = arith.constant 0 : i32
    %c0_i32_0 = arith.constant 0 : i32
    return %c0_i32, %arg0 : i32, i32
  }
  func.func @transform_3(%arg0: i32, %arg1: i32) -> (i32, i32) {
    %c0_i32 = arith.constant 0 : i32
    %c0_i32_0 = arith.constant 0 : i32
    return %c0_i32, %arg0 : i32, i32
  }
}

module attributes {stable_mosaic.version = 11 : i64} {
  func.func @_linear_kernel(%arg0: i32, %arg1: i32, %arg2: memref<2x512xf32, #tpu.memory_space<vmem>>, %arg3: memref<512x128xf32, #tpu.memory_space<vmem>>, %arg4: memref<1x128xf32, #tpu.memory_space<vmem>>, %arg5: memref<2x128xf32, #tpu.memory_space<vmem>>, %arg6: memref<2x128xf32, #tpu.memory_space<vmem>>) attributes {dimension_semantics = [#tpu.dimension_semantics<parallel>, #tpu.dimension_semantics<arbitrary>], iteration_bounds = array<i64: 1, 1>, scalar_prefetch = 0 : i64, scratch_operands = 1 : i64, tpu.core_type = #tpu.core_type<tc>, window_params = [{transform_indices = @transform_0, window_bounds = array<i64: 2, 512>}, {transform_indices = @transform_1, window_bounds = array<i64: 512, 128>}, {transform_indices = @transform_2, window_bounds = array<i64: 1, 128>}, {transform_indices = @transform_3, window_bounds = array<i64: 2, 128>}]} {
    %c0_i32 = arith.constant 0 : i32
    %0 = arith.cmpi eq, %arg1, %c0_i32 : i32
    %1 = arith.extui %0 : i1 to i32
    %c0_i32_0 = arith.constant 0 : i32
    %2 = arith.cmpi ne, %1, %c0_i32_0 : i32
    scf.if %2 {
      %cst_10 = arith.constant 0.000000e+00 : f32
      %12 = vector.broadcast %cst_10 : f32 to vector<2x128xf32>
      %c0_11 = arith.constant 0 : index
      %c0_12 = arith.constant 0 : index
      %13 = vector.load %arg6[%c0_11, %c0_12] : memref<2x128xf32, #tpu.memory_space<vmem>>, vector<2x128xf32>
      tpu.vector_store %arg6[%c0_11, %c0_12], %12 {strides = array<i32>} : memref<2x128xf32, #tpu.memory_space<vmem>>, vector<2x128xf32>,
    } else {
    }
    %c0 = arith.constant 0 : index
    %c0_1 = arith.constant 0 : index
    %3 = vector.load %arg6[%c0, %c0_1] : memref<2x128xf32, #tpu.memory_space<vmem>>, vector<2x128xf32>
    %c0_2 = arith.constant 0 : index
    %c0_3 = arith.constant 0 : index
    %4 = vector.load %arg2[%c0_2, %c0_3] : memref<2x512xf32, #tpu.memory_space<vmem>>, vector<2x512xf32>
    %c0_4 = arith.constant 0 : index
    %c0_5 = arith.constant 0 : index
    %5 = vector.load %arg3[%c0_4, %c0_5] : memref<512x128xf32, #tpu.memory_space<vmem>>, vector<512x128xf32>
    %cst = arith.constant dense<0.000000e+00> : vector<2x128xf32>
    %6 = tpu.matmul %4, %5, %cst {dimension_numbers = #tpu.dot_dimension_numbers<[1], [0], [0], [1], [0, 0, 1, 1], [], []>} : vector<2x512xf32>, vector<512x128xf32>, vector<2x128xf32> -> vector<2x128xf32>
    %7 = arith.addf %3, %6 : vector<2x128xf32>
    %c0_6 = arith.constant 0 : index
    %c0_7 = arith.constant 0 : index
    %8 = vector.load %arg6[%c0_6, %c0_7] : memref<2x128xf32, #tpu.memory_space<vmem>>, vector<2x128xf32>
    tpu.vector_store %arg6[%c0_6, %c0_7], %7 {strides = array<i32>} : memref<2x128xf32, #tpu.memory_space<vmem>>, vector<2x128xf32>,
    %c0_i32_8 = arith.constant 0 : i32
    %9 = arith.cmpi eq, %arg1, %c0_i32_8 : i32
    %10 = arith.extui %9 : i1 to i32
    %c0_i32_9 = arith.constant 0 : i32
    %11 = arith.cmpi ne, %10, %c0_i32_9 : i32
    scf.if %11 {
      %c0_10 = arith.constant 0 : index
      %c0_11 = arith.constant 0 : index
      %12 = vector.load %arg6[%c0_10, %c0_11] : memref<2x128xf32, #tpu.memory_space<vmem>>, vector<2x128xf32>
      %c0_12 = arith.constant 0 : index
      %c0_13 = arith.constant 0 : index
      %13 = vector.load %arg4[%c0_12, %c0_13] : memref<1x128xf32, #tpu.memory_space<vmem>>, vector<1x128xf32>
      %14 = vector.broadcast %13 : vector<1x128xf32> to vector<2x128xf32>
      %15 = arith.addf %12, %14 : vector<2x128xf32>
      %cst_14 = arith.constant 0.000000e+00 : f32
      %16 = vector.broadcast %cst_14 : f32 to vector<2x128xf32>
      %17 = arith.maximumf %15, %16 : vector<2x128xf32>
      %c0_15 = arith.constant 0 : index
      %c0_16 = arith.constant 0 : index
      %18 = vector.load %arg5[%c0_15, %c0_16] : memref<2x128xf32, #tpu.memory_space<vmem>>, vector<2x128xf32>
      tpu.vector_store %arg5[%c0_15, %c0_16], %17 {strides = array<i32>} : memref<2x128xf32, #tpu.memory_space<vmem>>, vector<2x128xf32>,
    } else {
    }
    return
  }
  func.func @transform_0(%arg0: i32, %arg1: i32) -> (i32, i32) {
    %c0_i32 = arith.constant 0 : i32
    %c0_i32_0 = arith.constant 0 : i32
    return %c0_i32, %arg1 : i32, i32
  }
  func.func @transform_1(%arg0: i32, %arg1: i32) -> (i32, i32) {
    %c0_i32 = arith.constant 0 : i32
    return %arg1, %arg0 : i32, i32
  }
  func.func @transform_2(%arg0: i32, %arg1: i32) -> (i32, i32) {
    %c0_i32 = arith.constant 0 : i32
    %c0_i32_0 = arith.constant 0 : i32
    return %c0_i32, %arg0 : i32, i32
  }
  func.func @transform_3(%arg0: i32, %arg1: i32) -> (i32, i32) {
    %c0_i32 = arith.constant 0 : i32
    %c0_i32_0 = arith.constant 0 : i32
    return %c0_i32, %arg0 : i32, i32
  }
}

module attributes {stable_mosaic.version = 11 : i64} {
  func.func @_linear_kernel(%arg0: i32, %arg1: i32, %arg2: memref<2x128xf32, #tpu.memory_space<vmem>>, %arg3: memref<128x128xf32, #tpu.memory_space<vmem>>, %arg4: memref<1x128xf32, #tpu.memory_space<vmem>>, %arg5: memref<2x128xf32, #tpu.memory_space<vmem>>, %arg6: memref<2x128xf32, #tpu.memory_space<vmem>>) attributes {dimension_semantics = [#tpu.dimension_semantics<parallel>, #tpu.dimension_semantics<arbitrary>], iteration_bounds = array<i64: 1, 1>, scalar_prefetch = 0 : i64, scratch_operands = 1 : i64, tpu.core_type = #tpu.core_type<tc>, window_params = [{transform_indices = @transform_0, window_bounds = array<i64: 2, 128>}, {transform_indices = @transform_1, window_bounds = array<i64: 128, 128>}, {transform_indices = @transform_2, window_bounds = array<i64: 1, 128>}, {transform_indices = @transform_3, window_bounds = array<i64: 2, 128>}]} {
    %c0_i32 = arith.constant 0 : i32
    %0 = arith.cmpi eq, %arg1, %c0_i32 : i32
    %1 = arith.extui %0 : i1 to i32
    %c0_i32_0 = arith.constant 0 : i32
    %2 = arith.cmpi ne, %1, %c0_i32_0 : i32
    scf.if %2 {
      %cst_10 = arith.constant 0.000000e+00 : f32
      %12 = vector.broadcast %cst_10 : f32 to vector<2x128xf32>
      %c0_11 = arith.constant 0 : index
      %c0_12 = arith.constant 0 : index
      %13 = vector.load %arg6[%c0_11, %c0_12] : memref<2x128xf32, #tpu.memory_space<vmem>>, vector<2x128xf32>
      tpu.vector_store %arg6[%c0_11, %c0_12], %12 {strides = array<i32>} : memref<2x128xf32, #tpu.memory_space<vmem>>, vector<2x128xf32>,
    } else {
    }
    %c0 = arith.constant 0 : index
    %c0_1 = arith.constant 0 : index
    %3 = vector.load %arg6[%c0, %c0_1] : memref<2x128xf32, #tpu.memory_space<vmem>>, vector<2x128xf32>
    %c0_2 = arith.constant 0 : index
    %c0_3 = arith.constant 0 : index
    %4 = vector.load %arg2[%c0_2, %c0_3] : memref<2x128xf32, #tpu.memory_space<vmem>>, vector<2x128xf32>
    %c0_4 = arith.constant 0 : index
    %c0_5 = arith.constant 0 : index
    %5 = vector.load %arg3[%c0_4, %c0_5] : memref<128x128xf32, #tpu.memory_space<vmem>>, vector<128x128xf32>
    %cst = arith.constant dense<0.000000e+00> : vector<2x128xf32>
    %6 = tpu.matmul %4, %5, %cst {dimension_numbers = #tpu.dot_dimension_numbers<[1], [0], [0], [1], [0, 0, 1, 1], [], []>} : vector<2x128xf32>, vector<128x128xf32>, vector<2x128xf32> -> vector<2x128xf32>
    %7 = arith.addf %3, %6 : vector<2x128xf32>
    %c0_6 = arith.constant 0 : index
    %c0_7 = arith.constant 0 : index
    %8 = vector.load %arg6[%c0_6, %c0_7] : memref<2x128xf32, #tpu.memory_space<vmem>>, vector<2x128xf32>
    tpu.vector_store %arg6[%c0_6, %c0_7], %7 {strides = array<i32>} : memref<2x128xf32, #tpu.memory_space<vmem>>, vector<2x128xf32>,
    %c0_i32_8 = arith.constant 0 : i32
    %9 = arith.cmpi eq, %arg1, %c0_i32_8 : i32
    %10 = arith.extui %9 : i1 to i32
    %c0_i32_9 = arith.constant 0 : i32
    %11 = arith.cmpi ne, %10, %c0_i32_9 : i32
    scf.if %11 {
      %c0_10 = arith.constant 0 : index
      %c0_11 = arith.constant 0 : index
      %12 = vector.load %arg6[%c0_10, %c0_11] : memref<2x128xf32, #tpu.memory_space<vmem>>, vector<2x128xf32>
      %c0_12 = arith.constant 0 : index
      %c0_13 = arith.constant 0 : index
      %13 = vector.load %arg4[%c0_12, %c0_13] : memref<1x128xf32, #tpu.memory_space<vmem>>, vector<1x128xf32>
      %14 = vector.broadcast %13 : vector<1x128xf32> to vector<2x128xf32>
      %15 = arith.addf %12, %14 : vector<2x128xf32>
      %c0_14 = arith.constant 0 : index
      %c0_15 = arith.constant 0 : index
      %16 = vector.load %arg5[%c0_14, %c0_15] : memref<2x128xf32, #tpu.memory_space<vmem>>, vector<2x128xf32>
      tpu.vector_store %arg5[%c0_14, %c0_15], %15 {strides = array<i32>} : memref<2x128xf32, #tpu.memory_space<vmem>>, vector<2x128xf32>,
    } else {
    }
    return
  }
  func.func @transform_0(%arg0: i32, %arg1: i32) -> (i32, i32) {
    %c0_i32 = arith.constant 0 : i32
    %c0_i32_0 = arith.constant 0 : i32
    return %c0_i32, %arg1 : i32, i32
  }
  func.func @transform_1(%arg0: i32, %arg1: i32) -> (i32, i32) {
    %c0_i32 = arith.constant 0 : i32
    return %arg1, %arg0 : i32, i32
  }
  func.func @transform_2(%arg0: i32, %arg1: i32) -> (i32, i32) {
    %c0_i32 = arith.constant 0 : i32
    %c0_i32_0 = arith.constant 0 : i32
    return %c0_i32, %arg0 : i32, i32
  }
  func.func @transform_3(%arg0: i32, %arg1: i32) -> (i32, i32) {
    %c0_i32 = arith.constant 0 : i32
    %c0_i32_0 = arith.constant 0 : i32
    return %c0_i32, %arg0 : i32, i32
  }
}

</mosaic_0001>

<bundles_post_ra>
// kernel: cnn_forward.7
= control target key start
LH: loop header
LB: loop body
LE: loop exit
PB: predicated region body
PF: predicated region fallthrough
CT: control target
= control target key end

     0   :  { %s1095_s12 = smov 0   ;;  %s1294_s0 = inlined_call_operand.vmem [shape: f32[2,128,9,126], index: 0, kind: input, shape index: {}]   ;;  %s1295_s1 = inlined_call_operand.vmem [shape: f32[3,24,9], index: 1, kind: input, shape index: {}]   ;;  %s1296_s2 = inlined_call_operand.vmem [shape: f32[24,1], index: 2, kind: input, shape index: {}]   ;;  %s1297_s3 = inlined_call_operand.vmem [shape: f32[2,63,24,63], index: 3, kind: output, shape index: {}]  }
   0x1 LB: > { %s865_s13 = sadd.s32 4294967295, %s1065_s12   ;;  %p869_p0 = scmp.ge.s32.totalorder %s1065_s12, 1  ;;  %s1065_s12 = sphi %s1095_s12, %s13_s12  }
   0x2   : > { %p137_p1 = scmp.lt.s32.totalorder %s1065_s12, 3 }
   0x4   : > { %p138_p2 = pnand %p869_p0, %p137_p1 }
   0x5   : > { %p161_p3 = scmp.lt.s32.totalorder (!%p138_p2), %s865_s13, 1  ;;  %s1173_s21 = smov (!%p138_p2), 0  }
   0x6   : > { %141 = sbr.rel (%p138_p2) target bundleno = 500 (0x1f4), region = 32 }
   0xb   : > { %v182_v0 = vld [vmem:[%s1296_s2] sm:$0xff]  ;;  %v184_v1 = vld [vmem:[%s1296_s2 + $0x10] sm:$0xff]  ;;  %v1071_v2 = vmov 0   ;;  %v183_v3 = vld [vmem:[%s1296_s2 + $0x8] sm:$0xff]  ;;  %s1299_s13 = smov (!%p161_p3, %s865_s13), 1 }
   0xc   : > { %1053 = vset.pattern.permute.xlu0 %v1071_v2  ;;  %1054 = vset.pattern.permute.xlu1 %v1071_v2  ;;  %v1115_v4 = vld [vmem:[%s1295_s1] sm:$0xff]  ;;  %v1120_v5 = vld [vmem:[%s1295_s1 + $0x8] sm:$0xff]  ;;  %v1125_v6 = vld [vmem:[%s1295_s1 + $0x10] sm:$0xff]  ;;  %s919_s11 = sshll.u32 %s1299_s13, 11  ;;  %s1032_s14 = smul.u32 1512, %s1299_s13 }
   0xd   : > { %187 = vperm.xlu0 %1053, %v182_v0   ;;  %197 = vperm.xlu1 %1054, %v184_v1   ;;  %v1130_v7 = vld [vmem:[%s1295_s1 + $0x18] sm:$0xff]  ;;  %v1135_v8 = vld [vmem:[%s1295_s1 + $0x20] sm:$0xff]  ;;  %v1140_v9 = vld [vmem:[%s1295_s1 + $0x28] sm:$0xff]  ;;  %s1160_s17 = scalar_lea.vmem %s1294_s0, %s919_s11 }
   0xe   : > { %v1145_v10 = vld [vmem:[%s1295_s1 + $0x30] sm:$0xff]  ;;  %v1150_v11 = vld [vmem:[%s1295_s1 + $0x38] sm:$0xff]  ;;  %v1155_v12 = vld [vmem:[%s1295_s1 + $0x40] sm:$0xff]  ;;  %s1165_s20 = scalar_lea.vmem %s1297_s3, %s1032_s14 }
  0x11   : > { %192 = vperm.xlu0 %1053, %v183_v3  }
  0x88   : > { %v1167_v13 = vpop.permute.xlu0 %187  ;;  %v1169_v14 = vpop.permute.xlu1 %197 }
  0x8c   : > { %v1171_v15 = vpop.permute.xlu0 %192 }
  0x8d LB: >> { %v1072_v16 = vmov 0.0   ;;  %s920_s13 = sshll.u32 %s1069_s21, 5  ;;  %vm226_vm0 = vcmask 1040384   ;;  %vm1073_vm1 = vmmov 0   ;;  %vm216_vm2 = vcmask 72704   ;;  %s1074_s23 = smov 65   ;;  %s1069_s21 = sphi %s1173_s21, %s205_s21  }
  0x8e   : >> { %954 = vmatprep.subr.mxu0 %v1072_v16  ;;  %967 = vmatprep.subr.mxu1 %v1072_v16  ;;  %s1186_s22 = scalar_lea.vmem %s1160_s17, %s920_s13  ;;  %s783_s24 = smul.u32 24, %s1069_s21  ;;  %vm785_vm3 = vcmask 515072  }
  0x8f   : >> { %958 = vmatprep.mubr.msk.f32.mxu0 %vm1073_vm1, %v1072_v16  ;;  %971 = vmatprep.mubr.msk.f32.mxu1 %vm1073_vm1, %v1072_v16  ;;  %v884_v17 = vld [vmem:[%s1186_s22 + $0x18] sm:$0x1]  ;;  %v210_v18 = vld [vmem:[%s1186_s22 + $0x8] sm:$0x1]  ;;  %v883_v19 = vld [vmem:[%s1186_s22 + $0x10] sm:$0xff]  ;;  %s205_s21 = sadd.s32 1, %s1069_s21  }
  0x90   : >> { %955 = vmatpush3.msk.msra.mxu0 %vm226_vm0, %v884_v17  ;;  %968 = vmatpush3.msk.msra.mxu1 %vm226_vm0, %v210_v18  ;;  %v209_v20 = vld [vmem:[%s1186_s22] sm:$0xff]  ;;  %v896_v21 = vld [vmem:[%s1186_s22 + $0x28] sm:$0x1]  ;;  %v912_v23 = vld [vmem:[%s1186_s22 + $0x38] sm:$0x1]  ;;  %s784_s25 = scalar_lea.vmem %s1165_s20, %s783_s24  ;;  %p202_p4 = scmp.ge.s32.totalorder %s205_s21, 63  }
  0x91   : >> { %956 = vmatprep.subr.mxu0 %v1072_v16  ;;  %969 = vmatprep.subr.mxu1 %v1072_v16  ;;  %v895_v22 = vld [vmem:[%s1186_s22 + $0x20] sm:$0xff]  ;;  %v911_v24 = vld [vmem:[%s1186_s22 + $0x30] sm:$0xff] }
  0x92   : >> { %957 = vmatpush3.msra.mxu0 %v883_v19  ;;  %970 = vmatpush3.msra.mxu1 %v209_v20 }
  0x93   : >> { %959 = vmatmul.mubr.msk.f32.vlgmr.msra.gmra.mxu0 %vm216_vm2, %v1130_v7  ;;  %980 = vmatprep.subr.mxu0 %v1072_v16 }
  0x94   : >> { %972 = vmatmul.mubr.msk.f32.vlgmr.msra.gmra.mxu1 %vm216_vm2, %v1115_v4  ;;  %981 = vmatpush3.msk.msra.mxu0 %vm226_vm0, %v896_v21 }
  0x95   : >> { %993 = vmatprep.subr.mxu1 %v1072_v16  ;;  %961 = vmatprep.mubr.msk.f32.mxu0 %vm1073_vm1, %v1072_v16 }
  0x96   : >> { %994 = vmatpush3.msk.msra.mxu1 %vm226_vm0, %v896_v21  ;;  %974 = vmatprep.mubr.msk.f32.mxu1 %vm1073_vm1, %v1072_v16 }
  0x97   : >> { %962 = vmatmul.mubr.msk.f32.gmra.mxu0 %vm216_vm2, %v1135_v8  ;;  %982 = vmatprep.subr.mxu0 %v1072_v16 }
  0x98   : >> { %975 = vmatmul.mubr.msk.f32.gmra.mxu1 %vm216_vm2, %v1120_v5  ;;  %964 = vmatprep.mubr.msk.f32.mxu0 %vm1073_vm1, %v1072_v16 }
  0x99   : >> { %983 = vmatpush3.msra.mxu0 %v895_v22  ;;  %977 = vmatprep.mubr.msk.f32.mxu1 %vm1073_vm1, %v1072_v16 }
  0x9a   : >> { %995 = vmatprep.subr.mxu1 %v1072_v16  ;;  %1006 = vmatprep.subr.mxu0 %v1072_v16 }
  0x9b   : >> { %965 = vmatmul.mubr.msk.f32.gmra.mxu0 %vm216_vm2, %v1140_v9  ;;  %996 = vmatpush3.msra.mxu1 %v895_v22 }
  0x9c   : >> { %978 = vmatmul.mubr.msk.f32.gmra.mxu1 %vm216_vm2, %v1125_v6  ;;  %984 = vmatprep.mubr.msk.f32.mxu0 %vm1073_vm1, %v1072_v16 }
  0x9d   : >> { %997 = vmatprep.mubr.msk.f32.mxu1 %vm1073_vm1, %v1072_v16  ;;  %1019 = vmatprep.subr.mxu1 %v1072_v16 }
  0x9f   : >> { %985 = vmatmul.mubr.msk.f32.vlgmr.msra.gmra.mxu0 %vm216_vm2, %v1145_v10 }
  0xa0   : >> { %998 = vmatmul.mubr.msk.f32.vlgmr.msra.gmra.mxu1 %vm216_vm2, %v1130_v7  ;;  %1007 = vmatpush3.msk.msra.mxu0 %vm226_vm0, %v884_v17 }
  0xa1   : >> { %987 = vmatprep.mubr.msk.f32.mxu0 %vm1073_vm1, %v1072_v16  ;;  %1020 = vmatpush3.msk.msra.mxu1 %vm226_vm0, %v912_v23 }
  0xa2   : >> { %1000 = vmatprep.mubr.msk.f32.mxu1 %vm1073_vm1, %v1072_v16  ;;  %1008 = vmatprep.subr.mxu0 %v1072_v16 }
  0xa3   : >> { %988 = vmatmul.mubr.msk.f32.gmra.mxu0 %vm216_vm2, %v1150_v11  ;;  %1021 = vmatprep.subr.mxu1 %v1072_v16 }
  0xa4   : >> { %1001 = vmatmul.mubr.msk.f32.gmra.mxu1 %vm216_vm2, %v1135_v8  ;;  %990 = vmatprep.mubr.msk.f32.mxu0 %vm1073_vm1, %v1072_v16 }
  0xa5   : >> { %1009 = vmatpush3.msra.mxu0 %v883_v19  ;;  %1003 = vmatprep.mubr.msk.f32.mxu1 %vm1073_vm1, %v1072_v16 }
  0xa6   : >> { %1022 = vmatpush3.msra.mxu1 %v911_v24 }
  0xa7   : >> { %991 = vmatmul.mubr.msk.f32.gmra.mxu0 %vm216_vm2, %v1155_v12 }
  0xa8   : >> { %1004 = vmatmul.mubr.msk.f32.gmra.mxu1 %vm216_vm2, %v1140_v9  ;;  %1010 = vmatprep.mubr.msk.f32.mxu0 %vm1073_vm1, %v1072_v16 }
  0xa9   : >> { %1023 = vmatprep.mubr.msk.f32.mxu1 %vm1073_vm1, %v1072_v16 }
  0xab   : >> { %1011 = vmatmul.mubr.msk.f32.vlgmr.msra.gmra.mxu0 %vm216_vm2, %v1115_v4 }
  0xac   : >> { %1024 = vmatmul.mubr.msk.f32.vlgmr.msra.gmra.mxu1 %vm216_vm2, %v1145_v10  ;;  %1013 = vmatprep.mubr.msk.f32.mxu0 %vm1073_vm1, %v1072_v16 }
  0xad   : >> { %1026 = vmatprep.mubr.msk.f32.mxu1 %vm1073_vm1, %v1072_v16 }
  0xaf   : >> { %1014 = vmatmul.mubr.msk.f32.gmra.mxu0 %vm216_vm2, %v1120_v5 }
  0xb0   : >> { %1027 = vmatmul.mubr.msk.f32.gmra.mxu1 %vm216_vm2, %v1150_v11  ;;  %1016 = vmatprep.mubr.msk.f32.mxu0 %vm1073_vm1, %v1072_v16 }
  0xb1   : >> { %1029 = vmatprep.mubr.msk.f32.mxu1 %vm1073_vm1, %v1072_v16 }
  0xb3   : >> { %1017 = vmatmul.mubr.msk.f32.gmra.mxu0 %vm216_vm2, %v1125_v6 }
  0xb4   : >> { %1030 = vmatmul.mubr.msk.f32.gmra.mxu1 %vm216_vm2, %v1155_v12 }
 0x153   : >> { %v296_v25 = vpop.f32.mrf.mxu0 }
 0x154   : >> { %v388_v26 = vpop.f32.mrf.mxu1 }
 0x155   : >> { %v960_v27 = vpop.f32.mrf.mxu0  ;;  %v389_v45 = vadd.f32 %v388_v26, %v296_v25 }
 0x156   : >> { %v973_v28 = vpop.f32.mrf.mxu1 }
 0x157   : >> { %v301_v29 = vpop.f32.mrf.mxu0 }
 0x158   : >> { %v393_v30 = vpop.f32.mrf.mxu1 }
 0x159   : >> { %v963_v31 = vpop.f32.mrf.mxu0  ;;  %v394_v52 = vadd.f32 %v393_v30, %v301_v29 }
 0x15a   : >> { %v976_v32 = vpop.f32.mrf.mxu1 }
 0x15b   : >> { %v306_v33 = vpop.f32.mrf.mxu0 }
 0x15c   : >> { %v398_v34 = vpop.f32.mrf.mxu1 }
 0x15d   : >> { %v966_v35 = vpop.f32.mrf.mxu0  ;;  %v399_v61 = vadd.f32 %v398_v34, %v306_v33 }
 0x15e   : >> { %v979_v36 = vpop.f32.mrf.mxu1 }
 0x15f   : >> { %v485_v37 = vpop.f32.mrf.mxu0 }
 0x160   : >> { %v574_v38 = vpop.f32.mrf.mxu1  ;;  %v499_v48 = vadd.f32 %v485_v37, %v389_v45 }
 0x161   : >> { %v986_v39 = vpop.f32.mrf.mxu0 }
 0x162   : >> { %v999_v40 = vpop.f32.mrf.mxu1  ;;  %v502_v55 = vadd.f32 %v499_v48, %v1167_v13 }
 0x163   : >> { %v490_v41 = vpop.f32.mrf.mxu0 }
 0x164   : >> { %v579_v42 = vpop.f32.mrf.mxu1  ;;  %v500_v57 = vadd.f32 %v490_v41, %v394_v52  ;;  %v505_v1 = vmax.f32 %v502_v55, 0.0 }
 0x165   : >> { %v989_v43 = vpop.f32.mrf.mxu0 }
 0x166   : >> { %v1002_v44 = vpop.f32.mrf.mxu1  ;;  %v503_v3 = vadd.f32 %v500_v57, %v1171_v15 }
 0x167   : >> { %v495_v46 = vpop.f32.mrf.mxu0 }
 0x168   : >> { %v584_v47 = vpop.f32.mrf.mxu1  ;;  %v501_v16 = vadd.f32 %v495_v46, %v399_v61  ;;  %v506_v26 = vmax.f32 %v503_v3, 0.0 }
 0x169   : >> { %v992_v49 = vpop.f32.mrf.mxu0 }
 0x16a   : >> { %v1005_v50 = vpop.f32.mrf.mxu1  ;;  %v504_v27 = vadd.f32 %v501_v16, %v1169_v14 }
 0x16b   : >> { %v654_v51 = vpop.f32.mrf.mxu0 }
 0x16c   : >> { %v655_v53 = vadd.f32 %v654_v51, %v574_v38  ;;  %v742_v54 = vpop.f32.mrf.mxu1  ;;  %v507_v33 = vmax.f32 %v504_v27, 0.0 }
 0x16d   : >> { %v1012_v56 = vpop.f32.mrf.mxu0 }
 0x16e   : >> { %v756_v58 = vadd.f32 %v742_v54, %v655_v53  ;;  %v1025_v59 = vpop.f32.mrf.mxu1 }
 0x16f   : >> { %v659_v60 = vpop.f32.mrf.mxu0 }
 0x170   : >> { %v759_v62 = vadd.f32 %v756_v58, %v1167_v13  ;;  %v660_v63 = vadd.f32 %v659_v60, %v579_v42  ;;  %v747_v0 = vpop.f32.mrf.mxu1 }
 0x171   : >> { %v1015_v2 = vpop.f32.mrf.mxu0 }
 0x172   : >> { %v762_v17 = vmax.f32 %v759_v62, 0.0  ;;  %v757_v18 = vadd.f32 %v747_v0, %v660_v63  ;;  %v1028_v19 = vpop.f32.mrf.mxu1 }
 0x173   : >> { %v664_v20 = vpop.f32.mrf.mxu0 }
 0x174   : >> { %v760_v21 = vadd.f32 %v757_v18, %v1171_v15  ;;  %v665_v22 = vadd.f32 %v664_v20, %v584_v47  ;;  %v752_v23 = vpop.f32.mrf.mxu1  ;;  %v765_v24 = vmax.f32 %v505_v1, %v762_v17 }
 0x175   : >> { %v1018_v25 = vpop.f32.mrf.mxu0 }
 0x176   : >> { %v763_v28 = vmax.f32 %v760_v21, 0.0  ;;  %v758_v29 = vadd.f32 %v752_v23, %v665_v22  ;;  %771 = vrot.lane.b32.xlu0 %v765_v24, %s1074_s23  ;;  %v1031_v30 = vpop.f32.mrf.mxu1 }
 0x178   : >> { %v766_v31 = vmax.f32 %v506_v26, %v763_v28  ;;  %v761_v32 = vadd.f32 %v758_v29, %v1169_v14 }
 0x17a   : >> { %v764_v34 = vmax.f32 %v761_v32, 0.0  ;;  %773 = vrot.lane.b32.xlu0 %v766_v31, %s1074_s23 }
 0x17c   : >> { %v767_v35 = vmax.f32 %v507_v33, %v764_v34 }
 0x17e   : >> { %775 = vrot.lane.b32.xlu1 %v767_v35, %s1074_s23 }
 0x1e8   : >> { %v772_v36 = vpop.permute.xlu0 %771 }
 0x1e9   : >> { %v780_v37 = vmax.f32 %v765_v24, %v772_v36 }
 0x1eb   : >> { %786 = vst.msk [vmem:[%s784_s25] sm:$0xff] %vm785_vm3, %v780_v37 }
 0x1ec   : >> { %v774_v38 = vpop.permute.xlu0 %773 }
 0x1ed   : >> { %v781_v39 = vmax.f32 %v766_v31, %v774_v38 }
 0x1ef   : >> { %787 = vst.msk [vmem:[%s784_s25 + $0x8] sm:$0xff] %vm785_vm3, %v781_v39  ;;  %204 = sbr.rel (!%p202_p4) target bundleno = 141 (0x8d), region = 76 }
 0x1f0   : >> { %v776_v40 = vpop.permute.xlu1 %775 }
 0x1f1   : >> { %v782_v41 = vmax.f32 %v767_v35, %v776_v40 }
 0x1f3   : >> { %788 = vst.msk [vmem:[%s784_s25 + $0x10] sm:$0xff] %vm785_vm3, %v782_v41 }
 0x1f4 PF: > { %s13_s12 = sadd.s32 1, %s1065_s12  }
 0x1f5   : > { %p10_p5 = scmp.ge.s32.totalorder %s13_s12, 4  }
 0x1f7   :  { %12 = sbr.rel (!%p10_p5) target bundleno = 1 (0x1), region = 87 }

// kernel: cnn_forward.8
= control target key start
LH: loop header
LB: loop body
LE: loop exit
PB: predicated region body
PF: predicated region fallthrough
CT: control target
= control target key end

     0   :  { %s1769_s12 = smov 0   ;;  %s2190_s0 = inlined_call_operand.vmem [shape: f32[2,63,72,61], index: 0, kind: input, shape index: {}]   ;;  %s2191_s1 = inlined_call_operand.vmem [shape: f32[3,18,72], index: 1, kind: input, shape index: {}]   ;;  %s2192_s2 = inlined_call_operand.vmem [shape: f32[18,1], index: 2, kind: input, shape index: {}]   ;;  %s2193_s3 = inlined_call_operand.vmem [shape: f32[2,61,18,61], index: 3, kind: output, shape index: {}]  }
   0x1 LB: > { %s1203_s13 = sadd.s32 4294967295, %s1738_s12   ;;  %p1207_p0 = scmp.ge.s32.totalorder %s1738_s12, 1  ;;  %s1738_s12 = sphi %s1769_s12, %s13_s12  }
   0x2   : > { %p137_p1 = scmp.lt.s32.totalorder %s1738_s12, 3 }
   0x4   : > { %p138_p2 = pnand %p1207_p0, %p137_p1 }
   0x5   : > { %p161_p3 = scmp.lt.s32.totalorder (!%p138_p2), %s1203_s13, 1  ;;  %s1847_s21 = smov (!%p138_p2), 0  }
   0x6   : > { %141 = sbr.rel (%p138_p2) target bundleno = 634 (0x27a), region = 32 }
   0xb   : > { %v182_v0 = vld [vmem:[%s2192_s2] sm:$0xff]  ;;  %v184_v1 = vld [vmem:[%s2192_s2 + $0x10] sm:$0x3]  ;;  %v1744_v2 = vmov 0   ;;  %v183_v3 = vld [vmem:[%s2192_s2 + $0x8] sm:$0xff]  ;;  %s2195_s13 = smov (!%p161_p3, %s1203_s13), 1 }
   0xc   : > { %1726 = vset.pattern.permute.xlu0 %v1744_v2  ;;  %1727 = vset.pattern.permute.xlu1 %v1744_v2  ;;  %v1789_v4 = vld [vmem:[%s2191_s1] sm:$0xff]  ;;  %v1794_v5 = vld [vmem:[%s2191_s1 + $0x8] sm:$0xff]  ;;  %v1799_v6 = vld [vmem:[%s2191_s1 + $0x10] sm:$0x3]  ;;  %s1703_s11 = smul.u32 4536, %s2195_s13 }
   0xd   : > { %187 = vperm.xlu0 %1726, %v182_v0   ;;  %197 = vperm.xlu1 %1727, %v184_v1   ;;  %v1804_v7 = vld [vmem:[%s2191_s1 + $0x18] sm:$0xff]  ;;  %v1809_v8 = vld [vmem:[%s2191_s1 + $0x20] sm:$0xff]  ;;  %v1814_v9 = vld [vmem:[%s2191_s1 + $0x28] sm:$0x3]  ;;  %s1704_s14 = smul.u32 1464, %s2195_s13 }
   0xe   : > { %v1819_v10 = vld [vmem:[%s2191_s1 + $0x30] sm:$0xff]  ;;  %v1824_v11 = vld [vmem:[%s2191_s1 + $0x38] sm:$0xff]  ;;  %v1829_v12 = vld [vmem:[%s2191_s1 + $0x40] sm:$0x3]  ;;  %s1834_s17 = scalar_lea.vmem %s2190_s0, %s1703_s11 }
   0xf   : > { %s1839_s20 = scalar_lea.vmem %s2193_s3, %s1704_s14 }
  0x11   : > { %192 = vperm.xlu0 %1726, %v183_v3  }
  0x88   : > { %v1841_v13 = vpop.permute.xlu0 %187  ;;  %v1843_v14 = vpop.permute.xlu1 %197 }
  0x8c   : > { %v1845_v15 = vpop.permute.xlu0 %192 }
  0x8d LB: >> { %v1745_v16 = vmov 0.0   ;;  %s1217_s13 = smul.u32 144, %s1742_s21  ;;  %vm1746_vm0 = vmmov 0   ;;  %vm230_vm1 = vcmask 588800   ;;  %vm521_vm2 = vcmask 498688   ;;  %s1742_s21 = sphi %s1847_s21, %s205_s21  }
  0x8e   : >> { %1442 = vmatprep.subr.mxu0 %v1745_v16  ;;  %1469 = vmatprep.subr.mxu1 %v1745_v16  ;;  %s1249_s23 = smul.u32 48, %s1742_s21  ;;  %vm524_vm3 = vcmask 492544   ;;  %s205_s21 = sadd.s32 1, %s1742_s21  }
  0x8f   : >> { %1460 = vmatprep.mubr.msk.f32.mxu0 %vm1746_vm0, %v1745_v16  ;;  %1487 = vmatprep.mubr.msk.f32.mxu1 %vm1746_vm0, %v1745_v16  ;;  %s1860_s22 = scalar_lea.vmem %s1834_s17, %s1217_s13  ;;  %p202_p4 = scmp.ge.s32.totalorder %s205_s21, 30  }
  0x90   : >> { %v1863_v17 = vld [vmem:[%s1860_s22 + $0x88] sm:$0xff]  ;;  %v217_v18 = vld [vmem:[%s1860_s22 + $0x40] sm:$0xff]  ;;  %v216_v20 = vld [vmem:[%s1860_s22 + $0x38] sm:$0xff]  ;;  %s2057_s24 = scalar_lea.vmem %s1839_s20, %s1249_s23  ;;  %vm1748_vm4 = vmmov (%p202_p4), 0  }
  0x91   : >> { %v1867_v19 = vld [vmem:[%s1860_s22 + $0x80] sm:$0xff]  ;;  %1443 = vmatpush3.msra.mxu0 %v1863_v17  ;;  %1470 = vmatpush3.msra.mxu1 %v217_v18  ;;  %v1874_v21 = vld [vmem:[%s1860_s22 + $0x78] sm:$0xff]  ;;  %v215_v22 = vld [vmem:[%s1860_s22 + $0x30] sm:$0xff] }
  0x92   : >> { %1444 = vmatprep.subr.mxu0 %v1745_v16  ;;  %1471 = vmatprep.subr.mxu1 %v1745_v16  ;;  %v1881_v23 = vld [vmem:[%s1860_s22 + $0x70] sm:$0xff]  ;;  %v214_v24 = vld [vmem:[%s1860_s22 + $0x28] sm:$0xff]  ;;  %v213_v26 = vld [vmem:[%s1860_s22 + $0x20] sm:$0xff] }
  0x93   : >> { %1445 = vmatpush3.msra.mxu0 %v1867_v19  ;;  %1472 = vmatpush3.msra.mxu1 %v216_v20  ;;  %v1888_v25 = vld [vmem:[%s1860_s22 + $0x68] sm:$0xff]  ;;  %v1895_v27 = vld [vmem:[%s1860_s22 + $0x60] sm:$0xff]  ;;  %v212_v28 = vld [vmem:[%s1860_s22 + $0x18] sm:$0xff] }
  0x94   : >> { %1446 = vmatprep.subr.mxu0 %v1745_v16  ;;  %1473 = vmatprep.subr.mxu1 %v1745_v16  ;;  %v1902_v29 = vld [vmem:[%s1860_s22 + $0x58] sm:$0xff]  ;;  %v211_v30 = vld [vmem:[%s1860_s22 + $0x10] sm:$0xff]  ;;  %v210_v32 = vld [vmem:[%s1860_s22 + $0x8] sm:$0xff] }
  0x95   : >> { %1447 = vmatpush3.msra.mxu0 %v1874_v21  ;;  %1474 = vmatpush3.msra.mxu1 %v215_v22  ;;  %v1909_v31 = vld [vmem:[%s1860_s22 + $0x50] sm:$0xff]  ;;  %v1916_v33 = vld [vmem:[%s1860_s22 + $0x48] sm:$0xff]  ;;  %v209_v34 = vld [vmem:[%s1860_s22] sm:$0xff] }
  0x96   : >> { %1448 = vmatprep.subr.mxu0 %v1745_v16  ;;  %1475 = vmatprep.subr.mxu1 %v1745_v16  ;;  %v1245_v35 = vld [vmem:[%s1860_s22 + $0xd0] sm:$0xff]  ;;  %v1244_v36 = vld [vmem:[%s1860_s22 + $0xc8] sm:$0xff]  ;;  %v1243_v37 = vld [vmem:[%s1860_s22 + $0xc0] sm:$0xff] }
  0x97   : >> { %1449 = vmatpush3.msra.mxu0 %v1881_v23  ;;  %1476 = vmatpush3.msra.mxu1 %v214_v24  ;;  %v1242_v38 = vld [vmem:[%s1860_s22 + $0xb8] sm:$0xff]  ;;  %v1241_v39 = vld [vmem:[%s1860_s22 + $0xb0] sm:$0xff]  ;;  %v1240_v40 = vld [vmem:[%s1860_s22 + $0xa8] sm:$0xff] }
  0x98   : >> { %1450 = vmatprep.subr.mxu0 %v1745_v16  ;;  %1477 = vmatprep.subr.mxu1 %v1745_v16  ;;  %v1239_v41 = vld [vmem:[%s1860_s22 + $0xa0] sm:$0xff]  ;;  %v1238_v42 = vld [vmem:[%s1860_s22 + $0x98] sm:$0xff]  ;;  %v1237_v43 = vld [vmem:[%s1860_s22 + $0x90] sm:$0xff] }
  0x99   : >> { %1451 = vmatpush3.msra.mxu0 %v1888_v25  ;;  %1478 = vmatpush3.msra.mxu1 %v213_v26  ;;  %v1284_v44 = vld [vmem:[%s1860_s22 + $0x118] sm:$0xff]  ;;  %v1283_v45 = vld [vmem:[%s1860_s22 + $0x110] sm:$0xff]  ;;  %v1282_v46 = vld [vmem:[%s1860_s22 + $0x108] sm:$0xff] }
  0x9a   : >> { %1452 = vmatprep.subr.mxu0 %v1745_v16  ;;  %1479 = vmatprep.subr.mxu1 %v1745_v16  ;;  %v1281_v47 = vld [vmem:[%s1860_s22 + $0x100] sm:$0xff]  ;;  %v1280_v48 = vld [vmem:[%s1860_s22 + $0xf8] sm:$0xff]  ;;  %v1279_v49 = vld [vmem:[%s1860_s22 + $0xf0] sm:$0xff] }
  0x9b   : >> { %1453 = vmatpush3.msra.mxu0 %v1895_v27  ;;  %1480 = vmatpush3.msra.mxu1 %v212_v28  ;;  %v1278_v50 = vld [vmem:[%s1860_s22 + $0xe8] sm:$0xff]  ;;  %v1277_v51 = vld [vmem:[%s1860_s22 + $0xe0] sm:$0xff]  ;;  %v1276_v52 = vld [vmem:[%s1860_s22 + $0xd8] sm:$0xff] }
  0x9c   : >> { %1454 = vmatprep.subr.mxu0 %v1745_v16  ;;  %1481 = vmatprep.subr.mxu1 %v1745_v16 }
  0x9d   : >> { %1455 = vmatpush3.msra.mxu0 %v1902_v29  ;;  %1482 = vmatpush3.msra.mxu1 %v211_v30 }
  0x9e   : >> { %1456 = vmatprep.subr.mxu0 %v1745_v16  ;;  %1483 = vmatprep.subr.mxu1 %v1745_v16 }
  0x9f   : >> { %1457 = vmatpush3.msra.mxu0 %v1909_v31  ;;  %1484 = vmatpush3.msra.mxu1 %v210_v32 }
  0xa0   : >> { %1458 = vmatprep.subr.mxu0 %v1745_v16  ;;  %1485 = vmatprep.subr.mxu1 %v1745_v16 }
  0xa1   : >> { %1459 = vmatpush3.msra.mxu0 %v1916_v33  ;;  %1486 = vmatpush3.msra.mxu1 %v209_v34 }
  0xa2   : >> { %1461 = vmatmul.mubr.msk.f32.vlgmr.msra.gmra.mxu0 %vm230_vm1, %v1804_v7  ;;  %1496 = vmatprep.subr.mxu0 %v1745_v16 }
  0xa3   : >> { %1523 = vmatprep.subr.mxu1 %v1745_v16  ;;  %1488 = vmatmul.mubr.msk.f32.vlgmr.msra.gmra.mxu1 %vm230_vm1, %v1789_v4 }
  0xa4   : >> { %1497 = vmatpush3.msra.mxu0 %v1245_v35  ;;  %1524 = vmatpush3.msra.mxu1 %v1245_v35 }
  0xa5   : >> { %1498 = vmatprep.subr.mxu0 %v1745_v16  ;;  %1525 = vmatprep.subr.mxu1 %v1745_v16 }
  0xa6   : >> { %1499 = vmatpush3.msra.mxu0 %v1244_v36  ;;  %1526 = vmatpush3.msra.mxu1 %v1244_v36 }
  0xa7   : >> { %1500 = vmatprep.subr.mxu0 %v1745_v16  ;;  %1527 = vmatprep.subr.mxu1 %v1745_v16 }
  0xa8   : >> { %1501 = vmatpush3.msra.mxu0 %v1243_v37  ;;  %1528 = vmatpush3.msra.mxu1 %v1243_v37 }
  0xa9   : >> { %1502 = vmatprep.subr.mxu0 %v1745_v16  ;;  %1529 = vmatprep.subr.mxu1 %v1745_v16 }
  0xaa   : >> { %1503 = vmatpush3.msra.mxu0 %v1242_v38  ;;  %1530 = vmatpush3.msra.mxu1 %v1242_v38 }
  0xab   : >> { %1463 = vmatprep.mubr.msk.f32.mxu0 %vm1746_vm0, %v1745_v16  ;;  %1504 = vmatprep.subr.mxu0 %v1745_v16 }
  0xac   : >> { %1531 = vmatprep.subr.mxu1 %v1745_v16  ;;  %1464 = vmatmul.mubr.msk.f32.gmra.mxu0 %vm230_vm1, %v1809_v8 }
  0xad   : >> { %1505 = vmatpush3.msra.mxu0 %v1241_v39  ;;  %1532 = vmatpush3.msra.mxu1 %v1241_v39 }
  0xae   : >> { %1490 = vmatprep.mubr.msk.f32.mxu1 %vm1746_vm0, %v1745_v16  ;;  %1506 = vmatprep.subr.mxu0 %v1745_v16 }
  0xaf   : >> { %1533 = vmatprep.subr.mxu1 %v1745_v16  ;;  %1491 = vmatmul.mubr.msk.f32.gmra.mxu1 %vm230_vm1, %v1794_v5 }
  0xb0   : >> { %1507 = vmatpush3.msra.mxu0 %v1240_v40  ;;  %1534 = vmatpush3.msra.mxu1 %v1240_v40 }
  0xb1   : >> { %1466 = vmatprep.mubr.msk.f32.mxu0 %vm1746_vm0, %v1745_v16  ;;  %1508 = vmatprep.subr.mxu0 %v1745_v16 }
  0xb2   : >> { %1535 = vmatprep.subr.mxu1 %v1745_v16  ;;  %1467 = vmatmul.mubr.msk.f32.gmra.mxu0 %vm230_vm1, %v1814_v9 }
  0xb3   : >> { %1509 = vmatpush3.msra.mxu0 %v1239_v41  ;;  %1536 = vmatpush3.msra.mxu1 %v1239_v41 }
  0xb4   : >> { %1493 = vmatprep.mubr.msk.f32.mxu1 %vm1746_vm0, %v1745_v16  ;;  %1510 = vmatprep.subr.mxu0 %v1745_v16 }
  0xb5   : >> { %1537 = vmatprep.subr.mxu1 %v1745_v16  ;;  %1494 = vmatmul.mubr.msk.f32.gmra.mxu1 %vm230_vm1, %v1799_v6 }
  0xb6   : >> { %1511 = vmatpush3.msra.mxu0 %v1238_v42  ;;  %1538 = vmatpush3.msra.mxu1 %v1238_v42 }
  0xb7   : >> { %1512 = vmatprep.subr.mxu0 %v1745_v16  ;;  %1539 = vmatprep.subr.mxu1 %v1745_v16 }
  0xb8   : >> { %1513 = vmatpush3.msra.mxu0 %v1237_v43  ;;  %1514 = vmatprep.mubr.msk.f32.mxu0 %vm1746_vm0, %v1745_v16 }
  0xb9   : >> { %1540 = vmatpush3.msra.mxu1 %v1237_v43  ;;  %1515 = vmatmul.mubr.msk.f32.vlgmr.msra.gmra.mxu0 %vm230_vm1, %v1819_v10 }
  0xba   : >> { %1541 = vmatprep.mubr.msk.f32.mxu1 %vm1746_vm0, %v1745_v16  ;;  %1550 = vmatprep.subr.mxu0 %v1745_v16 }
  0xbb   : >> { %1577 = vmatprep.subr.mxu1 %v1745_v16  ;;  %1542 = vmatmul.mubr.msk.f32.vlgmr.msra.gmra.mxu1 %vm230_vm1, %v1804_v7 }
  0xbc   : >> { %1551 = vmatpush3.msra.mxu0 %v1863_v17  ;;  %1578 = vmatpush3.msra.mxu1 %v1284_v44 }
  0xbd   : >> { %1552 = vmatprep.subr.mxu0 %v1745_v16  ;;  %1579 = vmatprep.subr.mxu1 %v1745_v16 }
  0xbe   : >> { %1517 = vmatprep.mubr.msk.f32.mxu0 %vm1746_vm0, %v1745_v16  ;;  %1553 = vmatpush3.msra.mxu0 %v1867_v19 }
  0xbf   : >> { %1580 = vmatpush3.msra.mxu1 %v1283_v45  ;;  %1518 = vmatmul.mubr.msk.f32.gmra.mxu0 %vm230_vm1, %v1824_v11 }
  0xc0   : >> { %1554 = vmatprep.subr.mxu0 %v1745_v16  ;;  %1581 = vmatprep.subr.mxu1 %v1745_v16 }
  0xc1   : >> { %1555 = vmatpush3.msra.mxu0 %v1874_v21  ;;  %1582 = vmatpush3.msra.mxu1 %v1282_v46 }
  0xc2   : >> { %1556 = vmatprep.subr.mxu0 %v1745_v16  ;;  %1583 = vmatprep.subr.mxu1 %v1745_v16 }
  0xc3   : >> { %1520 = vmatprep.mubr.msk.f32.mxu0 %vm1746_vm0, %v1745_v16  ;;  %1557 = vmatpush3.msra.mxu0 %v1881_v23 }
  0xc4   : >> { %1584 = vmatpush3.msra.mxu1 %v1281_v47  ;;  %1521 = vmatmul.mubr.msk.f32.gmra.mxu0 %vm230_vm1, %v1829_v12 }
  0xc5   : >> { %1558 = vmatprep.subr.mxu0 %v1745_v16  ;;  %1585 = vmatprep.subr.mxu1 %v1745_v16 }
  0xc6   : >> { %1544 = vmatprep.mubr.msk.f32.mxu1 %vm1746_vm0, %v1745_v16  ;;  %1559 = vmatpush3.msra.mxu0 %v1888_v25 }
  0xc7   : >> { %1586 = vmatpush3.msra.mxu1 %v1280_v48  ;;  %1560 = vmatprep.subr.mxu0 %v1745_v16 }
  0xc8   : >> { %1545 = vmatmul.mubr.msk.f32.gmra.mxu1 %vm230_vm1, %v1809_v8  ;;  %1587 = vmatprep.subr.mxu1 %v1745_v16 }
  0xc9   : >> { %1561 = vmatpush3.msra.mxu0 %v1895_v27  ;;  %1588 = vmatpush3.msra.mxu1 %v1279_v49 }
  0xca   : >> { %1562 = vmatprep.subr.mxu0 %v1745_v16  ;;  %1589 = vmatprep.subr.mxu1 %v1745_v16 }
  0xcb   : >> { %1547 = vmatprep.mubr.msk.f32.mxu1 %vm1746_vm0, %v1745_v16  ;;  %1563 = vmatpush3.msra.mxu0 %v1902_v29 }
  0xcc   : >> { %1590 = vmatpush3.msra.mxu1 %v1278_v50  ;;  %1564 = vmatprep.subr.mxu0 %v1745_v16 }
  0xcd   : >> { %1548 = vmatmul.mubr.msk.f32.gmra.mxu1 %vm230_vm1, %v1814_v9  ;;  %1591 = vmatprep.subr.mxu1 %v1745_v16 }
  0xce   : >> { %1565 = vmatpush3.msra.mxu0 %v1909_v31  ;;  %1592 = vmatpush3.msra.mxu1 %v1277_v51 }
  0xcf   : >> { %1566 = vmatprep.subr.mxu0 %v1745_v16  ;;  %1593 = vmatprep.subr.mxu1 %v1745_v16 }
  0xd0   : >> { %1567 = vmatpush3.msra.mxu0 %v1916_v33  ;;  %1568 = vmatprep.mubr.msk.f32.mxu0 %vm1746_vm0, %v1745_v16 }
  0xd1   : >> { %1594 = vmatpush3.msra.mxu1 %v1276_v52  ;;  %1595 = vmatprep.mubr.msk.f32.mxu1 %vm1746_vm0, %v1745_v16 }
  0xd2   : >> { %1569 = vmatmul.mubr.msk.f32.vlgmr.msra.gmra.mxu0 %vm230_vm1, %v1789_v4  ;;  %1596 = vmatmul.mubr.msk.f32.vlgmr.msra.gmra.mxu1 %vm230_vm1, %v1819_v10 }
  0xd3   : >> { %1571 = vmatprep.mubr.msk.f32.mxu0 %vm1746_vm0, %v1745_v16  ;;  %1598 = vmatprep.mubr.msk.f32.mxu1 %vm1746_vm0, %v1745_v16 }
  0xd6   : >> { %1572 = vmatmul.mubr.msk.f32.gmra.mxu0 %vm230_vm1, %v1794_v5  ;;  %1599 = vmatmul.mubr.msk.f32.gmra.mxu1 %vm230_vm1, %v1824_v11 }
  0xd7   : >> { %1574 = vmatprep.mubr.msk.f32.mxu0 %vm1746_vm0, %v1745_v16  ;;  %1601 = vmatprep.mubr.msk.f32.mxu1 %vm1746_vm0, %v1745_v16 }
  0xda   : >> { %1575 = vmatmul.mubr.msk.f32.gmra.mxu0 %vm230_vm1, %v1799_v6  ;;  %1602 = vmatmul.mubr.msk.f32.gmra.mxu1 %vm230_vm1, %v1829_v12 }
 0x162   : >> { %v306_v53 = vpop.f32.mrf.mxu0 }
 0x163   : >> { %v395_v54 = vpop.f32.mrf.mxu1 }
 0x164   : >> { %v1462_v55 = vpop.f32.mrf.mxu0  ;;  %v396_v1 = vadd.f32 %v395_v54, %v306_v53 }
 0x165   : >> { %v1489_v56 = vpop.f32.mrf.mxu1 }
 0x16c   : >> { %v311_v57 = vpop.f32.mrf.mxu0 }
 0x16e   : >> { %v1465_v58 = vpop.f32.mrf.mxu0 }
 0x16f   : >> { %v400_v59 = vpop.f32.mrf.mxu1 }
 0x170   : >> { %v401_v20 = vadd.f32 %v400_v59, %v311_v57 }
 0x171   : >> { %v1492_v60 = vpop.f32.mrf.mxu1 }
 0x172   : >> { %v316_v61 = vpop.f32.mrf.mxu0 }
 0x174   : >> { %v1468_v62 = vpop.f32.mrf.mxu0 }
 0x175   : >> { %v405_v63 = vpop.f32.mrf.mxu1  ;;  %v1301_v62 = vld [vmem:[%s1834_s17 + $0x1120] sm:$0xff] (%p202_p4) }
 0x176   : >> { %v406_v26 = vadd.f32 %v405_v63, %v316_v61  ;;  %v1310_v61 = vld [vmem:[%s1834_s17 + $0x1168] sm:$0xff] (%p202_p4)  ;;  %v1747_v63 = vmov (%p202_p4), 0.0  }
 0x177   : >> { %v1495_v0 = vpop.f32.mrf.mxu1  ;;  %1604 = vmatprep.subr.mxu0 (%p202_p4), %v1747_v63  ;;  %1631 = vmatprep.subr.mxu1 (%p202_p4), %v1747_v63 }
 0x178   : > { %v1309_v0 = vld [vmem:[%s1834_s17 + $0x1160] sm:$0xff] (%p202_p4)  ;;  %1605 = vmatpush3.msra.mxu0 (%p202_p4), %v1310_v61  ;;  %1632 = vmatpush3.msra.mxu1 (%p202_p4), %v1301_v62 }
 0x179   : >> { %v496_v2 = vpop.f32.mrf.mxu0  ;;  %1606 = vmatprep.subr.mxu0 (%p202_p4), %v1747_v63  ;;  %1633 = vmatprep.subr.mxu1 (%p202_p4), %v1747_v63 }
 0x17a   : >> { %v510_v3 = vadd.f32 %v496_v2, %v396_v1  ;;  %v1300_v1 = vld [vmem:[%s1834_s17 + $0x1118] sm:$0xff] (%p202_p4)  ;;  %1607 = vmatpush3.msra.mxu0 (%p202_p4), %v1309_v0  ;;  %1649 = vmatprep.mubr.msk.f32.mxu1 (%p202_p4), %vm1748_vm4, %v1747_v63 }
 0x17b   : >> { %v610_v16 = vpop.f32.mrf.mxu1  ;;  %v1516_v17 = vpop.f32.mrf.mxu0  ;;  %v1308_v2 = vld [vmem:[%s1834_s17 + $0x1158] sm:$0xff] (%p202_p4)  ;;  %1634 = vmatpush3.msra.mxu1 (%p202_p4), %v1300_v1  ;;  %1608 = vmatprep.subr.mxu0 (%p202_p4), %v1747_v63 }
 0x17c   : >> { %v513_v18 = vadd.f32 %v510_v3, %v1841_v13  ;;  %v1299_v3 = vld [vmem:[%s1834_s17 + $0x1110] sm:$0xff] (%p202_p4)  ;;  %1635 = vmatprep.subr.mxu1 (%p202_p4), %v1747_v63  ;;  %v1298_v17 = vld [vmem:[%s1834_s17 + $0x1108] sm:$0xff] (%p202_p4)  ;;  %1609 = vmatpush3.msra.mxu0 (%p202_p4), %v1308_v2 }
 0x17d   : >> { %v1543_v19 = vpop.f32.mrf.mxu1  ;;  %1636 = vmatpush3.msra.mxu1 (%p202_p4), %v1299_v3  ;;  %1610 = vmatprep.subr.mxu0 (%p202_p4), %v1747_v63 }
 0x17e   : >> { %v516_v21 = vmax.f32 %v513_v18, 0.0  ;;  %1637 = vmatprep.subr.mxu1 (%p202_p4), %v1747_v63  ;;  %v1306_v18 = vld [vmem:[%s1834_s17 + $0x1148] sm:$0xff] (%p202_p4)  ;;  %v1297_v19 = vld [vmem:[%s1834_s17 + $0x1100] sm:$0xff] (%p202_p4)  ;;  %1622 = vmatprep.mubr.msk.f32.mxu0 (%p202_p4), %vm1748_vm4, %v1747_v63 }
 0x17f   : >> { %v501_v22 = vpop.f32.mrf.mxu0  ;;  %1638 = vmatpush3.msra.mxu1 (%p202_p4), %v1298_v17 }
 0x180   : >> { %522 = vst.msk [vmem:[%s2057_s24] sm:$0xff] %vm521_vm2, %v516_v21  ;;  %v511_v23 = vadd.f32 %v501_v22, %v401_v20  ;;  %1639 = vmatprep.subr.mxu1 (%p202_p4), %v1747_v63  ;;  %v1305_v20 = vld [vmem:[%s1834_s17 + $0x1140] sm:$0xff] (%p202_p4)  ;;  %v1296_v21 = vld [vmem:[%s1834_s17 + $0x10f8] sm:$0xff] (%p202_p4) }
 0x181   : >> { %v1519_v24 = vpop.f32.mrf.mxu0  ;;  %1640 = vmatpush3.msra.mxu1 (%p202_p4), %v1297_v19  ;;  %v1304_v22 = vld [vmem:[%s1834_s17 + $0x1138] sm:$0xff] (%p202_p4) }
 0x182   : >> { %v514_v25 = vadd.f32 %v511_v23, %v1845_v15  ;;  %1641 = vmatprep.subr.mxu1 (%p202_p4), %v1747_v63  ;;  %v1295_v23 = vld [vmem:[%s1834_s17 + $0x10f0] sm:$0xff] (%p202_p4) }
 0x183   : > { %1642 = vmatpush3.msra.mxu1 (%p202_p4), %v1296_v21  ;;  %v1303_v24 = vld [vmem:[%s1834_s17 + $0x1130] sm:$0xff] (%p202_p4) }
 0x184   : >> { %v517_v27 = vmax.f32 %v514_v25, 0.0  ;;  %v506_v28 = vpop.f32.mrf.mxu0  ;;  %1643 = vmatprep.subr.mxu1 (%p202_p4), %v1747_v63  ;;  %v1294_v25 = vld [vmem:[%s1834_s17 + $0x10e8] sm:$0xff] (%p202_p4) }
 0x185   : >> { %v512_v29 = vadd.f32 %v506_v28, %v406_v26  ;;  %1644 = vmatpush3.msra.mxu1 (%p202_p4), %v1295_v23  ;;  %v1302_v26 = vld [vmem:[%s1834_s17 + $0x1128] sm:$0xff] (%p202_p4)  ;;  %v1325_v28 = vld [vmem:[%s1834_s17 + $0x11b0] sm:$0xff] (%p202_p4) }
 0x186   : >> { %523 = vst.msk [vmem:[%s2057_s24 + $0x8] sm:$0xff] %vm521_vm2, %v517_v27  ;;  %v1522_v30 = vpop.f32.mrf.mxu0  ;;  %1645 = vmatprep.subr.mxu1 (%p202_p4), %v1747_v63  ;;  %v1293_v27 = vld [vmem:[%s1834_s17 + $0x10e0] sm:$0xff] (%p202_p4) }
 0x187   : >> { %v515_v31 = vadd.f32 %v512_v29, %v1843_v14  ;;  %1646 = vmatpush3.msra.mxu1 (%p202_p4), %v1294_v25  ;;  %v1324_v29 = vld [vmem:[%s1834_s17 + $0x11a8] sm:$0xff] (%p202_p4)  ;;  %v1323_v30 = vld [vmem:[%s1834_s17 + $0x11a0] sm:$0xff] (%p202_p4) }
 0x188   : >> { %v615_v32 = vpop.f32.mrf.mxu1  ;;  %1647 = vmatprep.subr.mxu1 (%p202_p4), %v1747_v63 }
 0x189   : >> { %v518_v33 = vmax.f32 %v515_v31, 0.0  ;;  %1648 = vmatpush3.msra.mxu1 (%p202_p4), %v1293_v27  ;;  %v1320_v31 = vld [vmem:[%s1834_s17 + $0x1188] sm:$0xff] (%p202_p4) }
 0x18a   : >> { %v1546_v34 = vpop.f32.mrf.mxu1  ;;  %1650 = vmatmul.mubr.msk.f32.vlgmr.msra.gmra.mxu1 (%p202_p4), %vm230_vm1, %v1789_v4  ;;  %1685 = vmatprep.subr.mxu1 (%p202_p4), %v1747_v63  ;;  %v1322_v4 = vld [vmem:[%s1834_s17 + $0x1198] sm:$0xff] (%p202_p4) }
 0x18b   : >> { %525 = vst.msk [vmem:[%s2057_s24 + $0x10] sm:$0x3] %vm524_vm3, %v518_v33  ;;  %1694 = vmatpush3.msra.mxu1 (%p202_p4), %v1325_v28  ;;  %1652 = vmatprep.mubr.msk.f32.mxu1 (%p202_p4), %vm1748_vm4, %v1747_v63 }
 0x18c   : > { %1686 = vmatprep.subr.mxu1 (%p202_p4), %v1747_v63 }
 0x18d   : >> { %v620_v35 = vpop.f32.mrf.mxu1  ;;  %1695 = vmatpush3.msra.mxu1 (%p202_p4), %v1324_v29 }
 0x18e   : > { %1687 = vmatprep.subr.mxu1 (%p202_p4), %v1747_v63  ;;  %1653 = vmatmul.mubr.msk.f32.gmra.mxu1 (%p202_p4), %vm230_vm1, %v1794_v5  ;;  %v1319_v5 = vld [vmem:[%s1834_s17 + $0x1180] sm:$0xff] (%p202_p4) }
 0x18f   : >> { %v1549_v36 = vpop.f32.mrf.mxu1  ;;  %1696 = vmatpush3.msra.mxu1 (%p202_p4), %v1323_v30  ;;  %1655 = vmatprep.mubr.msk.f32.mxu1 (%p202_p4), %vm1748_vm4, %v1747_v63 }
 0x190   : > { %1688 = vmatprep.subr.mxu1 (%p202_p4), %v1747_v63 }
 0x191   : > { %1697 = vmatpush3.msra.mxu1 (%p202_p4), %v1322_v4 }
 0x192   : >> { %v690_v37 = vpop.f32.mrf.mxu0  ;;  %v782_v38 = vpop.f32.mrf.mxu1  ;;  %1689 = vmatprep.subr.mxu1 (%p202_p4), %v1747_v63  ;;  %1656 = vmatmul.mubr.msk.f32.gmra.mxu1 (%p202_p4), %vm230_vm1, %v1799_v6 }
 0x193   : >> { %v691_v39 = vadd.f32 %v690_v37, %v610_v16  ;;  %v1307_v16 = vld [vmem:[%s1834_s17 + $0x1150] sm:$0xff] (%p202_p4)  ;;  %1679 = vmatprep.mubr.msk.f32.mxu1 (%p202_p4), %vm1748_vm4, %v1747_v63 }
 0x194   : >> { %v1570_v40 = vpop.f32.mrf.mxu0  ;;  %v1597_v41 = vpop.f32.mrf.mxu1  ;;  %1611 = vmatpush3.msra.mxu0 (%p202_p4), %v1307_v16 }
 0x195   : >> { %v796_v42 = vadd.f32 %v782_v38, %v691_v39  ;;  %1612 = vmatprep.subr.mxu0 (%p202_p4), %v1747_v63 }
 0x196   : >> { %v695_v43 = vpop.f32.mrf.mxu0  ;;  %v787_v44 = vpop.f32.mrf.mxu1  ;;  %1613 = vmatpush3.msra.mxu0 (%p202_p4), %v1306_v18 }
 0x197   : >> { %v799_v45 = vadd.f32 %v796_v42, %v1841_v13  ;;  %v696_v46 = vadd.f32 %v695_v43, %v615_v32  ;;  %1614 = vmatprep.subr.mxu0 (%p202_p4), %v1747_v63  ;;  %v1317_v32 = vld [vmem:[%s1834_s17 + $0x1170] sm:$0xff] (%p202_p4) }
 0x198   : >> { %v1573_v47 = vpop.f32.mrf.mxu0  ;;  %v1600_v48 = vpop.f32.mrf.mxu1  ;;  %1615 = vmatpush3.msra.mxu0 (%p202_p4), %v1305_v20 }
 0x199   : >> { %v802_v49 = vmax.f32 %v799_v45, 0.0  ;;  %v797_v50 = vadd.f32 %v787_v44, %v696_v46  ;;  %1616 = vmatprep.subr.mxu0 (%p202_p4), %v1747_v63 }
 0x19a   : >> { %v700_v51 = vpop.f32.mrf.mxu0  ;;  %v792_v52 = vpop.f32.mrf.mxu1  ;;  %1617 = vmatpush3.msra.mxu0 (%p202_p4), %v1304_v22 }
 0x19b   : >> { %1290 = vst.msk [vmem:[%s2057_s24 + $0x18] sm:$0xff] %vm521_vm2, %v802_v49  ;;  %v800_v53 = vadd.f32 %v797_v50, %v1845_v15  ;;  %v701_v54 = vadd.f32 %v700_v51, %v620_v35  ;;  %1618 = vmatprep.subr.mxu0 (%p202_p4), %v1747_v63 }
 0x19c   : >> { %v1576_v55 = vpop.f32.mrf.mxu0  ;;  %v1603_v56 = vpop.f32.mrf.mxu1  ;;  %1619 = vmatpush3.msra.mxu0 (%p202_p4), %v1303_v24 }
 0x19d   : >> { %v803_v57 = vmax.f32 %v800_v53, 0.0  ;;  %v798_v58 = vadd.f32 %v792_v52, %v701_v54  ;;  %1620 = vmatprep.subr.mxu0 (%p202_p4), %v1747_v63 }
 0x19e   : > { %1621 = vmatpush3.msra.mxu0 (%p202_p4), %v1302_v26 }
 0x19f   : >> { %1291 = vst.msk [vmem:[%s2057_s24 + $0x20] sm:$0xff] %vm521_vm2, %v803_v57  ;;  %v801_v59 = vadd.f32 %v798_v58, %v1843_v14  ;;  %204 = sbr.rel (!%p202_p4) target bundleno = 141 (0x8d), region = 81  ;;  %1658 = vmatprep.subr.mxu0 (%p202_p4), %v1747_v63  ;;  %1623 = vmatmul.mubr.msk.f32.vlgmr.msra.gmra.mxu0 (%p202_p4), %vm230_vm1, %v1804_v7  ;;  %v1321_v7 = vld [vmem:[%s1834_s17 + $0x1190] sm:$0xff] (%p202_p4) }
 0x1a0   : > { %1659 = vmatpush3.msra.mxu0 (%p202_p4), %v1325_v28  ;;  %1625 = vmatprep.mubr.msk.f32.mxu0 (%p202_p4), %vm1748_vm4, %v1747_v63 }
 0x1a1   : >> { %v804_v60 = vmax.f32 %v801_v59, 0.0  ;;  %1660 = vmatprep.subr.mxu0 (%p202_p4), %v1747_v63  ;;  %1698 = vmatpush3.msra.mxu1 (%p202_p4), %v1321_v7 }
 0x1a2   : > { %1661 = vmatpush3.msra.mxu0 (%p202_p4), %v1324_v29  ;;  %1690 = vmatprep.subr.mxu1 (%p202_p4), %v1747_v63 }
 0x1a3   : >> { %1292 = vst.msk [vmem:[%s2057_s24 + $0x28] sm:$0x3] %vm524_vm3, %v804_v60  ;;  %1662 = vmatprep.subr.mxu0 (%p202_p4), %v1747_v63  ;;  %1626 = vmatmul.mubr.msk.f32.gmra.mxu0 (%p202_p4), %vm230_vm1, %v1809_v8  ;;  %v1318_v8 = vld [vmem:[%s1834_s17 + $0x1178] sm:$0xff] (%p202_p4) }
 0x1a4   : > { %1663 = vmatpush3.msra.mxu0 %v1323_v30  ;;  %1699 = vmatpush3.msra.mxu1 %v1320_v31 }
 0x1a5   : > { %1664 = vmatprep.subr.mxu0 %v1747_v63  ;;  %1691 = vmatprep.subr.mxu1 %v1747_v63 }
 0x1a6   : > { %1665 = vmatpush3.msra.mxu0 %v1322_v4  ;;  %1628 = vmatprep.mubr.msk.f32.mxu0 %vm1748_vm4, %v1747_v63 }
 0x1a7   : > { %1666 = vmatprep.subr.mxu0 %v1747_v63  ;;  %1700 = vmatpush3.msra.mxu1 %v1319_v5 }
 0x1a8   : > { %1667 = vmatpush3.msra.mxu0 %v1321_v7  ;;  %1692 = vmatprep.subr.mxu1 %v1747_v63 }
 0x1a9   : > { %1668 = vmatprep.subr.mxu0 %v1747_v63  ;;  %1629 = vmatmul.mubr.msk.f32.gmra.mxu0 %vm230_vm1, %v1814_v9 }
 0x1aa   : > { %1669 = vmatpush3.msra.mxu0 %v1320_v31  ;;  %1701 = vmatpush3.msra.mxu1 %v1318_v8 }
 0x1ab   : > { %1670 = vmatprep.subr.mxu0 %v1747_v63  ;;  %1693 = vmatprep.subr.mxu1 %v1747_v63 }
 0x1ac   : > { %1671 = vmatpush3.msra.mxu0 %v1319_v5  ;;  %1702 = vmatpush3.msra.mxu1 %v1317_v32 }
 0x1ad   : > { %1672 = vmatprep.subr.mxu0 %v1747_v63  ;;  %1676 = vmatprep.mubr.msk.f32.mxu0 %vm1748_vm4, %v1747_v63 }
 0x1ae   : > { %1673 = vmatpush3.msra.mxu0 %v1318_v8  ;;  %1680 = vmatmul.mubr.msk.f32.vlgmr.msra.gmra.mxu1 %vm230_vm1, %v1824_v11 }
 0x1af   : > { %1674 = vmatprep.subr.mxu0 %v1747_v63  ;;  %1682 = vmatprep.mubr.msk.f32.mxu1 %vm1748_vm4, %v1747_v63 }
 0x1b0   : > { %1675 = vmatpush3.msra.mxu0 %v1317_v32 }
 0x1b1   : > { %1677 = vmatmul.mubr.msk.f32.vlgmr.msra.gmra.mxu0 %vm230_vm1, %v1819_v10 }
 0x1b2   : > { %1683 = vmatmul.mubr.msk.f32.gmra.mxu1 %vm230_vm1, %v1829_v12 }
 0x24a   : > { %v995_v6 = vpop.f32.mrf.mxu1 }
 0x24c   : > { %v1651_v33 = vpop.f32.mrf.mxu1 }
 0x24e   : > { %v1000_v35 = vpop.f32.mrf.mxu1 }
 0x250   : > { %v1654_v37 = vpop.f32.mrf.mxu1 }
 0x252   : > { %v1005_v39 = vpop.f32.mrf.mxu1 }
 0x254   : > { %v1657_v10 = vpop.f32.mrf.mxu1 }
 0x25f   : > { %v906_v9 = vpop.f32.mrf.mxu0 }
 0x260   : > { %v996_v42 = vadd.f32 %v995_v6, %v906_v9 }
 0x261   : > { %v1624_v34 = vpop.f32.mrf.mxu0 }
 0x263   : > { %v911_v36 = vpop.f32.mrf.mxu0 }
 0x264   : > { %v1001_v11 = vadd.f32 %v1000_v35, %v911_v36 }
 0x265   : > { %v1627_v38 = vpop.f32.mrf.mxu0 }
 0x269   : > { %v916_v40 = vpop.f32.mrf.mxu0 }
 0x26a   : > { %v1006_v48 = vadd.f32 %v1005_v39, %v916_v40 }
 0x26b   : > { %v1630_v41 = vpop.f32.mrf.mxu0 }
 0x26e   : > { %v1099_v44 = vpop.f32.mrf.mxu1 }
 0x26f   : > { %v1109_v12 = vadd.f32 %v1099_v44, %v1001_v11 }
 0x270   : > { %v1681_v46 = vpop.f32.mrf.mxu1 }
 0x271   : > { %v1094_v43 = vpop.f32.mrf.mxu0  ;;  %v1112_v50 = vadd.f32 %v1109_v12, %v1845_v15 }
 0x272   : > { %v1108_v45 = vadd.f32 %v1094_v43, %v996_v42  ;;  %v1104_v51 = vpop.f32.mrf.mxu1 }
 0x273   : > { %v1678_v47 = vpop.f32.mrf.mxu0  ;;  %v1115_v53 = vmax.f32 %v1112_v50, 0.0  ;;  %v1110_v54 = vadd.f32 %v1104_v51, %v1006_v48 }
 0x274   : > { %v1111_v49 = vadd.f32 %v1108_v45, %v1841_v13  ;;  %v1684_v55 = vpop.f32.mrf.mxu1 }
 0x275   : > { %1330 = vst.msk [vmem:[%s1839_s20 + $0x5a8] sm:$0xff] %vm521_vm2, %v1115_v53  ;;  %v1113_v56 = vadd.f32 %v1110_v54, %v1843_v14 }
 0x276   : > { %v1114_v52 = vmax.f32 %v1111_v49, 0.0 }
 0x277   : > { %v1116_v57 = vmax.f32 %v1113_v56, 0.0 }
 0x278   : > { %1329 = vst.msk [vmem:[%s1839_s20 + $0x5a0] sm:$0xff] %vm521_vm2, %v1114_v52 }
 0x279   : > { %1331 = vst.msk [vmem:[%s1839_s20 + $0x5b0] sm:$0x3] %vm524_vm3, %v1116_v57 }
 0x27a PF: > { %s13_s12 = sadd.s32 1, %s1738_s12  }
 0x27b   : > { %p10_p5 = scmp.ge.s32.totalorder %s13_s12, 4  }
 0x27d   :  { %12 = sbr.rel (!%p10_p5) target bundleno = 1 (0x1), region = 92 }

// kernel: cnn_forward.9
= control target key start
LH: loop header
LB: loop body
LE: loop exit
PB: predicated region body
PF: predicated region fallthrough
CT: control target
= control target key end

     0   :  { %s1434_s12 = smov 0   ;;  %s1676_s0 = inlined_call_operand.vmem [shape: f32[2,61,54,59], index: 0, kind: input, shape index: {}]   ;;  %s1677_s1 = inlined_call_operand.vmem [shape: f32[3,6,54], index: 1, kind: input, shape index: {}]   ;;  %s1678_s2 = inlined_call_operand.vmem [shape: f32[6,1], index: 2, kind: input, shape index: {}]   ;;  %s1679_s3 = inlined_call_operand.vmem [shape: f32[2,59,6,59], index: 3, kind: output, shape index: {}]  }
   0x1 LB: > { %s1044_s13 = sadd.s32 4294967295, %s1403_s12   ;;  %p1048_p0 = scmp.ge.s32.totalorder %s1403_s12, 1  ;;  %s1403_s12 = sphi %s1434_s12, %s13_s12  }
   0x2   : > { %p137_p1 = scmp.lt.s32.totalorder %s1403_s12, 3 }
   0x4   : > { %p138_p2 = pnand %p1048_p0, %p137_p1 }
   0x5   : > { %p161_p3 = scmp.lt.s32.totalorder (!%p138_p2), %s1044_s13, 1  ;;  %s1472_s30 = smov (!%p138_p2), 0  }
   0x6   : > { %141 = sbr.rel (%p138_p2) target bundleno = 416 (0x1a0), region = 32 }
   0xb   : > { %v176_v0 = vld [vmem:[%s1678_s2] sm:$0x3f]  ;;  %v1409_v2 = vmov 0   ;;  %v1453_v3 = vld [vmem:[%s1677_s1 + $0x8] sm:$0x3f]  ;;  %s1681_s13 = smov (!%p161_p3, %s1044_s13), 1 }
   0xc   : > { %v1448_v1 = vld [vmem:[%s1677_s1] sm:$0x3f]  ;;  %1392 = vset.pattern.permute.xlu0 %v1409_v2  ;;  %v1458_v4 = vld [vmem:[%s1677_s1 + $0x10] sm:$0x3f]  ;;  %s1369_s22 = smul.u32 3416, %s1681_s13 }
   0xd   : > { %179 = vperm.xlu0 %1392, %v176_v0   ;;  %s1370_s23 = smul.u32 472, %s1681_s13 }
   0xe   : > { %s1463_s26 = scalar_lea.vmem %s1676_s0, %s1369_s22 }
   0xf   : > { %s1468_s29 = scalar_lea.vmem %s1679_s3, %s1370_s23 }
  0x88   : > { %v1470_v5 = vpop.permute.xlu0 %179 }
  0x89 LB: >> { %v1410_v6 = vmov 0.0   ;;  %s1054_s4 = smul.u32 112, %s1407_s30  ;;  %vm1411_vm0 = vmmov 0   ;;  %vm212_vm1 = vcmask 1045504   ;;  %vm208_vm2 = vcmask 441344   ;;  %s1142_s6 = sshll.u32 %s1407_s30, 4  ;;  %s1407_s30 = sphi %s1472_s30, %s187_s30  }
  0x8a   : >> { %1216 = vmatprep.subr.mxu0 %v1410_v6  ;;  %1233 = vmatprep.subr.mxu1 %v1410_v6  ;;  %s452_s7 = scalar_lea.vmem %s1468_s29, %s1142_s6  ;;  %vm453_vm3 = vcmask 480256   ;;  %s187_s30 = sadd.s32 1, %s1407_s30  }
  0x8b   : >> { %1230 = vmatprep.mubr.msk.f32.mxu0 %vm1411_vm0, %v1410_v6  ;;  %1247 = vmatprep.mubr.msk.f32.mxu1 %vm1411_vm0, %v1410_v6  ;;  %s1485_s5 = scalar_lea.vmem %s1463_s26, %s1054_s4  ;;  %p184_p4 = scmp.ge.s32.totalorder %s187_s30, 29  }
  0x8c   : >> { %v1063_v7 = vld [vmem:[%s1485_s5 + $0x68] sm:$0x3f]  ;;  %v197_v8 = vld [vmem:[%s1485_s5 + $0x30] sm:$0x3f]  ;;  %v1490_v9 = vld [vmem:[%s1485_s5 + $0x60] sm:$0xff]  ;;  %v1412_v59 = vmov (%p184_p4), 0.0  }
  0x8d   : >> { %1217 = vmatpush3.msk.msra.mxu0 %vm212_vm1, %v1063_v7  ;;  %1234 = vmatpush3.msk.msra.mxu1 %vm212_vm1, %v197_v8  ;;  %v196_v10 = vld [vmem:[%s1485_s5 + $0x28] sm:$0xff]  ;;  %v1498_v11 = vld [vmem:[%s1485_s5 + $0x58] sm:$0xff]  ;;  %v195_v12 = vld [vmem:[%s1485_s5 + $0x20] sm:$0xff]  ;;  %vm1413_vm4 = vmmov (%p184_p4), 0  }
  0x8e   : >> { %1218 = vmatprep.subr.mxu0 %v1410_v6  ;;  %1235 = vmatprep.subr.mxu1 %v1410_v6  ;;  %v1505_v13 = vld [vmem:[%s1485_s5 + $0x50] sm:$0xff]  ;;  %v194_v14 = vld [vmem:[%s1485_s5 + $0x18] sm:$0xff]  ;;  %v1512_v15 = vld [vmem:[%s1485_s5 + $0x48] sm:$0xff] }
  0x8f   : >> { %1219 = vmatpush3.msra.mxu0 %v1490_v9  ;;  %1236 = vmatpush3.msra.mxu1 %v196_v10  ;;  %v193_v16 = vld [vmem:[%s1485_s5 + $0x10] sm:$0xff]  ;;  %v1519_v17 = vld [vmem:[%s1485_s5 + $0x40] sm:$0xff]  ;;  %v192_v18 = vld [vmem:[%s1485_s5 + $0x8] sm:$0xff] }
  0x90   : >> { %1220 = vmatprep.subr.mxu0 %v1410_v6  ;;  %1237 = vmatprep.subr.mxu1 %v1410_v6  ;;  %v1526_v19 = vld [vmem:[%s1485_s5 + $0x38] sm:$0xff]  ;;  %v191_v20 = vld [vmem:[%s1485_s5] sm:$0xff]  ;;  %v1074_v24 = vld [vmem:[%s1485_s5 + $0x90] sm:$0xff] }
  0x91   : >> { %1221 = vmatpush3.msra.mxu0 %v1498_v11  ;;  %1238 = vmatpush3.msra.mxu1 %v195_v12  ;;  %v1076_v21 = vld [vmem:[%s1485_s5 + $0xa0] sm:$0x3f]  ;;  %v1075_v23 = vld [vmem:[%s1485_s5 + $0x98] sm:$0xff]  ;;  %v1073_v25 = vld [vmem:[%s1485_s5 + $0x88] sm:$0xff] }
  0x92   : >> { %1222 = vmatprep.subr.mxu0 %v1410_v6  ;;  %1239 = vmatprep.subr.mxu1 %v1410_v6  ;;  %v1093_v22 = vld [vmem:[%s1485_s5 + $0xa0] sm:$0x3f]  ;;  %v1071_v27 = vld [vmem:[%s1485_s5 + $0x78] sm:$0xff]  ;;  %v1070_v28 = vld [vmem:[%s1485_s5 + $0x70] sm:$0xff] }
  0x93   : >> { %1223 = vmatpush3.msra.mxu0 %v1505_v13  ;;  %1240 = vmatpush3.msra.mxu1 %v194_v14  ;;  %v1072_v26 = vld [vmem:[%s1485_s5 + $0x80] sm:$0xff]  ;;  %v1086_v29 = vld [vmem:[%s1485_s5 + $0x68] sm:$0x3f]  ;;  %v1106_v30 = vld [vmem:[%s1485_s5 + $0xd8] sm:$0x3f] }
  0x94   : >> { %1224 = vmatprep.subr.mxu0 %v1410_v6  ;;  %1241 = vmatprep.subr.mxu1 %v1410_v6  ;;  %v1105_v31 = vld [vmem:[%s1485_s5 + $0xd0] sm:$0xff]  ;;  %v1104_v32 = vld [vmem:[%s1485_s5 + $0xc8] sm:$0xff]  ;;  %v1103_v33 = vld [vmem:[%s1485_s5 + $0xc0] sm:$0xff] }
  0x95   : >> { %1225 = vmatpush3.msra.mxu0 %v1512_v15  ;;  %1242 = vmatpush3.msra.mxu1 %v193_v16  ;;  %v1102_v34 = vld [vmem:[%s1485_s5 + $0xb8] sm:$0xff]  ;;  %v1101_v35 = vld [vmem:[%s1485_s5 + $0xb0] sm:$0xff]  ;;  %v1100_v36 = vld [vmem:[%s1485_s5 + $0xa8] sm:$0xff] }
  0x96   : >> { %1226 = vmatprep.subr.mxu0 %v1410_v6  ;;  %1243 = vmatprep.subr.mxu1 %v1410_v6  ;;  %v1125_v57 = vld [vmem:[%s1463_s26 + $0xd18] sm:$0x3f] (%p184_p4)  ;;  %v1118_v58 = vld [vmem:[%s1463_s26 + $0xce0] sm:$0x3f] (%p184_p4)  ;;  %v1124_v60 = vld [vmem:[%s1463_s26 + $0xd10] sm:$0xff] (%p184_p4) }
  0x97   : >> { %1227 = vmatpush3.msra.mxu0 %v1519_v17  ;;  %1244 = vmatpush3.msra.mxu1 %v192_v18  ;;  %v1117_v61 = vld [vmem:[%s1463_s26 + $0xcd8] sm:$0xff] (%p184_p4)  ;;  %v1123_v62 = vld [vmem:[%s1463_s26 + $0xd08] sm:$0xff] (%p184_p4)  ;;  %v1116_v63 = vld [vmem:[%s1463_s26 + $0xcd0] sm:$0xff] (%p184_p4) }
  0x98   : >> { %1228 = vmatprep.subr.mxu0 %v1410_v6  ;;  %1245 = vmatprep.subr.mxu1 %v1410_v6  ;;  %v1122_v0 = vld [vmem:[%s1463_s26 + $0xd00] sm:$0xff] (%p184_p4)  ;;  %v1115_v2 = vld [vmem:[%s1463_s26 + $0xcc8] sm:$0xff] (%p184_p4)  ;;  %v1120_v8 = vld [vmem:[%s1463_s26 + $0xcf0] sm:$0xff] (%p184_p4) }
  0x99   : >> { %1229 = vmatpush3.msra.mxu0 %v1526_v19  ;;  %1246 = vmatpush3.msra.mxu1 %v191_v20  ;;  %v1114_v7 = vld [vmem:[%s1463_s26 + $0xcc0] sm:$0xff] (%p184_p4)  ;;  %v1119_v10 = vld [vmem:[%s1463_s26 + $0xce8] sm:$0xff] (%p184_p4)  ;;  %v1136_v12 = vld [vmem:[%s1463_s26 + $0xd50] sm:$0x3f] (%p184_p4) }
  0x9a   : >> { %1231 = vmatmul.mubr.msk.f32.vlgmr.msra.gmra.mxu0 %vm208_vm2, %v1453_v3  ;;  %1250 = vmatprep.subr.mxu0 %v1410_v6  ;;  %v1134_v14 = vld [vmem:[%s1463_s26 + $0xd40] sm:$0xff] (%p184_p4) }
  0x9b   : >> { %1267 = vmatprep.subr.mxu1 %v1410_v6  ;;  %1248 = vmatmul.mubr.msk.f32.vlgmr.msra.gmra.mxu1 %vm208_vm2, %v1448_v1  ;;  %v1130_v16 = vld [vmem:[%s1463_s26 + $0xd20] sm:$0xff] (%p184_p4) }
  0x9c   : >> { %1251 = vmatpush3.msk.msra.mxu0 %vm212_vm1, %v1076_v21  ;;  %1268 = vmatpush3.msk.msra.mxu1 %vm212_vm1, %v1093_v22 }
  0x9d   : >> { %1252 = vmatprep.subr.mxu0 %v1410_v6  ;;  %1269 = vmatprep.subr.mxu1 %v1410_v6 }
  0x9e   : >> { %1253 = vmatpush3.msra.mxu0 %v1075_v23  ;;  %1270 = vmatpush3.msra.mxu1 %v1075_v23 }
  0x9f   : >> { %1254 = vmatprep.subr.mxu0 %v1410_v6  ;;  %1271 = vmatprep.subr.mxu1 %v1410_v6 }
  0xa0   : >> { %1255 = vmatpush3.msra.mxu0 %v1074_v24  ;;  %1272 = vmatpush3.msra.mxu1 %v1074_v24 }
  0xa1   : >> { %1256 = vmatprep.subr.mxu0 %v1410_v6  ;;  %1273 = vmatprep.subr.mxu1 %v1410_v6 }
  0xa2   : >> { %1257 = vmatpush3.msra.mxu0 %v1073_v25  ;;  %1274 = vmatpush3.msra.mxu1 %v1073_v25 }
  0xa3   : >> { %1258 = vmatprep.subr.mxu0 %v1410_v6  ;;  %1275 = vmatprep.subr.mxu1 %v1410_v6 }
  0xa4   : >> { %1259 = vmatpush3.msra.mxu0 %v1072_v26  ;;  %1276 = vmatpush3.msra.mxu1 %v1072_v26 }
  0xa5   : >> { %1260 = vmatprep.subr.mxu0 %v1410_v6  ;;  %1277 = vmatprep.subr.mxu1 %v1410_v6 }
  0xa6   : >> { %1261 = vmatpush3.msra.mxu0 %v1071_v27  ;;  %1278 = vmatpush3.msra.mxu1 %v1071_v27 }
  0xa7   : >> { %1262 = vmatprep.subr.mxu0 %v1410_v6  ;;  %1279 = vmatprep.subr.mxu1 %v1410_v6 }
  0xa8   : >> { %1263 = vmatpush3.msra.mxu0 %v1070_v28  ;;  %1264 = vmatprep.mubr.msk.f32.mxu0 %vm1411_vm0, %v1410_v6 }
  0xa9   : >> { %1280 = vmatpush3.msra.mxu1 %v1070_v28  ;;  %1265 = vmatmul.mubr.msk.f32.vlgmr.msra.gmra.mxu0 %vm208_vm2, %v1458_v4 }
  0xaa   : >> { %1281 = vmatprep.mubr.msk.f32.mxu1 %vm1411_vm0, %v1410_v6  ;;  %1284 = vmatprep.subr.mxu0 %v1410_v6 }
  0xab   : >> { %1301 = vmatprep.subr.mxu1 %v1410_v6  ;;  %1282 = vmatmul.mubr.msk.f32.vlgmr.msra.gmra.mxu1 %vm208_vm2, %v1453_v3 }
  0xac   : >> { %1285 = vmatpush3.msk.msra.mxu0 %vm212_vm1, %v1086_v29  ;;  %1302 = vmatpush3.msk.msra.mxu1 %vm212_vm1, %v1106_v30 }
  0xad   : >> { %1286 = vmatprep.subr.mxu0 %v1410_v6  ;;  %1303 = vmatprep.subr.mxu1 %v1410_v6 }
  0xae   : >> { %1287 = vmatpush3.msra.mxu0 %v1490_v9  ;;  %1304 = vmatpush3.msra.mxu1 %v1105_v31  ;;  %v1113_v9 = vld [vmem:[%s1463_s26 + $0xcb8] sm:$0xff] (%p184_p4) }
  0xaf   : >> { %1288 = vmatprep.subr.mxu0 %v1410_v6  ;;  %1305 = vmatprep.subr.mxu1 %v1410_v6 }
  0xb0   : >> { %1289 = vmatpush3.msra.mxu0 %v1498_v11  ;;  %1306 = vmatpush3.msra.mxu1 %v1104_v32  ;;  %v1112_v11 = vld [vmem:[%s1463_s26 + $0xcb0] sm:$0xff] (%p184_p4) }
  0xb1   : >> { %1290 = vmatprep.subr.mxu0 %v1410_v6  ;;  %1307 = vmatprep.subr.mxu1 %v1410_v6 }
  0xb2   : >> { %1291 = vmatpush3.msra.mxu0 %v1505_v13  ;;  %1308 = vmatpush3.msra.mxu1 %v1103_v33  ;;  %v1135_v13 = vld [vmem:[%s1463_s26 + $0xd48] sm:$0xff] (%p184_p4) }
  0xb3   : >> { %1292 = vmatprep.subr.mxu0 %v1410_v6  ;;  %1309 = vmatprep.subr.mxu1 %v1410_v6 }
  0xb4   : >> { %1293 = vmatpush3.msra.mxu0 %v1512_v15  ;;  %1310 = vmatpush3.msra.mxu1 %v1102_v34  ;;  %v1132_v15 = vld [vmem:[%s1463_s26 + $0xd30] sm:$0xff] (%p184_p4) }
  0xb5   : >> { %1294 = vmatprep.subr.mxu0 %v1410_v6  ;;  %1311 = vmatprep.subr.mxu1 %v1410_v6 }
  0xb6   : >> { %1295 = vmatpush3.msra.mxu0 %v1519_v17  ;;  %1312 = vmatpush3.msra.mxu1 %v1101_v35 }
  0xb7   : >> { %1296 = vmatprep.subr.mxu0 %v1410_v6  ;;  %1313 = vmatprep.subr.mxu1 %v1410_v6 }
  0xb8   : >> { %1297 = vmatpush3.msra.mxu0 %v1526_v19  ;;  %1298 = vmatprep.mubr.msk.f32.mxu0 %vm1411_vm0, %v1410_v6 }
  0xb9   : >> { %1314 = vmatpush3.msra.mxu1 %v1100_v36  ;;  %1315 = vmatprep.mubr.msk.f32.mxu1 %vm1411_vm0, %v1410_v6  ;;  %v1121_v6 = vld [vmem:[%s1463_s26 + $0xcf8] sm:$0xff] (%p184_p4) }
  0xba   : >> { %1299 = vmatmul.mubr.msk.f32.vlgmr.msra.gmra.mxu0 %vm208_vm2, %v1448_v1  ;;  %1316 = vmatmul.mubr.msk.f32.vlgmr.msra.gmra.mxu1 %vm208_vm2, %v1458_v4 }
  0xbb   : > { %1318 = vmatprep.subr.mxu0 (%p184_p4), %v1412_v59  ;;  %1335 = vmatprep.subr.mxu1 (%p184_p4), %v1412_v59 }
  0xbc   : > { %1319 = vmatpush3.msk.msra.mxu0 (%p184_p4), %vm212_vm1, %v1125_v57  ;;  %1336 = vmatpush3.msk.msra.mxu1 (%p184_p4), %vm212_vm1, %v1118_v58 }
  0xbd   : > { %1320 = vmatprep.subr.mxu0 (%p184_p4), %v1412_v59  ;;  %1337 = vmatprep.subr.mxu1 (%p184_p4), %v1412_v59 }
  0xbe   : > { %1321 = vmatpush3.msra.mxu0 (%p184_p4), %v1124_v60  ;;  %1338 = vmatpush3.msra.mxu1 (%p184_p4), %v1117_v61 }
  0xbf   : > { %1322 = vmatprep.subr.mxu0 (%p184_p4), %v1412_v59  ;;  %1339 = vmatprep.subr.mxu1 (%p184_p4), %v1412_v59 }
  0xc0   : > { %1323 = vmatpush3.msra.mxu0 (%p184_p4), %v1123_v62  ;;  %1340 = vmatpush3.msra.mxu1 (%p184_p4), %v1116_v63 }
  0xc1   : > { %1324 = vmatprep.subr.mxu0 (%p184_p4), %v1412_v59  ;;  %1341 = vmatprep.subr.mxu1 (%p184_p4), %v1412_v59 }
  0xc2   : > { %1325 = vmatpush3.msra.mxu0 (%p184_p4), %v1122_v0  ;;  %1342 = vmatpush3.msra.mxu1 (%p184_p4), %v1115_v2 }
  0xc3   : > { %1326 = vmatprep.subr.mxu0 (%p184_p4), %v1412_v59  ;;  %1343 = vmatprep.subr.mxu1 (%p184_p4), %v1412_v59 }
  0xc4   : > { %1327 = vmatpush3.msra.mxu0 (%p184_p4), %v1121_v6  ;;  %1344 = vmatpush3.msra.mxu1 (%p184_p4), %v1114_v7 }
  0xc5   : > { %1328 = vmatprep.subr.mxu0 (%p184_p4), %v1412_v59  ;;  %1345 = vmatprep.subr.mxu1 (%p184_p4), %v1412_v59 }
  0xc6   : > { %1329 = vmatpush3.msra.mxu0 (%p184_p4), %v1120_v8  ;;  %1346 = vmatpush3.msra.mxu1 (%p184_p4), %v1113_v9 }
  0xc7   : > { %1330 = vmatprep.subr.mxu0 (%p184_p4), %v1412_v59  ;;  %1332 = vmatprep.mubr.msk.f32.mxu0 (%p184_p4), %vm1413_vm4, %v1412_v59 }
  0xc8   : > { %1331 = vmatpush3.msra.mxu0 (%p184_p4), %v1119_v10  ;;  %1347 = vmatprep.subr.mxu1 (%p184_p4), %v1412_v59 }
  0xc9   : > { %1333 = vmatmul.mubr.msk.f32.vlgmr.msra.gmra.mxu0 (%p184_p4), %vm208_vm2, %v1453_v3  ;;  %1348 = vmatpush3.msra.mxu1 (%p184_p4), %v1112_v11  ;;  %v1133_v3 = vld [vmem:[%s1463_s26 + $0xd38] sm:$0xff] (%p184_p4) }
  0xca   : > { %1349 = vmatprep.mubr.msk.f32.mxu1 (%p184_p4), %vm1413_vm4, %v1412_v59  ;;  %1352 = vmatprep.subr.mxu0 (%p184_p4), %v1412_v59 }
  0xcb   : > { %1350 = vmatmul.mubr.msk.f32.vlgmr.msra.gmra.mxu1 (%p184_p4), %vm208_vm2, %v1448_v1  ;;  %1353 = vmatpush3.msk.msra.mxu0 (%p184_p4), %vm212_vm1, %v1136_v12  ;;  %v1131_v1 = vld [vmem:[%s1463_s26 + $0xd28] sm:$0xff] (%p184_p4) }
  0xcc   : > { %1354 = vmatprep.subr.mxu0 (%p184_p4), %v1412_v59  ;;  %1366 = vmatprep.mubr.msk.f32.mxu0 (%p184_p4), %vm1413_vm4, %v1412_v59 }
  0xcd   : > { %1355 = vmatpush3.msra.mxu0 (%p184_p4), %v1135_v13 }
  0xce   : > { %1356 = vmatprep.subr.mxu0 (%p184_p4), %v1412_v59 }
  0xcf   : > { %1357 = vmatpush3.msra.mxu0 (%p184_p4), %v1134_v14 }
  0xd0   : > { %1358 = vmatprep.subr.mxu0 (%p184_p4), %v1412_v59 }
  0xd1   : > { %1359 = vmatpush3.msra.mxu0 (%p184_p4), %v1133_v3 }
  0xd2   : > { %1360 = vmatprep.subr.mxu0 (%p184_p4), %v1412_v59 }
  0xd3   : > { %1361 = vmatpush3.msra.mxu0 (%p184_p4), %v1132_v15 }
  0xd4   : > { %1362 = vmatprep.subr.mxu0 (%p184_p4), %v1412_v59 }
  0xd5   : > { %1363 = vmatpush3.msra.mxu0 (%p184_p4), %v1131_v1 }
  0xd6   : > { %1364 = vmatprep.subr.mxu0 (%p184_p4), %v1412_v59 }
  0xd7   : > { %1365 = vmatpush3.msra.mxu0 (%p184_p4), %v1130_v16 }
  0xd8   : > { %1367 = vmatmul.mubr.msk.f32.vlgmr.msra.gmra.mxu0 (%p184_p4), %vm208_vm2, %v1458_v4 }
 0x15a   : >> { %v282_v37 = vpop.f32.mrf.mxu0 }
 0x15b   : >> { %v358_v38 = vpop.f32.mrf.mxu1 }
 0x15c   : >> { %v1232_v39 = vpop.f32.mrf.mxu0  ;;  %v359_v41 = vadd.f32 %v358_v38, %v282_v37 }
 0x15d   : >> { %v1249_v40 = vpop.f32.mrf.mxu1 }
 0x169   : >> { %v444_v42 = vpop.f32.mrf.mxu0 }
 0x16a   : >> { %v448_v43 = vadd.f32 %v444_v42, %v359_v41 }
 0x16b   : >> { %v538_v44 = vpop.f32.mrf.mxu1  ;;  %v1266_v45 = vpop.f32.mrf.mxu0 }
 0x16c   : >> { %v449_v46 = vadd.f32 %v448_v43, %v1470_v5 }
 0x16d   : >> { %v1283_v47 = vpop.f32.mrf.mxu1 }
 0x16e   : >> { %v450_v48 = vmax.f32 %v449_v46, 0.0 }
 0x170   : >> { %454 = vst.msk [vmem:[%s452_s7] sm:$0x3f] %vm453_vm3, %v450_v48 }
 0x17a   : >> { %v611_v49 = vpop.f32.mrf.mxu0  ;;  %v694_v50 = vpop.f32.mrf.mxu1 }
 0x17b   : >> { %v612_v51 = vadd.f32 %v611_v49, %v538_v44 }
 0x17c   : >> { %v1300_v52 = vpop.f32.mrf.mxu0  ;;  %v1317_v53 = vpop.f32.mrf.mxu1 }
 0x17d   : >> { %v698_v54 = vadd.f32 %v694_v50, %v612_v51 }
 0x17f   : >> { %v699_v55 = vadd.f32 %v698_v54, %v1470_v5  ;;  %186 = sbr.rel (!%p184_p4) target bundleno = 137 (0x89), region = 81 }
 0x181   : >> { %v700_v56 = vmax.f32 %v699_v55, 0.0 }
 0x183   : >> { %1111 = vst.msk [vmem:[%s452_s7 + $0x8] sm:$0x3f] %vm453_vm3, %v700_v56 }
 0x189   : > { %v794_v17 = vpop.f32.mrf.mxu0 }
 0x18b   : > { %v870_v18 = vpop.f32.mrf.mxu1  ;;  %v1334_v19 = vpop.f32.mrf.mxu0 }
 0x18c   : > { %v871_v21 = vadd.f32 %v870_v18, %v794_v17 }
 0x18d   : > { %v1351_v20 = vpop.f32.mrf.mxu1 }
 0x198   : > { %v954_v22 = vpop.f32.mrf.mxu0 }
 0x199   : > { %v958_v23 = vadd.f32 %v954_v22, %v871_v21 }
 0x19a   : > { %v1368_v24 = vpop.f32.mrf.mxu0 }
 0x19b   : > { %v959_v25 = vadd.f32 %v958_v23, %v1470_v5 }
 0x19d   : > { %v960_v26 = vmax.f32 %v959_v25, 0.0 }
 0x19f   : > { %1139 = vst.msk [vmem:[%s1468_s29 + $0x1d0] sm:$0x3f] %vm453_vm3, %v960_v26 }
 0x1a0 PF: > { %s13_s12 = sadd.s32 1, %s1403_s12  }
 0x1a1   : > { %p10_p5 = scmp.ge.s32.totalorder %s13_s12, 4  }
 0x1a3   :  { %12 = sbr.rel (!%p10_p5) target bundleno = 1 (0x1), region = 92 }

// kernel: cnn_forward.11
= control target key start
LH: loop header
LB: loop body
LE: loop exit
PB: predicated region body
PF: predicated region fallthrough
CT: control target
= control target key end

     0   :  { %s2384_s12 = smov 0   ;;  %s2386_s13 = smov 0   ;;  %s2902_s0 = inlined_call_operand.vmem [shape: bf16[2,4096], index: 0, kind: input, shape index: {}]   ;;  %s2903_s1 = inlined_call_operand.vmem [shape: bf16[4096,512], index: 1, kind: input, shape index: {}]   ;;  %s2904_s2 = inlined_call_operand.vmem [shape: f32[1,512], index: 2, kind: input, shape index: {}]   ;;  %s2905_s3 = inlined_call_operand.vmem [shape: f32[2,512], index: 3, kind: output, shape index: {}]  }
   0x1   :  { %s2388_s14 = smov 0   ;;  %s2390_s15 = smov 0  }
   0x2   :  { %s2392_s16 = smov 0   ;;  %s2394_s17 = smov 0  }
   0x3   :  { %s2396_s18 = smov 0  }
   0x4 LB: > { %s22_s19 = sadd.s32 1, %s2351_s16  ;;  %s25_s20 = sadd.s32 1, %s2355_s17  ;;  %s2359_s18 = sphi %s2396_s18, %s13_s18   ;;  %s2355_s17 = sphi %s2394_s17, %s2911_s17   ;;  %s2351_s16 = sphi %s2392_s16, %s2910_s16   ;;  %s2347_s15 = sphi %s2390_s15, %s2909_s15   ;;  %s2343_s14 = sphi %s2388_s14, %s2908_s14   ;;  %s2339_s13 = sphi %s2386_s13, %s2907_s13   ;;  %s2335_s12 = sphi %s2384_s12, %s2906_s12  }
   0x5   : > { %p23_p0 = scmp.ge.s32.totalorder %s22_s19, 4  ;;  %p67_p1 = scmp.ne.s32.totalorder %s2339_s13, %s2335_s12 }
   0x6   : > { %p68_p2 = scmp.eq.s32.totalorder %s2359_s18, 0  ;;  %s60_s24 = sadd.s32 1, %s2339_s13 }
   0x7   : > { %s2913_s19 = smov (%p23_p0, %s22_s19), 0  ;;  %s2915_s20 = smov (!%p23_p0, %s25_s20), %s2355_s17 }
   0x8   : > { %p69_p3 = por %p68_p2, %p67_p1  ;;  %p27_p4 = scmp.ge.s32.totalorder %s2915_s20, 2 }
   0x9   : > { %s55_s21 = ssub.s32 %s2351_s16, %s2913_s19  ;;  %p1908_p6 = scmp.ge.s32.totalorder %s2359_s18, 8 }
   0xa   : > { %s2917_s20 = smov (%p27_p4, %s2915_s20), 0 }
   0xb   : > { %s56_s22 = ssub.s32 %s2355_s17, %s2917_s20  ;;  %145 = sbr.rel (%p1908_p6) target bundleno = 87 (0x57), region = 16 }
   0xc   : > { %s57_s23 = sor.u32 %s56_s22, %s55_s21 }
   0xd   : > { %p58_p5 = scmp.eq.s32.totalorder %s57_s23, 0 }
   0xf   : > { %s2435_s25 = scalar_select %p58_p5, %s2339_s13, %s60_s24  }
  0x10   : > { %156 = sbr.rel (!%p69_p3) target bundleno = 87 (0x57), region = 24  ;;  %s158_s26 = sand.u32 (%p69_p3), 1, %s2339_s13  }
  0x11   : > { %s1911_s27 = sshll.u32 (%p69_p3), %s2355_s17, 1  ;;  %s1909_s28 = sshll.u32 (%p69_p3), %s158_s26, 10 }
  0x12   : > { %s2052_s29 = sshll.u32 (%p69_p3), %s2351_s16, 9  ;;  %s2449_s8 = scalar_lea.vmem (%p69_p3), [#allocation3], %s1909_s28 }
  0x13   : > { %s164_s30 = sadd.s32 (%p69_p3), %s2052_s29, %s1911_s27 }
  0x14   : > { %s1913_s4 = sshll.u32 (%p69_p3), %s164_s30, 2 }
  0x15   : > { %s2444_s7 = scalar_lea.vmem %s2903_s1, %s1913_s4 }
  0x16   : > { %v449_v0 = vld [vmem:[%s2444_s7] sm:$0xff]  ;;  %v451_v1 = vld [vmem:[%s2444_s7 + $0x10] sm:$0xff] }
  0x17   : > { %v453_v2 = vld [vmem:[%s2444_s7 + $0x20] sm:$0xff]  ;;  %450 = vst [vmem:[%s2449_s8] sm:$0xff] %v449_v0  ;;  %452 = vst [vmem:[%s2449_s8 + $0x8] sm:$0xff] %v451_v1  ;;  %v455_v3 = vld [vmem:[%s2444_s7 + $0x30] sm:$0xff] }
  0x18   : > { %454 = vst [vmem:[%s2449_s8 + $0x10] sm:$0xff] %v453_v2  ;;  %v457_v4 = vld [vmem:[%s2444_s7 + $0x40] sm:$0xff]  ;;  %v459_v5 = vld [vmem:[%s2444_s7 + $0x50] sm:$0xff]  ;;  %456 = vst [vmem:[%s2449_s8 + $0x18] sm:$0xff] %v455_v3 }
  0x19   : > { %458 = vst [vmem:[%s2449_s8 + $0x20] sm:$0xff] %v457_v4  ;;  %460 = vst [vmem:[%s2449_s8 + $0x28] sm:$0xff] %v459_v5  ;;  %v461_v6 = vld [vmem:[%s2444_s7 + $0x60] sm:$0xff]  ;;  %v463_v7 = vld [vmem:[%s2444_s7 + $0x70] sm:$0xff] }
  0x1a   : > { %v465_v8 = vld [vmem:[%s2444_s7 + $0x80] sm:$0xff]  ;;  %462 = vst [vmem:[%s2449_s8 + $0x30] sm:$0xff] %v461_v6  ;;  %464 = vst [vmem:[%s2449_s8 + $0x38] sm:$0xff] %v463_v7  ;;  %v467_v9 = vld [vmem:[%s2444_s7 + $0x90] sm:$0xff] }
  0x1b   : > { %466 = vst [vmem:[%s2449_s8 + $0x40] sm:$0xff] %v465_v8  ;;  %v469_v10 = vld [vmem:[%s2444_s7 + $0xa0] sm:$0xff]  ;;  %v471_v11 = vld [vmem:[%s2444_s7 + $0xb0] sm:$0xff]  ;;  %468 = vst [vmem:[%s2449_s8 + $0x48] sm:$0xff] %v467_v9 }
  0x1c   : > { %470 = vst [vmem:[%s2449_s8 + $0x50] sm:$0xff] %v469_v10  ;;  %472 = vst [vmem:[%s2449_s8 + $0x58] sm:$0xff] %v471_v11  ;;  %v473_v12 = vld [vmem:[%s2444_s7 + $0xc0] sm:$0xff]  ;;  %v475_v13 = vld [vmem:[%s2444_s7 + $0xd0] sm:$0xff] }
  0x1d   : > { %v477_v14 = vld [vmem:[%s2444_s7 + $0xe0] sm:$0xff]  ;;  %474 = vst [vmem:[%s2449_s8 + $0x60] sm:$0xff] %v473_v12  ;;  %476 = vst [vmem:[%s2449_s8 + $0x68] sm:$0xff] %v475_v13  ;;  %v479_v15 = vld [vmem:[%s2444_s7 + $0xf0] sm:$0xff] }
  0x1e   : > { %478 = vst [vmem:[%s2449_s8 + $0x70] sm:$0xff] %v477_v14  ;;  %v481_v16 = vld [vmem:[%s2444_s7 + $0x100] sm:$0xff]  ;;  %v483_v17 = vld [vmem:[%s2444_s7 + $0x110] sm:$0xff]  ;;  %480 = vst [vmem:[%s2449_s8 + $0x78] sm:$0xff] %v479_v15 }
  0x1f   : > { %482 = vst [vmem:[%s2449_s8 + $0x80] sm:$0xff] %v481_v16  ;;  %484 = vst [vmem:[%s2449_s8 + $0x88] sm:$0xff] %v483_v17  ;;  %v485_v18 = vld [vmem:[%s2444_s7 + $0x120] sm:$0xff]  ;;  %v487_v19 = vld [vmem:[%s2444_s7 + $0x130] sm:$0xff] }
  0x20   : > { %v489_v20 = vld [vmem:[%s2444_s7 + $0x140] sm:$0xff]  ;;  %486 = vst [vmem:[%s2449_s8 + $0x90] sm:$0xff] %v485_v18  ;;  %488 = vst [vmem:[%s2449_s8 + $0x98] sm:$0xff] %v487_v19  ;;  %v491_v21 = vld [vmem:[%s2444_s7 + $0x150] sm:$0xff] }
  0x21   : > { %490 = vst [vmem:[%s2449_s8 + $0xa0] sm:$0xff] %v489_v20  ;;  %v493_v22 = vld [vmem:[%s2444_s7 + $0x160] sm:$0xff]  ;;  %v495_v23 = vld [vmem:[%s2444_s7 + $0x170] sm:$0xff]  ;;  %492 = vst [vmem:[%s2449_s8 + $0xa8] sm:$0xff] %v491_v21 }
  0x22   : > { %494 = vst [vmem:[%s2449_s8 + $0xb0] sm:$0xff] %v493_v22  ;;  %496 = vst [vmem:[%s2449_s8 + $0xb8] sm:$0xff] %v495_v23  ;;  %v497_v24 = vld [vmem:[%s2444_s7 + $0x180] sm:$0xff]  ;;  %v499_v25 = vld [vmem:[%s2444_s7 + $0x190] sm:$0xff] }
  0x23   : > { %v501_v26 = vld [vmem:[%s2444_s7 + $0x1a0] sm:$0xff]  ;;  %498 = vst [vmem:[%s2449_s8 + $0xc0] sm:$0xff] %v497_v24  ;;  %500 = vst [vmem:[%s2449_s8 + $0xc8] sm:$0xff] %v499_v25  ;;  %v503_v27 = vld [vmem:[%s2444_s7 + $0x1b0] sm:$0xff] }
  0x24   : > { %502 = vst [vmem:[%s2449_s8 + $0xd0] sm:$0xff] %v501_v26  ;;  %v505_v28 = vld [vmem:[%s2444_s7 + $0x1c0] sm:$0xff]  ;;  %v507_v29 = vld [vmem:[%s2444_s7 + $0x1d0] sm:$0xff]  ;;  %504 = vst [vmem:[%s2449_s8 + $0xd8] sm:$0xff] %v503_v27 }
  0x25   : > { %506 = vst [vmem:[%s2449_s8 + $0xe0] sm:$0xff] %v505_v28  ;;  %508 = vst [vmem:[%s2449_s8 + $0xe8] sm:$0xff] %v507_v29  ;;  %v509_v30 = vld [vmem:[%s2444_s7 + $0x1e0] sm:$0xff]  ;;  %v511_v31 = vld [vmem:[%s2444_s7 + $0x1f0] sm:$0xff] }
  0x26   : > { %v513_v32 = vld [vmem:[%s2444_s7 + $0x200] sm:$0xff]  ;;  %510 = vst [vmem:[%s2449_s8 + $0xf0] sm:$0xff] %v509_v30  ;;  %512 = vst [vmem:[%s2449_s8 + $0xf8] sm:$0xff] %v511_v31  ;;  %v515_v33 = vld [vmem:[%s2444_s7 + $0x210] sm:$0xff] }
  0x27   : > { %514 = vst [vmem:[%s2449_s8 + $0x100] sm:$0xff] %v513_v32  ;;  %v517_v34 = vld [vmem:[%s2444_s7 + $0x220] sm:$0xff]  ;;  %v519_v35 = vld [vmem:[%s2444_s7 + $0x230] sm:$0xff]  ;;  %516 = vst [vmem:[%s2449_s8 + $0x108] sm:$0xff] %v515_v33 }
  0x28   : > { %518 = vst [vmem:[%s2449_s8 + $0x110] sm:$0xff] %v517_v34  ;;  %520 = vst [vmem:[%s2449_s8 + $0x118] sm:$0xff] %v519_v35  ;;  %v521_v36 = vld [vmem:[%s2444_s7 + $0x240] sm:$0xff]  ;;  %v523_v37 = vld [vmem:[%s2444_s7 + $0x250] sm:$0xff] }
  0x29   : > { %v525_v38 = vld [vmem:[%s2444_s7 + $0x260] sm:$0xff]  ;;  %522 = vst [vmem:[%s2449_s8 + $0x120] sm:$0xff] %v521_v36  ;;  %524 = vst [vmem:[%s2449_s8 + $0x128] sm:$0xff] %v523_v37  ;;  %v527_v39 = vld [vmem:[%s2444_s7 + $0x270] sm:$0xff] }
  0x2a   : > { %526 = vst [vmem:[%s2449_s8 + $0x130] sm:$0xff] %v525_v38  ;;  %v529_v40 = vld [vmem:[%s2444_s7 + $0x280] sm:$0xff]  ;;  %v531_v41 = vld [vmem:[%s2444_s7 + $0x290] sm:$0xff]  ;;  %528 = vst [vmem:[%s2449_s8 + $0x138] sm:$0xff] %v527_v39 }
  0x2b   : > { %530 = vst [vmem:[%s2449_s8 + $0x140] sm:$0xff] %v529_v40  ;;  %532 = vst [vmem:[%s2449_s8 + $0x148] sm:$0xff] %v531_v41  ;;  %v533_v42 = vld [vmem:[%s2444_s7 + $0x2a0] sm:$0xff]  ;;  %v535_v43 = vld [vmem:[%s2444_s7 + $0x2b0] sm:$0xff] }
  0x2c   : > { %v537_v44 = vld [vmem:[%s2444_s7 + $0x2c0] sm:$0xff]  ;;  %534 = vst [vmem:[%s2449_s8 + $0x150] sm:$0xff] %v533_v42  ;;  %536 = vst [vmem:[%s2449_s8 + $0x158] sm:$0xff] %v535_v43  ;;  %v539_v45 = vld [vmem:[%s2444_s7 + $0x2d0] sm:$0xff] }
  0x2d   : > { %538 = vst [vmem:[%s2449_s8 + $0x160] sm:$0xff] %v537_v44  ;;  %v541_v46 = vld [vmem:[%s2444_s7 + $0x2e0] sm:$0xff]  ;;  %v543_v47 = vld [vmem:[%s2444_s7 + $0x2f0] sm:$0xff]  ;;  %540 = vst [vmem:[%s2449_s8 + $0x168] sm:$0xff] %v539_v45 }
  0x2e   : > { %542 = vst [vmem:[%s2449_s8 + $0x170] sm:$0xff] %v541_v46  ;;  %544 = vst [vmem:[%s2449_s8 + $0x178] sm:$0xff] %v543_v47  ;;  %v545_v48 = vld [vmem:[%s2444_s7 + $0x300] sm:$0xff]  ;;  %v547_v49 = vld [vmem:[%s2444_s7 + $0x310] sm:$0xff] }
  0x2f   : > { %v549_v50 = vld [vmem:[%s2444_s7 + $0x320] sm:$0xff]  ;;  %546 = vst [vmem:[%s2449_s8 + $0x180] sm:$0xff] %v545_v48  ;;  %548 = vst [vmem:[%s2449_s8 + $0x188] sm:$0xff] %v547_v49  ;;  %v551_v51 = vld [vmem:[%s2444_s7 + $0x330] sm:$0xff] }
  0x30   : > { %550 = vst [vmem:[%s2449_s8 + $0x190] sm:$0xff] %v549_v50  ;;  %v553_v52 = vld [vmem:[%s2444_s7 + $0x340] sm:$0xff]  ;;  %v555_v53 = vld [vmem:[%s2444_s7 + $0x350] sm:$0xff]  ;;  %552 = vst [vmem:[%s2449_s8 + $0x198] sm:$0xff] %v551_v51 }
  0x31   : > { %554 = vst [vmem:[%s2449_s8 + $0x1a0] sm:$0xff] %v553_v52  ;;  %556 = vst [vmem:[%s2449_s8 + $0x1a8] sm:$0xff] %v555_v53  ;;  %v557_v54 = vld [vmem:[%s2444_s7 + $0x360] sm:$0xff]  ;;  %v559_v55 = vld [vmem:[%s2444_s7 + $0x370] sm:$0xff] }
  0x32   : > { %v561_v56 = vld [vmem:[%s2444_s7 + $0x380] sm:$0xff]  ;;  %558 = vst [vmem:[%s2449_s8 + $0x1b0] sm:$0xff] %v557_v54  ;;  %560 = vst [vmem:[%s2449_s8 + $0x1b8] sm:$0xff] %v559_v55  ;;  %v563_v57 = vld [vmem:[%s2444_s7 + $0x390] sm:$0xff] }
  0x33   : > { %562 = vst [vmem:[%s2449_s8 + $0x1c0] sm:$0xff] %v561_v56  ;;  %v565_v58 = vld [vmem:[%s2444_s7 + $0x3a0] sm:$0xff]  ;;  %v567_v59 = vld [vmem:[%s2444_s7 + $0x3b0] sm:$0xff]  ;;  %564 = vst [vmem:[%s2449_s8 + $0x1c8] sm:$0xff] %v563_v57 }
  0x34   : > { %566 = vst [vmem:[%s2449_s8 + $0x1d0] sm:$0xff] %v565_v58  ;;  %568 = vst [vmem:[%s2449_s8 + $0x1d8] sm:$0xff] %v567_v59  ;;  %v569_v60 = vld [vmem:[%s2444_s7 + $0x3c0] sm:$0xff]  ;;  %v571_v61 = vld [vmem:[%s2444_s7 + $0x3d0] sm:$0xff] }
  0x35   : > { %v573_v62 = vld [vmem:[%s2444_s7 + $0x3e0] sm:$0xff]  ;;  %570 = vst [vmem:[%s2449_s8 + $0x1e0] sm:$0xff] %v569_v60  ;;  %572 = vst [vmem:[%s2449_s8 + $0x1e8] sm:$0xff] %v571_v61  ;;  %v575_v63 = vld [vmem:[%s2444_s7 + $0x3f0] sm:$0xff] }
  0x36   : > { %574 = vst [vmem:[%s2449_s8 + $0x1f0] sm:$0xff] %v573_v62  ;;  %v577_v0 = vld [vmem:[%s2444_s7 + $0x400] sm:$0xff]  ;;  %v579_v1 = vld [vmem:[%s2444_s7 + $0x410] sm:$0xff]  ;;  %576 = vst [vmem:[%s2449_s8 + $0x1f8] sm:$0xff] %v575_v63 }
  0x37   : > { %578 = vst [vmem:[%s2449_s8 + $0x200] sm:$0xff] %v577_v0  ;;  %580 = vst [vmem:[%s2449_s8 + $0x208] sm:$0xff] %v579_v1  ;;  %v581_v2 = vld [vmem:[%s2444_s7 + $0x420] sm:$0xff]  ;;  %v583_v3 = vld [vmem:[%s2444_s7 + $0x430] sm:$0xff] }
  0x38   : > { %v585_v4 = vld [vmem:[%s2444_s7 + $0x440] sm:$0xff]  ;;  %582 = vst [vmem:[%s2449_s8 + $0x210] sm:$0xff] %v581_v2  ;;  %584 = vst [vmem:[%s2449_s8 + $0x218] sm:$0xff] %v583_v3  ;;  %v587_v5 = vld [vmem:[%s2444_s7 + $0x450] sm:$0xff] }
  0x39   : > { %586 = vst [vmem:[%s2449_s8 + $0x220] sm:$0xff] %v585_v4  ;;  %v589_v6 = vld [vmem:[%s2444_s7 + $0x460] sm:$0xff]  ;;  %v591_v7 = vld [vmem:[%s2444_s7 + $0x470] sm:$0xff]  ;;  %588 = vst [vmem:[%s2449_s8 + $0x228] sm:$0xff] %v587_v5 }
  0x3a   : > { %590 = vst [vmem:[%s2449_s8 + $0x230] sm:$0xff] %v589_v6  ;;  %592 = vst [vmem:[%s2449_s8 + $0x238] sm:$0xff] %v591_v7  ;;  %v593_v8 = vld [vmem:[%s2444_s7 + $0x480] sm:$0xff]  ;;  %v595_v9 = vld [vmem:[%s2444_s7 + $0x490] sm:$0xff] }
  0x3b   : > { %v597_v10 = vld [vmem:[%s2444_s7 + $0x4a0] sm:$0xff]  ;;  %594 = vst [vmem:[%s2449_s8 + $0x240] sm:$0xff] %v593_v8  ;;  %596 = vst [vmem:[%s2449_s8 + $0x248] sm:$0xff] %v595_v9  ;;  %v599_v11 = vld [vmem:[%s2444_s7 + $0x4b0] sm:$0xff] }
  0x3c   : > { %598 = vst [vmem:[%s2449_s8 + $0x250] sm:$0xff] %v597_v10  ;;  %v601_v12 = vld [vmem:[%s2444_s7 + $0x4c0] sm:$0xff]  ;;  %v603_v13 = vld [vmem:[%s2444_s7 + $0x4d0] sm:$0xff]  ;;  %600 = vst [vmem:[%s2449_s8 + $0x258] sm:$0xff] %v599_v11 }
  0x3d   : > { %602 = vst [vmem:[%s2449_s8 + $0x260] sm:$0xff] %v601_v12  ;;  %604 = vst [vmem:[%s2449_s8 + $0x268] sm:$0xff] %v603_v13  ;;  %v605_v14 = vld [vmem:[%s2444_s7 + $0x4e0] sm:$0xff]  ;;  %v607_v15 = vld [vmem:[%s2444_s7 + $0x4f0] sm:$0xff] }
  0x3e   : > { %v609_v16 = vld [vmem:[%s2444_s7 + $0x500] sm:$0xff]  ;;  %606 = vst [vmem:[%s2449_s8 + $0x270] sm:$0xff] %v605_v14  ;;  %608 = vst [vmem:[%s2449_s8 + $0x278] sm:$0xff] %v607_v15  ;;  %v611_v17 = vld [vmem:[%s2444_s7 + $0x510] sm:$0xff] }
  0x3f   : > { %610 = vst [vmem:[%s2449_s8 + $0x280] sm:$0xff] %v609_v16  ;;  %v613_v18 = vld [vmem:[%s2444_s7 + $0x520] sm:$0xff]  ;;  %v615_v19 = vld [vmem:[%s2444_s7 + $0x530] sm:$0xff]  ;;  %612 = vst [vmem:[%s2449_s8 + $0x288] sm:$0xff] %v611_v17 }
  0x40   : > { %614 = vst [vmem:[%s2449_s8 + $0x290] sm:$0xff] %v613_v18  ;;  %616 = vst [vmem:[%s2449_s8 + $0x298] sm:$0xff] %v615_v19  ;;  %v617_v20 = vld [vmem:[%s2444_s7 + $0x540] sm:$0xff]  ;;  %v619_v21 = vld [vmem:[%s2444_s7 + $0x550] sm:$0xff] }
  0x41   : > { %v621_v22 = vld [vmem:[%s2444_s7 + $0x560] sm:$0xff]  ;;  %618 = vst [vmem:[%s2449_s8 + $0x2a0] sm:$0xff] %v617_v20  ;;  %620 = vst [vmem:[%s2449_s8 + $0x2a8] sm:$0xff] %v619_v21  ;;  %v623_v23 = vld [vmem:[%s2444_s7 + $0x570] sm:$0xff] }
  0x42   : > { %622 = vst [vmem:[%s2449_s8 + $0x2b0] sm:$0xff] %v621_v22  ;;  %v625_v24 = vld [vmem:[%s2444_s7 + $0x580] sm:$0xff]  ;;  %v627_v25 = vld [vmem:[%s2444_s7 + $0x590] sm:$0xff]  ;;  %624 = vst [vmem:[%s2449_s8 + $0x2b8] sm:$0xff] %v623_v23 }
  0x43   : > { %626 = vst [vmem:[%s2449_s8 + $0x2c0] sm:$0xff] %v625_v24  ;;  %628 = vst [vmem:[%s2449_s8 + $0x2c8] sm:$0xff] %v627_v25  ;;  %v629_v26 = vld [vmem:[%s2444_s7 + $0x5a0] sm:$0xff]  ;;  %v631_v27 = vld [vmem:[%s2444_s7 + $0x5b0] sm:$0xff] }
  0x44   : > { %v633_v28 = vld [vmem:[%s2444_s7 + $0x5c0] sm:$0xff]  ;;  %630 = vst [vmem:[%s2449_s8 + $0x2d0] sm:$0xff] %v629_v26  ;;  %632 = vst [vmem:[%s2449_s8 + $0x2d8] sm:$0xff] %v631_v27  ;;  %v635_v29 = vld [vmem:[%s2444_s7 + $0x5d0] sm:$0xff] }
  0x45   : > { %634 = vst [vmem:[%s2449_s8 + $0x2e0] sm:$0xff] %v633_v28  ;;  %v637_v30 = vld [vmem:[%s2444_s7 + $0x5e0] sm:$0xff]  ;;  %v639_v31 = vld [vmem:[%s2444_s7 + $0x5f0] sm:$0xff]  ;;  %636 = vst [vmem:[%s2449_s8 + $0x2e8] sm:$0xff] %v635_v29 }
  0x46   : > { %638 = vst [vmem:[%s2449_s8 + $0x2f0] sm:$0xff] %v637_v30  ;;  %640 = vst [vmem:[%s2449_s8 + $0x2f8] sm:$0xff] %v639_v31  ;;  %v641_v32 = vld [vmem:[%s2444_s7 + $0x600] sm:$0xff]  ;;  %v643_v33 = vld [vmem:[%s2444_s7 + $0x610] sm:$0xff] }
  0x47   : > { %v645_v34 = vld [vmem:[%s2444_s7 + $0x620] sm:$0xff]  ;;  %642 = vst [vmem:[%s2449_s8 + $0x300] sm:$0xff] %v641_v32  ;;  %644 = vst [vmem:[%s2449_s8 + $0x308] sm:$0xff] %v643_v33  ;;  %v647_v35 = vld [vmem:[%s2444_s7 + $0x630] sm:$0xff] }
  0x48   : > { %646 = vst [vmem:[%s2449_s8 + $0x310] sm:$0xff] %v645_v34  ;;  %v649_v36 = vld [vmem:[%s2444_s7 + $0x640] sm:$0xff]  ;;  %v651_v37 = vld [vmem:[%s2444_s7 + $0x650] sm:$0xff]  ;;  %648 = vst [vmem:[%s2449_s8 + $0x318] sm:$0xff] %v647_v35 }
  0x49   : > { %650 = vst [vmem:[%s2449_s8 + $0x320] sm:$0xff] %v649_v36  ;;  %652 = vst [vmem:[%s2449_s8 + $0x328] sm:$0xff] %v651_v37  ;;  %v653_v38 = vld [vmem:[%s2444_s7 + $0x660] sm:$0xff]  ;;  %v655_v39 = vld [vmem:[%s2444_s7 + $0x670] sm:$0xff] }
  0x4a   : > { %v657_v40 = vld [vmem:[%s2444_s7 + $0x680] sm:$0xff]  ;;  %654 = vst [vmem:[%s2449_s8 + $0x330] sm:$0xff] %v653_v38  ;;  %656 = vst [vmem:[%s2449_s8 + $0x338] sm:$0xff] %v655_v39  ;;  %v659_v41 = vld [vmem:[%s2444_s7 + $0x690] sm:$0xff] }
  0x4b   : > { %658 = vst [vmem:[%s2449_s8 + $0x340] sm:$0xff] %v657_v40  ;;  %v661_v42 = vld [vmem:[%s2444_s7 + $0x6a0] sm:$0xff]  ;;  %v663_v43 = vld [vmem:[%s2444_s7 + $0x6b0] sm:$0xff]  ;;  %660 = vst [vmem:[%s2449_s8 + $0x348] sm:$0xff] %v659_v41 }
  0x4c   : > { %662 = vst [vmem:[%s2449_s8 + $0x350] sm:$0xff] %v661_v42  ;;  %664 = vst [vmem:[%s2449_s8 + $0x358] sm:$0xff] %v663_v43  ;;  %v665_v44 = vld [vmem:[%s2444_s7 + $0x6c0] sm:$0xff]  ;;  %v667_v45 = vld [vmem:[%s2444_s7 + $0x6d0] sm:$0xff] }
  0x4d   : > { %v669_v46 = vld [vmem:[%s2444_s7 + $0x6e0] sm:$0xff]  ;;  %666 = vst [vmem:[%s2449_s8 + $0x360] sm:$0xff] %v665_v44  ;;  %668 = vst [vmem:[%s2449_s8 + $0x368] sm:$0xff] %v667_v45  ;;  %v671_v47 = vld [vmem:[%s2444_s7 + $0x6f0] sm:$0xff] }
  0x4e   : > { %670 = vst [vmem:[%s2449_s8 + $0x370] sm:$0xff] %v669_v46  ;;  %v673_v48 = vld [vmem:[%s2444_s7 + $0x700] sm:$0xff]  ;;  %v675_v49 = vld [vmem:[%s2444_s7 + $0x710] sm:$0xff]  ;;  %672 = vst [vmem:[%s2449_s8 + $0x378] sm:$0xff] %v671_v47 }
  0x4f   : > { %674 = vst [vmem:[%s2449_s8 + $0x380] sm:$0xff] %v673_v48  ;;  %676 = vst [vmem:[%s2449_s8 + $0x388] sm:$0xff] %v675_v49  ;;  %v677_v50 = vld [vmem:[%s2444_s7 + $0x720] sm:$0xff]  ;;  %v679_v51 = vld [vmem:[%s2444_s7 + $0x730] sm:$0xff] }
  0x50   : > { %v681_v52 = vld [vmem:[%s2444_s7 + $0x740] sm:$0xff]  ;;  %678 = vst [vmem:[%s2449_s8 + $0x390] sm:$0xff] %v677_v50  ;;  %680 = vst [vmem:[%s2449_s8 + $0x398] sm:$0xff] %v679_v51  ;;  %v683_v53 = vld [vmem:[%s2444_s7 + $0x750] sm:$0xff] }
  0x51   : > { %682 = vst [vmem:[%s2449_s8 + $0x3a0] sm:$0xff] %v681_v52  ;;  %v685_v54 = vld [vmem:[%s2444_s7 + $0x760] sm:$0xff]  ;;  %v687_v55 = vld [vmem:[%s2444_s7 + $0x770] sm:$0xff]  ;;  %684 = vst [vmem:[%s2449_s8 + $0x3a8] sm:$0xff] %v683_v53 }
  0x52   : > { %686 = vst [vmem:[%s2449_s8 + $0x3b0] sm:$0xff] %v685_v54  ;;  %688 = vst [vmem:[%s2449_s8 + $0x3b8] sm:$0xff] %v687_v55  ;;  %v689_v56 = vld [vmem:[%s2444_s7 + $0x780] sm:$0xff]  ;;  %v691_v57 = vld [vmem:[%s2444_s7 + $0x790] sm:$0xff] }
  0x53   : > { %v693_v58 = vld [vmem:[%s2444_s7 + $0x7a0] sm:$0xff]  ;;  %690 = vst [vmem:[%s2449_s8 + $0x3c0] sm:$0xff] %v689_v56  ;;  %692 = vst [vmem:[%s2449_s8 + $0x3c8] sm:$0xff] %v691_v57  ;;  %v695_v59 = vld [vmem:[%s2444_s7 + $0x7b0] sm:$0xff] }
  0x54   : > { %694 = vst [vmem:[%s2449_s8 + $0x3d0] sm:$0xff] %v693_v58  ;;  %v697_v60 = vld [vmem:[%s2444_s7 + $0x7c0] sm:$0xff]  ;;  %v699_v61 = vld [vmem:[%s2444_s7 + $0x7d0] sm:$0xff]  ;;  %696 = vst [vmem:[%s2449_s8 + $0x3d8] sm:$0xff] %v695_v59 }
  0x55   : > { %698 = vst [vmem:[%s2449_s8 + $0x3e0] sm:$0xff] %v697_v60  ;;  %700 = vst [vmem:[%s2449_s8 + $0x3e8] sm:$0xff] %v699_v61  ;;  %v701_v62 = vld [vmem:[%s2444_s7 + $0x7e0] sm:$0xff]  ;;  %v703_v63 = vld [vmem:[%s2444_s7 + $0x7f0] sm:$0xff] }
  0x56   : > { %702 = vst [vmem:[%s2449_s8 + $0x3f0] sm:$0xff] %v701_v62  ;;  %704 = vst [vmem:[%s2449_s8 + $0x3f8] sm:$0xff] %v703_v63 }
  0x57 PF: > { %p1914_p7 = scmp.ge.s32.totalorder %s2359_s18, 1  ;;  %p717_p8 = scmp.lt.s32.totalorder %s2359_s18, 9 }
  0x59   : > { %p718_p9 = pnand %p1914_p7, %p717_p8 }
  0x5a   : > { %s724_s9 = sand.u32 (!%p718_p9), 1, %s2335_s12   ;;  %s1916_s10 = sshll.u32 (!%p718_p9), %s2343_s14, 3 }
  0x5b   : > { %721 = sbr.rel (%p718_p9) target bundleno = 453 (0x1c5), region = 66  ;;  %s1915_s11 = sshll.u32 (!%p718_p9), %s724_s9, 10 }
  0x5c   : > { %p756_p10 = scmp.lt.s32.totalorder (!%p718_p9), %s1916_s10, 31  ;;  %s1917_s21 = sshll.u32 (!%p718_p9), %s2347_s15, 1 }
  0x5d   : > { %p763_p11 = scmp.lt.s32.totalorder (!%p718_p9), %s1917_s21, 3  ;;  %s2727_s4 = scalar_lea.vmem (!%p718_p9), [#allocation3], %s1915_s11 }
  0x5e   : > { %p1920_p12 = scmp.ne.s32.totalorder (!%p718_p9), %s2343_s14, 0 }
  0x60   : > { %s2919_s10 = smov (!%p756_p10, %s1916_s10), 31  ;;  %s2921_s21 = smov (!%p763_p11, %s1917_s21), 3 }
  0x61   : > { %s758_s24 = scalar_lea.vmem %s2902_s0, %s2919_s10  ;;  %s765_s12 = scalar_lea.vmem %s2904_s2, %s2921_s21 }
  0x62   : > { %s1919_s28 = sshll.u32 %s2921_s21, 1  ;;  %776 = sbr.rel (%p1920_p12) target bundleno = 105 (0x69), region = 74 }
  0x63   : > { %s2725_s15 = scalar_lea.vmem %s2905_s3, %s1919_s28 }
  0x67   : > { %v2361_v0 = vmov 0.0  }
  0x68   : > { %777 = vst [vmem:[#allocation2] sm:$0xf] %v2361_v0 }
  0x69 PF: > { %v2112_v1 = vld [vmem:[%s2727_s4 + $0x74] ss:$8 sps:$4 sm:$0xff]   ;;  %v2116_v3 = vld [vmem:[%s2727_s4 + $0x70] ss:$8 sps:$4 sm:$0xff]   ;;  %v2118_v5 = vld [vmem:[%s2727_s4 + $0x64] ss:$8 sps:$4 sm:$0xff]   ;;  %v913_v39 = vlaneseq }
  0x6a   : > { %v2114_v2 = vld [vmem:[%s2727_s4 + $0x174] ss:$8 sps:$4 sm:$0xff]   ;;  %1606 = vmatprep.subr.bf16.mxu0 %v2112_v1  ;;  %v2117_v4 = vld [vmem:[%s2727_s4 + $0x170] ss:$8 sps:$4 sm:$0xff]   ;;  %v2120_v6 = vld [vmem:[%s2727_s4 + $0x164] ss:$8 sps:$4 sm:$0xff]  }
  0x6b   : > { %1647 = vmatprep.subr.bf16.mxu1 %v2114_v2  ;;  %1607 = vmatpush1.bf16.msra.mxu0 %v2116_v3  ;;  %v2122_v7 = vld [vmem:[%s2727_s4 + $0x60] ss:$8 sps:$4 sm:$0xff]   ;;  %v2124_v9 = vld [vmem:[%s2727_s4 + $0x54] ss:$8 sps:$4 sm:$0xff]   ;;  %v2128_v11 = vld [vmem:[%s2727_s4 + $0x50] ss:$8 sps:$4 sm:$0xff]  }
  0x6c   : > { %1648 = vmatpush1.bf16.msra.mxu1 %v2117_v4  ;;  %1608 = vmatprep.subr.bf16.mxu0 %v2118_v5  ;;  %v2123_v8 = vld [vmem:[%s2727_s4 + $0x160] ss:$8 sps:$4 sm:$0xff]   ;;  %v2126_v10 = vld [vmem:[%s2727_s4 + $0x154] ss:$8 sps:$4 sm:$0xff]   ;;  %v2129_v12 = vld [vmem:[%s2727_s4 + $0x150] ss:$8 sps:$4 sm:$0xff]  }
  0x6d   : > { %1649 = vmatprep.subr.bf16.mxu1 %v2120_v6  ;;  %v2130_v13 = vld [vmem:[%s2727_s4 + $0x44] ss:$8 sps:$4 sm:$0xff]   ;;  %v2134_v15 = vld [vmem:[%s2727_s4 + $0x40] ss:$8 sps:$4 sm:$0xff]   ;;  %v2136_v17 = vld [vmem:[%s2727_s4 + $0x34] ss:$8 sps:$4 sm:$0xff]  }
  0x6e   : > { %v2132_v14 = vld [vmem:[%s2727_s4 + $0x144] ss:$8 sps:$4 sm:$0xff]   ;;  %v2135_v16 = vld [vmem:[%s2727_s4 + $0x140] ss:$8 sps:$4 sm:$0xff]   ;;  %v2138_v18 = vld [vmem:[%s2727_s4 + $0x134] ss:$8 sps:$4 sm:$0xff]  }
  0x6f   : > { %1609 = vmatpush1.bf16.msra.mxu0 %v2122_v7  ;;  %v2140_v19 = vld [vmem:[%s2727_s4 + $0x30] ss:$8 sps:$4 sm:$0xff]   ;;  %v2142_v21 = vld [vmem:[%s2727_s4 + $0x24] ss:$8 sps:$4 sm:$0xff]   ;;  %v2146_v23 = vld [vmem:[%s2727_s4 + $0x20] ss:$8 sps:$4 sm:$0xff]  }
  0x70   : > { %1650 = vmatpush1.bf16.msra.mxu1 %v2123_v8  ;;  %1610 = vmatprep.subr.bf16.mxu0 %v2124_v9  ;;  %v2141_v20 = vld [vmem:[%s2727_s4 + $0x130] ss:$8 sps:$4 sm:$0xff]   ;;  %v2144_v22 = vld [vmem:[%s2727_s4 + $0x124] ss:$8 sps:$4 sm:$0xff]   ;;  %v2147_v24 = vld [vmem:[%s2727_s4 + $0x120] ss:$8 sps:$4 sm:$0xff]  }
  0x71   : > { %1651 = vmatprep.subr.bf16.mxu1 %v2126_v10  ;;  %v2148_v25 = vld [vmem:[%s2727_s4 + $0x14] ss:$8 sps:$4 sm:$0xff]   ;;  %v2152_v27 = vld [vmem:[%s2727_s4 + $0x10] ss:$8 sps:$4 sm:$0xff]   ;;  %v2154_v29 = vld [vmem:[%s2727_s4 + $0x4] ss:$8 sps:$4 sm:$0xff]  }
  0x72   : > { %v2150_v26 = vld [vmem:[%s2727_s4 + $0x114] ss:$8 sps:$4 sm:$0xff]   ;;  %v2153_v28 = vld [vmem:[%s2727_s4 + $0x110] ss:$8 sps:$4 sm:$0xff]   ;;  %v2156_v30 = vld [vmem:[%s2727_s4 + $0x104] ss:$8 sps:$4 sm:$0xff]  }
  0x73   : > { %1611 = vmatpush1.bf16.msra.mxu0 %v2128_v11  ;;  %v2158_v31 = vld [vmem:[%s2727_s4] ss:$8 sps:$4 sm:$0xff]   ;;  %v2160_v33 = vld [vmem:[%s2727_s4 + $0xf4] ss:$8 sps:$4 sm:$0xff]   ;;  %v2164_v35 = vld [vmem:[%s2727_s4 + $0xf0] ss:$8 sps:$4 sm:$0xff]  }
  0x74   : > { %1652 = vmatpush1.bf16.msra.mxu1 %v2129_v12  ;;  %1612 = vmatprep.subr.bf16.mxu0 %v2130_v13  ;;  %v2159_v32 = vld [vmem:[%s2727_s4 + $0x100] ss:$8 sps:$4 sm:$0xff]   ;;  %v2162_v34 = vld [vmem:[%s2727_s4 + $0x1f4] ss:$8 sps:$4 sm:$0xff]   ;;  %v2165_v36 = vld [vmem:[%s2727_s4 + $0x1f0] ss:$8 sps:$4 sm:$0xff]  }
  0x75   : > { %1653 = vmatprep.subr.bf16.mxu1 %v2132_v14  ;;  %v2362_v37 = vmov 1966171168   ;;  %v2166_v40 = vld [vmem:[%s2727_s4 + $0xe4] ss:$8 sps:$4 sm:$0xff]   ;;  %v2170_v42 = vld [vmem:[%s2727_s4 + $0xe0] ss:$8 sps:$4 sm:$0xff]  }
  0x76   : > { %v911_v38 = vunpack.c.l.s4 %v2362_v37  ;;  %v2168_v41 = vld [vmem:[%s2727_s4 + $0x1e4] ss:$8 sps:$4 sm:$0xff]   ;;  %v2769_v44 = vshrl.u32 %v913_v39, 7  ;;  %v2171_v45 = vld [vmem:[%s2727_s4 + $0x1e0] ss:$8 sps:$4 sm:$0xff]   ;;  %p2049_p13 = scmp.ne.s32.totalorder %s2343_s14, 3 }
  0x77   : > { %1613 = vmatpush1.bf16.msra.mxu0 %v2134_v15  ;;  %v2172_v46 = vld [vmem:[%s2727_s4 + $0xd4] ss:$8 sps:$4 sm:$0xff]   ;;  %v2176_v48 = vld [vmem:[%s2727_s4 + $0xd0] ss:$8 sps:$4 sm:$0xff]   ;;  %v2178_v51 = vld [vmem:[%s2727_s4 + $0xc4] ss:$8 sps:$4 sm:$0xff]  }
  0x78   : > { %1654 = vmatpush1.bf16.msra.mxu1 %v2135_v16  ;;  %1614 = vmatprep.subr.bf16.mxu0 %v2136_v17  ;;  %v912_v43 = vunpack.c.0.s8 %v911_v38  ;;  %v2174_v47 = vld [vmem:[%s2727_s4 + $0x1d4] ss:$8 sps:$4 sm:$0xff]   ;;  %v2177_v49 = vld [vmem:[%s2727_s4 + $0x1d0] ss:$8 sps:$4 sm:$0xff]   ;;  %v2180_v52 = vld [vmem:[%s2727_s4 + $0x1c4] ss:$8 sps:$4 sm:$0xff]  }
  0x79   : > { %1655 = vmatprep.subr.bf16.mxu1 %v2138_v18  ;;  %v779_v53 = vld [vmem:[%s758_s24] sm:$0xff]  ;;  %v2188_v62 = vld [vmem:[%s2727_s4 + $0xb0] ss:$8 sps:$4 sm:$0xff]   ;;  %v2190_v2 = vld [vmem:[%s2727_s4 + $0xa4] ss:$8 sps:$4 sm:$0xff]  }
  0x7a   : > { %v915_v50 = vsub.s32 %v912_v43, %v2769_v44  ;;  %v2182_v54 = vld [vmem:[%s2727_s4 + $0xc0] ss:$8 sps:$4 sm:$0xff]   ;;  %v909_v55 = vcombine.high %v779_v53, %v779_v53  ;;  %v2184_v58 = vld [vmem:[%s2727_s4 + $0xb4] ss:$8 sps:$4 sm:$0xff]   ;;  %v2189_v1 = vld [vmem:[%s2727_s4 + $0x1b0] ss:$8 sps:$4 sm:$0xff]  }
  0x7b   : > { %1615 = vmatpush1.bf16.msra.mxu0 %v2140_v19  ;;  %v2183_v57 = vld [vmem:[%s2727_s4 + $0x1c0] ss:$8 sps:$4 sm:$0xff]   ;;  %v2186_v59 = vld [vmem:[%s2727_s4 + $0x1b4] ss:$8 sps:$4 sm:$0xff]   ;;  %v2192_v3 = vld [vmem:[%s2727_s4 + $0x1a4] ss:$8 sps:$4 sm:$0xff]  }
  0x7c   : > { %1656 = vmatpush1.bf16.msra.mxu1 %v2141_v20  ;;  %1616 = vmatprep.subr.bf16.mxu0 %v2142_v21  ;;  %v916_v56 = vrot.slane %v779_v53, %v915_v50  ;;  %v923_v61 = vrot.slane %v909_v55, %v915_v50  ;;  %v2194_v5 = vld [vmem:[%s2727_s4 + $0xa0] ss:$8 sps:$4 sm:$0xff]   ;;  %v2196_v7 = vld [vmem:[%s2727_s4 + $0x94] ss:$8 sps:$4 sm:$0xff]   ;;  %v2200_v9 = vld [vmem:[%s2727_s4 + $0x90] ss:$8 sps:$4 sm:$0xff]  }
  0x7d   : > { %1657 = vmatprep.subr.bf16.mxu1 %v2144_v22  ;;  %v2195_v6 = vld [vmem:[%s2727_s4 + $0x1a0] ss:$8 sps:$4 sm:$0xff]   ;;  %v2198_v8 = vld [vmem:[%s2727_s4 + $0x194] ss:$8 sps:$4 sm:$0xff]   ;;  %v2201_v10 = vld [vmem:[%s2727_s4 + $0x190] ss:$8 sps:$4 sm:$0xff]  }
  0x7e   : > { %v924_v60 = vcombine.high %v916_v56, %v916_v56  ;;  %v2789_v0 = vrot.slane %v923_v61, %v915_v50  ;;  %v2202_v11 = vld [vmem:[%s2727_s4 + $0x84] ss:$8 sps:$4 sm:$0xff]   ;;  %v925_v13 = vcombine.high %v923_v61, %v923_v61  ;;  %v2206_v14 = vld [vmem:[%s2727_s4 + $0x80] ss:$8 sps:$4 sm:$0xff]   ;;  %v932_v15 = vrot.slane %v916_v56, %v915_v50  ;;  %v2211_v17 = vld [vmem:[%s2727_s4 + $0x274] ss:$8 sps:$4 sm:$0xff]  }
  0x7f   : > { %1617 = vmatpush1.bf16.msra.mxu0 %v2146_v23  ;;  %v2204_v12 = vld [vmem:[%s2727_s4 + $0x184] ss:$8 sps:$4 sm:$0xff]   ;;  %v2207_v16 = vld [vmem:[%s2727_s4 + $0x180] ss:$8 sps:$4 sm:$0xff]   ;;  %v2214_v18 = vld [vmem:[%s2727_s4 + $0x374] ss:$8 sps:$4 sm:$0xff]  }
  0x80   : > { %1658 = vmatpush1.bf16.msra.mxu1 %v2147_v24  ;;  %1618 = vmatprep.subr.bf16.mxu0 %v2148_v25  ;;  %v946_v63 = vrot.slane %v924_v60, %v915_v50  ;;  %v953_v19 = vrot.slane %v925_v13, %v915_v50  ;;  %v954_v20 = vcombine.high %v932_v15, %v932_v15  ;;  %v2209_v21 = vld [vmem:[%s2727_s4 + $0x270] ss:$8 sps:$4 sm:$0xff]   ;;  %v2217_v23 = vld [vmem:[%s2727_s4 + $0x264] ss:$8 sps:$4 sm:$0xff]   ;;  %v2238_v37 = vld [vmem:[%s2727_s4 + $0x334] ss:$8 sps:$4 sm:$0xff]  }
  0x81   : > { %1659 = vmatprep.subr.bf16.mxu1 %v2150_v26  ;;  %v2212_v22 = vld [vmem:[%s2727_s4 + $0x370] ss:$8 sps:$4 sm:$0xff]   ;;  %v2220_v24 = vld [vmem:[%s2727_s4 + $0x364] ss:$8 sps:$4 sm:$0xff]   ;;  %v2215_v26 = vld [vmem:[%s2727_s4 + $0x260] ss:$8 sps:$4 sm:$0xff]  }
  0x82   : > { %v956_v4 = vcombine.high %v946_v63, %v946_v63  ;;  %1638 = vmatprep.mubr.bf16.mxu0 %v946_v63  ;;  %v957_v25 = vcombine.high %v953_v19, %v953_v19  ;;  %v2233_v38 = vld [vmem:[%s2727_s4 + $0x230] ss:$8 sps:$4 sm:$0xff]   ;;  %v2242_v43 = vld [vmem:[%s2727_s4 + $0x320] ss:$8 sps:$4 sm:$0xff]   ;;  %v2256_v50 = vld [vmem:[%s2727_s4 + $0x304] ss:$8 sps:$4 sm:$0xff]  }
  0x83   : > { %1619 = vmatpush1.bf16.msra.mxu0 %v2152_v27  ;;  %v2218_v27 = vld [vmem:[%s2727_s4 + $0x360] ss:$8 sps:$4 sm:$0xff]   ;;  %v2236_v39 = vld [vmem:[%s2727_s4 + $0x330] ss:$8 sps:$4 sm:$0xff]   ;;  %v2259_v53 = vld [vmem:[%s2727_s4 + $0x2f4] ss:$8 sps:$4 sm:$0xff]  }
  0x84   : > { %1660 = vmatpush1.bf16.msra.mxu1 %v2153_v28  ;;  %1620 = vmatprep.subr.bf16.mxu0 %v2154_v29  ;;  %v2223_v28 = vld [vmem:[%s2727_s4 + $0x254] ss:$8 sps:$4 sm:$0xff]   ;;  %v2257_v55 = vld [vmem:[%s2727_s4 + $0x2f0] ss:$8 sps:$4 sm:$0xff]   ;;  %v2266_v60 = vld [vmem:[%s2727_s4 + $0x3e0] ss:$8 sps:$4 sm:$0xff]  }
  0x85   : > { %1661 = vmatprep.subr.bf16.mxu1 %v2156_v30  ;;  %1679 = vmatprep.mubr.bf16.mxu1 %v956_v4  ;;  %v2226_v29 = vld [vmem:[%s2727_s4 + $0x354] ss:$8 sps:$4 sm:$0xff]   ;;  %v2221_v30 = vld [vmem:[%s2727_s4 + $0x250] ss:$8 sps:$4 sm:$0xff]   ;;  %v2275_v4 = vld [vmem:[%s2727_s4 + $0x2c0] ss:$8 sps:$4 sm:$0xff]  }
  0x86   : > { %v2260_v56 = vld [vmem:[%s2727_s4 + $0x3f0] ss:$8 sps:$4 sm:$0xff]   ;;  %v2271_v61 = vld [vmem:[%s2727_s4 + $0x2d4] ss:$8 sps:$4 sm:$0xff]   ;;  %v2290_v13 = vld [vmem:[%s2727_s4 + $0x3a0] ss:$8 sps:$4 sm:$0xff]  }
  0x87   : > { %1621 = vmatpush1.bf16.msra.mxu0 %v2158_v31  ;;  %v2224_v31 = vld [vmem:[%s2727_s4 + $0x350] ss:$8 sps:$4 sm:$0xff]  }
  0x88   : > { %1662 = vmatpush1.bf16.msra.mxu1 %v2159_v32  ;;  %1622 = vmatprep.subr.bf16.mxu0 %v2160_v33  ;;  %v2229_v32 = vld [vmem:[%s2727_s4 + $0x244] ss:$8 sps:$4 sm:$0xff]   ;;  %v2269_v63 = vld [vmem:[%s2727_s4 + $0x2d0] ss:$8 sps:$4 sm:$0xff]  }
  0x89   : > { %1663 = vmatprep.subr.bf16.mxu1 %v2162_v34  ;;  %v2232_v33 = vld [vmem:[%s2727_s4 + $0x344] ss:$8 sps:$4 sm:$0xff]   ;;  %v2227_v34 = vld [vmem:[%s2727_s4 + $0x240] ss:$8 sps:$4 sm:$0xff]  }
  0x8b   : > { %1623 = vmatpush2.bf16.msra.mxu0 %v2164_v35  ;;  %v2230_v35 = vld [vmem:[%s2727_s4 + $0x340] ss:$8 sps:$4 sm:$0xff]  }
  0x8c   : > { %1664 = vmatpush2.bf16.msra.mxu1 %v2165_v36  ;;  %1624 = vmatprep.subr.bf16.mxu0 %v2166_v40  ;;  %v2235_v36 = vld [vmem:[%s2727_s4 + $0x234] ss:$8 sps:$4 sm:$0xff]   ;;  %v2241_v40 = vld [vmem:[%s2727_s4 + $0x224] ss:$8 sps:$4 sm:$0xff]  }
  0x8d   : > { %1665 = vmatprep.subr.bf16.mxu1 %v2168_v41  ;;  %v2244_v41 = vld [vmem:[%s2727_s4 + $0x324] ss:$8 sps:$4 sm:$0xff]  }
  0x8f   : > { %1625 = vmatpush2.bf16.msra.mxu0 %v2170_v42  ;;  %v2239_v42 = vld [vmem:[%s2727_s4 + $0x220] ss:$8 sps:$4 sm:$0xff]  }
  0x90   : > { %1666 = vmatpush2.bf16.msra.mxu1 %v2171_v45  ;;  %1626 = vmatprep.subr.bf16.mxu0 %v2172_v46  ;;  %v2247_v45 = vld [vmem:[%s2727_s4 + $0x214] ss:$8 sps:$4 sm:$0xff]  }
  0x91   : > { %1667 = vmatprep.subr.bf16.mxu1 %v2174_v47  ;;  %v2250_v46 = vld [vmem:[%s2727_s4 + $0x314] ss:$8 sps:$4 sm:$0xff]   ;;  %v2245_v47 = vld [vmem:[%s2727_s4 + $0x210] ss:$8 sps:$4 sm:$0xff]  }
  0x93   : > { %1627 = vmatpush2.bf16.msra.mxu0 %v2176_v48  ;;  %v2248_v48 = vld [vmem:[%s2727_s4 + $0x310] ss:$8 sps:$4 sm:$0xff]  }
  0x94   : > { %1668 = vmatpush2.bf16.msra.mxu1 %v2177_v49  ;;  %1628 = vmatprep.subr.bf16.mxu0 %v2178_v51  ;;  %v2253_v49 = vld [vmem:[%s2727_s4 + $0x204] ss:$8 sps:$4 sm:$0xff]   ;;  %v2251_v51 = vld [vmem:[%s2727_s4 + $0x200] ss:$8 sps:$4 sm:$0xff]  }
  0x95   : > { %1669 = vmatprep.subr.bf16.mxu1 %v2180_v52  ;;  %v2254_v52 = vld [vmem:[%s2727_s4 + $0x300] ss:$8 sps:$4 sm:$0xff]  }
  0x97   : > { %1629 = vmatpush2.bf16.msra.mxu0 %v2182_v54  ;;  %v2262_v54 = vld [vmem:[%s2727_s4 + $0x3f4] ss:$8 sps:$4 sm:$0xff]  }
  0x98   : > { %1670 = vmatpush2.bf16.msra.mxu1 %v2183_v57  ;;  %1630 = vmatprep.subr.bf16.mxu0 %v2184_v58  ;;  %v2265_v57 = vld [vmem:[%s2727_s4 + $0x2e4] ss:$8 sps:$4 sm:$0xff]  }
  0x99   : > { %1671 = vmatprep.subr.bf16.mxu1 %v2186_v59  ;;  %v2268_v58 = vld [vmem:[%s2727_s4 + $0x3e4] ss:$8 sps:$4 sm:$0xff]   ;;  %v2263_v59 = vld [vmem:[%s2727_s4 + $0x2e0] ss:$8 sps:$4 sm:$0xff]  }
  0x9b   : > { %1631 = vmatpush2.bf16.msra.mxu0 %v2188_v62  ;;  %v2274_v62 = vld [vmem:[%s2727_s4 + $0x3d4] ss:$8 sps:$4 sm:$0xff]  }
  0x9c   : > { %1672 = vmatpush2.bf16.msra.mxu1 %v2189_v1  ;;  %1632 = vmatprep.subr.bf16.mxu0 %v2190_v2  ;;  %v2272_v1 = vld [vmem:[%s2727_s4 + $0x3d0] ss:$8 sps:$4 sm:$0xff]   ;;  %v2277_v2 = vld [vmem:[%s2727_s4 + $0x2c4] ss:$8 sps:$4 sm:$0xff]  }
  0x9d   : > { %1673 = vmatprep.subr.bf16.mxu1 %v2192_v3  ;;  %v2280_v3 = vld [vmem:[%s2727_s4 + $0x3c4] ss:$8 sps:$4 sm:$0xff]  }
  0x9f   : > { %1633 = vmatpush2.bf16.msra.mxu0 %v2194_v5  ;;  %v2278_v5 = vld [vmem:[%s2727_s4 + $0x3c0] ss:$8 sps:$4 sm:$0xff]  }
  0xa0   : > { %1674 = vmatpush2.bf16.msra.mxu1 %v2195_v6  ;;  %1634 = vmatprep.subr.bf16.mxu0 %v2196_v7  ;;  %v2283_v6 = vld [vmem:[%s2727_s4 + $0x2b4] ss:$8 sps:$4 sm:$0xff]  }
  0xa1   : > { %1675 = vmatprep.subr.bf16.mxu1 %v2198_v8  ;;  %v2286_v7 = vld [vmem:[%s2727_s4 + $0x3b4] ss:$8 sps:$4 sm:$0xff]   ;;  %v2281_v8 = vld [vmem:[%s2727_s4 + $0x2b0] ss:$8 sps:$4 sm:$0xff]  }
  0xa3   : > { %1635 = vmatpush2.bf16.msra.mxu0 %v2200_v9  ;;  %v2284_v9 = vld [vmem:[%s2727_s4 + $0x3b0] ss:$8 sps:$4 sm:$0xff]  }
  0xa4   : > { %1676 = vmatpush2.bf16.msra.mxu1 %v2201_v10  ;;  %1636 = vmatprep.subr.bf16.mxu0 %v2202_v11  ;;  %v2289_v10 = vld [vmem:[%s2727_s4 + $0x2a4] ss:$8 sps:$4 sm:$0xff]  }
  0xa5   : > { %1677 = vmatprep.subr.bf16.mxu1 %v2204_v12  ;;  %v2292_v11 = vld [vmem:[%s2727_s4 + $0x3a4] ss:$8 sps:$4 sm:$0xff]   ;;  %v2287_v12 = vld [vmem:[%s2727_s4 + $0x2a0] ss:$8 sps:$4 sm:$0xff]  }
  0xa7   : > { %1637 = vmatpush2.bf16.msra.mxu0 %v2206_v14  ;;  %v2295_v14 = vld [vmem:[%s2727_s4 + $0x294] ss:$8 sps:$4 sm:$0xff]  }
  0xa8   : > { %1678 = vmatpush2.bf16.msra.mxu1 %v2207_v16  ;;  %1688 = vmatprep.subr.bf16.mxu0 %v2211_v17  ;;  %v2293_v16 = vld [vmem:[%s2727_s4 + $0x290] ss:$8 sps:$4 sm:$0xff]  }
  0xa9   : > { %1729 = vmatprep.subr.bf16.mxu1 %v2214_v18  ;;  %v2296_v17 = vld [vmem:[%s2727_s4 + $0x390] ss:$8 sps:$4 sm:$0xff]   ;;  %v2301_v18 = vld [vmem:[%s2727_s4 + $0x284] ss:$8 sps:$4 sm:$0xff]  }
  0xaa   : > { %1639 = vmatmul.mubr.bf16.vlgmr.msra.gmra.mxu0 %v932_v15  ;;  %v2298_v15 = vld [vmem:[%s2727_s4 + $0x394] ss:$8 sps:$4 sm:$0xff]  }
  0xab   : > { %1680 = vmatmul.mubr.bf16.vlgmr.msra.gmra.mxu1 %v954_v20  ;;  %1689 = vmatpush1.bf16.msra.mxu0 %v2209_v21  ;;  %v2299_v20 = vld [vmem:[%s2727_s4 + $0x280] ss:$8 sps:$4 sm:$0xff]  }
  0xac   : > { %1730 = vmatpush1.bf16.msra.mxu1 %v2212_v22  ;;  %1690 = vmatprep.subr.bf16.mxu0 %v2217_v23  ;;  %v2302_v21 = vld [vmem:[%s2727_s4 + $0x380] ss:$8 sps:$4 sm:$0xff]   ;;  %v955_v22 = vcombine.high %v2789_v0, %v2789_v0 }
  0xad   : > { %1731 = vmatprep.subr.bf16.mxu1 %v2220_v24  ;;  %1720 = vmatprep.mubr.bf16.mxu0 %v953_v19  ;;  %v2304_v19 = vld [vmem:[%s2727_s4 + $0x384] ss:$8 sps:$4 sm:$0xff]  }
  0xae   : > { %1761 = vmatprep.mubr.bf16.mxu1 %v957_v25 }
  0xaf   : > { %1691 = vmatpush1.bf16.msra.mxu0 %v2215_v26 }
  0xb0   : > { %1732 = vmatpush1.bf16.msra.mxu1 %v2218_v27  ;;  %1692 = vmatprep.subr.bf16.mxu0 %v2223_v28 }
  0xb1   : > { %1733 = vmatprep.subr.bf16.mxu1 %v2226_v29 }
  0xb3   : > { %1693 = vmatpush1.bf16.msra.mxu0 %v2221_v30 }
  0xb4   : > { %1734 = vmatpush1.bf16.msra.mxu1 %v2224_v31  ;;  %1694 = vmatprep.subr.bf16.mxu0 %v2229_v32  ;;  %v2363_v32 = vmov 1983009808  }
  0xb5   : > { %1735 = vmatprep.subr.bf16.mxu1 %v2232_v33  ;;  %v1774_v33 = vunpack.c.l.s4 %v2363_v32 }
  0xb7   : > { %1695 = vmatpush1.bf16.msra.mxu0 %v2227_v34 }
  0xb8   : > { %1736 = vmatpush1.bf16.msra.mxu1 %v2230_v35  ;;  %1696 = vmatprep.subr.bf16.mxu0 %v2235_v36 }
  0xb9   : > { %1737 = vmatprep.subr.bf16.mxu1 %v2238_v37 }
  0xbb   : > { %1697 = vmatpush1.bf16.msra.mxu0 %v2233_v38  ;;  %v1775_v38 = vunpack.c.0.s8 %v1774_v33 }
  0xbc   : > { %1738 = vmatpush1.bf16.msra.mxu1 %v2236_v39  ;;  %1698 = vmatprep.subr.bf16.mxu0 %v2241_v40 }
  0xbd   : > { %1739 = vmatprep.subr.bf16.mxu1 %v2244_v41 }
  0xbf   : > { %1699 = vmatpush1.bf16.msra.mxu0 %v2239_v42 }
  0xc0   : > { %1740 = vmatpush1.bf16.msra.mxu1 %v2242_v43  ;;  %1700 = vmatprep.subr.bf16.mxu0 %v2247_v45 }
  0xc1   : > { %1741 = vmatprep.subr.bf16.mxu1 %v2250_v46  ;;  %v1778_v46 = vsub.s32 %v1775_v38, %v2769_v44 }
  0xc3   : > { %1701 = vmatpush1.bf16.msra.mxu0 %v2245_v47 }
  0xc4   : > { %1742 = vmatpush1.bf16.msra.mxu1 %v2248_v48  ;;  %1702 = vmatprep.subr.bf16.mxu0 %v2253_v49 }
  0xc5   : > { %1743 = vmatprep.subr.bf16.mxu1 %v2256_v50  ;;  %v778_v50 = vld [vmem:[#allocation2] sm:$0xf] }
  0xc7   : > { %1703 = vmatpush1.bf16.msra.mxu0 %v2251_v51 }
  0xc8   : > { %1744 = vmatpush1.bf16.msra.mxu1 %v2254_v52  ;;  %1704 = vmatprep.subr.bf16.mxu0 %v2259_v53 }
  0xc9   : > { %1745 = vmatprep.subr.bf16.mxu1 %v2262_v54 }
  0xcb   : > { %1705 = vmatpush2.bf16.msra.mxu0 %v2257_v55 }
  0xcc   : > { %1746 = vmatpush2.bf16.msra.mxu1 %v2260_v56  ;;  %1706 = vmatprep.subr.bf16.mxu0 %v2265_v57 }
  0xcd   : > { %1747 = vmatprep.subr.bf16.mxu1 %v2268_v58 }
  0xcf   : > { %1707 = vmatpush2.bf16.msra.mxu0 %v2263_v59 }
  0xd0   : > { %1748 = vmatpush2.bf16.msra.mxu1 %v2266_v60  ;;  %1708 = vmatprep.subr.bf16.mxu0 %v2271_v61 }
  0xd1   : > { %1749 = vmatprep.subr.bf16.mxu1 %v2274_v62 }
  0xd3   : > { %1709 = vmatpush2.bf16.msra.mxu0 %v2269_v63 }
  0xd4   : > { %1750 = vmatpush2.bf16.msra.mxu1 %v2272_v1  ;;  %1710 = vmatprep.subr.bf16.mxu0 %v2277_v2 }
  0xd5   : > { %1751 = vmatprep.subr.bf16.mxu1 %v2280_v3 }
  0xd7   : > { %1711 = vmatpush2.bf16.msra.mxu0 %v2275_v4 }
  0xd8   : > { %1752 = vmatpush2.bf16.msra.mxu1 %v2278_v5  ;;  %1712 = vmatprep.subr.bf16.mxu0 %v2283_v6 }
  0xd9   : > { %1753 = vmatprep.subr.bf16.mxu1 %v2286_v7 }
  0xdb   : > { %1713 = vmatpush2.bf16.msra.mxu0 %v2281_v8 }
  0xdc   : > { %1754 = vmatpush2.bf16.msra.mxu1 %v2284_v9  ;;  %1714 = vmatprep.subr.bf16.mxu0 %v2289_v10 }
  0xdd   : > { %1755 = vmatprep.subr.bf16.mxu1 %v2292_v11 }
  0xdf   : > { %1715 = vmatpush2.bf16.msra.mxu0 %v2287_v12 }
  0xe0   : > { %1756 = vmatpush2.bf16.msra.mxu1 %v2290_v13  ;;  %1716 = vmatprep.subr.bf16.mxu0 %v2295_v14 }
  0xe1   : > { %1757 = vmatprep.subr.bf16.mxu1 %v2298_v15 }
  0xe3   : > { %1717 = vmatpush2.bf16.msra.mxu0 %v2293_v16 }
  0xe4   : > { %1758 = vmatpush2.bf16.msra.mxu1 %v2296_v17  ;;  %1718 = vmatprep.subr.bf16.mxu0 %v2301_v18 }
  0xe5   : > { %1759 = vmatprep.subr.bf16.mxu1 %v2304_v19 }
  0xe7   : > { %1719 = vmatpush2.bf16.msra.mxu0 %v2299_v20 }
  0xe8   : > { %1760 = vmatpush2.bf16.msra.mxu1 %v2302_v21 }
  0xea   : > { %1721 = vmatmul.mubr.bf16.vlgmr.msra.gmra.mxu0 %v2789_v0 }
  0xeb   : > { %1762 = vmatmul.mubr.bf16.vlgmr.msra.gmra.mxu1 %v955_v22 }
 0x16a   : > { %v1640_v23 = vpop.f32.mrf.mxu0 }
 0x16b   : > { %v1681_v24 = vpop.f32.mrf.mxu1 }
 0x16c   : > { %v1682_v25 = vadd.f32 %v1681_v24, %v1640_v23  ;;  %v1642_v26 = vpop.f32.mrf.mxu0 }
 0x16d   : > { %v1683_v27 = vpop.f32.mrf.mxu1 }
 0x16e   : > { %v1644_v28 = vpop.f32.mrf.mxu0  ;;  %v1684_v36 = vadd.f32 %v1683_v27, %v1642_v26 }
 0x16f   : > { %v1685_v29 = vpop.f32.mrf.mxu1 }
 0x170   : > { %v1645_v30 = vpop.f32.mrf.mxu0 }
 0x171   : > { %v1686_v31 = vpop.f32.mrf.mxu1 }
 0x1aa   : > { %v1722_v34 = vpop.f32.mrf.mxu0 }
 0x1ab   : > { %v1763_v35 = vpop.f32.mrf.mxu1  ;;  %v1723_v37 = vadd.f32 %v1722_v34, %v1682_v25 }
 0x1ac   : > { %v1724_v39 = vpop.f32.mrf.mxu0 }
 0x1ad   : > { %v1765_v40 = vpop.f32.mrf.mxu1  ;;  %v1725_v0 = vadd.f32 %v1724_v39, %v1684_v36  ;;  %v1764_v43 = vadd.f32 %v1763_v35, %v1723_v37 }
 0x1ae   : > { %v1726_v41 = vpop.f32.mrf.mxu0 }
 0x1af   : > { %v1767_v42 = vpop.f32.mrf.mxu1  ;;  %v1766_v45 = vadd.f32 %v1765_v40, %v1725_v0 }
 0x1b0   : > { %v1727_v47 = vpop.f32.mrf.mxu0 }
 0x1b1   : > { %v1768_v48 = vpop.f32.mrf.mxu1  ;;  %v1772_v49 = vcombine.low %v1764_v43, %v1766_v45 }
 0x1b3   : > { %v1779_v51 = vrot.slane %v1772_v49, %v1778_v46  ;;  %1786 = sbr.rel (%p2049_p13) target bundleno = 453 (0x1c5), region = 78 }
 0x1b5   : > { %v1781_v52 = vadd.f32 %v1779_v51, %v778_v50 }
 0x1b7   : > { %1782 = vst [vmem:[#allocation2] sm:$0xf] %v1781_v52 }
 0x1b8   : > { %v1788_v53 = vld [vmem:[%s765_s12] sm:$0x3]  ;;  %v1792_v54 = vsub.s32 0, %v2769_v44  ;;  %v1796_v55 = vsub.s32 1, %v2769_v44 }
 0x1ba   : > { %v1793_v56 = vrot.slane %v1788_v53, %v1792_v54  ;;  %v1797_v57 = vrot.slane %v1788_v53, %v1796_v55 }
 0x1bc   : > { %v1798_v58 = vcombine.low %v1793_v56, %v1797_v57 }
 0x1be   : > { %v1787_v59 = vld [vmem:[#allocation2] sm:$0xf]  ;;  %v1805_v60 = vrot.slane %v1798_v58, %v1778_v46 }
 0x1c0   : > { %v1807_v61 = vadd.f32 %v1805_v60, %v1787_v59 }
 0x1c2   : > { %v1808_v62 = vmax.f32 %v1807_v61, 0.0 }
 0x1c4   : > { %1809 = vst [vmem:[%s2725_s15] sm:$0xf] %v1808_v62 }
 0x1c5 PF: > { %s13_s18 = sadd.s32 1, %s2359_s18   ;;  %s2906_s12 = smov %s2339_s13 }
 0x1c6   : > { %p10_p0 = scmp.ge.s32.totalorder %s13_s18, 10   ;;  %s2907_s13 = smov %s2435_s25 }
 0x1c7   : > { %s2908_s14 = smov %s2351_s16  ;;  %s2909_s15 = smov %s2355_s17 }
 0x1c8   : > { %s2910_s16 = smov %s2913_s19  ;;  %s2911_s17 = smov %s2917_s20 }
 0x1c9   :  { %12 = sbr.rel (!%p10_p0) target bundleno = 4 (0x4), region = 119 }

// kernel: cnn_forward.12
= control target key start
LH: loop header
LB: loop body
LE: loop exit
PB: predicated region body
PF: predicated region fallthrough
CT: control target
= control target key end

     0   :  { %v341_v30 = vmov 1983009808   ;;  %v90_v32 = vlaneseq  ;;  %s564_s1 = inlined_call_operand.vmem [shape: f32[512,128], index: 1, kind: input, shape index: {}]   ;;  %s565_s0 = inlined_call_operand.vmem [shape: f32[2,512], index: 0, kind: input, shape index: {}]   ;;  %s566_s2 = inlined_call_operand.vmem [shape: f32[1,128], index: 2, kind: input, shape index: {}]   ;;  %s567_s3 = inlined_call_operand.vmem [shape: f32[2,128], index: 3, kind: output, shape index: {}]  }
   0x1   :  { %v52_v0 = vld [vmem:[%s564_s1 + $0xf8] sm:$0xff]  ;;  %v51_v4 = vld [vmem:[%s564_s1 + $0xf0] sm:$0xff]  ;;  %v50_v8 = vld [vmem:[%s564_s1 + $0xe8] sm:$0xff]  ;;  %v88_v31 = vunpack.c.l.s4 %v341_v30 }
   0x2   :  { %v84_v1 = vld [vmem:[%s564_s1 + $0x1f8] sm:$0xff]  ;;  %268 = vmatprep.subr.mxu0 %v52_v0  ;;  %v83_v5 = vld [vmem:[%s564_s1 + $0x1f0] sm:$0xff]  ;;  %v82_v9 = vld [vmem:[%s564_s1 + $0x1e8] sm:$0xff]  ;;  %v91_v42 = vshrl.u32 %v90_v32, 7 }
   0x3   :  { %v36_v2 = vld [vmem:[%s564_s1 + $0x78] sm:$0xff]  ;;  %303 = vmatprep.subr.mxu1 %v84_v1  ;;  %v35_v6 = vld [vmem:[%s564_s1 + $0x70] sm:$0xff]  ;;  %v34_v10 = vld [vmem:[%s564_s1 + $0x68] sm:$0xff]  ;;  %v89_v41 = vunpack.c.0.s8 %v88_v31 }
   0x4   :  { %v68_v3 = vld [vmem:[%s564_s1 + $0x178] sm:$0xff]  ;;  %269 = vmatpush3.msra.mxu0 %v36_v2  ;;  %v67_v7 = vld [vmem:[%s564_s1 + $0x170] sm:$0xff]  ;;  %v66_v11 = vld [vmem:[%s564_s1 + $0x168] sm:$0xff] }
   0x5   :  { %304 = vmatpush3.msra.mxu1 %v68_v3  ;;  %270 = vmatprep.subr.mxu0 %v51_v4  ;;  %v49_v12 = vld [vmem:[%s564_s1 + $0xe0] sm:$0xff]  ;;  %v48_v16 = vld [vmem:[%s564_s1 + $0xd8] sm:$0xff]  ;;  %v47_v20 = vld [vmem:[%s564_s1 + $0xd0] sm:$0xff]  ;;  %v92_v51 = vsub.s32 %v89_v41, %v91_v42 }
   0x6   :  { %305 = vmatprep.subr.mxu1 %v83_v5  ;;  %271 = vmatpush3.msra.mxu0 %v35_v6  ;;  %v81_v13 = vld [vmem:[%s564_s1 + $0x1e0] sm:$0xff]  ;;  %v80_v17 = vld [vmem:[%s564_s1 + $0x1d8] sm:$0xff]  ;;  %v79_v21 = vld [vmem:[%s564_s1 + $0x1d0] sm:$0xff] }
   0x7   :  { %306 = vmatpush3.msra.mxu1 %v67_v7  ;;  %272 = vmatprep.subr.mxu0 %v50_v8  ;;  %v33_v14 = vld [vmem:[%s564_s1 + $0x60] sm:$0xff]  ;;  %v32_v18 = vld [vmem:[%s564_s1 + $0x58] sm:$0xff]  ;;  %v31_v22 = vld [vmem:[%s564_s1 + $0x50] sm:$0xff] }
   0x8   :  { %307 = vmatprep.subr.mxu1 %v82_v9  ;;  %v65_v15 = vld [vmem:[%s564_s1 + $0x160] sm:$0xff]  ;;  %273 = vmatpush3.msra.mxu0 %v34_v10  ;;  %v64_v19 = vld [vmem:[%s564_s1 + $0x158] sm:$0xff]  ;;  %v63_v23 = vld [vmem:[%s564_s1 + $0x150] sm:$0xff] }
   0x9   :  { %308 = vmatpush3.msra.mxu1 %v66_v11  ;;  %274 = vmatprep.subr.mxu0 %v49_v12  ;;  %v46_v24 = vld [vmem:[%s564_s1 + $0xc8] sm:$0xff]  ;;  %v45_v28 = vld [vmem:[%s564_s1 + $0xc0] sm:$0xff]  ;;  %v44_v35 = vld [vmem:[%s564_s1 + $0xb8] sm:$0xff]  ;;  %v342_v12 = vmov 0.0  }
   0xa   :  { %309 = vmatprep.subr.mxu1 %v81_v13  ;;  %275 = vmatpush3.msra.mxu0 %v33_v14  ;;  %v78_v25 = vld [vmem:[%s564_s1 + $0x1c8] sm:$0xff]  ;;  %v77_v29 = vld [vmem:[%s564_s1 + $0x1c0] sm:$0xff]  ;;  %v76_v36 = vld [vmem:[%s564_s1 + $0x1b8] sm:$0xff]  ;;  %18 = vst [vmem:[#allocation2] sm:$0x3] %v342_v12 }
   0xb   :  { %310 = vmatpush3.msra.mxu1 %v65_v15  ;;  %276 = vmatprep.subr.mxu0 %v48_v16  ;;  %v30_v26 = vld [vmem:[%s564_s1 + $0x48] sm:$0xff]  ;;  %v29_v33 = vld [vmem:[%s564_s1 + $0x40] sm:$0xff]  ;;  %v28_v37 = vld [vmem:[%s564_s1 + $0x38] sm:$0xff] }
   0xc   :  { %311 = vmatprep.subr.mxu1 %v80_v17  ;;  %277 = vmatpush3.msra.mxu0 %v32_v18  ;;  %v62_v27 = vld [vmem:[%s564_s1 + $0x148] sm:$0xff]  ;;  %v61_v34 = vld [vmem:[%s564_s1 + $0x140] sm:$0xff]  ;;  %v60_v38 = vld [vmem:[%s564_s1 + $0x138] sm:$0xff] }
   0xd   :  { %312 = vmatpush3.msra.mxu1 %v64_v19  ;;  %278 = vmatprep.subr.mxu0 %v47_v20  ;;  %v43_v39 = vld [vmem:[%s564_s1 + $0xb0] sm:$0xff]  ;;  %v42_v45 = vld [vmem:[%s564_s1 + $0xa8] sm:$0xff]  ;;  %v41_v49 = vld [vmem:[%s564_s1 + $0xa0] sm:$0xff] }
   0xe   :  { %313 = vmatprep.subr.mxu1 %v79_v21  ;;  %279 = vmatpush3.msra.mxu0 %v31_v22  ;;  %v75_v40 = vld [vmem:[%s564_s1 + $0x1b0] sm:$0xff]  ;;  %v74_v46 = vld [vmem:[%s564_s1 + $0x1a8] sm:$0xff]  ;;  %v73_v50 = vld [vmem:[%s564_s1 + $0x1a0] sm:$0xff] }
   0xf   :  { %314 = vmatpush3.msra.mxu1 %v63_v23  ;;  %280 = vmatprep.subr.mxu0 %v46_v24  ;;  %v27_v43 = vld [vmem:[%s564_s1 + $0x30] sm:$0xff]  ;;  %v26_v47 = vld [vmem:[%s564_s1 + $0x28] sm:$0xff]  ;;  %v25_v52 = vld [vmem:[%s564_s1 + $0x20] sm:$0xff] }
  0x10   :  { %315 = vmatprep.subr.mxu1 %v78_v25  ;;  %281 = vmatpush3.msra.mxu0 %v30_v26  ;;  %v59_v44 = vld [vmem:[%s564_s1 + $0x130] sm:$0xff]  ;;  %v58_v48 = vld [vmem:[%s564_s1 + $0x128] sm:$0xff]  ;;  %v57_v53 = vld [vmem:[%s564_s1 + $0x120] sm:$0xff] }
  0x11   :  { %316 = vmatpush3.msra.mxu1 %v62_v27  ;;  %282 = vmatprep.subr.mxu0 %v45_v28  ;;  %v20_v54 = vld [vmem:[%s565_s0] sm:$0xff]  ;;  %v40_v55 = vld [vmem:[%s564_s1 + $0x98] sm:$0xff]  ;;  %v39_v60 = vld [vmem:[%s564_s1 + $0x90] sm:$0xff] }
  0x12   :  { %317 = vmatprep.subr.mxu1 %v77_v29  ;;  %283 = vmatpush3.msra.mxu0 %v29_v33  ;;  %v72_v56 = vld [vmem:[%s564_s1 + $0x198] sm:$0xff]  ;;  %v86_v57 = vcombine.high %v20_v54, %v20_v54  ;;  %v71_v61 = vld [vmem:[%s564_s1 + $0x190] sm:$0xff]  ;;  %v93_v62 = vrot.slane %v20_v54, %v92_v51  ;;  %v38_v2 = vld [vmem:[%s564_s1 + $0x88] sm:$0xff] }
  0x13   :  { %318 = vmatpush3.msra.mxu1 %v61_v34  ;;  %284 = vmatprep.subr.mxu0 %v44_v35  ;;  %v24_v58 = vld [vmem:[%s564_s1 + $0x18] sm:$0xff]  ;;  %v23_v63 = vld [vmem:[%s564_s1 + $0x10] sm:$0xff]  ;;  %v70_v3 = vld [vmem:[%s564_s1 + $0x188] sm:$0xff] }
  0x14   :  { %319 = vmatprep.subr.mxu1 %v76_v36  ;;  %285 = vmatpush3.msra.mxu0 %v28_v37  ;;  %v56_v59 = vld [vmem:[%s564_s1 + $0x118] sm:$0xff]  ;;  %v55_v0 = vld [vmem:[%s564_s1 + $0x110] sm:$0xff]  ;;  %v100_v1 = vrot.slane %v86_v57, %v92_v51  ;;  %v22_v4 = vld [vmem:[%s564_s1 + $0x8] sm:$0xff]  ;;  %v101_v8 = vcombine.high %v93_v62, %v93_v62 }
  0x15   :  { %320 = vmatpush3.msra.mxu1 %v60_v38  ;;  %286 = vmatprep.subr.mxu0 %v43_v39  ;;  %v54_v5 = vld [vmem:[%s564_s1 + $0x108] sm:$0xff]  ;;  %v37_v6 = vld [vmem:[%s564_s1 + $0x80] sm:$0xff] }
  0x16   :  { %321 = vmatprep.subr.mxu1 %v75_v40  ;;  %287 = vmatpush3.msra.mxu0 %v27_v43  ;;  %v69_v7 = vld [vmem:[%s564_s1 + $0x180] sm:$0xff]  ;;  %v102_v10 = vcombine.high %v100_v1, %v100_v1 }
  0x17   :  { %322 = vmatpush3.msra.mxu1 %v59_v44  ;;  %288 = vmatprep.subr.mxu0 %v42_v45  ;;  %v21_v9 = vld [vmem:[%s564_s1] sm:$0xff] }
  0x18   :  { %323 = vmatprep.subr.mxu1 %v74_v46  ;;  %289 = vmatpush3.msra.mxu0 %v26_v47  ;;  %v53_v11 = vld [vmem:[%s564_s1 + $0x100] sm:$0xff] }
  0x19   :  { %324 = vmatpush3.msra.mxu1 %v58_v48  ;;  %290 = vmatprep.subr.mxu0 %v41_v49  ;;  %v19_v19 = vld [vmem:[#allocation2] sm:$0x3] }
  0x1a   :  { %325 = vmatprep.subr.mxu1 %v73_v50  ;;  %291 = vmatpush3.msra.mxu0 %v25_v52  ;;  %v267_v22 = vld [vmem:[%s566_s2] ss:$0 sm:$0xff] }
  0x1b   :  { %326 = vmatpush3.msra.mxu1 %v57_v53  ;;  %292 = vmatprep.subr.mxu0 %v40_v55 }
  0x1c   :  { %327 = vmatprep.subr.mxu1 %v72_v56  ;;  %293 = vmatpush3.msra.mxu0 %v24_v58 }
  0x1d   :  { %328 = vmatpush3.msra.mxu1 %v56_v59  ;;  %294 = vmatprep.subr.mxu0 %v39_v60 }
  0x1e   :  { %329 = vmatprep.subr.mxu1 %v71_v61  ;;  %295 = vmatpush3.msra.mxu0 %v23_v63 }
  0x1f   :  { %330 = vmatpush3.msra.mxu1 %v55_v0  ;;  %296 = vmatprep.subr.mxu0 %v38_v2 }
  0x20   :  { %331 = vmatprep.subr.mxu1 %v70_v3  ;;  %297 = vmatpush3.msra.mxu0 %v22_v4 }
  0x21   :  { %332 = vmatpush3.msra.mxu1 %v54_v5  ;;  %298 = vmatprep.subr.mxu0 %v37_v6 }
  0x22   :  { %333 = vmatprep.subr.mxu1 %v69_v7  ;;  %299 = vmatpush3.msra.mxu0 %v21_v9 }
  0x23   :  { %171 = vmatprep.mubr.f32.mxu0 %v101_v8  ;;  %334 = vmatpush3.msra.mxu1 %v53_v11 }
  0x24   :  { %241 = vmatprep.mubr.f32.mxu1 %v102_v10  ;;  %172 = vmatmul.mubr.f32.vlgmr.msra.gmra.mxu0 %v93_v62 }
  0x25   :  { %242 = vmatmul.mubr.f32.vlgmr.msra.gmra.mxu1 %v100_v1 }
  0xe4   :  { %v300_v13 = vpop.f32.mrf.mxu0 }
  0xe5   :  { %v335_v14 = vpop.f32.mrf.mxu1 }
  0xe6   :  { %v301_v15 = vpop.f32.mrf.mxu0 }
  0xe7   :  { %v336_v16 = vpop.f32.mrf.mxu1  ;;  %v302_v17 = vadd.f32 %v301_v15, %v300_v13 }
  0xe8   :  { %v337_v18 = vadd.f32 %v336_v16, %v335_v14 }
  0xea   :  { %v244_v20 = vadd.f32 %v337_v18, %v302_v17 }
  0xec   :  { %v247_v21 = vadd.f32 %v244_v20, %v19_v19 }
  0xee   :  { %248 = vst [vmem:[#allocation2] sm:$0x3] %v247_v21 }
  0xf5   :  { %v252_v23 = vld [vmem:[#allocation2] sm:$0x3] }
  0xf6   :  { %v260_v24 = vadd.f32 %v267_v22, %v252_v23 }
  0xf8   :  { %v261_v25 = vmax.f32 %v260_v24, 0.0 }
  0xfa   :  { %262 = vst [vmem:[%s567_s3] sm:$0x3] %v261_v25 }

// kernel: cnn_forward.13
= control target key start
LH: loop header
LB: loop body
LE: loop exit
PB: predicated region body
PF: predicated region fallthrough
CT: control target
= control target key end

     0   :  { %v215_v1 = vmov 0.0   ;;  %vm216_vm0 = vmmov 0   ;;  %s295_s0 = inlined_call_operand.vmem [shape: f32[2,128], index: 0, kind: input, shape index: {}]   ;;  %s296_s1 = inlined_call_operand.vmem [shape: f32[128,128], index: 1, kind: input, shape index: {}]   ;;  %s297_s2 = inlined_call_operand.vmem [shape: f32[1,128], index: 2, kind: input, shape index: {}]   ;;  %s298_s3 = inlined_call_operand.hbm [shape: f32[2,128], index: 3, kind: output, shape index: {}]  }
   0x1   :  { %v37_v0 = vld [vmem:[%s296_s1 + $0x78] sm:$0xff]  ;;  %155 = vmatprep.subr.mxu0 %v215_v1  ;;  %19 = vst [vmem:[#allocation2] sm:$0x3] %v215_v1  ;;  %v36_v2 = vld [vmem:[%s296_s1 + $0x70] sm:$0xff]  ;;  %187 = vmatprep.mubr.msk.f32.mxu0 %vm216_vm0, %v215_v1  ;;  %v35_v3 = vld [vmem:[%s296_s1 + $0x68] sm:$0xff] }
   0x2   :  { %156 = vmatpush3.msra.mxu0 %v37_v0  ;;  %v34_v4 = vld [vmem:[%s296_s1 + $0x60] sm:$0xff] }
   0x3   :  { %157 = vmatprep.subr.mxu0 %v215_v1 }
   0x4   :  { %158 = vmatpush3.msra.mxu0 %v36_v2 }
   0x5   :  { %159 = vmatprep.subr.mxu0 %v215_v1 }
   0x6   :  { %8 = vsyncpa [#allocation4], 0  ;;  %160 = vmatpush3.msra.mxu0 %v35_v3  ;;  %v33_v5 = vld [vmem:[%s296_s1 + $0x58] sm:$0xff]  ;;  %v32_v6 = vld [vmem:[%s296_s1 + $0x50] sm:$0xff]  ;;  %s217_s21 = smov [#allocation3]  }
   0x7   :  { %161 = vmatprep.subr.mxu0 %v215_v1  ;;  %v31_v7 = vld [vmem:[%s296_s1 + $0x48] sm:$0xff]  ;;  %v30_v8 = vld [vmem:[%s296_s1 + $0x40] sm:$0xff]  ;;  %v29_v9 = vld [vmem:[%s296_s1 + $0x38] sm:$0xff]  ;;  %s129_s22 = sshll.u32 %s217_s21, 4  ;;  %s130_s22 = int_to_ptr.vmem [resolvable:$true] %s129_s22 }
   0x8   :  { %162 = vmatpush3.msra.mxu0 %v34_v4  ;;  %v28_v10 = vld [vmem:[%s296_s1 + $0x30] sm:$0xff]  ;;  %v27_v11 = vld [vmem:[%s296_s1 + $0x28] sm:$0xff]  ;;  %v26_v12 = vld [vmem:[%s296_s1 + $0x20] sm:$0xff]  ;;  %p198_p1 = scmp.lt.s32.totalorder %s130_s22, %s130_s22 }
   0x9   :  { %163 = vmatprep.subr.mxu0 %v215_v1  ;;  %v25_v13 = vld [vmem:[%s296_s1 + $0x18] sm:$0xff]  ;;  %v24_v14 = vld [vmem:[%s296_s1 + $0x10] sm:$0xff]  ;;  %v23_v15 = vld [vmem:[%s296_s1 + $0x8] sm:$0xff] }
   0xa   :  { %164 = vmatpush3.msra.mxu0 %v33_v5  ;;  %v22_v16 = vld [vmem:[%s296_s1] sm:$0xff]  ;;  %s193_s1 = scalar_lea.vmem %s130_s22, 32 }
   0xb   :  { %165 = vmatprep.subr.mxu0 %v215_v1  ;;  %v21_v17 = vld [vmem:[%s295_s0] sm:$0x3]  ;;  %p194_p0 = scmp.ne.s32.totalorder %s130_s22, %s193_s1  ;;  %p199_p2 = scmp.lt.s32.totalorder %s193_s1, %s193_s1 }
   0xc   :  { %166 = vmatpush3.msra.mxu0 %v32_v6  ;;  %v20_v18 = vld [vmem:[#allocation2] sm:$0x3] }
   0xd   :  { %167 = vmatprep.subr.mxu0 %v215_v1  ;;  %v137_v22 = vld [vmem:[%s297_s2] ss:$0 sm:$0xff]  ;;  %p200_p3 = por %p199_p2, %p198_p1 }
   0xe   :  { %168 = vmatpush3.msra.mxu0 %v31_v7 }
   0xf   :  { %169 = vmatprep.subr.mxu0 %v215_v1  ;;  %p201_p4 = pnand %p200_p3, %p194_p0 }
  0x10   :  { %170 = vmatpush3.msra.mxu0 %v30_v8 }
  0x11   :  { %171 = vmatprep.subr.mxu0 %v215_v1 }
  0x12   :  { %172 = vmatpush3.msra.mxu0 %v29_v9 }
  0x13   :  { %173 = vmatprep.subr.mxu0 %v215_v1 }
  0x14   :  { %174 = vmatpush3.msra.mxu0 %v28_v10 }
  0x15   :  { %175 = vmatprep.subr.mxu0 %v215_v1 }
  0x16   :  { %176 = vmatpush3.msra.mxu0 %v27_v11 }
  0x17   :  { %177 = vmatprep.subr.mxu0 %v215_v1 }
  0x18   :  { %178 = vmatpush3.msra.mxu0 %v26_v12 }
  0x19   :  { %179 = vmatprep.subr.mxu0 %v215_v1 }
  0x1a   :  { %180 = vmatpush3.msra.mxu0 %v25_v13 }
  0x1b   :  { %181 = vmatprep.subr.mxu0 %v215_v1 }
  0x1c   :  { %182 = vmatpush3.msra.mxu0 %v24_v14 }
  0x1d   :  { %183 = vmatprep.subr.mxu0 %v215_v1 }
  0x1e   :  { %184 = vmatpush3.msra.mxu0 %v23_v15 }
  0x1f   :  { %185 = vmatprep.subr.mxu0 %v215_v1 }
  0x20   :  { %186 = vmatpush3.msra.mxu0 %v22_v16 }
  0x21   :  { %188 = vmatmul.mubr.f32.vlgmr.msra.gmra.mxu0 %v21_v17 }
  0xe1   :  { %v104_v19 = vpop.f32.mrf.mxu0 }
  0xe2   :  { %v108_v20 = vadd.f32 %v104_v19, %v20_v18 }
  0xe3   :  { %v189_v21 = vpop.f32.mrf.mxu0 }
  0xe4   :  { %109 = vst [vmem:[#allocation2] sm:$0x3] %v108_v20 }
  0xeb   :  { %v113_v23 = vld [vmem:[#allocation2] sm:$0x3] }
  0xec   :  { %v121_v24 = vadd.f32 %v137_v22, %v113_v23 }
  0xee   :  { %122 = vst [vmem:[#allocation3] sm:$0x3] %v121_v24 }
  0xef   :  { %204 = shalt.err (!%p201_p4)
}
  0xf0   :  { %132 = dma.vmem_to_hbm [thread:$0]  %s130_s22, 32, %s298_s3, [#allocation4]  }
  0xf1   :  { %213 = dma.done.wait [#allocation4], 32  }
  0xf2   :  { %214 = vsyncadd [#allocation4], 4294967264 }
  0xf3   :  { %136 = vsyncpa [#allocation4], 1 }

// kernel: cnn_forward.10
= control target key start
LH: loop header
LB: loop body
LE: loop exit
PB: predicated region body
PF: predicated region fallthrough
CT: control target
= control target key end

     0   :  { %8 = vsyncpa [#allocation4], 0  ;;  %s10767_s0 = inlined_call_operand.vmem [shape: bf16[2,21504], index: 0, kind: input, shape index: {}]   ;;  %s10768_s1 = inlined_call_operand.hbm [shape: bf16[21504,4096], index: 1, kind: input, shape index: {}]   ;;  %s10769_s2 = inlined_call_operand.vmem [shape: f32[1,4096], index: 2, kind: input, shape index: {}]   ;;  %s10770_s3 = inlined_call_operand.vmem [shape: f32[2,4096], index: 3, kind: output, shape index: {}]  }
   0x1   :  { %10 = vsyncpa [#allocation4 + $0x1], 0  ;;  %s9377_s12 = smov 0   ;;  %s9379_s13 = smov 0  }
   0x2   :  { %s9381_s14 = smov 0   ;;  %s9383_s15 = smov 0  }
   0x3   :  { %s9385_s16 = smov 0   ;;  %s9387_s17 = smov 0  }
   0x4   :  { %s9389_s18 = smov 0   ;;  %s9391_s19 = smov 0  }
   0x5 LB: > { %s8132_s20 = sadd.s32 4294967295, %s9348_s19   ;;  %s25_s21 = sadd.s32 1, %s9340_s17  ;;  %s9348_s19 = sphi %s9391_s19, %s16_s19   ;;  %s9344_s18 = sphi %s9389_s18, %s10780_s18   ;;  %s9340_s17 = sphi %s9387_s17, %s10779_s17   ;;  %s9336_s16 = sphi %s9385_s16, %s10778_s16   ;;  %s9332_s15 = sphi %s9383_s15, %s10777_s15   ;;  %s9328_s14 = sphi %s9381_s14, %s10776_s14   ;;  %s9324_s13 = sphi %s9379_s13, %s10775_s13   ;;  %s9320_s12 = sphi %s9377_s12, %s10774_s12  }
   0x6   : > { %p26_p0 = scmp.ge.s32.totalorder %s25_s21, 21  ;;  %s28_s22 = sadd.s32 1, %s9344_s18 }
   0x7   : > { %s63_s23 = sadd.s32 1, %s9328_s14  ;;  %p70_p1 = scmp.ne.s32.totalorder %s9328_s14, %s9324_s13 }
   0x8   : > { %s10782_s21 = smov (%p26_p0, %s25_s21), 0  ;;  %s10784_s22 = smov (!%p26_p0, %s28_s22), %s9344_s18 }
   0x9   : > { %s58_s24 = ssub.s32 %s9340_s17, %s10782_s21  ;;  %p71_p2 = scmp.eq.s32.totalorder %s9348_s19, 0 }
   0xa   : > { %p30_p3 = scmp.ge.s32.totalorder %s10784_s22, 2  ;;  %p76_p4 = scmp.ne.s32.totalorder %s9324_s13, %s9320_s12 }
   0xb   : > { %p9428_p5 = por %p71_p2, %p70_p1  ;;  %p77_p6 = scmp.eq.s32.totalorder %s8132_s20, 0 }
   0xc   : > { %s10786_s22 = smov (%p30_p3, %s10784_s22), 0  ;;  %p9182_p8 = scmp.lt.s32.totalorder %s9348_s19, 42 }
   0xd   : > { %p9434_p7 = por %p77_p6, %p76_p4  ;;  %s59_s27 = ssub.s32 %s9344_s18, %s10786_s22 }
   0xe   : > { %s60_s28 = sor.u32 %s59_s27, %s58_s24  ;;  %s160_s29 = sand.u32 1, %s9328_s14  }
   0xf   : > { %p61_p9 = scmp.eq.s32.totalorder %s60_s28, 0  ;;  %s8136_s30 = sshll.u32 %s160_s29, 13 }
  0x10   : > { %s8138_s4 = sshll.u32 %s9344_s18, 4  ;;  %s9175_s6 = sshll.u32 %s9340_s17, 12 }
  0x11   : > { %s9444_s5 = scalar_select %p61_p9, %s9328_s14, %s63_s23  }
  0x12   : > { %s171_s7 = sadd.s32 %s9175_s6, %s8138_s4  ;;  %s164_s8 = scalar_lea.vmem [#allocation3], %s8136_s30 }
  0x13   : > { %s174_s9 = sshll.u32 %s164_s8, 4  ;;  %s8140_s10 = sshll.u32 %s171_s7, 6  ;;  %s175_s9 = int_to_ptr.vmem [resolvable:$true] %s174_s9 }
  0x14   : > { %s173_s20 = scalar_lea.hbm %s10768_s1, %s8140_s10  ;;  %p9454_p10 = pnand %p9182_p8, %p9428_p5 }
  0x15   : > { %s161_s27 = scalar_lea.sflag [#allocation4], %s160_s29  ;;  %s9267_s23 = scalar_lea.vmem %s175_s9, 131072 }
  0x16   : > { %p9256_p11 = pneg %p9454_p10  ;;  %p9268_p12 = scmp.ne.s32.totalorder %s175_s9, %s9267_s23 }
  0x17   : > { %s9350_s28 = smov [#allocation3]  }
  0x18   : > { %p9270_p13 = pnand %p9268_p12, %p9256_p11  ;;  %s9272_s30 = sshll.u32 %s9350_s28, 4  ;;  %s9273_s30 = int_to_ptr.vmem [resolvable:$false] %s9272_s30 }
  0x19   : > { %s9274_s4 = scalar_lea.vmem %s9273_s30, 262144  ;;  %p9275_p1 = scmp.lt.s32.totalorder %s175_s9, %s9273_s30 }
  0x1a   : > { %p9271_p0 = pneg %p9270_p13  ;;  %p9276_p2 = scmp.lt.s32.totalorder %s9274_s4, %s9267_s23 }
  0x1c   : > { %p9277_p3 = por %p9276_p2, %p9275_p1 }
  0x1e   : > { %p9278_p4 = pnand %p9277_p3, %p9271_p0 }
  0x20   : > { %9281 = shalt.err (!%p9278_p4)
}
  0x21   : > { %s9351_s25 = smov 2048   ;;  %s9352_s29 = smov 1024  }
  0x22   : > { %s9353_s6 = smov 64   ;;  %p8141_p5 = scmp.ge.s32.totalorder %s9348_s19, 1 }
  0x23   : > { %9181 = dma.hbm_to_vmem [thread:$0]  (!%p9454_p10), %s173_s20, 131072, %s175_s9, %s161_s27, %s9351_s25, %s9352_s29, %s9353_s6  }
  0x24   : > { %p190_p6 = scmp.lt.s32.totalorder %s9348_s19, 43 }
  0x26   : > { %p191_p8 = pnand %p8141_p5, %p190_p6 }
  0x27   : > { %s196_s7 = sand.u32 (!%p191_p8), 1, %s9324_s13  }
  0x28   : > { %194 = sbr.rel (%p191_p8) target bundleno = 1317 (0x525), region = 32  ;;  %s8142_s8 = sshll.u32 (!%p191_p8), %s196_s7, 13 }
  0x29   : > { %s197_s10 = scalar_lea.sflag (!%p191_p8), [#allocation4], %s196_s7  ;;  %s9465_s11 = scalar_lea.vmem (!%p191_p8), [#allocation3], %s8142_s8 }
  0x2d   : > { %9315 = dma.done.wait (%p9434_p7), %s197_s10, 131072  }
  0x2e   : > { %9317 = vsyncadd (%p9434_p7), %s197_s10, 4294836224  ;;  %s8143_s12 = sshll.u32 %s9332_s15, 3  ;;  %s8144_s9 = sshll.u32 %s9336_s16, 4 }
  0x2f   : > { %p232_p9 = scmp.lt.s32.totalorder %s8143_s12, 167  ;;  %p239_p10 = scmp.lt.s32.totalorder %s8144_s9, 31 }
  0x30   : > { %p8147_p7 = scmp.ne.s32.totalorder %s9332_s15, 0 }
  0x31   : > { %s10788_s12 = smov (!%p232_p9, %s8143_s12), 167  ;;  %s10790_s9 = smov (!%p239_p10, %s8144_s9), 31 }
  0x32   : > { %s234_s27 = scalar_lea.vmem %s10767_s0, %s10788_s12  ;;  %s9482_s30 = scalar_lea.vmem %s10769_s2, %s10790_s9 }
  0x33   : > { %s8146_s26 = sshll.u32 %s10790_s9, 1  ;;  %252 = sbr.rel (%p8147_p7) target bundleno = 59 (0x3b), region = 40 }
  0x34   : > { %s9487_s16 = scalar_lea.vmem %s10770_s3, %s8146_s26 }
  0x38   : > { %v9354_v0 = vmov 0.0  }
  0x39   : > { %253 = vst [vmem:[#allocation2 + $0x10] sm:$0xff] %v9354_v0  ;;  %254 = vst [vmem:[#allocation2] sm:$0xff] %v9354_v0 }
  0x3a   : > { %255 = vst [vmem:[#allocation2 + $0x18] sm:$0xff] %v9354_v0  ;;  %256 = vst [vmem:[#allocation2 + $0x8] sm:$0xff] %v9354_v0 }
  0x3b PF: > { %v374_v1 = vld [vmem:[%s9465_s11 + $0x380] sm:$0xff]  ;;  %v9355_v33 = vmov 1966171168   ;;  %v1291_v35 = vlaneseq  ;;  %p9172_p11 = scmp.ne.s32.totalorder %s9332_s15, 20 }
  0x3c   : > { %v382_v2 = vld [vmem:[%s9465_s11 + $0x3c0] sm:$0xff]  ;;  %v1289_v34 = vunpack.c.l.s4 %v9355_v33 }
  0x3d   : > { %v630_v3 = vld [vmem:[%s9465_s11 + $0xb80] sm:$0xff]  ;;  %v8261_v4 = vcombine.high %v374_v1, %v382_v2  ;;  %v8260_v6 = vcombine.low %v374_v1, %v382_v2  ;;  %v9512_v45 = vshrl.u32 %v1291_v35, 7 }
  0x3e   : > { %v638_v5 = vld [vmem:[%s9465_s11 + $0xbc0] sm:$0xff]  ;;  %v1290_v44 = vunpack.c.0.s8 %v1289_v34 }
  0x3f   : > { %v358_v7 = vld [vmem:[%s9465_s11 + $0x300] sm:$0xff]  ;;  %v8517_v9 = vcombine.high %v630_v3, %v638_v5  ;;  %v8516_v10 = vcombine.low %v630_v3, %v638_v5  ;;  %6464 = vmatprep.subr.bf16.mxu0 %v8261_v4 }
  0x40   : > { %v366_v8 = vld [vmem:[%s9465_s11 + $0x340] sm:$0xff]  ;;  %6465 = vmatpush1.bf16.msra.mxu0 %v8260_v6  ;;  %v9519_v54 = vsub.s32 %v1290_v44, %v9512_v45 }
  0x41   : > { %v8245_v11 = vcombine.high %v358_v7, %v366_v8  ;;  %v614_v12 = vld [vmem:[%s9465_s11 + $0xb00] sm:$0xff]  ;;  %6505 = vmatprep.subr.bf16.mxu1 %v8517_v9  ;;  %v8244_v19 = vcombine.low %v358_v7, %v366_v8 }
  0x42   : > { %v622_v13 = vld [vmem:[%s9465_s11 + $0xb40] sm:$0xff]  ;;  %6506 = vmatpush1.bf16.msra.mxu1 %v8516_v10 }
  0x43   : > { %v342_v14 = vld [vmem:[%s9465_s11 + $0x280] sm:$0xff]  ;;  %v8501_v15 = vcombine.high %v614_v12, %v622_v13  ;;  %6466 = vmatprep.subr.bf16.mxu0 %v8245_v11  ;;  %v8500_v20 = vcombine.low %v614_v12, %v622_v13 }
  0x44   : > { %v350_v16 = vld [vmem:[%s9465_s11 + $0x2c0] sm:$0xff]  ;;  %6467 = vmatpush1.bf16.msra.mxu0 %v8244_v19 }
  0x45   : > { %v598_v17 = vld [vmem:[%s9465_s11 + $0xa80] sm:$0xff]  ;;  %v8229_v21 = vcombine.high %v342_v14, %v350_v16  ;;  %6507 = vmatprep.subr.bf16.mxu1 %v8501_v15  ;;  %v8228_v27 = vcombine.low %v342_v14, %v350_v16 }
  0x46   : > { %v606_v18 = vld [vmem:[%s9465_s11 + $0xac0] sm:$0xff]  ;;  %6508 = vmatpush1.bf16.msra.mxu1 %v8500_v20 }
  0x47   : > { %v8485_v22 = vcombine.high %v598_v17, %v606_v18  ;;  %v326_v23 = vld [vmem:[%s9465_s11 + $0x200] sm:$0xff]  ;;  %6468 = vmatprep.subr.bf16.mxu0 %v8229_v21  ;;  %v8484_v28 = vcombine.low %v598_v17, %v606_v18 }
  0x48   : > { %v334_v24 = vld [vmem:[%s9465_s11 + $0x240] sm:$0xff]  ;;  %6469 = vmatpush1.bf16.msra.mxu0 %v8228_v27 }
  0x49   : > { %v582_v25 = vld [vmem:[%s9465_s11 + $0xa00] sm:$0xff]  ;;  %v8213_v29 = vcombine.high %v326_v23, %v334_v24  ;;  %6509 = vmatprep.subr.bf16.mxu1 %v8485_v22  ;;  %v8212_v38 = vcombine.low %v326_v23, %v334_v24 }
  0x4a   : > { %v590_v26 = vld [vmem:[%s9465_s11 + $0xa40] sm:$0xff]  ;;  %6510 = vmatpush1.bf16.msra.mxu1 %v8484_v28 }
  0x4b   : > { %v8469_v30 = vcombine.high %v582_v25, %v590_v26  ;;  %v310_v31 = vld [vmem:[%s9465_s11 + $0x180] sm:$0xff]  ;;  %6470 = vmatprep.subr.bf16.mxu0 %v8213_v29  ;;  %v8468_v39 = vcombine.low %v582_v25, %v590_v26 }
  0x4c   : > { %v318_v32 = vld [vmem:[%s9465_s11 + $0x1c0] sm:$0xff]  ;;  %6471 = vmatpush1.bf16.msra.mxu0 %v8212_v38 }
  0x4d   : > { %v566_v36 = vld [vmem:[%s9465_s11 + $0x980] sm:$0xff]  ;;  %v8197_v40 = vcombine.high %v310_v31, %v318_v32  ;;  %6511 = vmatprep.subr.bf16.mxu1 %v8469_v30  ;;  %v8196_v48 = vcombine.low %v310_v31, %v318_v32 }
  0x4e   : > { %v574_v37 = vld [vmem:[%s9465_s11 + $0x9c0] sm:$0xff]  ;;  %6512 = vmatpush1.bf16.msra.mxu1 %v8468_v39 }
  0x4f   : > { %v8453_v41 = vcombine.high %v566_v36, %v574_v37  ;;  %v294_v42 = vld [vmem:[%s9465_s11 + $0x100] sm:$0xff]  ;;  %6472 = vmatprep.subr.bf16.mxu0 %v8197_v40  ;;  %v8452_v49 = vcombine.low %v566_v36, %v574_v37 }
  0x50   : > { %v302_v43 = vld [vmem:[%s9465_s11 + $0x140] sm:$0xff]  ;;  %6473 = vmatpush1.bf16.msra.mxu0 %v8196_v48 }
  0x51   : > { %v550_v46 = vld [vmem:[%s9465_s11 + $0x900] sm:$0xff]  ;;  %v8181_v50 = vcombine.high %v294_v42, %v302_v43  ;;  %6513 = vmatprep.subr.bf16.mxu1 %v8453_v41  ;;  %v8180_v57 = vcombine.low %v294_v42, %v302_v43 }
  0x52   : > { %v558_v47 = vld [vmem:[%s9465_s11 + $0x940] sm:$0xff]  ;;  %6514 = vmatpush1.bf16.msra.mxu1 %v8452_v49 }
  0x53   : > { %v8437_v51 = vcombine.high %v550_v46, %v558_v47  ;;  %v278_v52 = vld [vmem:[%s9465_s11 + $0x80] sm:$0xff]  ;;  %6474 = vmatprep.subr.bf16.mxu0 %v8181_v50  ;;  %v8436_v58 = vcombine.low %v550_v46, %v558_v47 }
  0x54   : > { %v286_v53 = vld [vmem:[%s9465_s11 + $0xc0] sm:$0xff]  ;;  %6475 = vmatpush1.bf16.msra.mxu0 %v8180_v57 }
  0x55   : > { %v534_v55 = vld [vmem:[%s9465_s11 + $0x880] sm:$0xff]  ;;  %v8165_v59 = vcombine.high %v278_v52, %v286_v53  ;;  %6515 = vmatprep.subr.bf16.mxu1 %v8437_v51  ;;  %v8164_v3 = vcombine.low %v278_v52, %v286_v53 }
  0x56   : > { %v542_v56 = vld [vmem:[%s9465_s11 + $0x8c0] sm:$0xff]  ;;  %6516 = vmatpush1.bf16.msra.mxu1 %v8436_v58 }
  0x57   : > { %v261_v60 = vld [vmem:[%s234_s27] sm:$0xff]  ;;  %v8421_v61 = vcombine.high %v534_v55, %v542_v56  ;;  %6476 = vmatprep.subr.bf16.mxu0 %v8165_v59  ;;  %v8420_v5 = vcombine.low %v534_v55, %v542_v56 }
  0x58   : > { %v262_v62 = vld [vmem:[%s9465_s11] sm:$0xff]  ;;  %v9531_v0 = vrot.slane %v261_v60, %v9519_v54  ;;  %6477 = vmatpush1.bf16.msra.mxu0 %v8164_v3  ;;  %v1287_v20 = vcombine.high %v261_v60, %v261_v60 }
  0x59   : > { %v270_v63 = vld [vmem:[%s9465_s11 + $0x40] sm:$0xff]  ;;  %6517 = vmatprep.subr.bf16.mxu1 %v8421_v61 }
  0x5a   : > { %v518_v1 = vld [vmem:[%s9465_s11 + $0x800] sm:$0xff]  ;;  %v1302_v4 = vcombine.high %v9531_v0, %v9531_v0  ;;  %v8149_v6 = vcombine.high %v262_v62, %v270_v63  ;;  %v8148_v13 = vcombine.low %v262_v62, %v270_v63  ;;  %6518 = vmatpush1.bf16.msra.mxu1 %v8420_v5  ;;  %v9557_v29 = vrot.slane %v1287_v20, %v9519_v54 }
  0x5b   : > { %v526_v2 = vld [vmem:[%s9465_s11 + $0x840] sm:$0xff] }
  0x5c   : > { %v8405_v7 = vcombine.high %v518_v1, %v526_v2  ;;  %v502_v8 = vld [vmem:[%s9465_s11 + $0x780] sm:$0xff]  ;;  %v9540_v10 = vrot.slane %v1302_v4, %v9519_v54  ;;  %6478 = vmatprep.subr.bf16.mxu0 %v8149_v6  ;;  %v8404_v15 = vcombine.low %v518_v1, %v526_v2  ;;  %v9563_v33 = vrot.slane %v9557_v29, %v9519_v54 }
  0x5d   : > { %v510_v9 = vld [vmem:[%s9465_s11 + $0x7c0] sm:$0xff]  ;;  %6479 = vmatpush1.bf16.msra.mxu0 %v8148_v13 }
  0x5e   : > { %v758_v11 = vld [vmem:[%s9465_s11 + $0xf80] sm:$0xff]  ;;  %6496 = vmatprep.mubr.bf16.mxu0 %v9540_v10  ;;  %v9547_v14 = vcombine.high %v9540_v10, %v9540_v10  ;;  %v8389_v16 = vcombine.high %v502_v8, %v510_v9  ;;  %6519 = vmatprep.subr.bf16.mxu1 %v8405_v7  ;;  %v8388_v23 = vcombine.low %v502_v8, %v510_v9 }
  0x5f   : > { %v766_v12 = vld [vmem:[%s9465_s11 + $0xfc0] sm:$0xff]  ;;  %6520 = vmatpush1.bf16.msra.mxu1 %v8404_v15 }
  0x60   : > { %v8645_v17 = vcombine.high %v758_v11, %v766_v12  ;;  %v486_v18 = vld [vmem:[%s9465_s11 + $0x700] sm:$0xff]  ;;  %6537 = vmatprep.mubr.bf16.mxu1 %v9547_v14  ;;  %6480 = vmatprep.subr.bf16.mxu0 %v8389_v16  ;;  %v8644_v24 = vcombine.low %v758_v11, %v766_v12 }
  0x61   : > { %v494_v19 = vld [vmem:[%s9465_s11 + $0x740] sm:$0xff]  ;;  %6481 = vmatpush2.bf16.msra.mxu0 %v8388_v23 }
  0x62   : > { %v742_v21 = vld [vmem:[%s9465_s11 + $0xf00] sm:$0xff]  ;;  %v8373_v25 = vcombine.high %v486_v18, %v494_v19  ;;  %6521 = vmatprep.subr.bf16.mxu1 %v8645_v17  ;;  %v8372_v32 = vcombine.low %v486_v18, %v494_v19 }
  0x63   : > { %v750_v22 = vld [vmem:[%s9465_s11 + $0xf40] sm:$0xff]  ;;  %6522 = vmatpush2.bf16.msra.mxu1 %v8644_v24  ;;  %v9593_v24 = vrot.slane %v9531_v0, %v9519_v54 }
  0x64   : > { %v8629_v26 = vcombine.high %v742_v21, %v750_v22  ;;  %v470_v27 = vld [vmem:[%s9465_s11 + $0x680] sm:$0xff]  ;;  %6482 = vmatprep.subr.bf16.mxu0 %v8373_v25  ;;  %v8628_v34 = vcombine.low %v742_v21, %v750_v22  ;;  %v1303_v22 = vcombine.high %v9557_v29, %v9557_v29 }
  0x65   : > { %v478_v28 = vld [vmem:[%s9465_s11 + $0x6c0] sm:$0xff]  ;;  %6483 = vmatpush2.bf16.msra.mxu0 %v8372_v32  ;;  %v9604_v0 = vcombine.high %v9593_v24, %v9593_v24 }
  0x66   : > { %v726_v30 = vld [vmem:[%s9465_s11 + $0xe80] sm:$0xff]  ;;  %v8357_v35 = vcombine.high %v470_v27, %v478_v28  ;;  %6523 = vmatprep.subr.bf16.mxu1 %v8629_v26  ;;  %v8356_v41 = vcombine.low %v470_v27, %v478_v28  ;;  %v9600_v32 = vrot.slane %v1303_v22, %v9519_v54 }
  0x67   : > { %v734_v31 = vld [vmem:[%s9465_s11 + $0xec0] sm:$0xff]  ;;  %6524 = vmatpush2.bf16.msra.mxu1 %v8628_v34 }
  0x68   : > { %v8613_v36 = vcombine.high %v726_v30, %v734_v31  ;;  %v454_v37 = vld [vmem:[%s9465_s11 + $0x600] sm:$0xff]  ;;  %6484 = vmatprep.subr.bf16.mxu0 %v8357_v35  ;;  %v8612_v42 = vcombine.low %v726_v30, %v734_v31 }
  0x69   : > { %v462_v38 = vld [vmem:[%s9465_s11 + $0x640] sm:$0xff]  ;;  %6485 = vmatpush2.bf16.msra.mxu0 %v8356_v41  ;;  %v9613_v41 = vcombine.high %v9600_v32, %v9600_v32 }
  0x6a   : > { %v710_v39 = vld [vmem:[%s9465_s11 + $0xe00] sm:$0xff]  ;;  %v8341_v43 = vcombine.high %v454_v37, %v462_v38  ;;  %6525 = vmatprep.subr.bf16.mxu1 %v8613_v36  ;;  %v8340_v50 = vcombine.low %v454_v37, %v462_v38 }
  0x6b   : > { %v718_v40 = vld [vmem:[%s9465_s11 + $0xe40] sm:$0xff]  ;;  %6526 = vmatpush2.bf16.msra.mxu1 %v8612_v42 }
  0x6c   : > { %v8597_v44 = vcombine.high %v710_v39, %v718_v40  ;;  %v438_v46 = vld [vmem:[%s9465_s11 + $0x580] sm:$0xff]  ;;  %6486 = vmatprep.subr.bf16.mxu0 %v8341_v43  ;;  %v8596_v51 = vcombine.low %v710_v39, %v718_v40 }
  0x6d   : > { %v446_v47 = vld [vmem:[%s9465_s11 + $0x5c0] sm:$0xff]  ;;  %6487 = vmatpush2.bf16.msra.mxu0 %v8340_v50 }
  0x6e   : > { %v694_v48 = vld [vmem:[%s9465_s11 + $0xd80] sm:$0xff]  ;;  %v8325_v52 = vcombine.high %v438_v46, %v446_v47  ;;  %6527 = vmatprep.subr.bf16.mxu1 %v8597_v44  ;;  %v8324_v59 = vcombine.low %v438_v46, %v446_v47 }
  0x6f   : > { %v702_v49 = vld [vmem:[%s9465_s11 + $0xdc0] sm:$0xff]  ;;  %6528 = vmatpush2.bf16.msra.mxu1 %v8596_v51 }
  0x70   : > { %v8581_v53 = vcombine.high %v694_v48, %v702_v49  ;;  %v422_v55 = vld [vmem:[%s9465_s11 + $0x500] sm:$0xff]  ;;  %6488 = vmatprep.subr.bf16.mxu0 %v8325_v52  ;;  %v8580_v60 = vcombine.low %v694_v48, %v702_v49 }
  0x71   : > { %v430_v56 = vld [vmem:[%s9465_s11 + $0x540] sm:$0xff]  ;;  %6489 = vmatpush2.bf16.msra.mxu0 %v8324_v59 }
  0x72   : > { %v678_v57 = vld [vmem:[%s9465_s11 + $0xd00] sm:$0xff]  ;;  %v8309_v61 = vcombine.high %v422_v55, %v430_v56  ;;  %6529 = vmatprep.subr.bf16.mxu1 %v8581_v53  ;;  %v8308_v4 = vcombine.low %v422_v55, %v430_v56 }
  0x73   : > { %v686_v58 = vld [vmem:[%s9465_s11 + $0xd40] sm:$0xff]  ;;  %6530 = vmatpush2.bf16.msra.mxu1 %v8580_v60 }
  0x74   : > { %v8565_v62 = vcombine.high %v678_v57, %v686_v58  ;;  %v406_v63 = vld [vmem:[%s9465_s11 + $0x480] sm:$0xff]  ;;  %6490 = vmatprep.subr.bf16.mxu0 %v8309_v61  ;;  %v8564_v5 = vcombine.low %v678_v57, %v686_v58 }
  0x75   : > { %v414_v1 = vld [vmem:[%s9465_s11 + $0x4c0] sm:$0xff]  ;;  %6491 = vmatpush2.bf16.msra.mxu0 %v8308_v4 }
  0x76   : > { %v662_v2 = vld [vmem:[%s9465_s11 + $0xc80] sm:$0xff]  ;;  %v8293_v6 = vcombine.high %v406_v63, %v414_v1  ;;  %6531 = vmatprep.subr.bf16.mxu1 %v8565_v62  ;;  %v8292_v13 = vcombine.low %v406_v63, %v414_v1 }
  0x77   : > { %v670_v3 = vld [vmem:[%s9465_s11 + $0xcc0] sm:$0xff]  ;;  %6532 = vmatpush2.bf16.msra.mxu1 %v8564_v5 }
  0x78   : > { %v8549_v7 = vcombine.high %v662_v2, %v670_v3  ;;  %v390_v8 = vld [vmem:[%s9465_s11 + $0x400] sm:$0xff]  ;;  %6492 = vmatprep.subr.bf16.mxu0 %v8293_v6  ;;  %v8548_v15 = vcombine.low %v662_v2, %v670_v3 }
  0x79   : > { %v398_v9 = vld [vmem:[%s9465_s11 + $0x440] sm:$0xff]  ;;  %6493 = vmatpush2.bf16.msra.mxu0 %v8292_v13 }
  0x7a   : > { %v646_v11 = vld [vmem:[%s9465_s11 + $0xc00] sm:$0xff]  ;;  %v8277_v16 = vcombine.high %v390_v8, %v398_v9  ;;  %6533 = vmatprep.subr.bf16.mxu1 %v8549_v7  ;;  %v8276_v23 = vcombine.low %v390_v8, %v398_v9 }
  0x7b   : > { %v654_v12 = vld [vmem:[%s9465_s11 + $0xc40] sm:$0xff]  ;;  %6534 = vmatpush2.bf16.msra.mxu1 %v8548_v15 }
  0x7c   : > { %v8533_v17 = vcombine.high %v646_v11, %v654_v12  ;;  %v886_v18 = vld [vmem:[%s9465_s11 + $0x1380] sm:$0xff]  ;;  %6494 = vmatprep.subr.bf16.mxu0 %v8277_v16  ;;  %v8532_v25 = vcombine.low %v646_v11, %v654_v12 }
  0x7d   : > { %v894_v19 = vld [vmem:[%s9465_s11 + $0x13c0] sm:$0xff]  ;;  %6495 = vmatpush2.bf16.msra.mxu0 %v8276_v23 }
  0x7e   : > { %v1142_v20 = vld [vmem:[%s9465_s11 + $0x1b80] sm:$0xff]  ;;  %v8773_v26 = vcombine.high %v886_v18, %v894_v19  ;;  %6535 = vmatprep.subr.bf16.mxu1 %v8533_v17  ;;  %v8772_v34 = vcombine.low %v886_v18, %v894_v19 }
  0x7f   : > { %v1150_v21 = vld [vmem:[%s9465_s11 + $0x1bc0] sm:$0xff]  ;;  %6536 = vmatpush2.bf16.msra.mxu1 %v8532_v25 }
  0x80   : > { %v9029_v27 = vcombine.high %v1142_v20, %v1150_v21  ;;  %v870_v28 = vld [vmem:[%s9465_s11 + $0x1300] sm:$0xff]  ;;  %6546 = vmatprep.subr.bf16.mxu0 %v8773_v26  ;;  %v9028_v35 = vcombine.low %v1142_v20, %v1150_v21  ;;  %6497 = vmatmul.mubr.bf16.vlgmr.msra.gmra.mxu0 %v9593_v24 }
  0x81   : > { %v878_v30 = vld [vmem:[%s9465_s11 + $0x1340] sm:$0xff]  ;;  %6547 = vmatpush1.bf16.msra.mxu0 %v8772_v34  ;;  %6578 = vmatprep.mubr.bf16.mxu0 %v9600_v32 }
  0x82   : > { %v1126_v31 = vld [vmem:[%s9465_s11 + $0x1b00] sm:$0xff]  ;;  %v8757_v36 = vcombine.high %v870_v28, %v878_v30  ;;  %6587 = vmatprep.subr.bf16.mxu1 %v9029_v27  ;;  %6538 = vmatmul.mubr.bf16.vlgmr.msra.gmra.mxu1 %v9604_v0  ;;  %v8756_v42 = vcombine.low %v870_v28, %v878_v30 }
  0x83   : > { %v1134_v29 = vld [vmem:[%s9465_s11 + $0x1b40] sm:$0xff]  ;;  %6588 = vmatpush1.bf16.msra.mxu1 %v9028_v35  ;;  %6619 = vmatprep.mubr.bf16.mxu1 %v9613_v41 }
  0x84   : > { %v9013_v37 = vcombine.high %v1126_v31, %v1134_v29  ;;  %v854_v38 = vld [vmem:[%s9465_s11 + $0x1280] sm:$0xff]  ;;  %6548 = vmatprep.subr.bf16.mxu0 %v8757_v36  ;;  %v9012_v43 = vcombine.low %v1126_v31, %v1134_v29 }
  0x85   : > { %v862_v39 = vld [vmem:[%s9465_s11 + $0x12c0] sm:$0xff]  ;;  %6549 = vmatpush1.bf16.msra.mxu0 %v8756_v42 }
  0x86   : > { %v1110_v54 = vld [vmem:[%s9465_s11 + $0x1a80] sm:$0xff]  ;;  %v8741_v44 = vcombine.high %v854_v38, %v862_v39  ;;  %6589 = vmatprep.subr.bf16.mxu1 %v9013_v37  ;;  %v8740_v51 = vcombine.low %v854_v38, %v862_v39 }
  0x87   : > { %v1118_v40 = vld [vmem:[%s9465_s11 + $0x1ac0] sm:$0xff]  ;;  %6590 = vmatpush1.bf16.msra.mxu1 %v9012_v43 }
  0x88   : > { %v8997_v46 = vcombine.high %v1110_v54, %v1118_v40  ;;  %v838_v47 = vld [vmem:[%s9465_s11 + $0x1200] sm:$0xff]  ;;  %6550 = vmatprep.subr.bf16.mxu0 %v8741_v44  ;;  %v8996_v52 = vcombine.low %v1110_v54, %v1118_v40 }
  0x89   : > { %v846_v48 = vld [vmem:[%s9465_s11 + $0x1240] sm:$0xff]  ;;  %6551 = vmatpush1.bf16.msra.mxu0 %v8740_v51 }
  0x8a   : > { %v1094_v49 = vld [vmem:[%s9465_s11 + $0x1a00] sm:$0xff]  ;;  %v8725_v53 = vcombine.high %v838_v47, %v846_v48  ;;  %6591 = vmatprep.subr.bf16.mxu1 %v8997_v46  ;;  %v8724_v60 = vcombine.low %v838_v47, %v846_v48 }
  0x8b   : > { %v1102_v50 = vld [vmem:[%s9465_s11 + $0x1a40] sm:$0xff]  ;;  %6592 = vmatpush1.bf16.msra.mxu1 %v8996_v52 }
  0x8c   : > { %v8981_v55 = vcombine.high %v1094_v49, %v1102_v50  ;;  %v822_v56 = vld [vmem:[%s9465_s11 + $0x1180] sm:$0xff]  ;;  %6552 = vmatprep.subr.bf16.mxu0 %v8725_v53  ;;  %v8980_v61 = vcombine.low %v1094_v49, %v1102_v50 }
  0x8d   : > { %v830_v57 = vld [vmem:[%s9465_s11 + $0x11c0] sm:$0xff]  ;;  %6553 = vmatpush1.bf16.msra.mxu0 %v8724_v60 }
  0x8e   : > { %v1078_v58 = vld [vmem:[%s9465_s11 + $0x1980] sm:$0xff]  ;;  %v8709_v62 = vcombine.high %v822_v56, %v830_v57  ;;  %6593 = vmatprep.subr.bf16.mxu1 %v8981_v55  ;;  %v8708_v5 = vcombine.low %v822_v56, %v830_v57 }
  0x8f   : > { %v1086_v59 = vld [vmem:[%s9465_s11 + $0x19c0] sm:$0xff]  ;;  %6594 = vmatpush1.bf16.msra.mxu1 %v8980_v61 }
  0x90   : > { %v8965_v63 = vcombine.high %v1078_v58, %v1086_v59  ;;  %v806_v1 = vld [vmem:[%s9465_s11 + $0x1100] sm:$0xff]  ;;  %6554 = vmatprep.subr.bf16.mxu0 %v8709_v62  ;;  %v8964_v6 = vcombine.low %v1078_v58, %v1086_v59 }
  0x91   : > { %v814_v2 = vld [vmem:[%s9465_s11 + $0x1140] sm:$0xff]  ;;  %6555 = vmatpush1.bf16.msra.mxu0 %v8708_v5 }
  0x92   : > { %v1062_v3 = vld [vmem:[%s9465_s11 + $0x1900] sm:$0xff]  ;;  %v8693_v7 = vcombine.high %v806_v1, %v814_v2  ;;  %6595 = vmatprep.subr.bf16.mxu1 %v8965_v63  ;;  %v8692_v15 = vcombine.low %v806_v1, %v814_v2 }
  0x93   : > { %v1070_v4 = vld [vmem:[%s9465_s11 + $0x1940] sm:$0xff]  ;;  %6596 = vmatpush1.bf16.msra.mxu1 %v8964_v6 }
  0x94   : > { %v8949_v8 = vcombine.high %v1062_v3, %v1070_v4  ;;  %v790_v9 = vld [vmem:[%s9465_s11 + $0x1080] sm:$0xff]  ;;  %6556 = vmatprep.subr.bf16.mxu0 %v8693_v7  ;;  %v8948_v16 = vcombine.low %v1062_v3, %v1070_v4 }
  0x95   : > { %v798_v11 = vld [vmem:[%s9465_s11 + $0x10c0] sm:$0xff]  ;;  %6557 = vmatpush1.bf16.msra.mxu0 %v8692_v15 }
  0x96   : > { %v1046_v12 = vld [vmem:[%s9465_s11 + $0x1880] sm:$0xff]  ;;  %v8677_v17 = vcombine.high %v790_v9, %v798_v11  ;;  %6597 = vmatprep.subr.bf16.mxu1 %v8949_v8  ;;  %v8676_v23 = vcombine.low %v790_v9, %v798_v11 }
  0x97   : > { %v1054_v13 = vld [vmem:[%s9465_s11 + $0x18c0] sm:$0xff]  ;;  %6598 = vmatpush1.bf16.msra.mxu1 %v8948_v16 }
  0x98   : > { %v8933_v18 = vcombine.high %v1046_v12, %v1054_v13  ;;  %v774_v19 = vld [vmem:[%s9465_s11 + $0x1000] sm:$0xff]  ;;  %6558 = vmatprep.subr.bf16.mxu0 %v8677_v17  ;;  %v8932_v25 = vcombine.low %v1046_v12, %v1054_v13 }
  0x99   : > { %v782_v20 = vld [vmem:[%s9465_s11 + $0x1040] sm:$0xff]  ;;  %6559 = vmatpush1.bf16.msra.mxu0 %v8676_v23 }
  0x9a   : > { %v1030_v21 = vld [vmem:[%s9465_s11 + $0x1800] sm:$0xff]  ;;  %v8661_v26 = vcombine.high %v774_v19, %v782_v20  ;;  %6599 = vmatprep.subr.bf16.mxu1 %v8933_v18  ;;  %v8660_v34 = vcombine.low %v774_v19, %v782_v20 }
  0x9b   : > { %v1038_v22 = vld [vmem:[%s9465_s11 + $0x1840] sm:$0xff]  ;;  %6600 = vmatpush1.bf16.msra.mxu1 %v8932_v25 }
  0x9c   : > { %v8917_v27 = vcombine.high %v1030_v21, %v1038_v22  ;;  %v1014_v28 = vld [vmem:[%s9465_s11 + $0x1780] sm:$0xff]  ;;  %6560 = vmatprep.subr.bf16.mxu0 %v8661_v26  ;;  %v8916_v35 = vcombine.low %v1030_v21, %v1038_v22 }
  0x9d   : > { %v1022_v30 = vld [vmem:[%s9465_s11 + $0x17c0] sm:$0xff]  ;;  %6561 = vmatpush1.bf16.msra.mxu0 %v8660_v34 }
  0x9e   : > { %v1270_v31 = vld [vmem:[%s9465_s11 + $0x1f80] sm:$0xff]  ;;  %v8901_v36 = vcombine.high %v1014_v28, %v1022_v30  ;;  %6601 = vmatprep.subr.bf16.mxu1 %v8917_v27  ;;  %v8900_v42 = vcombine.low %v1014_v28, %v1022_v30 }
  0x9f   : > { %v1278_v29 = vld [vmem:[%s9465_s11 + $0x1fc0] sm:$0xff]  ;;  %6602 = vmatpush1.bf16.msra.mxu1 %v8916_v35 }
  0xa0   : > { %v9157_v37 = vcombine.high %v1270_v31, %v1278_v29  ;;  %v998_v38 = vld [vmem:[%s9465_s11 + $0x1700] sm:$0xff]  ;;  %6562 = vmatprep.subr.bf16.mxu0 %v8901_v36  ;;  %v9156_v43 = vcombine.low %v1270_v31, %v1278_v29 }
  0xa1   : > { %v1006_v39 = vld [vmem:[%s9465_s11 + $0x1740] sm:$0xff]  ;;  %6563 = vmatpush2.bf16.msra.mxu0 %v8900_v42 }
  0xa2   : > { %v1254_v54 = vld [vmem:[%s9465_s11 + $0x1f00] sm:$0xff]  ;;  %v8885_v44 = vcombine.high %v998_v38, %v1006_v39  ;;  %6603 = vmatprep.subr.bf16.mxu1 %v9157_v37  ;;  %v8884_v51 = vcombine.low %v998_v38, %v1006_v39  ;;  %v375_v38 = vld [vmem:[%s9465_s11 + $0x388] sm:$0xff] }
  0xa3   : > { %v1262_v40 = vld [vmem:[%s9465_s11 + $0x1f40] sm:$0xff]  ;;  %6604 = vmatpush2.bf16.msra.mxu1 %v9156_v43  ;;  %v383_v39 = vld [vmem:[%s9465_s11 + $0x3c8] sm:$0xff] }
  0xa4   : > { %v9141_v46 = vcombine.high %v1254_v54, %v1262_v40  ;;  %v982_v47 = vld [vmem:[%s9465_s11 + $0x1680] sm:$0xff]  ;;  %6564 = vmatprep.subr.bf16.mxu0 %v8885_v44  ;;  %v9140_v52 = vcombine.low %v1254_v54, %v1262_v40  ;;  %v631_v54 = vld [vmem:[%s9465_s11 + $0xb88] sm:$0xff]  ;;  %v8263_v44 = vcombine.high %v375_v38, %v383_v39 }
  0xa5   : > { %v990_v48 = vld [vmem:[%s9465_s11 + $0x16c0] sm:$0xff]  ;;  %6565 = vmatpush2.bf16.msra.mxu0 %v8884_v51  ;;  %v639_v40 = vld [vmem:[%s9465_s11 + $0xbc8] sm:$0xff]  ;;  %v9680_v51 = vcombine.high %v9563_v33, %v9563_v33 }
  0xa6   : > { %v1238_v49 = vld [vmem:[%s9465_s11 + $0x1e80] sm:$0xff]  ;;  %v8869_v53 = vcombine.high %v982_v47, %v990_v48  ;;  %6605 = vmatprep.subr.bf16.mxu1 %v9141_v46  ;;  %v8868_v60 = vcombine.low %v982_v47, %v990_v48  ;;  %v8519_v46 = vcombine.high %v631_v54, %v639_v40  ;;  %v359_v47 = vld [vmem:[%s9465_s11 + $0x308] sm:$0xff] }
  0xa7   : > { %v1246_v50 = vld [vmem:[%s9465_s11 + $0x1ec0] sm:$0xff]  ;;  %6606 = vmatpush2.bf16.msra.mxu1 %v9140_v52  ;;  %v367_v48 = vld [vmem:[%s9465_s11 + $0x348] sm:$0xff]  ;;  %v8262_v52 = vcombine.low %v375_v38, %v383_v39 }
  0xa8   : > { %v9125_v55 = vcombine.high %v1238_v49, %v1246_v50  ;;  %v966_v56 = vld [vmem:[%s9465_s11 + $0x1600] sm:$0xff]  ;;  %6566 = vmatprep.subr.bf16.mxu0 %v8869_v53  ;;  %v9124_v61 = vcombine.low %v1238_v49, %v1246_v50  ;;  %v615_v49 = vld [vmem:[%s9465_s11 + $0xb08] sm:$0xff]  ;;  %v8518_v53 = vcombine.low %v631_v54, %v639_v40 }
  0xa9   : > { %v974_v57 = vld [vmem:[%s9465_s11 + $0x1640] sm:$0xff]  ;;  %6567 = vmatpush2.bf16.msra.mxu0 %v8868_v60  ;;  %v623_v50 = vld [vmem:[%s9465_s11 + $0xb48] sm:$0xff] }
  0xaa   : > { %v1222_v58 = vld [vmem:[%s9465_s11 + $0x1e00] sm:$0xff]  ;;  %v8853_v62 = vcombine.high %v966_v56, %v974_v57  ;;  %6607 = vmatprep.subr.bf16.mxu1 %v9125_v55  ;;  %v8852_v5 = vcombine.low %v966_v56, %v974_v57  ;;  %v8247_v55 = vcombine.high %v359_v47, %v367_v48  ;;  %v8503_v56 = vcombine.high %v615_v49, %v623_v50  ;;  %v343_v57 = vld [vmem:[%s9465_s11 + $0x288] sm:$0xff] }
  0xab   : > { %v1230_v59 = vld [vmem:[%s9465_s11 + $0x1e40] sm:$0xff]  ;;  %6608 = vmatpush2.bf16.msra.mxu1 %v9124_v61  ;;  %v607_v60 = vld [vmem:[%s9465_s11 + $0xac8] sm:$0xff]  ;;  %v8246_v61 = vcombine.low %v359_v47, %v367_v48 }
  0xac   : > { %v9109_v63 = vcombine.high %v1222_v58, %v1230_v59  ;;  %v950_v1 = vld [vmem:[%s9465_s11 + $0x1580] sm:$0xff]  ;;  %6568 = vmatprep.subr.bf16.mxu0 %v8853_v62  ;;  %v9108_v6 = vcombine.low %v1222_v58, %v1230_v59  ;;  %v351_v58 = vld [vmem:[%s9465_s11 + $0x2c8] sm:$0xff]  ;;  %v8502_v62 = vcombine.low %v615_v49, %v623_v50 }
  0xad   : > { %v958_v2 = vld [vmem:[%s9465_s11 + $0x15c0] sm:$0xff]  ;;  %6569 = vmatpush2.bf16.msra.mxu0 %v8852_v5  ;;  %v599_v59 = vld [vmem:[%s9465_s11 + $0xa88] sm:$0xff] }
  0xae   : > { %v1206_v3 = vld [vmem:[%s9465_s11 + $0x1d80] sm:$0xff]  ;;  %v8837_v7 = vcombine.high %v950_v1, %v958_v2  ;;  %6609 = vmatprep.subr.bf16.mxu1 %v9109_v63  ;;  %v8836_v15 = vcombine.low %v950_v1, %v958_v2  ;;  %v8231_v63 = vcombine.high %v343_v57, %v351_v58  ;;  %v8487_v1 = vcombine.high %v599_v59, %v607_v60  ;;  %v327_v2 = vld [vmem:[%s9465_s11 + $0x208] sm:$0xff] }
  0xaf   : > { %v1214_v4 = vld [vmem:[%s9465_s11 + $0x1dc0] sm:$0xff]  ;;  %6610 = vmatpush2.bf16.msra.mxu1 %v9108_v6  ;;  %v591_v5 = vld [vmem:[%s9465_s11 + $0xa48] sm:$0xff]  ;;  %v8230_v6 = vcombine.low %v343_v57, %v351_v58 }
  0xb0   : > { %v9093_v8 = vcombine.high %v1206_v3, %v1214_v4  ;;  %v934_v9 = vld [vmem:[%s9465_s11 + $0x1500] sm:$0xff]  ;;  %6570 = vmatprep.subr.bf16.mxu0 %v8837_v7  ;;  %v9092_v16 = vcombine.low %v1206_v3, %v1214_v4  ;;  %v335_v3 = vld [vmem:[%s9465_s11 + $0x248] sm:$0xff]  ;;  %v8486_v7 = vcombine.low %v599_v59, %v607_v60 }
  0xb1   : > { %v942_v11 = vld [vmem:[%s9465_s11 + $0x1540] sm:$0xff]  ;;  %6571 = vmatpush2.bf16.msra.mxu0 %v8836_v15  ;;  %v583_v4 = vld [vmem:[%s9465_s11 + $0xa08] sm:$0xff] }
  0xb2   : > { %v1190_v12 = vld [vmem:[%s9465_s11 + $0x1d00] sm:$0xff]  ;;  %v8821_v17 = vcombine.high %v934_v9, %v942_v11  ;;  %6611 = vmatprep.subr.bf16.mxu1 %v9093_v8  ;;  %v8820_v23 = vcombine.low %v934_v9, %v942_v11  ;;  %v8215_v8 = vcombine.high %v327_v2, %v335_v3  ;;  %v8471_v9 = vcombine.high %v583_v4, %v591_v5  ;;  %v311_v11 = vld [vmem:[%s9465_s11 + $0x188] sm:$0xff] }
  0xb3   : > { %v1198_v13 = vld [vmem:[%s9465_s11 + $0x1d40] sm:$0xff]  ;;  %6612 = vmatpush2.bf16.msra.mxu1 %v9092_v16  ;;  %v575_v15 = vld [vmem:[%s9465_s11 + $0x9c8] sm:$0xff]  ;;  %v8214_v16 = vcombine.low %v327_v2, %v335_v3 }
  0xb4   : > { %v9077_v18 = vcombine.high %v1190_v12, %v1198_v13  ;;  %v918_v19 = vld [vmem:[%s9465_s11 + $0x1480] sm:$0xff]  ;;  %6572 = vmatprep.subr.bf16.mxu0 %v8821_v17  ;;  %v9076_v25 = vcombine.low %v1190_v12, %v1198_v13  ;;  %v319_v12 = vld [vmem:[%s9465_s11 + $0x1c8] sm:$0xff]  ;;  %v8470_v17 = vcombine.low %v583_v4, %v591_v5 }
  0xb5   : > { %v926_v20 = vld [vmem:[%s9465_s11 + $0x14c0] sm:$0xff]  ;;  %6573 = vmatpush2.bf16.msra.mxu0 %v8820_v23  ;;  %v567_v13 = vld [vmem:[%s9465_s11 + $0x988] sm:$0xff] }
  0xb6   : > { %v1174_v21 = vld [vmem:[%s9465_s11 + $0x1c80] sm:$0xff]  ;;  %v8805_v26 = vcombine.high %v918_v19, %v926_v20  ;;  %6613 = vmatprep.subr.bf16.mxu1 %v9077_v18  ;;  %v8804_v34 = vcombine.low %v918_v19, %v926_v20  ;;  %v8199_v18 = vcombine.high %v311_v11, %v319_v12  ;;  %v8455_v19 = vcombine.high %v567_v13, %v575_v15  ;;  %v295_v20 = vld [vmem:[%s9465_s11 + $0x108] sm:$0xff] }
  0xb7   : > { %v1182_v22 = vld [vmem:[%s9465_s11 + $0x1cc0] sm:$0xff]  ;;  %6614 = vmatpush2.bf16.msra.mxu1 %v9076_v25  ;;  %v559_v23 = vld [vmem:[%s9465_s11 + $0x948] sm:$0xff]  ;;  %v8198_v25 = vcombine.low %v311_v11, %v319_v12 }
  0xb8   : > { %v9061_v27 = vcombine.high %v1174_v21, %v1182_v22  ;;  %v902_v28 = vld [vmem:[%s9465_s11 + $0x1400] sm:$0xff]  ;;  %6574 = vmatprep.subr.bf16.mxu0 %v8805_v26  ;;  %v9060_v35 = vcombine.low %v1174_v21, %v1182_v22  ;;  %v303_v21 = vld [vmem:[%s9465_s11 + $0x148] sm:$0xff]  ;;  %v8454_v26 = vcombine.low %v567_v13, %v575_v15 }
  0xb9   : > { %v910_v30 = vld [vmem:[%s9465_s11 + $0x1440] sm:$0xff]  ;;  %6575 = vmatpush2.bf16.msra.mxu0 %v8804_v34  ;;  %v551_v22 = vld [vmem:[%s9465_s11 + $0x908] sm:$0xff] }
  0xba   : > { %v1158_v31 = vld [vmem:[%s9465_s11 + $0x1c00] sm:$0xff]  ;;  %v8789_v36 = vcombine.high %v902_v28, %v910_v30  ;;  %6615 = vmatprep.subr.bf16.mxu1 %v9061_v27  ;;  %v8788_v42 = vcombine.low %v902_v28, %v910_v30  ;;  %v8183_v27 = vcombine.high %v295_v20, %v303_v21  ;;  %v8439_v28 = vcombine.high %v551_v22, %v559_v23  ;;  %v279_v30 = vld [vmem:[%s9465_s11 + $0x88] sm:$0xff] }
  0xbb   : > { %v1166_v29 = vld [vmem:[%s9465_s11 + $0x1c40] sm:$0xff]  ;;  %6616 = vmatpush2.bf16.msra.mxu1 %v9060_v35  ;;  %v543_v34 = vld [vmem:[%s9465_s11 + $0x8c8] sm:$0xff]  ;;  %v8182_v35 = vcombine.low %v295_v20, %v303_v21 }
  0xbc   : > { %v9045_v37 = vcombine.high %v1158_v31, %v1166_v29  ;;  %6576 = vmatprep.subr.bf16.mxu0 %v8789_v36  ;;  %v9044_v43 = vcombine.low %v1158_v31, %v1166_v29  ;;  %v287_v31 = vld [vmem:[%s9465_s11 + $0xc8] sm:$0xff]  ;;  %v8438_v36 = vcombine.low %v551_v22, %v559_v23 }
  0xbd   : > { %6577 = vmatpush2.bf16.msra.mxu0 %v8788_v42  ;;  %v535_v29 = vld [vmem:[%s9465_s11 + $0x888] sm:$0xff] }
  0xbe   : > { %6617 = vmatprep.subr.bf16.mxu1 %v9045_v37  ;;  %6628 = vmatprep.subr.bf16.mxu0 %v8263_v44  ;;  %v8167_v37 = vcombine.high %v279_v30, %v287_v31  ;;  %v8423_v38 = vcombine.high %v535_v29, %v543_v34  ;;  %v263_v39 = vld [vmem:[%s9465_s11 + $0x8] sm:$0xff]  ;;  %v8422_v44 = vcombine.low %v535_v29, %v543_v34 }
  0xbf   : > { %6618 = vmatpush2.bf16.msra.mxu1 %v9044_v43  ;;  %v271_v54 = vld [vmem:[%s9465_s11 + $0x48] sm:$0xff]  ;;  %v8166_v43 = vcombine.low %v279_v30, %v287_v31 }
  0xc0   : > { %6669 = vmatprep.subr.bf16.mxu1 %v8519_v46  ;;  %6579 = vmatmul.mubr.bf16.vlgmr.msra.gmra.mxu0 %v9563_v33  ;;  %v519_v40 = vld [vmem:[%s9465_s11 + $0x808] sm:$0xff]  ;;  %v8151_v46 = vcombine.high %v263_v39, %v271_v54 }
  0xc1   : > { %6629 = vmatpush1.bf16.msra.mxu0 %v8262_v52  ;;  %6660 = vmatprep.mubr.bf16.mxu0 %v9540_v10  ;;  %v527_v42 = vld [vmem:[%s9465_s11 + $0x848] sm:$0xff] }
  0xc2   : > { %6620 = vmatmul.mubr.bf16.vlgmr.msra.gmra.mxu1 %v9680_v51  ;;  %6630 = vmatprep.subr.bf16.mxu0 %v8247_v55  ;;  %v8407_v47 = vcombine.high %v519_v40, %v527_v42  ;;  %v503_v48 = vld [vmem:[%s9465_s11 + $0x788] sm:$0xff]  ;;  %v8406_v55 = vcombine.low %v519_v40, %v527_v42 }
  0xc3   : > { %6670 = vmatpush1.bf16.msra.mxu1 %v8518_v53  ;;  %6701 = vmatprep.mubr.bf16.mxu1 %v9547_v14  ;;  %v511_v49 = vld [vmem:[%s9465_s11 + $0x7c8] sm:$0xff]  ;;  %v8150_v53 = vcombine.low %v263_v39, %v271_v54 }
  0xc4   : > { %6671 = vmatprep.subr.bf16.mxu1 %v8503_v56  ;;  %v759_v50 = vld [vmem:[%s9465_s11 + $0xf88] sm:$0xff]  ;;  %v8391_v56 = vcombine.high %v503_v48, %v511_v49 }
  0xc5   : > { %6631 = vmatpush1.bf16.msra.mxu0 %v8246_v61  ;;  %v767_v52 = vld [vmem:[%s9465_s11 + $0xfc8] sm:$0xff] }
  0xc6   : > { %6632 = vmatprep.subr.bf16.mxu0 %v8231_v63  ;;  %v8647_v57 = vcombine.high %v759_v50, %v767_v52  ;;  %v487_v58 = vld [vmem:[%s9465_s11 + $0x708] sm:$0xff]  ;;  %v8646_v63 = vcombine.low %v759_v50, %v767_v52 }
  0xc7   : > { %6672 = vmatpush1.bf16.msra.mxu1 %v8502_v62  ;;  %v495_v59 = vld [vmem:[%s9465_s11 + $0x748] sm:$0xff]  ;;  %v8390_v62 = vcombine.low %v503_v48, %v511_v49 }
  0xc8   : > { %6673 = vmatprep.subr.bf16.mxu1 %v8487_v1  ;;  %v743_v60 = vld [vmem:[%s9465_s11 + $0xf08] sm:$0xff]  ;;  %v8375_v1 = vcombine.high %v487_v58, %v495_v59 }
  0xc9   : > { %6633 = vmatpush1.bf16.msra.mxu0 %v8230_v6  ;;  %v751_v61 = vld [vmem:[%s9465_s11 + $0xf48] sm:$0xff] }
  0xca   : > { %6634 = vmatprep.subr.bf16.mxu0 %v8215_v8  ;;  %v8631_v2 = vcombine.high %v743_v60, %v751_v61  ;;  %v471_v3 = vld [vmem:[%s9465_s11 + $0x688] sm:$0xff]  ;;  %v8630_v8 = vcombine.low %v743_v60, %v751_v61 }
  0xcb   : > { %6674 = vmatpush1.bf16.msra.mxu1 %v8486_v7  ;;  %v479_v4 = vld [vmem:[%s9465_s11 + $0x6c8] sm:$0xff]  ;;  %v8374_v7 = vcombine.low %v487_v58, %v495_v59 }
  0xcc   : > { %6675 = vmatprep.subr.bf16.mxu1 %v8471_v9  ;;  %v727_v5 = vld [vmem:[%s9465_s11 + $0xe88] sm:$0xff]  ;;  %v8359_v9 = vcombine.high %v471_v3, %v479_v4 }
  0xcd   : > { %6635 = vmatpush1.bf16.msra.mxu0 %v8214_v16  ;;  %v735_v6 = vld [vmem:[%s9465_s11 + $0xec8] sm:$0xff] }
  0xce   : > { %6636 = vmatprep.subr.bf16.mxu0 %v8199_v18  ;;  %v8615_v11 = vcombine.high %v727_v5, %v735_v6  ;;  %v455_v12 = vld [vmem:[%s9465_s11 + $0x608] sm:$0xff]  ;;  %v8614_v18 = vcombine.low %v727_v5, %v735_v6 }
  0xcf   : > { %6676 = vmatpush1.bf16.msra.mxu1 %v8470_v17  ;;  %v463_v13 = vld [vmem:[%s9465_s11 + $0x648] sm:$0xff]  ;;  %v8358_v17 = vcombine.low %v471_v3, %v479_v4 }
  0xd0   : > { %6677 = vmatprep.subr.bf16.mxu1 %v8455_v19  ;;  %v711_v15 = vld [vmem:[%s9465_s11 + $0xe08] sm:$0xff]  ;;  %v8343_v19 = vcombine.high %v455_v12, %v463_v13 }
  0xd1   : > { %6637 = vmatpush1.bf16.msra.mxu0 %v8198_v25  ;;  %v719_v16 = vld [vmem:[%s9465_s11 + $0xe48] sm:$0xff] }
  0xd2   : > { %6638 = vmatprep.subr.bf16.mxu0 %v8183_v27  ;;  %v8599_v20 = vcombine.high %v711_v15, %v719_v16  ;;  %v439_v21 = vld [vmem:[%s9465_s11 + $0x588] sm:$0xff]  ;;  %v8598_v27 = vcombine.low %v711_v15, %v719_v16 }
  0xd3   : > { %6678 = vmatpush1.bf16.msra.mxu1 %v8454_v26  ;;  %v447_v22 = vld [vmem:[%s9465_s11 + $0x5c8] sm:$0xff]  ;;  %v8342_v26 = vcombine.low %v455_v12, %v463_v13 }
  0xd4   : > { %6679 = vmatprep.subr.bf16.mxu1 %v8439_v28  ;;  %v695_v23 = vld [vmem:[%s9465_s11 + $0xd88] sm:$0xff]  ;;  %v8327_v28 = vcombine.high %v439_v21, %v447_v22 }
  0xd5   : > { %6639 = vmatpush1.bf16.msra.mxu0 %v8182_v35  ;;  %v703_v25 = vld [vmem:[%s9465_s11 + $0xdc8] sm:$0xff] }
  0xd6   : > { %6640 = vmatprep.subr.bf16.mxu0 %v8167_v37  ;;  %v8583_v30 = vcombine.high %v695_v23, %v703_v25  ;;  %v423_v31 = vld [vmem:[%s9465_s11 + $0x508] sm:$0xff]  ;;  %v8582_v37 = vcombine.low %v695_v23, %v703_v25 }
  0xd7   : > { %6680 = vmatpush1.bf16.msra.mxu1 %v8438_v36  ;;  %v431_v29 = vld [vmem:[%s9465_s11 + $0x548] sm:$0xff]  ;;  %v8326_v36 = vcombine.low %v439_v21, %v447_v22 }
  0xd8   : > { %6681 = vmatprep.subr.bf16.mxu1 %v8423_v38  ;;  %v679_v34 = vld [vmem:[%s9465_s11 + $0xd08] sm:$0xff]  ;;  %v8311_v38 = vcombine.high %v423_v31, %v431_v29 }
  0xd9   : > { %6641 = vmatpush1.bf16.msra.mxu0 %v8166_v43  ;;  %v687_v35 = vld [vmem:[%s9465_s11 + $0xd48] sm:$0xff] }
  0xda   : > { %6642 = vmatprep.subr.bf16.mxu0 %v8151_v46  ;;  %v8567_v39 = vcombine.high %v679_v34, %v687_v35  ;;  %v407_v54 = vld [vmem:[%s9465_s11 + $0x488] sm:$0xff]  ;;  %v8566_v46 = vcombine.low %v679_v34, %v687_v35 }
  0xdb   : > { %6682 = vmatpush1.bf16.msra.mxu1 %v8422_v44  ;;  %v415_v40 = vld [vmem:[%s9465_s11 + $0x4c8] sm:$0xff]  ;;  %v8310_v44 = vcombine.low %v423_v31, %v431_v29 }
  0xdc   : > { %6683 = vmatprep.subr.bf16.mxu1 %v8407_v47  ;;  %v663_v42 = vld [vmem:[%s9465_s11 + $0xc88] sm:$0xff]  ;;  %v8295_v47 = vcombine.high %v407_v54, %v415_v40 }
  0xdd   : > { %6643 = vmatpush1.bf16.msra.mxu0 %v8150_v53  ;;  %v671_v43 = vld [vmem:[%s9465_s11 + $0xcc8] sm:$0xff] }
  0xde   : > { %6644 = vmatprep.subr.bf16.mxu0 %v8391_v56  ;;  %v8551_v48 = vcombine.high %v663_v42, %v671_v43  ;;  %v391_v49 = vld [vmem:[%s9465_s11 + $0x408] sm:$0xff]  ;;  %v8550_v56 = vcombine.low %v663_v42, %v671_v43 }
  0xdf   : > { %6684 = vmatpush1.bf16.msra.mxu1 %v8406_v55  ;;  %v399_v50 = vld [vmem:[%s9465_s11 + $0x448] sm:$0xff]  ;;  %v8294_v55 = vcombine.low %v407_v54, %v415_v40 }
  0xe0   : > { %6685 = vmatprep.subr.bf16.mxu1 %v8647_v57  ;;  %v647_v52 = vld [vmem:[%s9465_s11 + $0xc08] sm:$0xff]  ;;  %v8279_v57 = vcombine.high %v391_v49, %v399_v50 }
  0xe1   : > { %6645 = vmatpush2.bf16.msra.mxu0 %v8390_v62  ;;  %v655_v53 = vld [vmem:[%s9465_s11 + $0xc48] sm:$0xff] }
  0xe2   : > { %6646 = vmatprep.subr.bf16.mxu0 %v8375_v1  ;;  %v8535_v58 = vcombine.high %v647_v52, %v655_v53  ;;  %v887_v59 = vld [vmem:[%s9465_s11 + $0x1388] sm:$0xff]  ;;  %v8534_v1 = vcombine.low %v647_v52, %v655_v53 }
  0xe3   : > { %6686 = vmatpush2.bf16.msra.mxu1 %v8646_v63  ;;  %v895_v60 = vld [vmem:[%s9465_s11 + $0x13c8] sm:$0xff]  ;;  %v8278_v63 = vcombine.low %v391_v49, %v399_v50 }
  0xe4   : > { %6687 = vmatprep.subr.bf16.mxu1 %v8631_v2  ;;  %v1143_v61 = vld [vmem:[%s9465_s11 + $0x1b88] sm:$0xff]  ;;  %v8775_v2 = vcombine.high %v887_v59, %v895_v60 }
  0xe5   : > { %6647 = vmatpush2.bf16.msra.mxu0 %v8374_v7  ;;  %v1151_v62 = vld [vmem:[%s9465_s11 + $0x1bc8] sm:$0xff] }
  0xe6   : > { %6648 = vmatprep.subr.bf16.mxu0 %v8359_v9  ;;  %v9031_v3 = vcombine.high %v1143_v61, %v1151_v62  ;;  %v871_v4 = vld [vmem:[%s9465_s11 + $0x1308] sm:$0xff]  ;;  %v9030_v9 = vcombine.low %v1143_v61, %v1151_v62 }
  0xe7   : > { %6688 = vmatpush2.bf16.msra.mxu1 %v8630_v8  ;;  %v879_v5 = vld [vmem:[%s9465_s11 + $0x1348] sm:$0xff]  ;;  %v8774_v8 = vcombine.low %v887_v59, %v895_v60 }
  0xe8   : > { %6689 = vmatprep.subr.bf16.mxu1 %v8615_v11  ;;  %v1127_v6 = vld [vmem:[%s9465_s11 + $0x1b08] sm:$0xff]  ;;  %v8759_v11 = vcombine.high %v871_v4, %v879_v5 }
  0xe9   : > { %6649 = vmatpush2.bf16.msra.mxu0 %v8358_v17  ;;  %v1135_v7 = vld [vmem:[%s9465_s11 + $0x1b48] sm:$0xff] }
  0xea   : > { %6650 = vmatprep.subr.bf16.mxu0 %v8343_v19  ;;  %v9015_v12 = vcombine.high %v1127_v6, %v1135_v7  ;;  %v855_v13 = vld [vmem:[%s9465_s11 + $0x1288] sm:$0xff]  ;;  %v9014_v19 = vcombine.low %v1127_v6, %v1135_v7 }
  0xeb   : > { %6690 = vmatpush2.bf16.msra.mxu1 %v8614_v18  ;;  %v863_v15 = vld [vmem:[%s9465_s11 + $0x12c8] sm:$0xff]  ;;  %v8758_v18 = vcombine.low %v871_v4, %v879_v5 }
  0xec   : > { %6691 = vmatprep.subr.bf16.mxu1 %v8599_v20  ;;  %v1111_v16 = vld [vmem:[%s9465_s11 + $0x1a88] sm:$0xff]  ;;  %v8743_v20 = vcombine.high %v855_v13, %v863_v15 }
  0xed   : > { %6651 = vmatpush2.bf16.msra.mxu0 %v8342_v26  ;;  %v1119_v17 = vld [vmem:[%s9465_s11 + $0x1ac8] sm:$0xff] }
  0xee   : > { %6652 = vmatprep.subr.bf16.mxu0 %v8327_v28  ;;  %v8999_v21 = vcombine.high %v1111_v16, %v1119_v17  ;;  %v839_v22 = vld [vmem:[%s9465_s11 + $0x1208] sm:$0xff]  ;;  %v8998_v28 = vcombine.low %v1111_v16, %v1119_v17 }
  0xef   : > { %6692 = vmatpush2.bf16.msra.mxu1 %v8598_v27  ;;  %v847_v23 = vld [vmem:[%s9465_s11 + $0x1248] sm:$0xff]  ;;  %v8742_v27 = vcombine.low %v855_v13, %v863_v15 }
  0xf0   : > { %6693 = vmatprep.subr.bf16.mxu1 %v8583_v30  ;;  %v1095_v25 = vld [vmem:[%s9465_s11 + $0x1a08] sm:$0xff]  ;;  %v8727_v30 = vcombine.high %v839_v22, %v847_v23 }
  0xf1   : > { %6653 = vmatpush2.bf16.msra.mxu0 %v8326_v36  ;;  %v1103_v26 = vld [vmem:[%s9465_s11 + $0x1a48] sm:$0xff] }
  0xf2   : > { %6654 = vmatprep.subr.bf16.mxu0 %v8311_v38  ;;  %v8983_v31 = vcombine.high %v1095_v25, %v1103_v26  ;;  %v823_v29 = vld [vmem:[%s9465_s11 + $0x1188] sm:$0xff]  ;;  %v8982_v38 = vcombine.low %v1095_v25, %v1103_v26 }
  0xf3   : > { %6694 = vmatpush2.bf16.msra.mxu1 %v8582_v37  ;;  %v831_v34 = vld [vmem:[%s9465_s11 + $0x11c8] sm:$0xff]  ;;  %v8726_v37 = vcombine.low %v839_v22, %v847_v23 }
  0xf4   : > { %6695 = vmatprep.subr.bf16.mxu1 %v8567_v39  ;;  %v1079_v35 = vld [vmem:[%s9465_s11 + $0x1988] sm:$0xff]  ;;  %v8711_v39 = vcombine.high %v823_v29, %v831_v34 }
  0xf5   : > { %6655 = vmatpush2.bf16.msra.mxu0 %v8310_v44  ;;  %v1087_v36 = vld [vmem:[%s9465_s11 + $0x19c8] sm:$0xff] }
  0xf6   : > { %6656 = vmatprep.subr.bf16.mxu0 %v8295_v47  ;;  %v8967_v54 = vcombine.high %v1079_v35, %v1087_v36  ;;  %v807_v40 = vld [vmem:[%s9465_s11 + $0x1108] sm:$0xff]  ;;  %v8966_v47 = vcombine.low %v1079_v35, %v1087_v36 }
  0xf7   : > { %6696 = vmatpush2.bf16.msra.mxu1 %v8566_v46  ;;  %v815_v42 = vld [vmem:[%s9465_s11 + $0x1148] sm:$0xff]  ;;  %v8710_v46 = vcombine.low %v823_v29, %v831_v34 }
  0xf8   : > { %6697 = vmatprep.subr.bf16.mxu1 %v8551_v48  ;;  %v1063_v43 = vld [vmem:[%s9465_s11 + $0x1908] sm:$0xff]  ;;  %v8695_v48 = vcombine.high %v807_v40, %v815_v42 }
  0xf9   : > { %6657 = vmatpush2.bf16.msra.mxu0 %v8294_v55  ;;  %v1071_v44 = vld [vmem:[%s9465_s11 + $0x1948] sm:$0xff] }
  0xfa   : > { %6658 = vmatprep.subr.bf16.mxu0 %v8279_v57  ;;  %v8951_v49 = vcombine.high %v1063_v43, %v1071_v44  ;;  %v791_v50 = vld [vmem:[%s9465_s11 + $0x1088] sm:$0xff]  ;;  %v8950_v57 = vcombine.low %v1063_v43, %v1071_v44 }
  0xfb   : > { %6698 = vmatpush2.bf16.msra.mxu1 %v8550_v56  ;;  %v799_v52 = vld [vmem:[%s9465_s11 + $0x10c8] sm:$0xff]  ;;  %v8694_v56 = vcombine.low %v807_v40, %v815_v42 }
  0xfc   : > { %6699 = vmatprep.subr.bf16.mxu1 %v8535_v58  ;;  %v1047_v53 = vld [vmem:[%s9465_s11 + $0x1888] sm:$0xff]  ;;  %v8679_v58 = vcombine.high %v791_v50, %v799_v52 }
  0xfd   : > { %6659 = vmatpush2.bf16.msra.mxu0 %v8278_v63  ;;  %v1055_v55 = vld [vmem:[%s9465_s11 + $0x18c8] sm:$0xff] }
  0xfe   : > { %6710 = vmatprep.subr.bf16.mxu0 %v8775_v2  ;;  %v8935_v59 = vcombine.high %v1047_v53, %v1055_v55  ;;  %v775_v60 = vld [vmem:[%s9465_s11 + $0x1008] sm:$0xff]  ;;  %v8934_v2 = vcombine.low %v1047_v53, %v1055_v55 }
  0xff   : > { %6700 = vmatpush2.bf16.msra.mxu1 %v8534_v1  ;;  %v783_v61 = vld [vmem:[%s9465_s11 + $0x1048] sm:$0xff]  ;;  %v8678_v1 = vcombine.low %v791_v50, %v799_v52 }
 0x100   : > { %6751 = vmatprep.subr.bf16.mxu1 %v9031_v3  ;;  %6661 = vmatmul.mubr.bf16.vlgmr.msra.gmra.mxu0 %v9593_v24  ;;  %v1031_v62 = vld [vmem:[%s9465_s11 + $0x1808] sm:$0xff]  ;;  %v8663_v3 = vcombine.high %v775_v60, %v783_v61 }
 0x101   : > { %6711 = vmatpush1.bf16.msra.mxu0 %v8774_v8  ;;  %6742 = vmatprep.mubr.bf16.mxu0 %v9600_v32  ;;  %v1039_v63 = vld [vmem:[%s9465_s11 + $0x1848] sm:$0xff] }
 0x102   : > { %6702 = vmatmul.mubr.bf16.vlgmr.msra.gmra.mxu1 %v9604_v0  ;;  %6712 = vmatprep.subr.bf16.mxu0 %v8759_v11  ;;  %v8919_v4 = vcombine.high %v1031_v62, %v1039_v63  ;;  %v1015_v5 = vld [vmem:[%s9465_s11 + $0x1788] sm:$0xff]  ;;  %v8918_v11 = vcombine.low %v1031_v62, %v1039_v63 }
 0x103   : > { %6752 = vmatpush1.bf16.msra.mxu1 %v9030_v9  ;;  %6783 = vmatprep.mubr.bf16.mxu1 %v9613_v41  ;;  %v1023_v6 = vld [vmem:[%s9465_s11 + $0x17c8] sm:$0xff]  ;;  %v8662_v9 = vcombine.low %v775_v60, %v783_v61 }
 0x104   : > { %6753 = vmatprep.subr.bf16.mxu1 %v9015_v12  ;;  %v1271_v7 = vld [vmem:[%s9465_s11 + $0x1f88] sm:$0xff]  ;;  %v8903_v12 = vcombine.high %v1015_v5, %v1023_v6 }
 0x105   : > { %6713 = vmatpush1.bf16.msra.mxu0 %v8758_v18  ;;  %v1279_v8 = vld [vmem:[%s9465_s11 + $0x1fc8] sm:$0xff] }
 0x106   : > { %6714 = vmatprep.subr.bf16.mxu0 %v8743_v20  ;;  %v9159_v13 = vcombine.high %v1271_v7, %v1279_v8  ;;  %v999_v15 = vld [vmem:[%s9465_s11 + $0x1708] sm:$0xff]  ;;  %v9158_v20 = vcombine.low %v1271_v7, %v1279_v8 }
 0x107   : > { %6754 = vmatpush1.bf16.msra.mxu1 %v9014_v19  ;;  %v1007_v16 = vld [vmem:[%s9465_s11 + $0x1748] sm:$0xff]  ;;  %v8902_v19 = vcombine.low %v1015_v5, %v1023_v6 }
 0x108   : > { %6755 = vmatprep.subr.bf16.mxu1 %v8999_v21  ;;  %v1255_v17 = vld [vmem:[%s9465_s11 + $0x1f08] sm:$0xff]  ;;  %v8887_v21 = vcombine.high %v999_v15, %v1007_v16 }
 0x109   : > { %6715 = vmatpush1.bf16.msra.mxu0 %v8742_v27  ;;  %v1263_v18 = vld [vmem:[%s9465_s11 + $0x1f48] sm:$0xff] }
 0x10a   : > { %6716 = vmatprep.subr.bf16.mxu0 %v8727_v30  ;;  %v9143_v22 = vcombine.high %v1255_v17, %v1263_v18  ;;  %v983_v23 = vld [vmem:[%s9465_s11 + $0x1688] sm:$0xff]  ;;  %v9142_v30 = vcombine.low %v1255_v17, %v1263_v18  ;;  %v384_v17 = vld [vmem:[%s9465_s11 + $0x3d0] sm:$0xff] }
 0x10b   : > { %6756 = vmatpush1.bf16.msra.mxu1 %v8998_v28  ;;  %v991_v25 = vld [vmem:[%s9465_s11 + $0x16c8] sm:$0xff]  ;;  %v8886_v28 = vcombine.low %v999_v15, %v1007_v16  ;;  %v376_v16 = vld [vmem:[%s9465_s11 + $0x390] sm:$0xff] }
 0x10c   : > { %6757 = vmatprep.subr.bf16.mxu1 %v8983_v31  ;;  %v1239_v26 = vld [vmem:[%s9465_s11 + $0x1e88] sm:$0xff]  ;;  %v8871_v31 = vcombine.high %v983_v23, %v991_v25  ;;  %v632_v18 = vld [vmem:[%s9465_s11 + $0xb90] sm:$0xff] }
 0x10d   : > { %6717 = vmatpush1.bf16.msra.mxu0 %v8726_v37  ;;  %v1247_v27 = vld [vmem:[%s9465_s11 + $0x1ec8] sm:$0xff] }
 0x10e   : > { %6718 = vmatprep.subr.bf16.mxu0 %v8711_v39  ;;  %v9127_v29 = vcombine.high %v1239_v26, %v1247_v27  ;;  %v967_v34 = vld [vmem:[%s9465_s11 + $0x1608] sm:$0xff]  ;;  %v9126_v39 = vcombine.low %v1239_v26, %v1247_v27  ;;  %v368_v26 = vld [vmem:[%s9465_s11 + $0x350] sm:$0xff] }
 0x10f   : > { %6758 = vmatpush1.bf16.msra.mxu1 %v8982_v38  ;;  %v975_v35 = vld [vmem:[%s9465_s11 + $0x1648] sm:$0xff]  ;;  %v8870_v38 = vcombine.low %v983_v23, %v991_v25  ;;  %v360_v25 = vld [vmem:[%s9465_s11 + $0x310] sm:$0xff] }
 0x110   : > { %6759 = vmatprep.subr.bf16.mxu1 %v8967_v54  ;;  %v1223_v36 = vld [vmem:[%s9465_s11 + $0x1e08] sm:$0xff]  ;;  %v8855_v54 = vcombine.high %v967_v34, %v975_v35  ;;  %v616_v27 = vld [vmem:[%s9465_s11 + $0xb10] sm:$0xff] }
 0x111   : > { %6719 = vmatpush1.bf16.msra.mxu0 %v8710_v46  ;;  %v1231_v37 = vld [vmem:[%s9465_s11 + $0x1e48] sm:$0xff] }
 0x112   : > { %6720 = vmatprep.subr.bf16.mxu0 %v8695_v48  ;;  %v9111_v40 = vcombine.high %v1223_v36, %v1231_v37  ;;  %v951_v42 = vld [vmem:[%s9465_s11 + $0x1588] sm:$0xff]  ;;  %v9110_v48 = vcombine.low %v1223_v36, %v1231_v37  ;;  %v352_v36 = vld [vmem:[%s9465_s11 + $0x2d0] sm:$0xff] }
 0x113   : > { %6760 = vmatpush1.bf16.msra.mxu1 %v8966_v47  ;;  %v959_v43 = vld [vmem:[%s9465_s11 + $0x15c8] sm:$0xff]  ;;  %v8854_v47 = vcombine.low %v967_v34, %v975_v35  ;;  %v344_v35 = vld [vmem:[%s9465_s11 + $0x290] sm:$0xff] }
 0x114   : > { %6761 = vmatprep.subr.bf16.mxu1 %v8951_v49  ;;  %v1207_v44 = vld [vmem:[%s9465_s11 + $0x1d88] sm:$0xff]  ;;  %v8839_v49 = vcombine.high %v951_v42, %v959_v43 }
 0x115   : > { %6721 = vmatpush1.bf16.msra.mxu0 %v8694_v56  ;;  %v1215_v46 = vld [vmem:[%s9465_s11 + $0x1dc8] sm:$0xff] }
 0x116   : > { %6722 = vmatprep.subr.bf16.mxu0 %v8679_v58  ;;  %v9095_v50 = vcombine.high %v1207_v44, %v1215_v46  ;;  %v935_v52 = vld [vmem:[%s9465_s11 + $0x1508] sm:$0xff]  ;;  %v9094_v58 = vcombine.low %v1207_v44, %v1215_v46  ;;  %v8233_v46 = vcombine.high %v344_v35, %v352_v36 }
 0x117   : > { %6762 = vmatpush1.bf16.msra.mxu1 %v8950_v57  ;;  %v943_v53 = vld [vmem:[%s9465_s11 + $0x1548] sm:$0xff]  ;;  %v8838_v57 = vcombine.low %v951_v42, %v959_v43 }
 0x118   : > { %6763 = vmatprep.subr.bf16.mxu1 %v8935_v59  ;;  %v1191_v55 = vld [vmem:[%s9465_s11 + $0x1d08] sm:$0xff]  ;;  %v8823_v59 = vcombine.high %v935_v52, %v943_v53 }
 0x119   : > { %6723 = vmatpush1.bf16.msra.mxu0 %v8678_v1  ;;  %v1199_v56 = vld [vmem:[%s9465_s11 + $0x1d48] sm:$0xff] }
 0x11a   : > { %6724 = vmatprep.subr.bf16.mxu0 %v8663_v3  ;;  %v9079_v60 = vcombine.high %v1191_v55, %v1199_v56  ;;  %v919_v61 = vld [vmem:[%s9465_s11 + $0x1488] sm:$0xff]  ;;  %v9078_v3 = vcombine.low %v1191_v55, %v1199_v56  ;;  %v584_v55 = vld [vmem:[%s9465_s11 + $0xa10] sm:$0xff] }
 0x11b   : > { %6764 = vmatpush1.bf16.msra.mxu1 %v8934_v2  ;;  %v927_v62 = vld [vmem:[%s9465_s11 + $0x14c8] sm:$0xff]  ;;  %v8822_v2 = vcombine.low %v935_v52, %v943_v53  ;;  %v592_v56 = vld [vmem:[%s9465_s11 + $0xa50] sm:$0xff] }
 0x11c   : > { %6765 = vmatprep.subr.bf16.mxu1 %v8919_v4  ;;  %v1175_v63 = vld [vmem:[%s9465_s11 + $0x1c88] sm:$0xff]  ;;  %v8807_v4 = vcombine.high %v919_v61, %v927_v62 }
 0x11d   : > { %6725 = vmatpush1.bf16.msra.mxu0 %v8662_v9  ;;  %v1183_v1 = vld [vmem:[%s9465_s11 + $0x1cc8] sm:$0xff] }
 0x11e   : > { %6726 = vmatprep.subr.bf16.mxu0 %v8903_v12  ;;  %v9063_v5 = vcombine.high %v1175_v63, %v1183_v1  ;;  %v903_v6 = vld [vmem:[%s9465_s11 + $0x1408] sm:$0xff]  ;;  %v9062_v12 = vcombine.low %v1175_v63, %v1183_v1  ;;  %v8473_v63 = vcombine.high %v584_v55, %v592_v56  ;;  %v312_v1 = vld [vmem:[%s9465_s11 + $0x190] sm:$0xff] }
 0x11f   : > { %6766 = vmatpush1.bf16.msra.mxu1 %v8918_v11  ;;  %v911_v7 = vld [vmem:[%s9465_s11 + $0x1448] sm:$0xff]  ;;  %v8806_v11 = vcombine.low %v919_v61, %v927_v62 }
 0x120   : > { %6767 = vmatprep.subr.bf16.mxu1 %v9159_v13  ;;  %v1159_v8 = vld [vmem:[%s9465_s11 + $0x1c08] sm:$0xff]  ;;  %v8791_v13 = vcombine.high %v903_v6, %v911_v7 }
 0x121   : > { %6727 = vmatpush2.bf16.msra.mxu0 %v8902_v19  ;;  %v1167_v9 = vld [vmem:[%s9465_s11 + $0x1c48] sm:$0xff]  ;;  %v640_v19 = vld [vmem:[%s9465_s11 + $0xbd0] sm:$0xff] }
 0x122   : > { %6728 = vmatprep.subr.bf16.mxu0 %v8887_v21  ;;  %v9047_v15 = vcombine.high %v1159_v8, %v1167_v9  ;;  %v9046_v21 = vcombine.low %v1159_v8, %v1167_v9  ;;  %v8521_v23 = vcombine.high %v632_v18, %v640_v19  ;;  %v296_v9 = vld [vmem:[%s9465_s11 + $0x110] sm:$0xff] }
 0x123   : > { %6768 = vmatpush2.bf16.msra.mxu1 %v9158_v20  ;;  %v8790_v20 = vcombine.low %v903_v6, %v911_v7  ;;  %v8472_v6 = vcombine.low %v584_v55, %v592_v56 }
 0x124   : > { %6769 = vmatprep.subr.bf16.mxu1 %v9143_v22  ;;  %v8265_v22 = vcombine.high %v376_v16, %v384_v17 }
 0x125   : > { %6729 = vmatpush2.bf16.msra.mxu0 %v8886_v28  ;;  %v624_v28 = vld [vmem:[%s9465_s11 + $0xb50] sm:$0xff] }
 0x126   : > { %6730 = vmatprep.subr.bf16.mxu0 %v8871_v31  ;;  %v8520_v31 = vcombine.low %v632_v18, %v640_v19  ;;  %v8505_v34 = vcombine.high %v616_v27, %v624_v28  ;;  %v8504_v44 = vcombine.low %v616_v27, %v624_v28  ;;  %v280_v19 = vld [vmem:[%s9465_s11 + $0x90] sm:$0xff] }
 0x127   : > { %6770 = vmatpush2.bf16.msra.mxu1 %v9142_v30  ;;  %v8264_v30 = vcombine.low %v376_v16, %v384_v17  ;;  %v264_v28 = vld [vmem:[%s9465_s11 + $0x10] sm:$0xff] }
 0x128   : > { %6771 = vmatprep.subr.bf16.mxu1 %v9127_v29  ;;  %v8249_v29 = vcombine.high %v360_v25, %v368_v26 }
 0x129   : > { %6731 = vmatpush2.bf16.msra.mxu0 %v8870_v38  ;;  %v600_v38 = vld [vmem:[%s9465_s11 + $0xa90] sm:$0xff] }
 0x12a   : > { %6732 = vmatprep.subr.bf16.mxu0 %v8855_v54 }
 0x12b   : > { %6772 = vmatpush2.bf16.msra.mxu1 %v9126_v39  ;;  %v608_v39 = vld [vmem:[%s9465_s11 + $0xad0] sm:$0xff] }
 0x12c   : > { %6773 = vmatprep.subr.bf16.mxu1 %v9111_v40  ;;  %v8248_v40 = vcombine.low %v360_v25, %v368_v26 }
 0x12d   : > { %6733 = vmatpush2.bf16.msra.mxu0 %v8854_v47 }
 0x12e   : > { %6734 = vmatprep.subr.bf16.mxu0 %v8839_v49  ;;  %v328_v49 = vld [vmem:[%s9465_s11 + $0x210] sm:$0xff] }
 0x12f   : > { %6774 = vmatpush2.bf16.msra.mxu1 %v9110_v48  ;;  %v8489_v48 = vcombine.high %v600_v38, %v608_v39 }
 0x130   : > { %6775 = vmatprep.subr.bf16.mxu1 %v9095_v50  ;;  %v336_v50 = vld [vmem:[%s9465_s11 + $0x250] sm:$0xff] }
 0x131   : > { %6735 = vmatpush2.bf16.msra.mxu0 %v8838_v57  ;;  %v8217_v61 = vcombine.high %v328_v49, %v336_v50 }
 0x132   : > { %6736 = vmatprep.subr.bf16.mxu0 %v8823_v59 }
 0x133   : > { %6776 = vmatpush2.bf16.msra.mxu1 %v9094_v58  ;;  %v8232_v58 = vcombine.low %v344_v35, %v352_v36 }
 0x134   : > { %6777 = vmatprep.subr.bf16.mxu1 %v9079_v60  ;;  %v8488_v60 = vcombine.low %v600_v38, %v608_v39  ;;  %v504_v38 = vld [vmem:[%s9465_s11 + $0x790] sm:$0xff] }
 0x135   : > { %6737 = vmatpush2.bf16.msra.mxu0 %v8822_v2  ;;  %v320_v2 = vld [vmem:[%s9465_s11 + $0x1d0] sm:$0xff] }
 0x136   : > { %6738 = vmatprep.subr.bf16.mxu0 %v8807_v4  ;;  %v576_v4 = vld [vmem:[%s9465_s11 + $0x9d0] sm:$0xff]  ;;  %v8201_v7 = vcombine.high %v312_v1, %v320_v2 }
 0x137   : > { %6778 = vmatpush2.bf16.msra.mxu1 %v9078_v3  ;;  %v568_v3 = vld [vmem:[%s9465_s11 + $0x990] sm:$0xff] }
 0x138   : > { %6779 = vmatprep.subr.bf16.mxu1 %v9063_v5  ;;  %v8216_v5 = vcombine.low %v328_v49, %v336_v50  ;;  %v8457_v8 = vcombine.high %v568_v3, %v576_v4  ;;  %v8456_v16 = vcombine.low %v568_v3, %v576_v4  ;;  %v512_v39 = vld [vmem:[%s9465_s11 + $0x7d0] sm:$0xff] }
 0x139   : > { %6739 = vmatpush2.bf16.msra.mxu0 %v8806_v11  ;;  %v304_v11 = vld [vmem:[%s9465_s11 + $0x150] sm:$0xff]  ;;  %v8392_v55 = vcombine.low %v504_v38, %v512_v39 }
 0x13a   : > { %6740 = vmatprep.subr.bf16.mxu0 %v8791_v13  ;;  %v560_v13 = vld [vmem:[%s9465_s11 + $0x950] sm:$0xff]  ;;  %v8185_v17 = vcombine.high %v296_v9, %v304_v11 }
 0x13b   : > { %6780 = vmatpush2.bf16.msra.mxu1 %v9062_v12  ;;  %v552_v12 = vld [vmem:[%s9465_s11 + $0x910] sm:$0xff] }
 0x13c   : > { %6781 = vmatprep.subr.bf16.mxu1 %v9047_v15  ;;  %v8200_v15 = vcombine.low %v312_v1, %v320_v2  ;;  %v8441_v18 = vcombine.high %v552_v12, %v560_v13  ;;  %v8440_v25 = vcombine.low %v552_v12, %v560_v13  ;;  %v496_v49 = vld [vmem:[%s9465_s11 + $0x750] sm:$0xff] }
 0x13d   : > { %6741 = vmatpush2.bf16.msra.mxu0 %v8790_v20  ;;  %v288_v20 = vld [vmem:[%s9465_s11 + $0xd0] sm:$0xff] }
 0x13e   : > { %6792 = vmatprep.subr.bf16.mxu0 %v8265_v22  ;;  %v544_v22 = vld [vmem:[%s9465_s11 + $0x8d0] sm:$0xff]  ;;  %v8169_v26 = vcombine.high %v280_v19, %v288_v20 }
 0x13f   : > { %6782 = vmatpush2.bf16.msra.mxu1 %v9046_v21  ;;  %v536_v21 = vld [vmem:[%s9465_s11 + $0x890] sm:$0xff] }
 0x140   : > { %6833 = vmatprep.subr.bf16.mxu1 %v8521_v23  ;;  %v6498_v37 = vpop.f32.mrf.mxu0  ;;  %6743 = vmatmul.mubr.bf16.vlgmr.msra.gmra.mxu0 %v9563_v33  ;;  %v8184_v23 = vcombine.low %v296_v9, %v304_v11  ;;  %v8425_v27 = vcombine.high %v536_v21, %v544_v22  ;;  %v8424_v35 = vcombine.low %v536_v21, %v544_v22  ;;  %v744_v50 = vld [vmem:[%s9465_s11 + $0xf10] sm:$0xff] }
 0x141   : > { %6793 = vmatpush1.bf16.msra.mxu0 %v8264_v30  ;;  %6824 = vmatprep.mubr.bf16.mxu0 %v9540_v10  ;;  %v272_v30 = vld [vmem:[%s9465_s11 + $0x50] sm:$0xff] }
 0x142   : > { %v6539_v54 = vpop.f32.mrf.mxu1  ;;  %6784 = vmatmul.mubr.bf16.vlgmr.msra.gmra.mxu1 %v9680_v51  ;;  %v6500_v43 = vpop.f32.mrf.mxu0  ;;  %6794 = vmatprep.subr.bf16.mxu0 %v8249_v29  ;;  %v528_v29 = vld [vmem:[%s9465_s11 + $0x850] sm:$0xff]  ;;  %v8153_v36 = vcombine.high %v264_v28, %v272_v30 }
 0x143   : > { %v9824_v42 = vadd.f32 %v6539_v54, %v6498_v37  ;;  %6834 = vmatpush1.bf16.msra.mxu1 %v8520_v31  ;;  %6865 = vmatprep.mubr.bf16.mxu1 %v9547_v14  ;;  %v520_v31 = vld [vmem:[%s9465_s11 + $0x810] sm:$0xff] }
 0x144   : > { %v6541_v47 = vpop.f32.mrf.mxu1  ;;  %6835 = vmatprep.subr.bf16.mxu1 %v8505_v34  ;;  %v6502_v53 = vpop.f32.mrf.mxu0  ;;  %v8168_v34 = vcombine.low %v280_v19, %v288_v20  ;;  %v8409_v37 = vcombine.high %v520_v31, %v528_v29  ;;  %v760_v54 = vld [vmem:[%s9465_s11 + $0xf90] sm:$0xff] }
 0x145   : > { %v9829_v52 = vadd.f32 %v6541_v47, %v6500_v43  ;;  %6795 = vmatpush1.bf16.msra.mxu0 %v8248_v40  ;;  %v768_v40 = vld [vmem:[%s9465_s11 + $0xfd0] sm:$0xff]  ;;  %v8152_v43 = vcombine.low %v264_v28, %v272_v30 }
 0x146   : > { %v6543_v57 = vpop.f32.mrf.mxu1  ;;  %v6503_v59 = vpop.f32.mrf.mxu0  ;;  %6796 = vmatprep.subr.bf16.mxu0 %v8233_v46  ;;  %v8393_v46 = vcombine.high %v504_v38, %v512_v39  ;;  %v8649_v47 = vcombine.high %v760_v54, %v768_v40  ;;  %v752_v53 = vld [vmem:[%s9465_s11 + $0xf50] sm:$0xff]  ;;  %v8648_v56 = vcombine.low %v760_v54, %v768_v40 }
 0x147   : > { %6836 = vmatpush1.bf16.msra.mxu1 %v8504_v44  ;;  %v8408_v44 = vcombine.low %v520_v31, %v528_v29  ;;  %v472_v59 = vld [vmem:[%s9465_s11 + $0x690] sm:$0xff]  ;;  %v8632_v1 = vcombine.low %v744_v50, %v752_v53 }
 0x148   : > { %v6544_v62 = vpop.f32.mrf.mxu1  ;;  %6837 = vmatprep.subr.bf16.mxu1 %v8489_v48  ;;  %v488_v48 = vld [vmem:[%s9465_s11 + $0x710] sm:$0xff] }
 0x149   : > { %6797 = vmatpush1.bf16.msra.mxu0 %v8232_v58  ;;  %v8377_v57 = vcombine.high %v488_v48, %v496_v49  ;;  %v8633_v58 = vcombine.high %v744_v50, %v752_v53  ;;  %v736_v62 = vld [vmem:[%s9465_s11 + $0xed0] sm:$0xff] }
 0x14a   : > { %6798 = vmatprep.subr.bf16.mxu0 %v8217_v61  ;;  %v728_v61 = vld [vmem:[%s9465_s11 + $0xe90] sm:$0xff] }
 0x14b   : > { %6838 = vmatpush1.bf16.msra.mxu1 %v8488_v60  ;;  %v480_v60 = vld [vmem:[%s9465_s11 + $0x6d0] sm:$0xff]  ;;  %v8617_v3 = vcombine.high %v728_v61, %v736_v62  ;;  %v8616_v9 = vcombine.low %v728_v61, %v736_v62 }
 0x14c   : > { %6839 = vmatprep.subr.bf16.mxu1 %v8473_v63  ;;  %v8376_v63 = vcombine.low %v488_v48, %v496_v49  ;;  %v8361_v2 = vcombine.high %v472_v59, %v480_v60  ;;  %v456_v4 = vld [vmem:[%s9465_s11 + $0x610] sm:$0xff] }
 0x14d   : > { %6799 = vmatpush1.bf16.msra.mxu0 %v8216_v5  ;;  %v464_v5 = vld [vmem:[%s9465_s11 + $0x650] sm:$0xff] }
 0x14e   : > { %6800 = vmatprep.subr.bf16.mxu0 %v8201_v7  ;;  %v720_v7 = vld [vmem:[%s9465_s11 + $0xe50] sm:$0xff]  ;;  %v8345_v11 = vcombine.high %v456_v4, %v464_v5 }
 0x14f   : > { %6840 = vmatpush1.bf16.msra.mxu1 %v8472_v6  ;;  %v712_v6 = vld [vmem:[%s9465_s11 + $0xe10] sm:$0xff] }
 0x150   : > { %6841 = vmatprep.subr.bf16.mxu1 %v8457_v8  ;;  %v8360_v8 = vcombine.low %v472_v59, %v480_v60  ;;  %v8601_v12 = vcombine.high %v712_v6, %v720_v7  ;;  %v440_v13 = vld [vmem:[%s9465_s11 + $0x590] sm:$0xff]  ;;  %v8600_v19 = vcombine.low %v712_v6, %v720_v7 }
 0x151   : > { %6801 = vmatpush1.bf16.msra.mxu0 %v8200_v15  ;;  %v448_v15 = vld [vmem:[%s9465_s11 + $0x5d0] sm:$0xff] }
 0x152   : > { %6802 = vmatprep.subr.bf16.mxu0 %v8185_v17  ;;  %v704_v17 = vld [vmem:[%s9465_s11 + $0xdd0] sm:$0xff]  ;;  %v8329_v20 = vcombine.high %v440_v13, %v448_v15 }
 0x153   : > { %6842 = vmatpush1.bf16.msra.mxu1 %v8456_v16  ;;  %v696_v16 = vld [vmem:[%s9465_s11 + $0xd90] sm:$0xff] }
 0x154   : > { %6843 = vmatprep.subr.bf16.mxu1 %v8441_v18  ;;  %v8344_v18 = vcombine.low %v456_v4, %v464_v5  ;;  %v8585_v21 = vcombine.high %v696_v16, %v704_v17  ;;  %v424_v22 = vld [vmem:[%s9465_s11 + $0x510] sm:$0xff]  ;;  %v8584_v28 = vcombine.low %v696_v16, %v704_v17 }
 0x155   : > { %6803 = vmatpush1.bf16.msra.mxu0 %v8184_v23  ;;  %v432_v23 = vld [vmem:[%s9465_s11 + $0x550] sm:$0xff] }
 0x156   : > { %6804 = vmatprep.subr.bf16.mxu0 %v8169_v26  ;;  %v688_v26 = vld [vmem:[%s9465_s11 + $0xd50] sm:$0xff]  ;;  %v8313_v30 = vcombine.high %v424_v22, %v432_v23 }
 0x157   : > { %6844 = vmatpush1.bf16.msra.mxu1 %v8440_v25  ;;  %v680_v25 = vld [vmem:[%s9465_s11 + $0xd10] sm:$0xff] }
 0x158   : > { %6845 = vmatprep.subr.bf16.mxu1 %v8425_v27  ;;  %v8328_v27 = vcombine.low %v440_v13, %v448_v15  ;;  %v8569_v31 = vcombine.high %v680_v25, %v688_v26  ;;  %v408_v29 = vld [vmem:[%s9465_s11 + $0x490] sm:$0xff]  ;;  %v8568_v38 = vcombine.low %v680_v25, %v688_v26 }
 0x159   : > { %6805 = vmatpush1.bf16.msra.mxu0 %v8168_v34  ;;  %v416_v34 = vld [vmem:[%s9465_s11 + $0x4d0] sm:$0xff] }
 0x15a   : > { %6806 = vmatprep.subr.bf16.mxu0 %v8153_v36  ;;  %v672_v36 = vld [vmem:[%s9465_s11 + $0xcd0] sm:$0xff]  ;;  %v8297_v39 = vcombine.high %v408_v29, %v416_v34 }
 0x15b   : > { %6846 = vmatpush1.bf16.msra.mxu1 %v8424_v35  ;;  %v664_v35 = vld [vmem:[%s9465_s11 + $0xc90] sm:$0xff] }
 0x15c   : > { %6847 = vmatprep.subr.bf16.mxu1 %v8409_v37  ;;  %v8312_v37 = vcombine.low %v424_v22, %v432_v23  ;;  %v8553_v54 = vcombine.high %v664_v35, %v672_v36  ;;  %v392_v40 = vld [vmem:[%s9465_s11 + $0x410] sm:$0xff]  ;;  %v8552_v48 = vcombine.low %v664_v35, %v672_v36 }
 0x15d   : > { %6807 = vmatpush1.bf16.msra.mxu0 %v8152_v43  ;;  %v400_v43 = vld [vmem:[%s9465_s11 + $0x450] sm:$0xff] }
 0x15e   : > { %6808 = vmatprep.subr.bf16.mxu0 %v8393_v46  ;;  %v656_v46 = vld [vmem:[%s9465_s11 + $0xc50] sm:$0xff]  ;;  %v8281_v49 = vcombine.high %v392_v40, %v400_v43 }
 0x15f   : > { %6848 = vmatpush1.bf16.msra.mxu1 %v8408_v44  ;;  %v648_v44 = vld [vmem:[%s9465_s11 + $0xc10] sm:$0xff] }
 0x160   : > { %6849 = vmatprep.subr.bf16.mxu1 %v8649_v47  ;;  %v8296_v47 = vcombine.low %v408_v29, %v416_v34  ;;  %v8537_v50 = vcombine.high %v648_v44, %v656_v46  ;;  %v888_v53 = vld [vmem:[%s9465_s11 + $0x1390] sm:$0xff]  ;;  %v8536_v59 = vcombine.low %v648_v44, %v656_v46 }
 0x161   : > { %6809 = vmatpush2.bf16.msra.mxu0 %v8392_v55  ;;  %v896_v55 = vld [vmem:[%s9465_s11 + $0x13d0] sm:$0xff] }
 0x162   : > { %6810 = vmatprep.subr.bf16.mxu0 %v8377_v57  ;;  %v1152_v57 = vld [vmem:[%s9465_s11 + $0x1bd0] sm:$0xff]  ;;  %v8777_v60 = vcombine.high %v888_v53, %v896_v55 }
 0x163   : > { %6850 = vmatpush2.bf16.msra.mxu1 %v8648_v56  ;;  %v1144_v56 = vld [vmem:[%s9465_s11 + $0x1b90] sm:$0xff] }
 0x164   : > { %6851 = vmatprep.subr.bf16.mxu1 %v8633_v58  ;;  %v8280_v58 = vcombine.low %v392_v40, %v400_v43  ;;  %v9033_v61 = vcombine.high %v1144_v56, %v1152_v57  ;;  %v872_v62 = vld [vmem:[%s9465_s11 + $0x1310] sm:$0xff]  ;;  %v9032_v4 = vcombine.low %v1144_v56, %v1152_v57 }
 0x165   : > { %6811 = vmatpush2.bf16.msra.mxu0 %v8376_v63  ;;  %v880_v63 = vld [vmem:[%s9465_s11 + $0x1350] sm:$0xff] }
 0x166   : > { %6812 = vmatprep.subr.bf16.mxu0 %v8361_v2  ;;  %v1136_v2 = vld [vmem:[%s9465_s11 + $0x1b50] sm:$0xff]  ;;  %v8761_v5 = vcombine.high %v872_v62, %v880_v63  ;;  %v8760_v16 = vcombine.low %v872_v62, %v880_v63 }
 0x167   : > { %6852 = vmatpush2.bf16.msra.mxu1 %v8632_v1  ;;  %v1128_v1 = vld [vmem:[%s9465_s11 + $0x1b10] sm:$0xff] }
 0x168   : > { %6853 = vmatprep.subr.bf16.mxu1 %v8617_v3  ;;  %v8776_v3 = vcombine.low %v888_v53, %v896_v55  ;;  %v9017_v6 = vcombine.high %v1128_v1, %v1136_v2  ;;  %v856_v7 = vld [vmem:[%s9465_s11 + $0x1290] sm:$0xff] }
 0x169   : > { %6813 = vmatpush2.bf16.msra.mxu0 %v8360_v8  ;;  %v864_v8 = vld [vmem:[%s9465_s11 + $0x12d0] sm:$0xff] }
 0x16a   : > { %6814 = vmatprep.subr.bf16.mxu0 %v8345_v11  ;;  %v1112_v11 = vld [vmem:[%s9465_s11 + $0x1a90] sm:$0xff] }
 0x16b   : > { %6854 = vmatpush2.bf16.msra.mxu1 %v8616_v9  ;;  %v840_v23 = vld [vmem:[%s9465_s11 + $0x1210] sm:$0xff] }
 0x16c   : > { %6855 = vmatprep.subr.bf16.mxu1 %v8601_v12  ;;  %v1120_v12 = vld [vmem:[%s9465_s11 + $0x1ad0] sm:$0xff] }
 0x16d   : > { %6815 = vmatpush2.bf16.msra.mxu0 %v8344_v18  ;;  %v9016_v18 = vcombine.low %v1128_v1, %v1136_v2  ;;  %v848_v25 = vld [vmem:[%s9465_s11 + $0x1250] sm:$0xff]  ;;  %v9000_v34 = vcombine.low %v1112_v11, %v1120_v12 }
 0x16e   : > { %6816 = vmatprep.subr.bf16.mxu0 %v8329_v20  ;;  %v8729_v35 = vcombine.high %v840_v23, %v848_v25  ;;  %v1080_v40 = vld [vmem:[%s9465_s11 + $0x1990] sm:$0xff]  ;;  %v8728_v44 = vcombine.low %v840_v23, %v848_v25 }
 0x16f   : > { %6856 = vmatpush2.bf16.msra.mxu1 %v8600_v19  ;;  %v8745_v19 = vcombine.high %v856_v7, %v864_v8  ;;  %v1088_v43 = vld [vmem:[%s9465_s11 + $0x19d0] sm:$0xff] }
 0x170   : > { %6857 = vmatprep.subr.bf16.mxu1 %v8585_v21  ;;  %v1064_v53 = vld [vmem:[%s9465_s11 + $0x1910] sm:$0xff]  ;;  %v8968_v57 = vcombine.low %v1080_v40, %v1088_v43 }
 0x171   : > { %6817 = vmatpush2.bf16.msra.mxu0 %v8328_v27  ;;  %v1096_v27 = vld [vmem:[%s9465_s11 + $0x1a10] sm:$0xff] }
 0x172   : > { %6818 = vmatprep.subr.bf16.mxu0 %v8313_v30  ;;  %v1072_v55 = vld [vmem:[%s9465_s11 + $0x1950] sm:$0xff] }
 0x173   : > { %6858 = vmatpush2.bf16.msra.mxu1 %v8584_v28  ;;  %v1104_v28 = vld [vmem:[%s9465_s11 + $0x1a50] sm:$0xff]  ;;  %v8952_v2 = vcombine.low %v1064_v53, %v1072_v55 }
 0x174   : > { %6859 = vmatprep.subr.bf16.mxu1 %v8569_v31  ;;  %v8984_v46 = vcombine.low %v1096_v27, %v1104_v28  ;;  %v1048_v62 = vld [vmem:[%s9465_s11 + $0x1890] sm:$0xff] }
 0x175   : > { %6819 = vmatpush2.bf16.msra.mxu0 %v8312_v37  ;;  %v1056_v63 = vld [vmem:[%s9465_s11 + $0x18d0] sm:$0xff] }
 0x176   : > { %6820 = vmatprep.subr.bf16.mxu0 %v8297_v39  ;;  %v824_v39 = vld [vmem:[%s9465_s11 + $0x1190] sm:$0xff] }
 0x177   : > { %6860 = vmatpush2.bf16.msra.mxu1 %v8568_v38  ;;  %v8985_v38 = vcombine.high %v1096_v27, %v1104_v28  ;;  %v1000_v23 = vld [vmem:[%s9465_s11 + $0x1710] sm:$0xff] }
 0x178   : > { %6861 = vmatprep.subr.bf16.mxu1 %v8553_v54  ;;  %v832_v54 = vld [vmem:[%s9465_s11 + $0x11d0] sm:$0xff] }
 0x179   : > { %6821 = vmatpush2.bf16.msra.mxu0 %v8296_v47  ;;  %v8713_v47 = vcombine.high %v824_v39, %v832_v54  ;;  %v8712_v56 = vcombine.low %v824_v39, %v832_v54  ;;  %v1008_v25 = vld [vmem:[%s9465_s11 + $0x1750] sm:$0xff] }
 0x17a   : > { %6822 = vmatprep.subr.bf16.mxu0 %v8281_v49  ;;  %v808_v49 = vld [vmem:[%s9465_s11 + $0x1110] sm:$0xff]  ;;  %v8888_v39 = vcombine.low %v1000_v23, %v1008_v25 }
 0x17b   : > { %6862 = vmatpush2.bf16.msra.mxu1 %v8552_v48  ;;  %v8969_v48 = vcombine.high %v1080_v40, %v1088_v43  ;;  %v1264_v27 = vld [vmem:[%s9465_s11 + $0x1f50] sm:$0xff] }
 0x17c   : > { %6863 = vmatprep.subr.bf16.mxu1 %v8537_v50  ;;  %v816_v50 = vld [vmem:[%s9465_s11 + $0x1150] sm:$0xff] }
 0x17d   : > { %6823 = vmatpush2.bf16.msra.mxu0 %v8280_v58  ;;  %v8697_v58 = vcombine.high %v808_v49, %v816_v50  ;;  %v8696_v1 = vcombine.low %v808_v49, %v816_v50 }
 0x17e   : > { %6874 = vmatprep.subr.bf16.mxu0 %v8777_v60  ;;  %v792_v60 = vld [vmem:[%s9465_s11 + $0x1090] sm:$0xff] }
 0x17f   : > { %6864 = vmatpush2.bf16.msra.mxu1 %v8536_v59  ;;  %v8953_v59 = vcombine.high %v1064_v53, %v1072_v55 }
 0x180   : > { %6915 = vmatprep.subr.bf16.mxu1 %v9033_v61  ;;  %v6580_v9 = vpop.f32.mrf.mxu0  ;;  %6825 = vmatmul.mubr.bf16.vlgmr.msra.gmra.mxu0 %v9593_v24  ;;  %v800_v61 = vld [vmem:[%s9465_s11 + $0x10d0] sm:$0xff] }
 0x181   : > { %v6581_v13 = vadd.f32 %v6580_v9, %v9824_v42  ;;  %6875 = vmatpush1.bf16.msra.mxu0 %v8776_v3  ;;  %v9001_v42 = vcombine.high %v1112_v11, %v1120_v12  ;;  %6906 = vmatprep.mubr.bf16.mxu0 %v9600_v32  ;;  %v8681_v3 = vcombine.high %v792_v60, %v800_v61 }
 0x182   : > { %v6621_v15 = vpop.f32.mrf.mxu1  ;;  %6866 = vmatmul.mubr.bf16.vlgmr.msra.gmra.mxu1 %v9604_v0  ;;  %v6582_v17 = vpop.f32.mrf.mxu0  ;;  %6876 = vmatprep.subr.bf16.mxu0 %v8761_v5  ;;  %v776_v5 = vld [vmem:[%s9465_s11 + $0x1010] sm:$0xff]  ;;  %v8680_v9 = vcombine.low %v792_v60, %v800_v61  ;;  %v8936_v11 = vcombine.low %v1048_v62, %v1056_v63 }
 0x183   : > { %6916 = vmatpush1.bf16.msra.mxu1 %v9032_v4  ;;  %v9897_v20 = vadd.f32 %v6621_v15, %v6581_v13  ;;  %v6583_v21 = vadd.f32 %v6582_v17, %v9829_v52  ;;  %6947 = vmatprep.mubr.bf16.mxu1 %v9613_v41  ;;  %v8744_v52 = vcombine.low %v856_v7, %v864_v8  ;;  %v1032_v7 = vld [vmem:[%s9465_s11 + $0x1810] sm:$0xff] }
 0x184   : > { %v6623_v22 = vpop.f32.mrf.mxu1  ;;  %6917 = vmatprep.subr.bf16.mxu1 %v9017_v6  ;;  %v6584_v26 = vpop.f32.mrf.mxu0  ;;  %v8937_v4 = vcombine.high %v1048_v62, %v1056_v63  ;;  %v784_v6 = vld [vmem:[%s9465_s11 + $0x1050] sm:$0xff] }
 0x185   : > { %v9906_v30 = vadd.f32 %v6623_v22, %v6583_v21  ;;  %6877 = vmatpush1.bf16.msra.mxu0 %v8760_v16  ;;  %v1040_v8 = vld [vmem:[%s9465_s11 + $0x1850] sm:$0xff]  ;;  %v8665_v12 = vcombine.high %v776_v5, %v784_v6 }
 0x186   : > { %v6625_v31 = vpop.f32.mrf.mxu1  ;;  %v6585_v29 = vpop.f32.mrf.mxu0  ;;  %6878 = vmatprep.subr.bf16.mxu0 %v8745_v19  ;;  %v8921_v13 = vcombine.high %v1032_v7, %v1040_v8  ;;  %v1016_v15 = vld [vmem:[%s9465_s11 + $0x1790] sm:$0xff]  ;;  %v8664_v19 = vcombine.low %v776_v5, %v784_v6  ;;  %v8920_v21 = vcombine.low %v1032_v7, %v1040_v8 }
 0x187   : > { %6918 = vmatpush1.bf16.msra.mxu1 %v9016_v18  ;;  %v7792_v36 = vcombine.low %v9897_v20, %v9906_v30  ;;  %v1024_v16 = vld [vmem:[%s9465_s11 + $0x17d0] sm:$0xff]  ;;  %v1065_v20 = vld [vmem:[%s9465_s11 + $0x1918] sm:$0xff] }
 0x188   : > { %v6626_v37 = vpop.f32.mrf.mxu1  ;;  %6919 = vmatprep.subr.bf16.mxu1 %v9001_v42  ;;  %v1272_v17 = vld [vmem:[%s9465_s11 + $0x1f90] sm:$0xff]  ;;  %v8905_v22 = vcombine.high %v1016_v15, %v1024_v16  ;;  %v8904_v28 = vcombine.low %v1016_v15, %v1024_v16  ;;  %v1073_v30 = vld [vmem:[%s9465_s11 + $0x1958] sm:$0xff] }
 0x189   : > { %6879 = vmatpush1.bf16.msra.mxu0 %v8744_v52  ;;  %v1280_v18 = vld [vmem:[%s9465_s11 + $0x1fd0] sm:$0xff]  ;;  %v8889_v52 = vcombine.high %v1000_v23, %v1008_v25 }
 0x18a   : > { %6880 = vmatprep.subr.bf16.mxu0 %v8729_v35  ;;  %v9161_v42 = vcombine.high %v1272_v17, %v1280_v18  ;;  %v1256_v26 = vld [vmem:[%s9465_s11 + $0x1f10] sm:$0xff]  ;;  %v9160_v31 = vcombine.low %v1272_v17, %v1280_v18 }
 0x18b   : > { %6920 = vmatpush1.bf16.msra.mxu1 %v9000_v34  ;;  %v9145_v29 = vcombine.high %v1256_v26, %v1264_v27  ;;  %v984_v34 = vld [vmem:[%s9465_s11 + $0x1690] sm:$0xff]  ;;  %v9144_v54 = vcombine.low %v1256_v26, %v1264_v27 }
 0x18c   : > { %6921 = vmatprep.subr.bf16.mxu1 %v8985_v38  ;;  %v992_v35 = vld [vmem:[%s9465_s11 + $0x16d0] sm:$0xff] }
 0x18d   : > { %6881 = vmatpush1.bf16.msra.mxu0 %v8728_v44  ;;  %v1240_v37 = vld [vmem:[%s9465_s11 + $0x1e90] sm:$0xff]  ;;  %v8873_v40 = vcombine.high %v984_v34, %v992_v35  ;;  %v8872_v49 = vcombine.low %v984_v34, %v992_v35 }
 0x18e   : > { %6882 = vmatprep.subr.bf16.mxu0 %v8713_v47  ;;  %v1248_v38 = vld [vmem:[%s9465_s11 + $0x1ed0] sm:$0xff] }
 0x18f   : > { %6922 = vmatpush1.bf16.msra.mxu1 %v8984_v46  ;;  %v9129_v43 = vcombine.high %v1240_v37, %v1248_v38  ;;  %v968_v44 = vld [vmem:[%s9465_s11 + $0x1610] sm:$0xff]  ;;  %v9128_v50 = vcombine.low %v1240_v37, %v1248_v38 }
 0x190   : > { %6923 = vmatprep.subr.bf16.mxu1 %v8969_v48  ;;  %v976_v46 = vld [vmem:[%s9465_s11 + $0x1650] sm:$0xff] }
 0x191   : > { %6883 = vmatpush1.bf16.msra.mxu0 %v8712_v56  ;;  %v1224_v47 = vld [vmem:[%s9465_s11 + $0x1e10] sm:$0xff]  ;;  %v8857_v53 = vcombine.high %v968_v44, %v976_v46  ;;  %v8856_v60 = vcombine.low %v968_v44, %v976_v46 }
 0x192   : > { %6884 = vmatprep.subr.bf16.mxu0 %v8697_v58  ;;  %v1232_v48 = vld [vmem:[%s9465_s11 + $0x1e50] sm:$0xff] }
 0x193   : > { %6924 = vmatpush1.bf16.msra.mxu1 %v8968_v57  ;;  %v9113_v55 = vcombine.high %v1224_v47, %v1232_v48  ;;  %v952_v56 = vld [vmem:[%s9465_s11 + $0x1590] sm:$0xff]  ;;  %v9112_v61 = vcombine.low %v1224_v47, %v1232_v48 }
 0x194   : > { %6925 = vmatprep.subr.bf16.mxu1 %v8953_v59  ;;  %v960_v57 = vld [vmem:[%s9465_s11 + $0x15d0] sm:$0xff] }
 0x195   : > { %6885 = vmatpush1.bf16.msra.mxu0 %v8696_v1  ;;  %v1208_v58 = vld [vmem:[%s9465_s11 + $0x1d90] sm:$0xff]  ;;  %v8841_v62 = vcombine.high %v952_v56, %v960_v57  ;;  %v8840_v5 = vcombine.low %v952_v56, %v960_v57  ;;  %v609_v56 = vld [vmem:[%s9465_s11 + $0xad8] sm:$0xff] }
 0x196   : > { %6886 = vmatprep.subr.bf16.mxu0 %v8681_v3  ;;  %v1216_v59 = vld [vmem:[%s9465_s11 + $0x1dd0] sm:$0xff] }
 0x197   : > { %6926 = vmatpush1.bf16.msra.mxu1 %v8952_v2  ;;  %v9097_v63 = vcombine.high %v1208_v58, %v1216_v59  ;;  %v936_v1 = vld [vmem:[%s9465_s11 + $0x1510] sm:$0xff]  ;;  %v9096_v6 = vcombine.low %v1208_v58, %v1216_v59 }
 0x198   : > { %6927 = vmatprep.subr.bf16.mxu1 %v8937_v4  ;;  %v944_v2 = vld [vmem:[%s9465_s11 + $0x1550] sm:$0xff] }
 0x199   : > { %6887 = vmatpush1.bf16.msra.mxu0 %v8680_v9  ;;  %v1192_v3 = vld [vmem:[%s9465_s11 + $0x1d10] sm:$0xff]  ;;  %v8825_v7 = vcombine.high %v936_v1, %v944_v2  ;;  %v8824_v15 = vcombine.low %v936_v1, %v944_v2  ;;  %v329_v1 = vld [vmem:[%s9465_s11 + $0x218] sm:$0xff] }
 0x19a   : > { %6888 = vmatprep.subr.bf16.mxu0 %v8665_v12  ;;  %v1200_v4 = vld [vmem:[%s9465_s11 + $0x1d50] sm:$0xff]  ;;  %v337_v2 = vld [vmem:[%s9465_s11 + $0x258] sm:$0xff] }
 0x19b   : > { %6928 = vmatpush1.bf16.msra.mxu1 %v8936_v11  ;;  %v9081_v8 = vcombine.high %v1192_v3, %v1200_v4  ;;  %v920_v9 = vld [vmem:[%s9465_s11 + $0x1490] sm:$0xff]  ;;  %v9080_v16 = vcombine.low %v1192_v3, %v1200_v4  ;;  %v585_v4 = vld [vmem:[%s9465_s11 + $0xa18] sm:$0xff] }
 0x19c   : > { %6929 = vmatprep.subr.bf16.mxu1 %v8921_v13  ;;  %v928_v11 = vld [vmem:[%s9465_s11 + $0x14d0] sm:$0xff] }
 0x19d   : > { %6889 = vmatpush1.bf16.msra.mxu0 %v8664_v19  ;;  %v1176_v12 = vld [vmem:[%s9465_s11 + $0x1c90] sm:$0xff]  ;;  %v8809_v17 = vcombine.high %v920_v9, %v928_v11  ;;  %v8808_v23 = vcombine.low %v920_v9, %v928_v11  ;;  %v8219_v11 = vcombine.high %v329_v1, %v337_v2 }
 0x19e   : > { %6890 = vmatprep.subr.bf16.mxu0 %v8905_v22  ;;  %v1184_v13 = vld [vmem:[%s9465_s11 + $0x1cd0] sm:$0xff] }
 0x19f   : > { %6930 = vmatpush1.bf16.msra.mxu1 %v8920_v21  ;;  %v9065_v18 = vcombine.high %v1176_v12, %v1184_v13  ;;  %v904_v19 = vld [vmem:[%s9465_s11 + $0x1410] sm:$0xff]  ;;  %v9064_v25 = vcombine.low %v1176_v12, %v1184_v13 }
 0x1a0   : > { %6931 = vmatprep.subr.bf16.mxu1 %v9161_v42  ;;  %v912_v21 = vld [vmem:[%s9465_s11 + $0x1450] sm:$0xff] }
 0x1a1   : > { %6891 = vmatpush2.bf16.msra.mxu0 %v8904_v28  ;;  %v1160_v22 = vld [vmem:[%s9465_s11 + $0x1c10] sm:$0xff]  ;;  %v8793_v26 = vcombine.high %v904_v19, %v912_v21  ;;  %v377_v28 = vld [vmem:[%s9465_s11 + $0x398] sm:$0xff]  ;;  %v8792_v34 = vcombine.low %v904_v19, %v912_v21  ;;  %v8218_v19 = vcombine.low %v329_v1, %v337_v2 }
 0x1a2   : > { %6892 = vmatprep.subr.bf16.mxu0 %v8889_v52  ;;  %v1168_v42 = vld [vmem:[%s9465_s11 + $0x1c50] sm:$0xff]  ;;  %v633_v52 = vld [vmem:[%s9465_s11 + $0xb98] sm:$0xff] }
 0x1a3   : > { %6932 = vmatpush2.bf16.msra.mxu1 %v9160_v31  ;;  %v9049_v27 = vcombine.high %v1160_v22, %v1168_v42  ;;  %v385_v31 = vld [vmem:[%s9465_s11 + $0x3d8] sm:$0xff]  ;;  %v9048_v35 = vcombine.low %v1160_v22, %v1168_v42 }
 0x1a4   : > { %6933 = vmatprep.subr.bf16.mxu1 %v9145_v29  ;;  %v641_v29 = vld [vmem:[%s9465_s11 + $0xbd8] sm:$0xff]  ;;  %v8267_v37 = vcombine.high %v377_v28, %v385_v31  ;;  %v8266_v44 = vcombine.low %v377_v28, %v385_v31 }
 0x1a5   : > { %6893 = vmatpush2.bf16.msra.mxu0 %v8888_v39  ;;  %v8523_v38 = vcombine.high %v633_v52, %v641_v29  ;;  %v361_v39 = vld [vmem:[%s9465_s11 + $0x318] sm:$0xff]  ;;  %v8522_v46 = vcombine.low %v633_v52, %v641_v29 }
 0x1a6   : > { %6894 = vmatprep.subr.bf16.mxu0 %v8873_v40  ;;  %v617_v40 = vld [vmem:[%s9465_s11 + $0xb18] sm:$0xff] }
 0x1a7   : > { %6934 = vmatpush2.bf16.msra.mxu1 %v9144_v54  ;;  %v369_v54 = vld [vmem:[%s9465_s11 + $0x358] sm:$0xff] }
 0x1a8   : > { %6935 = vmatprep.subr.bf16.mxu1 %v9129_v43  ;;  %v625_v43 = vld [vmem:[%s9465_s11 + $0xb58] sm:$0xff]  ;;  %v8251_v47 = vcombine.high %v361_v39, %v369_v54  ;;  %v8250_v58 = vcombine.low %v361_v39, %v369_v54 }
 0x1a9   : > { %6895 = vmatpush2.bf16.msra.mxu0 %v8872_v49  ;;  %v8507_v48 = vcombine.high %v617_v40, %v625_v43  ;;  %v345_v49 = vld [vmem:[%s9465_s11 + $0x298] sm:$0xff] }
 0x1aa   : > { %6896 = vmatprep.subr.bf16.mxu0 %v8857_v53 }
 0x1ab   : > { %6936 = vmatpush2.bf16.msra.mxu1 %v9128_v50  ;;  %v353_v50 = vld [vmem:[%s9465_s11 + $0x2d8] sm:$0xff] }
 0x1ac   : > { %6937 = vmatprep.subr.bf16.mxu1 %v9113_v55  ;;  %v601_v55 = vld [vmem:[%s9465_s11 + $0xa98] sm:$0xff] }
 0x1ad   : > { %6897 = vmatpush2.bf16.msra.mxu0 %v8856_v60  ;;  %v8506_v60 = vcombine.low %v617_v40, %v625_v43  ;;  %v8490_v9 = vcombine.low %v601_v55, %v609_v56 }
 0x1ae   : > { %6898 = vmatprep.subr.bf16.mxu0 %v8841_v62 }
 0x1af   : > { %6938 = vmatpush2.bf16.msra.mxu1 %v9112_v61  ;;  %v8235_v61 = vcombine.high %v345_v49, %v353_v50 }
 0x1b0   : > { %6939 = vmatprep.subr.bf16.mxu1 %v9097_v63  ;;  %v8491_v63 = vcombine.high %v601_v55, %v609_v56 }
 0x1b1   : > { %6899 = vmatpush2.bf16.msra.mxu0 %v8840_v5  ;;  %v593_v5 = vld [vmem:[%s9465_s11 + $0xa58] sm:$0xff] }
 0x1b2   : > { %6900 = vmatprep.subr.bf16.mxu0 %v8825_v7  ;;  %v8234_v7 = vcombine.low %v345_v49, %v353_v50  ;;  %v8475_v13 = vcombine.high %v585_v4, %v593_v5  ;;  %v8474_v21 = vcombine.low %v585_v4, %v593_v5  ;;  %v489_v5 = vld [vmem:[%s9465_s11 + $0x718] sm:$0xff] }
 0x1b3   : > { %6940 = vmatpush2.bf16.msra.mxu1 %v9096_v6 }
 0x1b4   : > { %6941 = vmatprep.subr.bf16.mxu1 %v9081_v8 }
 0x1b5   : > { %6901 = vmatpush2.bf16.msra.mxu0 %v8824_v15  ;;  %v313_v15 = vld [vmem:[%s9465_s11 + $0x198] sm:$0xff] }
 0x1b6   : > { %6902 = vmatprep.subr.bf16.mxu0 %v8809_v17  ;;  %v569_v17 = vld [vmem:[%s9465_s11 + $0x998] sm:$0xff] }
 0x1b7   : > { %6942 = vmatpush2.bf16.msra.mxu1 %v9080_v16  ;;  %v321_v16 = vld [vmem:[%s9465_s11 + $0x1d8] sm:$0xff] }
 0x1b8   : > { %6943 = vmatprep.subr.bf16.mxu1 %v9065_v18  ;;  %v577_v18 = vld [vmem:[%s9465_s11 + $0x9d8] sm:$0xff]  ;;  %v8203_v22 = vcombine.high %v313_v15, %v321_v16  ;;  %v8202_v28 = vcombine.low %v313_v15, %v321_v16 }
 0x1b9   : > { %6903 = vmatpush2.bf16.msra.mxu0 %v8808_v23  ;;  %v8459_v42 = vcombine.high %v569_v17, %v577_v18  ;;  %v297_v23 = vld [vmem:[%s9465_s11 + $0x118] sm:$0xff]  ;;  %v8458_v31 = vcombine.low %v569_v17, %v577_v18 }
 0x1ba   : > { %6904 = vmatprep.subr.bf16.mxu0 %v8793_v26  ;;  %v553_v26 = vld [vmem:[%s9465_s11 + $0x918] sm:$0xff] }
 0x1bb   : > { %6944 = vmatpush2.bf16.msra.mxu1 %v9064_v25  ;;  %v305_v25 = vld [vmem:[%s9465_s11 + $0x158] sm:$0xff] }
 0x1bc   : > { %6945 = vmatprep.subr.bf16.mxu1 %v9049_v27  ;;  %v561_v27 = vld [vmem:[%s9465_s11 + $0x958] sm:$0xff]  ;;  %v8187_v52 = vcombine.high %v297_v23, %v305_v25  ;;  %v8186_v39 = vcombine.low %v297_v23, %v305_v25 }
 0x1bd   : > { %6905 = vmatpush2.bf16.msra.mxu0 %v8792_v34  ;;  %v8443_v29 = vcombine.high %v553_v26, %v561_v27  ;;  %v281_v34 = vld [vmem:[%s9465_s11 + $0x98] sm:$0xff]  ;;  %v8442_v54 = vcombine.low %v553_v26, %v561_v27 }
 0x1be   : > { %6956 = vmatprep.subr.bf16.mxu0 %v8267_v37  ;;  %v537_v37 = vld [vmem:[%s9465_s11 + $0x898] sm:$0xff] }
 0x1bf   : > { %6946 = vmatpush2.bf16.msra.mxu1 %v9048_v35  ;;  %v289_v35 = vld [vmem:[%s9465_s11 + $0xd8] sm:$0xff] }
 0x1c0   : > { %6997 = vmatprep.subr.bf16.mxu1 %v8523_v38  ;;  %v9968_v53 = vpop.f32.mrf.mxu0  ;;  %6907 = vmatmul.mubr.bf16.vlgmr.msra.gmra.mxu0 %v9563_v33  ;;  %v545_v38 = vld [vmem:[%s9465_s11 + $0x8d8] sm:$0xff]  ;;  %v8171_v40 = vcombine.high %v281_v34, %v289_v35  ;;  %v8170_v49 = vcombine.low %v281_v34, %v289_v35 }
 0x1c1   : > { %6957 = vmatpush1.bf16.msra.mxu0 %v8266_v44  ;;  %6988 = vmatprep.mubr.bf16.mxu0 %v9540_v10  ;;  %v8427_v43 = vcombine.high %v537_v37, %v545_v38  ;;  %v265_v44 = vld [vmem:[%s9465_s11 + $0x18] sm:$0xff]  ;;  %v8426_v50 = vcombine.low %v537_v37, %v545_v38 }
 0x1c2   : > { %v9973_v57 = vpop.f32.mrf.mxu1  ;;  %6948 = vmatmul.mubr.bf16.vlgmr.msra.gmra.mxu1 %v9680_v51  ;;  %v9976_v59 = vpop.f32.mrf.mxu0  ;;  %6958 = vmatprep.subr.bf16.mxu0 %v8251_v47  ;;  %v521_v47 = vld [vmem:[%s9465_s11 + $0x818] sm:$0xff] }
 0x1c3   : > { %6998 = vmatpush1.bf16.msra.mxu1 %v8522_v46  ;;  %7029 = vmatprep.mubr.bf16.mxu1 %v9547_v14  ;;  %v273_v46 = vld [vmem:[%s9465_s11 + $0x58] sm:$0xff] }
 0x1c4   : > { %v9978_v62 = vpop.f32.mrf.mxu1  ;;  %6999 = vmatprep.subr.bf16.mxu1 %v8507_v48  ;;  %v6666_v3 = vpop.f32.mrf.mxu0  ;;  %v529_v48 = vld [vmem:[%s9465_s11 + $0x858] sm:$0xff]  ;;  %v8155_v55 = vcombine.high %v265_v44, %v273_v46  ;;  %v8154_v1 = vcombine.low %v265_v44, %v273_v46 }
 0x1c5   : > { %6959 = vmatpush1.bf16.msra.mxu0 %v8250_v58  ;;  %v8411_v56 = vcombine.high %v521_v47, %v529_v48  ;;  %v505_v58 = vld [vmem:[%s9465_s11 + $0x798] sm:$0xff]  ;;  %v8410_v2 = vcombine.low %v521_v47, %v529_v48 }
 0x1c6   : > { %v6707_v6 = vpop.f32.mrf.mxu1  ;;  %v6667_v8 = vpop.f32.mrf.mxu0  ;;  %6960 = vmatprep.subr.bf16.mxu0 %v8235_v61  ;;  %v761_v61 = vld [vmem:[%s9465_s11 + $0xf98] sm:$0xff] }
 0x1c7   : > { %7000 = vmatpush1.bf16.msra.mxu1 %v8506_v60  ;;  %v513_v60 = vld [vmem:[%s9465_s11 + $0x7d8] sm:$0xff] }
 0x1c8   : > { %v6708_v12 = vpop.f32.mrf.mxu1  ;;  %7001 = vmatprep.subr.bf16.mxu1 %v8491_v63  ;;  %v769_v63 = vld [vmem:[%s9465_s11 + $0xfd8] sm:$0xff]  ;;  %v8395_v3 = vcombine.high %v505_v58, %v513_v60 }
 0x1c9   : > { %6961 = vmatpush1.bf16.msra.mxu0 %v8234_v7  ;;  %v8651_v4 = vcombine.high %v761_v61, %v769_v63  ;;  %v497_v6 = vld [vmem:[%s9465_s11 + $0x758] sm:$0xff] }
 0x1ca   : > { %6962 = vmatprep.subr.bf16.mxu0 %v8219_v11  ;;  %v745_v7 = vld [vmem:[%s9465_s11 + $0xf18] sm:$0xff]  ;;  %v8650_v11 = vcombine.low %v761_v61, %v769_v63  ;;  %v8379_v12 = vcombine.high %v489_v5, %v497_v6 }
 0x1cb   : > { %7002 = vmatpush1.bf16.msra.mxu1 %v8490_v9  ;;  %v753_v8 = vld [vmem:[%s9465_s11 + $0xf58] sm:$0xff]  ;;  %v8394_v9 = vcombine.low %v505_v58, %v513_v60 }
 0x1cc   : > { %7003 = vmatprep.subr.bf16.mxu1 %v8475_v13  ;;  %v8635_v13 = vcombine.high %v745_v7, %v753_v8  ;;  %v473_v15 = vld [vmem:[%s9465_s11 + $0x698] sm:$0xff] }
 0x1cd   : > { %6963 = vmatpush1.bf16.msra.mxu0 %v8218_v19  ;;  %v481_v16 = vld [vmem:[%s9465_s11 + $0x6d8] sm:$0xff]  ;;  %v8378_v19 = vcombine.low %v489_v5, %v497_v6 }
 0x1ce   : > { %6964 = vmatprep.subr.bf16.mxu0 %v8203_v22  ;;  %v729_v17 = vld [vmem:[%s9465_s11 + $0xe98] sm:$0xff]  ;;  %v8363_v22 = vcombine.high %v473_v15, %v481_v16 }
 0x1cf   : > { %7004 = vmatpush1.bf16.msra.mxu1 %v8474_v21  ;;  %v737_v18 = vld [vmem:[%s9465_s11 + $0xed8] sm:$0xff]  ;;  %v8634_v21 = vcombine.low %v745_v7, %v753_v8 }
 0x1d0   : > { %7005 = vmatprep.subr.bf16.mxu1 %v8459_v42  ;;  %v8619_v42 = vcombine.high %v729_v17, %v737_v18  ;;  %v457_v23 = vld [vmem:[%s9465_s11 + $0x618] sm:$0xff] }
 0x1d1   : > { %6965 = vmatpush1.bf16.msra.mxu0 %v8202_v28  ;;  %v465_v25 = vld [vmem:[%s9465_s11 + $0x658] sm:$0xff]  ;;  %v8362_v28 = vcombine.low %v473_v15, %v481_v16 }
 0x1d2   : > { %6966 = vmatprep.subr.bf16.mxu0 %v8187_v52  ;;  %v713_v26 = vld [vmem:[%s9465_s11 + $0xe18] sm:$0xff]  ;;  %v8347_v52 = vcombine.high %v457_v23, %v465_v25 }
 0x1d3   : > { %7006 = vmatpush1.bf16.msra.mxu1 %v8458_v31  ;;  %v721_v27 = vld [vmem:[%s9465_s11 + $0xe58] sm:$0xff]  ;;  %v8618_v31 = vcombine.low %v729_v17, %v737_v18 }
 0x1d4   : > { %7007 = vmatprep.subr.bf16.mxu1 %v8443_v29  ;;  %v8603_v29 = vcombine.high %v713_v26, %v721_v27  ;;  %v441_v34 = vld [vmem:[%s9465_s11 + $0x598] sm:$0xff] }
 0x1d5   : > { %6967 = vmatpush1.bf16.msra.mxu0 %v8186_v39  ;;  %v449_v35 = vld [vmem:[%s9465_s11 + $0x5d8] sm:$0xff]  ;;  %v8346_v39 = vcombine.low %v457_v23, %v465_v25 }
 0x1d6   : > { %6968 = vmatprep.subr.bf16.mxu0 %v8171_v40  ;;  %v697_v37 = vld [vmem:[%s9465_s11 + $0xd98] sm:$0xff]  ;;  %v8331_v40 = vcombine.high %v441_v34, %v449_v35 }
 0x1d7   : > { %7008 = vmatpush1.bf16.msra.mxu1 %v8442_v54  ;;  %v705_v38 = vld [vmem:[%s9465_s11 + $0xdd8] sm:$0xff]  ;;  %v8602_v54 = vcombine.low %v713_v26, %v721_v27 }
 0x1d8   : > { %7009 = vmatprep.subr.bf16.mxu1 %v8427_v43  ;;  %v8587_v43 = vcombine.high %v697_v37, %v705_v38  ;;  %v425_v44 = vld [vmem:[%s9465_s11 + $0x518] sm:$0xff] }
 0x1d9   : > { %6969 = vmatpush1.bf16.msra.mxu0 %v8170_v49  ;;  %v433_v46 = vld [vmem:[%s9465_s11 + $0x558] sm:$0xff]  ;;  %v8330_v49 = vcombine.low %v441_v34, %v449_v35  ;;  %v6704_v35 = vadd.f32 %v9973_v57, %v9968_v53 }
 0x1da   : > { %6970 = vmatprep.subr.bf16.mxu0 %v8155_v55  ;;  %v681_v47 = vld [vmem:[%s9465_s11 + $0xd18] sm:$0xff]  ;;  %v8315_v55 = vcombine.high %v425_v44, %v433_v46 }
 0x1db   : > { %7010 = vmatpush1.bf16.msra.mxu1 %v8426_v50  ;;  %v689_v48 = vld [vmem:[%s9465_s11 + $0xd58] sm:$0xff]  ;;  %v8586_v50 = vcombine.low %v697_v37, %v705_v38 }
 0x1dc   : > { %7011 = vmatprep.subr.bf16.mxu1 %v8411_v56  ;;  %v8571_v56 = vcombine.high %v681_v47, %v689_v48  ;;  %v409_v58 = vld [vmem:[%s9465_s11 + $0x498] sm:$0xff] }
 0x1dd   : > { %6971 = vmatpush1.bf16.msra.mxu0 %v8154_v1  ;;  %v417_v60 = vld [vmem:[%s9465_s11 + $0x4d8] sm:$0xff]  ;;  %v8314_v1 = vcombine.low %v425_v44, %v433_v46  ;;  %v6706_v46 = vadd.f32 %v9978_v62, %v9976_v59 }
 0x1de   : > { %6972 = vmatprep.subr.bf16.mxu0 %v8395_v3  ;;  %v665_v61 = vld [vmem:[%s9465_s11 + $0xc98] sm:$0xff]  ;;  %v8299_v3 = vcombine.high %v409_v58, %v417_v60 }
 0x1df   : > { %7012 = vmatpush1.bf16.msra.mxu1 %v8410_v2  ;;  %v673_v63 = vld [vmem:[%s9465_s11 + $0xcd8] sm:$0xff]  ;;  %v8570_v2 = vcombine.low %v681_v47, %v689_v48 }
 0x1e0   : > { %7013 = vmatprep.subr.bf16.mxu1 %v8651_v4  ;;  %v8555_v4 = vcombine.high %v665_v61, %v673_v63  ;;  %v393_v5 = vld [vmem:[%s9465_s11 + $0x418] sm:$0xff] }
 0x1e1   : > { %6973 = vmatpush2.bf16.msra.mxu0 %v8394_v9  ;;  %v401_v6 = vld [vmem:[%s9465_s11 + $0x458] sm:$0xff]  ;;  %v8298_v9 = vcombine.low %v409_v58, %v417_v60 }
 0x1e2   : > { %6974 = vmatprep.subr.bf16.mxu0 %v8379_v12  ;;  %v649_v7 = vld [vmem:[%s9465_s11 + $0xc18] sm:$0xff]  ;;  %v8283_v12 = vcombine.high %v393_v5, %v401_v6 }
 0x1e3   : > { %7014 = vmatpush2.bf16.msra.mxu1 %v8650_v11  ;;  %v657_v8 = vld [vmem:[%s9465_s11 + $0xc58] sm:$0xff]  ;;  %v8554_v11 = vcombine.low %v665_v61, %v673_v63 }
 0x1e4   : > { %7015 = vmatprep.subr.bf16.mxu1 %v8635_v13  ;;  %v8539_v13 = vcombine.high %v649_v7, %v657_v8  ;;  %v889_v15 = vld [vmem:[%s9465_s11 + $0x1398] sm:$0xff] }
 0x1e5   : > { %6975 = vmatpush2.bf16.msra.mxu0 %v8378_v19  ;;  %v897_v16 = vld [vmem:[%s9465_s11 + $0x13d8] sm:$0xff]  ;;  %v8282_v19 = vcombine.low %v393_v5, %v401_v6 }
 0x1e6   : > { %6976 = vmatprep.subr.bf16.mxu0 %v8363_v22  ;;  %v1145_v17 = vld [vmem:[%s9465_s11 + $0x1b98] sm:$0xff]  ;;  %v8779_v22 = vcombine.high %v889_v15, %v897_v16 }
 0x1e7   : > { %7016 = vmatpush2.bf16.msra.mxu1 %v8634_v21  ;;  %v1153_v18 = vld [vmem:[%s9465_s11 + $0x1bd8] sm:$0xff]  ;;  %v8538_v21 = vcombine.low %v649_v7, %v657_v8 }
 0x1e8   : > { %7017 = vmatprep.subr.bf16.mxu1 %v8619_v42  ;;  %v9035_v42 = vcombine.high %v1145_v17, %v1153_v18  ;;  %v873_v23 = vld [vmem:[%s9465_s11 + $0x1318] sm:$0xff] }
 0x1e9   : > { %6977 = vmatpush2.bf16.msra.mxu0 %v8362_v28  ;;  %v881_v25 = vld [vmem:[%s9465_s11 + $0x1358] sm:$0xff]  ;;  %v9356_v28 = vmov 1983009808  }
 0x1ea   : > { %6978 = vmatprep.subr.bf16.mxu0 %v8347_v52  ;;  %v1129_v26 = vld [vmem:[%s9465_s11 + $0x1b18] sm:$0xff]  ;;  %v8778_v52 = vcombine.low %v889_v15, %v897_v16  ;;  %v8763_v34 = vcombine.high %v873_v23, %v881_v25  ;;  %v8762_v53 = vcombine.low %v873_v23, %v881_v25 }
 0x1eb   : > { %7018 = vmatpush2.bf16.msra.mxu1 %v8618_v31  ;;  %v1137_v27 = vld [vmem:[%s9465_s11 + $0x1b58] sm:$0xff]  ;;  %v7795_v31 = vunpack.c.l.s4 %v9356_v28 }
 0x1ec   : > { %7019 = vmatprep.subr.bf16.mxu1 %v8603_v29  ;;  %v9034_v29 = vcombine.low %v1145_v17, %v1153_v18  ;;  %v9019_v37 = vcombine.high %v1129_v26, %v1137_v27  ;;  %v857_v38 = vld [vmem:[%s9465_s11 + $0x1298] sm:$0xff] }
 0x1ed   : > { %6979 = vmatpush2.bf16.msra.mxu0 %v8346_v39  ;;  %v865_v39 = vld [vmem:[%s9465_s11 + $0x12d8] sm:$0xff]  ;;  %v7796_v44 = vunpack.c.0.s8 %v7795_v31 }
 0x1ee   : > { %6980 = vmatprep.subr.bf16.mxu0 %v8331_v40  ;;  %v1113_v40 = vld [vmem:[%s9465_s11 + $0x1a98] sm:$0xff]  ;;  %v8746_v5 = vcombine.low %v857_v38, %v865_v39 }
 0x1ef   : > { %7020 = vmatpush2.bf16.msra.mxu1 %v8602_v54  ;;  %v841_v60 = vld [vmem:[%s9465_s11 + $0x1218] sm:$0xff] }
 0x1f0   : > { %7021 = vmatprep.subr.bf16.mxu1 %v8587_v43  ;;  %v1121_v43 = vld [vmem:[%s9465_s11 + $0x1ad8] sm:$0xff] }
 0x1f1   : > { %6981 = vmatpush2.bf16.msra.mxu0 %v8330_v49  ;;  %v9018_v49 = vcombine.low %v1129_v26, %v1137_v27  ;;  %v9003_v58 = vcombine.high %v1113_v40, %v1121_v43  ;;  %v849_v59 = vld [vmem:[%s9465_s11 + $0x1258] sm:$0xff]  ;;  %v9002_v7 = vcombine.low %v1113_v40, %v1121_v43  ;;  %v8954_v40 = vcombine.low %v1065_v20, %v1073_v30 }
 0x1f2   : > { %6982 = vmatprep.subr.bf16.mxu0 %v8315_v55  ;;  %v1097_v61 = vld [vmem:[%s9465_s11 + $0x1a18] sm:$0xff]  ;;  %v8731_v8 = vcombine.high %v841_v60, %v849_v59 }
 0x1f3   : > { %7022 = vmatpush2.bf16.msra.mxu1 %v8586_v50  ;;  %v8747_v50 = vcombine.high %v857_v38, %v865_v39  ;;  %v1105_v63 = vld [vmem:[%s9465_s11 + $0x1a58] sm:$0xff] }
 0x1f4   : > { %7023 = vmatprep.subr.bf16.mxu1 %v8571_v56  ;;  %v833_v15 = vld [vmem:[%s9465_s11 + $0x11d8] sm:$0xff] }
 0x1f5   : > { %6983 = vmatpush2.bf16.msra.mxu0 %v8314_v1  ;;  %v10059_v1 = vsub.s32 %v7796_v44, %v9512_v45  ;;  %v1081_v16 = vld [vmem:[%s9465_s11 + $0x1998] sm:$0xff] }
 0x1f6   : > { %6984 = vmatprep.subr.bf16.mxu0 %v8299_v3  ;;  %v1089_v17 = vld [vmem:[%s9465_s11 + $0x19d8] sm:$0xff] }
 0x1f7   : > { %7024 = vmatpush2.bf16.msra.mxu1 %v8570_v2  ;;  %v7800_v18 = vrot.slane %v7792_v36, %v10059_v1  ;;  %v8971_v26 = vcombine.high %v1081_v16, %v1089_v17  ;;  %v809_v27 = vld [vmem:[%s9465_s11 + $0x1118] sm:$0xff] }
 0x1f8   : > { %7025 = vmatprep.subr.bf16.mxu1 %v8555_v4  ;;  %v817_v28 = vld [vmem:[%s9465_s11 + $0x1158] sm:$0xff] }
 0x1f9   : > { %6985 = vmatpush2.bf16.msra.mxu0 %v8298_v9  ;;  %v1049_v38 = vld [vmem:[%s9465_s11 + $0x1898] sm:$0xff] }
 0x1fa   : > { %6986 = vmatprep.subr.bf16.mxu0 %v8283_v12  ;;  %v8987_v12 = vcombine.high %v1097_v61, %v1105_v63  ;;  %v1057_v39 = vld [vmem:[%s9465_s11 + $0x18d8] sm:$0xff] }
 0x1fb   : > { %7026 = vmatpush2.bf16.msra.mxu1 %v8554_v11  ;;  %v8939_v44 = vcombine.high %v1049_v38, %v1057_v39 }
 0x1fc   : > { %7027 = vmatprep.subr.bf16.mxu1 %v8539_v13  ;;  %v825_v13 = vld [vmem:[%s9465_s11 + $0x1198] sm:$0xff] }
 0x1fd   : > { %6987 = vmatpush2.bf16.msra.mxu0 %v8282_v19  ;;  %v8715_v23 = vcombine.high %v825_v13, %v833_v15  ;;  %v8714_v31 = vcombine.low %v825_v13, %v833_v15  ;;  %v993_v13 = vld [vmem:[%s9465_s11 + $0x16d8] sm:$0xff] }
 0x1fe   : > { %7038 = vmatprep.subr.bf16.mxu0 %v8779_v22  ;;  %v257_v22 = vld [vmem:[#allocation2 + $0x10] sm:$0xff]  ;;  %v1241_v15 = vld [vmem:[%s9465_s11 + $0x1e98] sm:$0xff] }
 0x1ff   : > { %7028 = vmatpush2.bf16.msra.mxu1 %v8538_v21  ;;  %v8730_v21 = vcombine.low %v841_v60, %v849_v59  ;;  %v1273_v60 = vld [vmem:[%s9465_s11 + $0x1f98] sm:$0xff] }
 0x200   : > { %7079 = vmatprep.subr.bf16.mxu1 %v9035_v42  ;;  %v6744_v54 = vpop.f32.mrf.mxu0  ;;  %6989 = vmatmul.mubr.bf16.vlgmr.msra.gmra.mxu0 %v9593_v24  ;;  %v8986_v42 = vcombine.low %v1097_v61, %v1105_v63  ;;  %v1281_v59 = vld [vmem:[%s9465_s11 + $0x1fd8] sm:$0xff] }
 0x201   : > { %v6745_v47 = vadd.f32 %v6744_v54, %v6704_v35  ;;  %7039 = vmatpush1.bf16.msra.mxu0 %v8778_v52  ;;  %7070 = vmatprep.mubr.bf16.mxu0 %v9600_v32  ;;  %v8970_v52 = vcombine.low %v1081_v16, %v1089_v17  ;;  %v793_v35 = vld [vmem:[%s9465_s11 + $0x1098] sm:$0xff]  ;;  %v8698_v54 = vcombine.low %v809_v27, %v817_v28 }
 0x202   : > { %v6785_v48 = vpop.f32.mrf.mxu1  ;;  %7030 = vmatmul.mubr.bf16.vlgmr.msra.gmra.mxu1 %v9604_v0  ;;  %v6746_v57 = vpop.f32.mrf.mxu0  ;;  %7040 = vmatprep.subr.bf16.mxu0 %v8763_v34  ;;  %v8955_v34 = vcombine.high %v1065_v20, %v1073_v30  ;;  %v1249_v16 = vld [vmem:[%s9465_s11 + $0x1ed8] sm:$0xff] }
 0x203   : > { %7080 = vmatpush1.bf16.msra.mxu1 %v9034_v29  ;;  %v6747_v55 = vadd.f32 %v6746_v57, %v6706_v46  ;;  %7111 = vmatprep.mubr.bf16.mxu1 %v9613_v41  ;;  %v6786_v2 = vadd.f32 %v6785_v48, %v6745_v47  ;;  %v8699_v29 = vcombine.high %v809_v27, %v817_v28  ;;  %v777_v46 = vld [vmem:[%s9465_s11 + $0x1018] sm:$0xff] }
 0x204   : > { %v6787_v56 = vpop.f32.mrf.mxu1  ;;  %7081 = vmatprep.subr.bf16.mxu1 %v9019_v37  ;;  %v6748_v62 = vpop.f32.mrf.mxu0  ;;  %v801_v37 = vld [vmem:[%s9465_s11 + $0x10d8] sm:$0xff]  ;;  %v9130_v27 = vcombine.low %v1241_v15, %v1249_v16 }
 0x205   : > { %v6788_v3 = vadd.f32 %v6787_v56, %v6747_v55  ;;  %7041 = vmatpush1.bf16.msra.mxu0 %v8762_v53  ;;  %v8683_v43 = vcombine.high %v793_v35, %v801_v37  ;;  %v785_v47 = vld [vmem:[%s9465_s11 + $0x1058] sm:$0xff]  ;;  %v8682_v57 = vcombine.low %v793_v35, %v801_v37 }
 0x206   : > { %v6789_v4 = vpop.f32.mrf.mxu1  ;;  %v6749_v6 = vpop.f32.mrf.mxu0  ;;  %7042 = vmatprep.subr.bf16.mxu0 %v8747_v50  ;;  %v1033_v48 = vld [vmem:[%s9465_s11 + $0x1818] sm:$0xff]  ;;  %v8667_v50 = vcombine.high %v777_v46, %v785_v47  ;;  %v8666_v62 = vcombine.low %v777_v46, %v785_v47 }
 0x207   : > { %7082 = vmatpush1.bf16.msra.mxu1 %v9018_v49  ;;  %v7793_v9 = vcombine.low %v6786_v2, %v6788_v3  ;;  %v1041_v53 = vld [vmem:[%s9465_s11 + $0x1858] sm:$0xff]  ;;  %v8938_v49 = vcombine.low %v1049_v38, %v1057_v39  ;;  %v9163_v2 = vcombine.high %v1273_v60, %v1281_v59 }
 0x208   : > { %v6790_v11 = vpop.f32.mrf.mxu1  ;;  %7083 = vmatprep.subr.bf16.mxu1 %v9003_v58  ;;  %v8923_v55 = vcombine.high %v1033_v48, %v1041_v53  ;;  %v1017_v56 = vld [vmem:[%s9465_s11 + $0x1798] sm:$0xff]  ;;  %v8922_v61 = vcombine.low %v1033_v48, %v1041_v53 }
 0x209   : > { %v7807_v19 = vrot.slane %v7793_v9, %v10059_v1  ;;  %7043 = vmatpush1.bf16.msra.mxu0 %v8746_v5  ;;  %v1025_v58 = vld [vmem:[%s9465_s11 + $0x17d8] sm:$0xff] }
 0x20a   : > { %7044 = vmatprep.subr.bf16.mxu0 %v8731_v8  ;;  %v8907_v63 = vcombine.high %v1017_v56, %v1025_v58  ;;  %v1001_v3 = vld [vmem:[%s9465_s11 + $0x1718] sm:$0xff]  ;;  %v9162_v8 = vcombine.low %v1273_v60, %v1281_v59 }
 0x20b   : > { %7084 = vmatpush1.bf16.msra.mxu1 %v9002_v7  ;;  %v7808_v25 = vcombine.low %v7800_v18, %v7807_v19  ;;  %v1009_v4 = vld [vmem:[%s9465_s11 + $0x1758] sm:$0xff]  ;;  %v8906_v7 = vcombine.low %v1017_v56, %v1025_v58 }
 0x20c   : > { %7085 = vmatprep.subr.bf16.mxu1 %v8987_v12  ;;  %v1257_v5 = vld [vmem:[%s9465_s11 + $0x1f18] sm:$0xff]  ;;  %v8891_v9 = vcombine.high %v1001_v3, %v1009_v4  ;;  %v8890_v17 = vcombine.low %v1001_v3, %v1009_v4 }
 0x20d   : > { %v7864_v36 = vadd.f32 %v7808_v25, %v257_v22  ;;  %7045 = vmatpush1.bf16.msra.mxu0 %v8730_v21  ;;  %v1265_v6 = vld [vmem:[%s9465_s11 + $0x1f58] sm:$0xff]  ;;  %v9131_v21 = vcombine.high %v1241_v15, %v1249_v16  ;;  %v362_v15 = vld [vmem:[%s9465_s11 + $0x320] sm:$0xff] }
 0x20e   : > { %7046 = vmatprep.subr.bf16.mxu0 %v8715_v23  ;;  %v9147_v11 = vcombine.high %v1257_v5, %v1265_v6  ;;  %v985_v12 = vld [vmem:[%s9465_s11 + $0x1698] sm:$0xff]  ;;  %v9146_v18 = vcombine.low %v1257_v5, %v1265_v6  ;;  %v378_v5 = vld [vmem:[%s9465_s11 + $0x3a0] sm:$0xff] }
 0x20f   : > { %7086 = vmatpush1.bf16.msra.mxu1 %v8986_v42  ;;  %7868 = vst [vmem:[#allocation2 + $0x10] sm:$0xff] %v7864_v36  ;;  %v8875_v19 = vcombine.high %v985_v12, %v993_v13  ;;  %v969_v22 = vld [vmem:[%s9465_s11 + $0x1618] sm:$0xff]  ;;  %v386_v6 = vld [vmem:[%s9465_s11 + $0x3e0] sm:$0xff] }
 0x210   : > { %7087 = vmatprep.subr.bf16.mxu1 %v8971_v26  ;;  %v977_v42 = vld [vmem:[%s9465_s11 + $0x1658] sm:$0xff]  ;;  %v8874_v26 = vcombine.low %v985_v12, %v993_v13  ;;  %v8269_v12 = vcombine.high %v378_v5, %v386_v6  ;;  %v370_v16 = vld [vmem:[%s9465_s11 + $0x360] sm:$0xff] }
 0x211   : > { %7047 = vmatpush1.bf16.msra.mxu0 %v8714_v31  ;;  %v1225_v23 = vld [vmem:[%s9465_s11 + $0x1e18] sm:$0xff]  ;;  %v8859_v28 = vcombine.high %v969_v22, %v977_v42 }
 0x212   : > { %7048 = vmatprep.subr.bf16.mxu0 %v8699_v29  ;;  %v1233_v25 = vld [vmem:[%s9465_s11 + $0x1e58] sm:$0xff]  ;;  %v8858_v29 = vcombine.low %v969_v22, %v977_v42  ;;  %v8253_v22 = vcombine.high %v362_v15, %v370_v16 }
 0x213   : > { %7088 = vmatpush1.bf16.msra.mxu1 %v8970_v52  ;;  %v9115_v20 = vcombine.high %v1225_v23, %v1233_v25  ;;  %v953_v30 = vld [vmem:[%s9465_s11 + $0x1598] sm:$0xff] }
 0x214   : > { %7089 = vmatprep.subr.bf16.mxu1 %v8955_v34  ;;  %v961_v36 = vld [vmem:[%s9465_s11 + $0x15d8] sm:$0xff]  ;;  %v9114_v34 = vcombine.low %v1225_v23, %v1233_v25  ;;  %v346_v23 = vld [vmem:[%s9465_s11 + $0x2a0] sm:$0xff] }
 0x215   : > { %7049 = vmatpush1.bf16.msra.mxu0 %v8698_v54  ;;  %v1209_v31 = vld [vmem:[%s9465_s11 + $0x1d98] sm:$0xff]  ;;  %v8843_v35 = vcombine.high %v953_v30, %v961_v36  ;;  %v354_v25 = vld [vmem:[%s9465_s11 + $0x2e0] sm:$0xff] }
 0x216   : > { %7050 = vmatprep.subr.bf16.mxu0 %v8683_v43  ;;  %v1217_v52 = vld [vmem:[%s9465_s11 + $0x1dd8] sm:$0xff]  ;;  %v8842_v43 = vcombine.low %v953_v30, %v961_v36  ;;  %v8252_v30 = vcombine.low %v362_v15, %v370_v16 }
 0x217   : > { %7090 = vmatpush1.bf16.msra.mxu1 %v8954_v40  ;;  %v9099_v37 = vcombine.high %v1209_v31, %v1217_v52  ;;  %v937_v38 = vld [vmem:[%s9465_s11 + $0x1518] sm:$0xff] }
 0x218   : > { %7091 = vmatprep.subr.bf16.mxu1 %v8939_v44  ;;  %v945_v39 = vld [vmem:[%s9465_s11 + $0x1558] sm:$0xff]  ;;  %v9098_v44 = vcombine.low %v1209_v31, %v1217_v52 }
 0x219   : > { %7051 = vmatpush1.bf16.msra.mxu0 %v8682_v57  ;;  %v1193_v54 = vld [vmem:[%s9465_s11 + $0x1d18] sm:$0xff]  ;;  %v8827_v46 = vcombine.high %v937_v38, %v945_v39 }
 0x21a   : > { %7052 = vmatprep.subr.bf16.mxu0 %v8667_v50  ;;  %v1201_v40 = vld [vmem:[%s9465_s11 + $0x1d58] sm:$0xff]  ;;  %v8826_v50 = vcombine.low %v937_v38, %v945_v39  ;;  %v338_v38 = vld [vmem:[%s9465_s11 + $0x260] sm:$0xff] }
 0x21b   : > { %7092 = vmatpush1.bf16.msra.mxu1 %v8938_v49  ;;  %v9083_v47 = vcombine.high %v1193_v54, %v1201_v40  ;;  %v921_v48 = vld [vmem:[%s9465_s11 + $0x1498] sm:$0xff] }
 0x21c   : > { %7093 = vmatprep.subr.bf16.mxu1 %v8923_v55  ;;  %v929_v53 = vld [vmem:[%s9465_s11 + $0x14d8] sm:$0xff]  ;;  %v9082_v55 = vcombine.low %v1193_v54, %v1201_v40  ;;  %v586_v40 = vld [vmem:[%s9465_s11 + $0xa20] sm:$0xff] }
 0x21d   : > { %7053 = vmatpush1.bf16.msra.mxu0 %v8666_v62  ;;  %v1177_v57 = vld [vmem:[%s9465_s11 + $0x1c98] sm:$0xff]  ;;  %v8811_v56 = vcombine.high %v921_v48, %v929_v53 }
 0x21e   : > { %7054 = vmatprep.subr.bf16.mxu0 %v8907_v63  ;;  %v1185_v49 = vld [vmem:[%s9465_s11 + $0x1cd8] sm:$0xff]  ;;  %v8810_v63 = vcombine.low %v921_v48, %v929_v53 }
 0x21f   : > { %7094 = vmatpush1.bf16.msra.mxu1 %v8922_v61  ;;  %v9067_v58 = vcombine.high %v1177_v57, %v1185_v49  ;;  %v905_v60 = vld [vmem:[%s9465_s11 + $0x1418] sm:$0xff] }
 0x220   : > { %7095 = vmatprep.subr.bf16.mxu1 %v9163_v2  ;;  %v913_v59 = vld [vmem:[%s9465_s11 + $0x1458] sm:$0xff]  ;;  %v9066_v2 = vcombine.low %v1177_v57, %v1185_v49 }
 0x221   : > { %7055 = vmatpush2.bf16.msra.mxu0 %v8906_v7  ;;  %v1161_v62 = vld [vmem:[%s9465_s11 + $0x1c18] sm:$0xff]  ;;  %v8795_v3 = vcombine.high %v905_v60, %v913_v59  ;;  %v634_v7 = vld [vmem:[%s9465_s11 + $0xba0] sm:$0xff] }
 0x222   : > { %7056 = vmatprep.subr.bf16.mxu0 %v8891_v9  ;;  %v1169_v61 = vld [vmem:[%s9465_s11 + $0x1c58] sm:$0xff]  ;;  %v8794_v9 = vcombine.low %v905_v60, %v913_v59 }
 0x223   : > { %7096 = vmatpush2.bf16.msra.mxu1 %v9162_v8  ;;  %v9051_v4 = vcombine.high %v1161_v62, %v1169_v61  ;;  %v642_v8 = vld [vmem:[%s9465_s11 + $0xbe0] sm:$0xff] }
 0x224   : > { %7097 = vmatprep.subr.bf16.mxu1 %v9147_v11  ;;  %v9050_v11 = vcombine.low %v1161_v62, %v1169_v61  ;;  %v8525_v13 = vcombine.high %v634_v7, %v642_v8 }
 0x225   : > { %7057 = vmatpush2.bf16.msra.mxu0 %v8890_v17  ;;  %v618_v17 = vld [vmem:[%s9465_s11 + $0xb20] sm:$0xff] }
 0x226   : > { %7058 = vmatprep.subr.bf16.mxu0 %v8875_v19  ;;  %v8268_v19 = vcombine.low %v378_v5, %v386_v6 }
 0x227   : > { %7098 = vmatpush2.bf16.msra.mxu1 %v9146_v18  ;;  %v626_v18 = vld [vmem:[%s9465_s11 + $0xb60] sm:$0xff] }
 0x228   : > { %7099 = vmatprep.subr.bf16.mxu1 %v9131_v21  ;;  %v8524_v21 = vcombine.low %v634_v7, %v642_v8  ;;  %v8509_v42 = vcombine.high %v618_v17, %v626_v18  ;;  %v8508_v52 = vcombine.low %v618_v17, %v626_v18 }
 0x229   : > { %7059 = vmatpush2.bf16.msra.mxu0 %v8874_v26 }
 0x22a   : > { %7060 = vmatprep.subr.bf16.mxu0 %v8859_v28  ;;  %v610_v28 = vld [vmem:[%s9465_s11 + $0xae0] sm:$0xff] }
 0x22b   : > { %7100 = vmatpush2.bf16.msra.mxu1 %v9130_v27  ;;  %v602_v27 = vld [vmem:[%s9465_s11 + $0xaa0] sm:$0xff] }
 0x22c   : > { %7101 = vmatprep.subr.bf16.mxu1 %v9115_v20  ;;  %v8492_v48 = vcombine.low %v602_v27, %v610_v28 }
 0x22d   : > { %7061 = vmatpush2.bf16.msra.mxu0 %v8858_v29  ;;  %v8237_v29 = vcombine.high %v346_v23, %v354_v25 }
 0x22e   : > { %7062 = vmatprep.subr.bf16.mxu0 %v8843_v35  ;;  %v8493_v35 = vcombine.high %v602_v27, %v610_v28  ;;  %v506_v28 = vld [vmem:[%s9465_s11 + $0x7a0] sm:$0xff] }
 0x22f   : > { %7102 = vmatpush2.bf16.msra.mxu1 %v9114_v34 }
 0x230   : > { %7103 = vmatprep.subr.bf16.mxu1 %v9099_v37  ;;  %v330_v37 = vld [vmem:[%s9465_s11 + $0x220] sm:$0xff] }
 0x231   : > { %7063 = vmatpush2.bf16.msra.mxu0 %v8842_v43  ;;  %v594_v43 = vld [vmem:[%s9465_s11 + $0xa60] sm:$0xff]  ;;  %v8221_v53 = vcombine.high %v330_v37, %v338_v38  ;;  %v8220_v60 = vcombine.low %v330_v37, %v338_v38 }
 0x232   : > { %7064 = vmatprep.subr.bf16.mxu0 %v8827_v46  ;;  %v8236_v46 = vcombine.low %v346_v23, %v354_v25  ;;  %v8477_v49 = vcombine.high %v586_v40, %v594_v43  ;;  %v8476_v59 = vcombine.low %v586_v40, %v594_v43  ;;  %v490_v37 = vld [vmem:[%s9465_s11 + $0x720] sm:$0xff] }
 0x233   : > { %7104 = vmatpush2.bf16.msra.mxu1 %v9098_v44  ;;  %v498_v38 = vld [vmem:[%s9465_s11 + $0x760] sm:$0xff] }
 0x234   : > { %7105 = vmatprep.subr.bf16.mxu1 %v9083_v47  ;;  %v754_v40 = vld [vmem:[%s9465_s11 + $0xf60] sm:$0xff] }
 0x235   : > { %7065 = vmatpush2.bf16.msra.mxu0 %v8826_v50  ;;  %v314_v50 = vld [vmem:[%s9465_s11 + $0x1a0] sm:$0xff] }
 0x236   : > { %7066 = vmatprep.subr.bf16.mxu0 %v8811_v56  ;;  %v570_v56 = vld [vmem:[%s9465_s11 + $0x9a0] sm:$0xff] }
 0x237   : > { %7106 = vmatpush2.bf16.msra.mxu1 %v9082_v55  ;;  %v322_v55 = vld [vmem:[%s9465_s11 + $0x1e0] sm:$0xff] }
 0x238   : > { %7107 = vmatprep.subr.bf16.mxu1 %v9067_v58  ;;  %v578_v58 = vld [vmem:[%s9465_s11 + $0x9e0] sm:$0xff]  ;;  %v8205_v62 = vcombine.high %v314_v50, %v322_v55  ;;  %v8204_v5 = vcombine.low %v314_v50, %v322_v55  ;;  %v8380_v50 = vcombine.low %v490_v37, %v498_v38 }
 0x239   : > { %7067 = vmatpush2.bf16.msra.mxu0 %v8810_v63  ;;  %v8461_v61 = vcombine.high %v570_v56, %v578_v58  ;;  %v298_v63 = vld [vmem:[%s9465_s11 + $0x120] sm:$0xff]  ;;  %v8460_v6 = vcombine.low %v570_v56, %v578_v58 }
 0x23a   : > { %7068 = vmatprep.subr.bf16.mxu0 %v8795_v3  ;;  %v554_v3 = vld [vmem:[%s9465_s11 + $0x920] sm:$0xff] }
 0x23b   : > { %7108 = vmatpush2.bf16.msra.mxu1 %v9066_v2  ;;  %v306_v2 = vld [vmem:[%s9465_s11 + $0x160] sm:$0xff] }
 0x23c   : > { %7109 = vmatprep.subr.bf16.mxu1 %v9051_v4  ;;  %v562_v4 = vld [vmem:[%s9465_s11 + $0x960] sm:$0xff]  ;;  %v8189_v7 = vcombine.high %v298_v63, %v306_v2  ;;  %v8188_v15 = vcombine.low %v298_v63, %v306_v2 }
 0x23d   : > { %7069 = vmatpush2.bf16.msra.mxu0 %v8794_v9  ;;  %v8445_v8 = vcombine.high %v554_v3, %v562_v4  ;;  %v282_v9 = vld [vmem:[%s9465_s11 + $0xa0] sm:$0xff]  ;;  %v8444_v16 = vcombine.low %v554_v3, %v562_v4 }
 0x23e   : > { %7120 = vmatprep.subr.bf16.mxu0 %v8269_v12  ;;  %v538_v12 = vld [vmem:[%s9465_s11 + $0x8a0] sm:$0xff] }
 0x23f   : > { %7110 = vmatpush2.bf16.msra.mxu1 %v9050_v11  ;;  %v290_v11 = vld [vmem:[%s9465_s11 + $0xe0] sm:$0xff] }
 0x240   : > { %7161 = vmatprep.subr.bf16.mxu1 %v8525_v13  ;;  %v6826_v26 = vpop.f32.mrf.mxu0  ;;  %7071 = vmatmul.mubr.bf16.vlgmr.msra.gmra.mxu0 %v9563_v33  ;;  %v546_v13 = vld [vmem:[%s9465_s11 + $0x8e0] sm:$0xff]  ;;  %v8173_v17 = vcombine.high %v282_v9, %v290_v11  ;;  %v8172_v23 = vcombine.low %v282_v9, %v290_v11 }
 0x241   : > { %7121 = vmatpush1.bf16.msra.mxu0 %v8268_v19  ;;  %7152 = vmatprep.mubr.bf16.mxu0 %v9540_v10  ;;  %v8429_v18 = vcombine.high %v538_v12, %v546_v13  ;;  %v266_v19 = vld [vmem:[%s9465_s11 + $0x20] sm:$0xff]  ;;  %v8428_v25 = vcombine.low %v538_v12, %v546_v13 }
 0x242   : > { %v6867_v20 = vpop.f32.mrf.mxu1  ;;  %7112 = vmatmul.mubr.bf16.vlgmr.msra.gmra.mxu1 %v9680_v51  ;;  %v6828_v31 = vpop.f32.mrf.mxu0  ;;  %7122 = vmatprep.subr.bf16.mxu0 %v8253_v22  ;;  %v522_v22 = vld [vmem:[%s9465_s11 + $0x820] sm:$0xff] }
 0x243   : > { %v10128_v36 = vadd.f32 %v6867_v20, %v6826_v26  ;;  %7162 = vmatpush1.bf16.msra.mxu1 %v8524_v21  ;;  %7193 = vmatprep.mubr.bf16.mxu1 %v9547_v14  ;;  %v274_v21 = vld [vmem:[%s9465_s11 + $0x60] sm:$0xff] }
 0x244   : > { %v6869_v34 = vpop.f32.mrf.mxu1  ;;  %7163 = vmatprep.subr.bf16.mxu1 %v8509_v42  ;;  %v6830_v54 = vpop.f32.mrf.mxu0  ;;  %v530_v42 = vld [vmem:[%s9465_s11 + $0x860] sm:$0xff]  ;;  %v8157_v26 = vcombine.high %v266_v19, %v274_v21 }
 0x245   : > { %v10133_v39 = vadd.f32 %v6869_v34, %v6828_v31  ;;  %7123 = vmatpush1.bf16.msra.mxu0 %v8252_v30  ;;  %v8413_v27 = vcombine.high %v522_v22, %v530_v42  ;;  %v514_v20 = vld [vmem:[%s9465_s11 + $0x7e0] sm:$0xff] }
 0x246   : > { %v6871_v44 = vpop.f32.mrf.mxu1  ;;  %v6831_v47 = vpop.f32.mrf.mxu0  ;;  %7124 = vmatprep.subr.bf16.mxu0 %v8237_v29  ;;  %v762_v30 = vld [vmem:[%s9465_s11 + $0xfa0] sm:$0xff]  ;;  %v8412_v29 = vcombine.low %v522_v22, %v530_v42  ;;  %v8397_v34 = vcombine.high %v506_v28, %v514_v20  ;;  %v8396_v43 = vcombine.low %v506_v28, %v514_v20 }
 0x247   : > { %7164 = vmatpush1.bf16.msra.mxu1 %v8508_v52  ;;  %v770_v31 = vld [vmem:[%s9465_s11 + $0xfe0] sm:$0xff]  ;;  %v8156_v52 = vcombine.low %v266_v19, %v274_v21 }
 0x248   : > { %v6872_v57 = vpop.f32.mrf.mxu1  ;;  %7165 = vmatprep.subr.bf16.mxu1 %v8493_v35  ;;  %v8653_v35 = vcombine.high %v762_v30, %v770_v31  ;;  %v746_v54 = vld [vmem:[%s9465_s11 + $0xf20] sm:$0xff]  ;;  %v8652_v44 = vcombine.low %v762_v30, %v770_v31 }
 0x249   : > { %7125 = vmatpush1.bf16.msra.mxu0 %v8236_v46  ;;  %v8381_v46 = vcombine.high %v490_v37, %v498_v38  ;;  %v8637_v47 = vcombine.high %v746_v54, %v754_v40  ;;  %v730_v57 = vld [vmem:[%s9465_s11 + $0xea0] sm:$0xff]  ;;  %v8636_v55 = vcombine.low %v746_v54, %v754_v40 }
 0x24a   : > { %7126 = vmatprep.subr.bf16.mxu0 %v8221_v53  ;;  %v482_v53 = vld [vmem:[%s9465_s11 + $0x6e0] sm:$0xff] }
 0x24b   : > { %7166 = vmatpush1.bf16.msra.mxu1 %v8492_v48  ;;  %v474_v48 = vld [vmem:[%s9465_s11 + $0x6a0] sm:$0xff] }
 0x24c   : > { %7167 = vmatprep.subr.bf16.mxu1 %v8477_v49  ;;  %v738_v49 = vld [vmem:[%s9465_s11 + $0xee0] sm:$0xff]  ;;  %v8365_v56 = vcombine.high %v474_v48, %v482_v53  ;;  %v8364_v63 = vcombine.low %v474_v48, %v482_v53 }
 0x24d   : > { %7127 = vmatpush1.bf16.msra.mxu0 %v8220_v60  ;;  %v8621_v58 = vcombine.high %v730_v57, %v738_v49  ;;  %v458_v60 = vld [vmem:[%s9465_s11 + $0x620] sm:$0xff]  ;;  %v8620_v2 = vcombine.low %v730_v57, %v738_v49 }
 0x24e   : > { %7128 = vmatprep.subr.bf16.mxu0 %v8205_v62  ;;  %v714_v62 = vld [vmem:[%s9465_s11 + $0xe20] sm:$0xff] }
 0x24f   : > { %7168 = vmatpush1.bf16.msra.mxu1 %v8476_v59  ;;  %v466_v59 = vld [vmem:[%s9465_s11 + $0x660] sm:$0xff] }
 0x250   : > { %7169 = vmatprep.subr.bf16.mxu1 %v8461_v61  ;;  %v722_v61 = vld [vmem:[%s9465_s11 + $0xe60] sm:$0xff]  ;;  %v8349_v3 = vcombine.high %v458_v60, %v466_v59  ;;  %v8348_v9 = vcombine.low %v458_v60, %v466_v59 }
 0x251   : > { %7129 = vmatpush1.bf16.msra.mxu0 %v8204_v5  ;;  %v8605_v4 = vcombine.high %v714_v62, %v722_v61  ;;  %v442_v5 = vld [vmem:[%s9465_s11 + $0x5a0] sm:$0xff]  ;;  %v8604_v11 = vcombine.low %v714_v62, %v722_v61 }
 0x252   : > { %7130 = vmatprep.subr.bf16.mxu0 %v8189_v7  ;;  %v698_v7 = vld [vmem:[%s9465_s11 + $0xda0] sm:$0xff] }
 0x253   : > { %7170 = vmatpush1.bf16.msra.mxu1 %v8460_v6  ;;  %v450_v6 = vld [vmem:[%s9465_s11 + $0x5e0] sm:$0xff] }
 0x254   : > { %7171 = vmatprep.subr.bf16.mxu1 %v8445_v8  ;;  %v706_v8 = vld [vmem:[%s9465_s11 + $0xde0] sm:$0xff]  ;;  %v8333_v12 = vcombine.high %v442_v5, %v450_v6  ;;  %v8332_v19 = vcombine.low %v442_v5, %v450_v6 }
 0x255   : > { %7131 = vmatpush1.bf16.msra.mxu0 %v8188_v15  ;;  %v8589_v13 = vcombine.high %v698_v7, %v706_v8  ;;  %v426_v15 = vld [vmem:[%s9465_s11 + $0x520] sm:$0xff]  ;;  %v8588_v21 = vcombine.low %v698_v7, %v706_v8 }
 0x256   : > { %7132 = vmatprep.subr.bf16.mxu0 %v8173_v17  ;;  %v682_v17 = vld [vmem:[%s9465_s11 + $0xd20] sm:$0xff] }
 0x257   : > { %7172 = vmatpush1.bf16.msra.mxu1 %v8444_v16  ;;  %v434_v16 = vld [vmem:[%s9465_s11 + $0x560] sm:$0xff] }
 0x258   : > { %7173 = vmatprep.subr.bf16.mxu1 %v8429_v18  ;;  %v690_v18 = vld [vmem:[%s9465_s11 + $0xd60] sm:$0xff]  ;;  %v8317_v22 = vcombine.high %v426_v15, %v434_v16  ;;  %v8316_v28 = vcombine.low %v426_v15, %v434_v16 }
 0x259   : > { %7133 = vmatpush1.bf16.msra.mxu0 %v8172_v23  ;;  %v8573_v42 = vcombine.high %v682_v17, %v690_v18  ;;  %v410_v23 = vld [vmem:[%s9465_s11 + $0x4a0] sm:$0xff]  ;;  %v8572_v20 = vcombine.low %v682_v17, %v690_v18 }
 0x25a   : > { %7134 = vmatprep.subr.bf16.mxu0 %v8157_v26  ;;  %v666_v26 = vld [vmem:[%s9465_s11 + $0xca0] sm:$0xff] }
 0x25b   : > { %7174 = vmatpush1.bf16.msra.mxu1 %v8428_v25  ;;  %v418_v25 = vld [vmem:[%s9465_s11 + $0x4e0] sm:$0xff] }
 0x25c   : > { %7175 = vmatprep.subr.bf16.mxu1 %v8413_v27  ;;  %v674_v27 = vld [vmem:[%s9465_s11 + $0xce0] sm:$0xff]  ;;  %v8301_v30 = vcombine.high %v410_v23, %v418_v25  ;;  %v8300_v37 = vcombine.low %v410_v23, %v418_v25 }
 0x25d   : > { %7135 = vmatpush1.bf16.msra.mxu0 %v8156_v52  ;;  %v8557_v31 = vcombine.high %v666_v26, %v674_v27  ;;  %v394_v52 = vld [vmem:[%s9465_s11 + $0x420] sm:$0xff]  ;;  %v8556_v38 = vcombine.low %v666_v26, %v674_v27 }
 0x25e   : > { %7136 = vmatprep.subr.bf16.mxu0 %v8397_v34  ;;  %v650_v34 = vld [vmem:[%s9465_s11 + $0xc20] sm:$0xff] }
 0x25f   : > { %7176 = vmatpush1.bf16.msra.mxu1 %v8412_v29  ;;  %v402_v29 = vld [vmem:[%s9465_s11 + $0x460] sm:$0xff] }
 0x260   : > { %7177 = vmatprep.subr.bf16.mxu1 %v8653_v35  ;;  %v658_v35 = vld [vmem:[%s9465_s11 + $0xc60] sm:$0xff]  ;;  %v8285_v54 = vcombine.high %v394_v52, %v402_v29  ;;  %v8284_v48 = vcombine.low %v394_v52, %v402_v29 }
 0x261   : > { %7137 = vmatpush2.bf16.msra.mxu0 %v8396_v43  ;;  %v8541_v40 = vcombine.high %v650_v34, %v658_v35  ;;  %v890_v43 = vld [vmem:[%s9465_s11 + $0x13a0] sm:$0xff]  ;;  %v8540_v53 = vcombine.low %v650_v34, %v658_v35 }
 0x262   : > { %7138 = vmatprep.subr.bf16.mxu0 %v8381_v46  ;;  %v1146_v46 = vld [vmem:[%s9465_s11 + $0x1ba0] sm:$0xff] }
 0x263   : > { %7178 = vmatpush2.bf16.msra.mxu1 %v8652_v44  ;;  %v898_v44 = vld [vmem:[%s9465_s11 + $0x13e0] sm:$0xff] }
 0x264   : > { %7179 = vmatprep.subr.bf16.mxu1 %v8637_v47  ;;  %v1154_v47 = vld [vmem:[%s9465_s11 + $0x1be0] sm:$0xff]  ;;  %v8781_v57 = vcombine.high %v890_v43, %v898_v44  ;;  %v8780_v60 = vcombine.low %v890_v43, %v898_v44 }
 0x265   : > { %7139 = vmatpush2.bf16.msra.mxu0 %v8380_v50  ;;  %v9037_v49 = vcombine.high %v1146_v46, %v1154_v47  ;;  %v874_v50 = vld [vmem:[%s9465_s11 + $0x1320] sm:$0xff]  ;;  %v9036_v59 = vcombine.low %v1146_v46, %v1154_v47 }
 0x266   : > { %7140 = vmatprep.subr.bf16.mxu0 %v8365_v56  ;;  %v1130_v56 = vld [vmem:[%s9465_s11 + $0x1b20] sm:$0xff] }
 0x267   : > { %7180 = vmatpush2.bf16.msra.mxu1 %v8636_v55  ;;  %v882_v55 = vld [vmem:[%s9465_s11 + $0x1360] sm:$0xff] }
 0x268   : > { %7181 = vmatprep.subr.bf16.mxu1 %v8621_v58  ;;  %v1138_v58 = vld [vmem:[%s9465_s11 + $0x1b60] sm:$0xff]  ;;  %v8765_v62 = vcombine.high %v874_v50, %v882_v55  ;;  %v8764_v8 = vcombine.low %v874_v50, %v882_v55 }
 0x269   : > { %7141 = vmatpush2.bf16.msra.mxu0 %v8364_v63  ;;  %v9021_v61 = vcombine.high %v1130_v56, %v1138_v58  ;;  %v858_v63 = vld [vmem:[%s9465_s11 + $0x12a0] sm:$0xff] }
 0x26a   : > { %7142 = vmatprep.subr.bf16.mxu0 %v8349_v3  ;;  %v1122_v5 = vld [vmem:[%s9465_s11 + $0x1ae0] sm:$0xff] }
 0x26b   : > { %7182 = vmatpush2.bf16.msra.mxu1 %v8620_v2  ;;  %v866_v2 = vld [vmem:[%s9465_s11 + $0x12e0] sm:$0xff] }
 0x26c   : > { %7183 = vmatprep.subr.bf16.mxu1 %v8605_v4  ;;  %v1114_v4 = vld [vmem:[%s9465_s11 + $0x1aa0] sm:$0xff] }
 0x26d   : > { %7143 = vmatpush2.bf16.msra.mxu0 %v8348_v9  ;;  %v842_v17 = vld [vmem:[%s9465_s11 + $0x1220] sm:$0xff]  ;;  %v9004_v26 = vcombine.low %v1114_v4, %v1122_v5 }
 0x26e   : > { %7144 = vmatprep.subr.bf16.mxu0 %v8333_v12  ;;  %v8749_v12 = vcombine.high %v858_v63, %v866_v2  ;;  %v850_v18 = vld [vmem:[%s9465_s11 + $0x1260] sm:$0xff] }
 0x26f   : > { %7184 = vmatpush2.bf16.msra.mxu1 %v8604_v11  ;;  %v9020_v11 = vcombine.low %v1130_v56, %v1138_v58  ;;  %v8733_v27 = vcombine.high %v842_v17, %v850_v18  ;;  %v834_v52 = vld [vmem:[%s9465_s11 + $0x11e0] sm:$0xff]  ;;  %v8732_v35 = vcombine.low %v842_v17, %v850_v18 }
 0x270   : > { %7185 = vmatprep.subr.bf16.mxu1 %v8589_v13  ;;  %v1082_v29 = vld [vmem:[%s9465_s11 + $0x19a0] sm:$0xff] }
 0x271   : > { %7145 = vmatpush2.bf16.msra.mxu0 %v8332_v19  ;;  %v1090_v34 = vld [vmem:[%s9465_s11 + $0x19e0] sm:$0xff] }
 0x272   : > { %7146 = vmatprep.subr.bf16.mxu0 %v8317_v22  ;;  %v1106_v22 = vld [vmem:[%s9465_s11 + $0x1a60] sm:$0xff] }
 0x273   : > { %7186 = vmatpush2.bf16.msra.mxu1 %v8588_v21  ;;  %v1098_v21 = vld [vmem:[%s9465_s11 + $0x1a20] sm:$0xff] }
 0x274   : > { %7187 = vmatprep.subr.bf16.mxu1 %v8573_v42  ;;  %v818_v43 = vld [vmem:[%s9465_s11 + $0x1160] sm:$0xff] }
 0x275   : > { %7147 = vmatpush2.bf16.msra.mxu0 %v8316_v28  ;;  %v1066_v44 = vld [vmem:[%s9465_s11 + $0x1920] sm:$0xff] }
 0x276   : > { %7148 = vmatprep.subr.bf16.mxu0 %v8301_v30  ;;  %v8989_v30 = vcombine.high %v1098_v21, %v1106_v22  ;;  %v1074_v46 = vld [vmem:[%s9465_s11 + $0x1960] sm:$0xff] }
 0x277   : > { %7188 = vmatpush2.bf16.msra.mxu1 %v8572_v20  ;;  %v802_v50 = vld [vmem:[%s9465_s11 + $0x10e0] sm:$0xff] }
 0x278   : > { %7189 = vmatprep.subr.bf16.mxu1 %v8557_v31  ;;  %v826_v31 = vld [vmem:[%s9465_s11 + $0x11a0] sm:$0xff] }
 0x279   : > { %7149 = vmatpush2.bf16.msra.mxu0 %v8300_v37  ;;  %v8988_v37 = vcombine.low %v1098_v21, %v1106_v22  ;;  %v8716_v47 = vcombine.low %v826_v31, %v834_v52  ;;  %v1050_v55 = vld [vmem:[%s9465_s11 + $0x18a0] sm:$0xff] }
 0x27a   : > { %7150 = vmatprep.subr.bf16.mxu0 %v8285_v54  ;;  %v8973_v54 = vcombine.high %v1082_v29, %v1090_v34  ;;  %v1058_v56 = vld [vmem:[%s9465_s11 + $0x18e0] sm:$0xff] }
 0x27b   : > { %7190 = vmatpush2.bf16.msra.mxu1 %v8556_v38  ;;  %v8717_v38 = vcombine.high %v826_v31, %v834_v52  ;;  %v1002_v18 = vld [vmem:[%s9465_s11 + $0x1720] sm:$0xff] }
 0x27c   : > { %7191 = vmatprep.subr.bf16.mxu1 %v8541_v40  ;;  %v810_v40 = vld [vmem:[%s9465_s11 + $0x1120] sm:$0xff] }
 0x27d   : > { %7151 = vmatpush2.bf16.msra.mxu0 %v8284_v48  ;;  %v8972_v48 = vcombine.low %v1082_v29, %v1090_v34  ;;  %v8700_v58 = vcombine.low %v810_v40, %v818_v43  ;;  %v1258_v21 = vld [vmem:[%s9465_s11 + $0x1f20] sm:$0xff] }
 0x27e   : > { %7202 = vmatprep.subr.bf16.mxu0 %v8781_v57  ;;  %v8957_v57 = vcombine.high %v1066_v44, %v1074_v46  ;;  %v1266_v22 = vld [vmem:[%s9465_s11 + $0x1f60] sm:$0xff] }
 0x27f   : > { %7192 = vmatpush2.bf16.msra.mxu1 %v8540_v53  ;;  %v8701_v53 = vcombine.high %v810_v40, %v818_v43  ;;  %v1250_v31 = vld [vmem:[%s9465_s11 + $0x1ee0] sm:$0xff]  ;;  %v9148_v29 = vcombine.low %v1258_v21, %v1266_v22 }
 0x280   : > { %7243 = vmatprep.subr.bf16.mxu1 %v9037_v49  ;;  %v6908_v3 = vpop.f32.mrf.mxu0  ;;  %7153 = vmatmul.mubr.bf16.vlgmr.msra.gmra.mxu0 %v9593_v24  ;;  %v794_v49 = vld [vmem:[%s9465_s11 + $0x10a0] sm:$0xff] }
 0x281   : > { %v6909_v6 = vadd.f32 %v6908_v3, %v10128_v36  ;;  %7203 = vmatpush1.bf16.msra.mxu0 %v8780_v60  ;;  %v9005_v36 = vcombine.high %v1114_v4, %v1122_v5  ;;  %7234 = vmatprep.mubr.bf16.mxu0 %v9600_v32  ;;  %v8956_v60 = vcombine.low %v1066_v44, %v1074_v46  ;;  %v1042_v3 = vld [vmem:[%s9465_s11 + $0x1860] sm:$0xff] }
 0x282   : > { %v6949_v7 = vpop.f32.mrf.mxu1  ;;  %7194 = vmatmul.mubr.bf16.vlgmr.msra.gmra.mxu1 %v9604_v0  ;;  %v6910_v9 = vpop.f32.mrf.mxu0  ;;  %7204 = vmatprep.subr.bf16.mxu0 %v8765_v62  ;;  %v8941_v62 = vcombine.high %v1050_v55, %v1058_v56  ;;  %v8684_v4 = vcombine.low %v794_v49, %v802_v50  ;;  %v8940_v5 = vcombine.low %v1050_v55, %v1058_v56  ;;  %v1234_v40 = vld [vmem:[%s9465_s11 + $0x1e60] sm:$0xff] }
 0x283   : > { %7244 = vmatpush1.bf16.msra.mxu1 %v9036_v59  ;;  %v10201_v13 = vadd.f32 %v6949_v7, %v6909_v6  ;;  %v6911_v15 = vadd.f32 %v6910_v9, %v10133_v39  ;;  %7275 = vmatprep.mubr.bf16.mxu1 %v9613_v41  ;;  %v8748_v39 = vcombine.low %v858_v63, %v866_v2  ;;  %v786_v63 = vld [vmem:[%s9465_s11 + $0x1060] sm:$0xff] }
 0x284   : > { %v6951_v16 = vpop.f32.mrf.mxu1  ;;  %7245 = vmatprep.subr.bf16.mxu1 %v9021_v61  ;;  %v6912_v19 = vpop.f32.mrf.mxu0  ;;  %v8685_v59 = vcombine.high %v794_v49, %v802_v50  ;;  %v778_v61 = vld [vmem:[%s9465_s11 + $0x1020] sm:$0xff] }
 0x285   : > { %v10210_v42 = vadd.f32 %v6951_v16, %v6911_v15  ;;  %7205 = vmatpush1.bf16.msra.mxu0 %v8764_v8  ;;  %v1034_v2 = vld [vmem:[%s9465_s11 + $0x1820] sm:$0xff]  ;;  %v8669_v6 = vcombine.high %v778_v61, %v786_v63  ;;  %v8668_v15 = vcombine.low %v778_v61, %v786_v63 }
 0x286   : > { %v6953_v23 = vpop.f32.mrf.mxu1  ;;  %v6913_v25 = vpop.f32.mrf.mxu0  ;;  %7206 = vmatprep.subr.bf16.mxu0 %v8749_v12  ;;  %v8925_v7 = vcombine.high %v1034_v2, %v1042_v3  ;;  %v1018_v8 = vld [vmem:[%s9465_s11 + $0x17a0] sm:$0xff]  ;;  %v8924_v16 = vcombine.low %v1034_v2, %v1042_v3 }
 0x287   : > { %7246 = vmatpush1.bf16.msra.mxu1 %v9020_v11  ;;  %v7809_v28 = vcombine.low %v10201_v13, %v10210_v42  ;;  %v1026_v9 = vld [vmem:[%s9465_s11 + $0x17e0] sm:$0xff]  ;;  %v1067_v13 = vld [vmem:[%s9465_s11 + $0x1928] sm:$0xff] }
 0x288   : > { %v6954_v20 = vpop.f32.mrf.mxu1  ;;  %7247 = vmatprep.subr.bf16.mxu1 %v9005_v36  ;;  %v1274_v11 = vld [vmem:[%s9465_s11 + $0x1fa0] sm:$0xff]  ;;  %v8909_v36 = vcombine.high %v1018_v8, %v1026_v9  ;;  %v8908_v23 = vcombine.low %v1018_v8, %v1026_v9  ;;  %v1075_v42 = vld [vmem:[%s9465_s11 + $0x1968] sm:$0xff] }
 0x289   : > { %7207 = vmatpush1.bf16.msra.mxu0 %v8748_v39  ;;  %v1282_v12 = vld [vmem:[%s9465_s11 + $0x1fe0] sm:$0xff] }
 0x28a   : > { %7208 = vmatprep.subr.bf16.mxu0 %v8733_v27  ;;  %v9165_v17 = vcombine.high %v1274_v11, %v1282_v12  ;;  %v1010_v19 = vld [vmem:[%s9465_s11 + $0x1760] sm:$0xff]  ;;  %v9164_v39 = vcombine.low %v1274_v11, %v1282_v12 }
 0x28b   : > { %7248 = vmatpush1.bf16.msra.mxu1 %v9004_v26  ;;  %v8893_v25 = vcombine.high %v1002_v18, %v1010_v19  ;;  %v9149_v26 = vcombine.high %v1258_v21, %v1266_v22  ;;  %v986_v27 = vld [vmem:[%s9465_s11 + $0x16a0] sm:$0xff]  ;;  %v8892_v52 = vcombine.low %v1002_v18, %v1010_v19 }
 0x28c   : > { %7249 = vmatprep.subr.bf16.mxu1 %v8989_v30  ;;  %v994_v20 = vld [vmem:[%s9465_s11 + $0x16e0] sm:$0xff] }
 0x28d   : > { %7209 = vmatpush1.bf16.msra.mxu0 %v8732_v35  ;;  %v1242_v30 = vld [vmem:[%s9465_s11 + $0x1ea0] sm:$0xff]  ;;  %v8877_v34 = vcombine.high %v986_v27, %v994_v20  ;;  %v8876_v43 = vcombine.low %v986_v27, %v994_v20  ;;  %v643_v27 = vld [vmem:[%s9465_s11 + $0xbe8] sm:$0xff] }
 0x28e   : > { %7210 = vmatprep.subr.bf16.mxu0 %v8717_v38  ;;  %v9133_v35 = vcombine.high %v1242_v30, %v1250_v31  ;;  %v978_v38 = vld [vmem:[%s9465_s11 + $0x1660] sm:$0xff]  ;;  %v9132_v44 = vcombine.low %v1242_v30, %v1250_v31 }
 0x28f   : > { %7250 = vmatpush1.bf16.msra.mxu1 %v8988_v37  ;;  %v970_v37 = vld [vmem:[%s9465_s11 + $0x1620] sm:$0xff] }
 0x290   : > { %7251 = vmatprep.subr.bf16.mxu1 %v8973_v54  ;;  %v1226_v54 = vld [vmem:[%s9465_s11 + $0x1e20] sm:$0xff]  ;;  %v8861_v46 = vcombine.high %v970_v37, %v978_v38  ;;  %v8860_v50 = vcombine.low %v970_v37, %v978_v38  ;;  %v627_v37 = vld [vmem:[%s9465_s11 + $0xb68] sm:$0xff] }
 0x291   : > { %7211 = vmatpush1.bf16.msra.mxu0 %v8716_v47  ;;  %v9117_v47 = vcombine.high %v1226_v54, %v1234_v40  ;;  %v1218_v49 = vld [vmem:[%s9465_s11 + $0x1de0] sm:$0xff]  ;;  %v9116_v55 = vcombine.low %v1226_v54, %v1234_v40 }
 0x292   : > { %7212 = vmatprep.subr.bf16.mxu0 %v8701_v53  ;;  %v962_v53 = vld [vmem:[%s9465_s11 + $0x15e0] sm:$0xff] }
 0x293   : > { %7252 = vmatpush1.bf16.msra.mxu1 %v8972_v48  ;;  %v954_v48 = vld [vmem:[%s9465_s11 + $0x15a0] sm:$0xff] }
 0x294   : > { %7253 = vmatprep.subr.bf16.mxu1 %v8957_v57  ;;  %v1210_v57 = vld [vmem:[%s9465_s11 + $0x1da0] sm:$0xff]  ;;  %v8845_v56 = vcombine.high %v954_v48, %v962_v53  ;;  %v8844_v63 = vcombine.low %v954_v48, %v962_v53  ;;  %v603_v48 = vld [vmem:[%s9465_s11 + $0xaa8] sm:$0xff] }
 0x295   : > { %7213 = vmatpush1.bf16.msra.mxu0 %v8700_v58  ;;  %v9101_v58 = vcombine.high %v1210_v57, %v1218_v49  ;;  %v1202_v61 = vld [vmem:[%s9465_s11 + $0x1d60] sm:$0xff]  ;;  %v9100_v2 = vcombine.low %v1210_v57, %v1218_v49  ;;  %v611_v53 = vld [vmem:[%s9465_s11 + $0xae8] sm:$0xff] }
 0x296   : > { %7214 = vmatprep.subr.bf16.mxu0 %v8685_v59  ;;  %v946_v59 = vld [vmem:[%s9465_s11 + $0x1560] sm:$0xff] }
 0x297   : > { %7254 = vmatpush1.bf16.msra.mxu1 %v8956_v60  ;;  %v938_v60 = vld [vmem:[%s9465_s11 + $0x1520] sm:$0xff] }
 0x298   : > { %7255 = vmatprep.subr.bf16.mxu1 %v8941_v62  ;;  %v1194_v62 = vld [vmem:[%s9465_s11 + $0x1d20] sm:$0xff]  ;;  %v8829_v3 = vcombine.high %v938_v60, %v946_v59  ;;  %v8828_v9 = vcombine.low %v938_v60, %v946_v59  ;;  %v8495_v60 = vcombine.high %v603_v48, %v611_v53  ;;  %v331_v59 = vld [vmem:[%s9465_s11 + $0x228] sm:$0xff] }
 0x299   : > { %7215 = vmatpush1.bf16.msra.mxu0 %v8684_v4  ;;  %v9085_v4 = vcombine.high %v1194_v62, %v1202_v61  ;;  %v1186_v8 = vld [vmem:[%s9465_s11 + $0x1ce0] sm:$0xff]  ;;  %v9084_v11 = vcombine.low %v1194_v62, %v1202_v61  ;;  %v339_v62 = vld [vmem:[%s9465_s11 + $0x268] sm:$0xff] }
 0x29a   : > { %7216 = vmatprep.subr.bf16.mxu0 %v8669_v6  ;;  %v930_v6 = vld [vmem:[%s9465_s11 + $0x14e0] sm:$0xff] }
 0x29b   : > { %7256 = vmatpush1.bf16.msra.mxu1 %v8940_v5  ;;  %v922_v5 = vld [vmem:[%s9465_s11 + $0x14a0] sm:$0xff] }
 0x29c   : > { %7257 = vmatprep.subr.bf16.mxu1 %v8925_v7  ;;  %v1178_v7 = vld [vmem:[%s9465_s11 + $0x1ca0] sm:$0xff]  ;;  %v8813_v12 = vcombine.high %v922_v5, %v930_v6  ;;  %v8812_v19 = vcombine.low %v922_v5, %v930_v6  ;;  %v8494_v6 = vcombine.low %v603_v48, %v611_v53 }
 0x29d   : > { %7217 = vmatpush1.bf16.msra.mxu0 %v8668_v15  ;;  %v9069_v15 = vcombine.high %v1178_v7, %v1186_v8  ;;  %v1170_v18 = vld [vmem:[%s9465_s11 + $0x1c60] sm:$0xff]  ;;  %v9068_v21 = vcombine.low %v1178_v7, %v1186_v8  ;;  %v8223_v7 = vcombine.high %v331_v59, %v339_v62 }
 0x29e   : > { %7218 = vmatprep.subr.bf16.mxu0 %v8909_v36  ;;  %v914_v36 = vld [vmem:[%s9465_s11 + $0x1460] sm:$0xff] }
 0x29f   : > { %7258 = vmatpush1.bf16.msra.mxu1 %v8924_v16  ;;  %v906_v16 = vld [vmem:[%s9465_s11 + $0x1420] sm:$0xff] }
 0x2a0   : > { %7259 = vmatprep.subr.bf16.mxu1 %v9165_v17  ;;  %v1162_v17 = vld [vmem:[%s9465_s11 + $0x1c20] sm:$0xff]  ;;  %v8797_v22 = vcombine.high %v906_v16, %v914_v36  ;;  %v8796_v20 = vcombine.low %v906_v16, %v914_v36  ;;  %v579_v16 = vld [vmem:[%s9465_s11 + $0x9e8] sm:$0xff]  ;;  %v8222_v36 = vcombine.low %v331_v59, %v339_v62 }
 0x2a1   : > { %7219 = vmatpush2.bf16.msra.mxu0 %v8908_v23  ;;  %v9053_v23 = vcombine.high %v1162_v17, %v1170_v18  ;;  %v9052_v30 = vcombine.low %v1162_v17, %v1170_v18  ;;  %v771_v59 = vld [vmem:[%s9465_s11 + $0xfe8] sm:$0xff] }
 0x2a2   : > { %7220 = vmatprep.subr.bf16.mxu0 %v8893_v25  ;;  %v387_v25 = vld [vmem:[%s9465_s11 + $0x3e8] sm:$0xff] }
 0x2a3   : > { %7260 = vmatpush2.bf16.msra.mxu1 %v9164_v39  ;;  %v379_v39 = vld [vmem:[%s9465_s11 + $0x3a8] sm:$0xff] }
 0x2a4   : > { %7261 = vmatprep.subr.bf16.mxu1 %v9149_v26  ;;  %v635_v26 = vld [vmem:[%s9465_s11 + $0xba8] sm:$0xff]  ;;  %v8271_v31 = vcombine.high %v379_v39, %v387_v25  ;;  %v8270_v38 = vcombine.low %v379_v39, %v387_v25 }
 0x2a5   : > { %7221 = vmatpush2.bf16.msra.mxu0 %v8892_v52  ;;  %v8527_v52 = vcombine.high %v635_v26, %v643_v27  ;;  %v8526_v54 = vcombine.low %v635_v26, %v643_v27  ;;  %v563_v39 = vld [vmem:[%s9465_s11 + $0x968] sm:$0xff] }
 0x2a6   : > { %7222 = vmatprep.subr.bf16.mxu0 %v8877_v34  ;;  %v371_v34 = vld [vmem:[%s9465_s11 + $0x368] sm:$0xff] }
 0x2a7   : > { %7262 = vmatpush2.bf16.msra.mxu1 %v9148_v29  ;;  %v363_v29 = vld [vmem:[%s9465_s11 + $0x328] sm:$0xff] }
 0x2a8   : > { %7263 = vmatprep.subr.bf16.mxu1 %v9133_v35  ;;  %v619_v35 = vld [vmem:[%s9465_s11 + $0xb28] sm:$0xff]  ;;  %v8255_v40 = vcombine.high %v363_v29, %v371_v34  ;;  %v8254_v49 = vcombine.low %v363_v29, %v371_v34 }
 0x2a9   : > { %7223 = vmatpush2.bf16.msra.mxu0 %v8876_v43  ;;  %v8511_v43 = vcombine.high %v619_v35, %v627_v37  ;;  %v547_v29 = vld [vmem:[%s9465_s11 + $0x8e8] sm:$0xff] }
 0x2aa   : > { %7224 = vmatprep.subr.bf16.mxu0 %v8861_v46  ;;  %v355_v46 = vld [vmem:[%s9465_s11 + $0x2e8] sm:$0xff] }
 0x2ab   : > { %7264 = vmatpush2.bf16.msra.mxu1 %v9132_v44  ;;  %v347_v44 = vld [vmem:[%s9465_s11 + $0x2a8] sm:$0xff] }
 0x2ac   : > { %7265 = vmatprep.subr.bf16.mxu1 %v9117_v47 }
 0x2ad   : > { %7225 = vmatpush2.bf16.msra.mxu0 %v8860_v50 }
 0x2ae   : > { %7226 = vmatprep.subr.bf16.mxu0 %v8845_v56  ;;  %v8239_v56 = vcombine.high %v347_v44, %v355_v46 }
 0x2af   : > { %7266 = vmatpush2.bf16.msra.mxu1 %v9116_v55  ;;  %v8510_v55 = vcombine.low %v619_v35, %v627_v37 }
 0x2b0   : > { %7267 = vmatprep.subr.bf16.mxu1 %v9101_v58 }
 0x2b1   : > { %7227 = vmatpush2.bf16.msra.mxu0 %v8844_v63  ;;  %v587_v63 = vld [vmem:[%s9465_s11 + $0xa28] sm:$0xff] }
 0x2b2   : > { %7228 = vmatprep.subr.bf16.mxu0 %v8829_v3 }
 0x2b3   : > { %7268 = vmatpush2.bf16.msra.mxu1 %v9100_v2  ;;  %v595_v2 = vld [vmem:[%s9465_s11 + $0xa68] sm:$0xff] }
 0x2b4   : > { %7269 = vmatprep.subr.bf16.mxu1 %v9085_v4  ;;  %v8238_v4 = vcombine.low %v347_v44, %v355_v46  ;;  %v8478_v17 = vcombine.low %v587_v63, %v595_v2  ;;  %v531_v44 = vld [vmem:[%s9465_s11 + $0x868] sm:$0xff] }
 0x2b5   : > { %7229 = vmatpush2.bf16.msra.mxu0 %v8828_v9  ;;  %v8479_v9 = vcombine.high %v587_v63, %v595_v2 }
 0x2b6   : > { %7230 = vmatprep.subr.bf16.mxu0 %v8813_v12  ;;  %v323_v12 = vld [vmem:[%s9465_s11 + $0x1e8] sm:$0xff] }
 0x2b7   : > { %7270 = vmatpush2.bf16.msra.mxu1 %v9084_v11  ;;  %v315_v11 = vld [vmem:[%s9465_s11 + $0x1a8] sm:$0xff] }
 0x2b8   : > { %7271 = vmatprep.subr.bf16.mxu1 %v9069_v15  ;;  %v571_v15 = vld [vmem:[%s9465_s11 + $0x9a8] sm:$0xff]  ;;  %v8207_v18 = vcombine.high %v315_v11, %v323_v12  ;;  %v8206_v25 = vcombine.low %v315_v11, %v323_v12 }
 0x2b9   : > { %7231 = vmatpush2.bf16.msra.mxu0 %v8812_v19  ;;  %v8463_v19 = vcombine.high %v571_v15, %v579_v16  ;;  %v8462_v26 = vcombine.low %v571_v15, %v579_v16  ;;  %v475_v12 = vld [vmem:[%s9465_s11 + $0x6a8] sm:$0xff] }
 0x2ba   : > { %7232 = vmatprep.subr.bf16.mxu0 %v8797_v22  ;;  %v307_v22 = vld [vmem:[%s9465_s11 + $0x168] sm:$0xff] }
 0x2bb   : > { %7272 = vmatpush2.bf16.msra.mxu1 %v9068_v21  ;;  %v299_v21 = vld [vmem:[%s9465_s11 + $0x128] sm:$0xff] }
 0x2bc   : > { %7273 = vmatprep.subr.bf16.mxu1 %v9053_v23  ;;  %v555_v23 = vld [vmem:[%s9465_s11 + $0x928] sm:$0xff]  ;;  %v8191_v27 = vcombine.high %v299_v21, %v307_v22  ;;  %v8190_v34 = vcombine.low %v299_v21, %v307_v22 }
 0x2bd   : > { %7233 = vmatpush2.bf16.msra.mxu0 %v8796_v20  ;;  %v8447_v20 = vcombine.high %v555_v23, %v563_v39  ;;  %v8446_v35 = vcombine.low %v555_v23, %v563_v39  ;;  %v483_v15 = vld [vmem:[%s9465_s11 + $0x6e8] sm:$0xff] }
 0x2be   : > { %7284 = vmatprep.subr.bf16.mxu0 %v8271_v31  ;;  %v291_v31 = vld [vmem:[%s9465_s11 + $0xe8] sm:$0xff] }
 0x2bf   : > { %7274 = vmatpush2.bf16.msra.mxu1 %v9052_v30  ;;  %v283_v30 = vld [vmem:[%s9465_s11 + $0xa8] sm:$0xff] }
 0x2c0   : > { %7325 = vmatprep.subr.bf16.mxu1 %v8527_v52  ;;  %v10272_v47 = vpop.f32.mrf.mxu0  ;;  %7235 = vmatmul.mubr.bf16.vlgmr.msra.gmra.mxu0 %v9563_v33  ;;  %v539_v52 = vld [vmem:[%s9465_s11 + $0x8a8] sm:$0xff]  ;;  %v8175_v37 = vcombine.high %v283_v30, %v291_v31  ;;  %v8174_v46 = vcombine.low %v283_v30, %v291_v31 }
 0x2c1   : > { %7285 = vmatpush1.bf16.msra.mxu0 %v8270_v38  ;;  %7316 = vmatprep.mubr.bf16.mxu0 %v9540_v10  ;;  %v8431_v38 = vcombine.high %v539_v52, %v547_v29  ;;  %v8430_v48 = vcombine.low %v539_v52, %v547_v29  ;;  %v731_v16 = vld [vmem:[%s9465_s11 + $0xea8] sm:$0xff] }
 0x2c2   : > { %v10277_v57 = vpop.f32.mrf.mxu1  ;;  %7276 = vmatmul.mubr.bf16.vlgmr.msra.gmra.mxu1 %v9680_v51  ;;  %v10280_v50 = vpop.f32.mrf.mxu0  ;;  %7286 = vmatprep.subr.bf16.mxu0 %v8255_v40  ;;  %v275_v40 = vld [vmem:[%s9465_s11 + $0x68] sm:$0xff] }
 0x2c3   : > { %7326 = vmatpush1.bf16.msra.mxu1 %v8526_v54  ;;  %7357 = vmatprep.mubr.bf16.mxu1 %v9547_v14  ;;  %v267_v54 = vld [vmem:[%s9465_s11 + $0x28] sm:$0xff] }
 0x2c4   : > { %v10282_v58 = vpop.f32.mrf.mxu1  ;;  %7327 = vmatprep.subr.bf16.mxu1 %v8511_v43  ;;  %v6994_v61 = vpop.f32.mrf.mxu0  ;;  %v523_v43 = vld [vmem:[%s9465_s11 + $0x828] sm:$0xff]  ;;  %v8159_v53 = vcombine.high %v267_v54, %v275_v40  ;;  %v8158_v62 = vcombine.low %v267_v54, %v275_v40 }
 0x2c5   : > { %7287 = vmatpush1.bf16.msra.mxu0 %v8254_v49  ;;  %v8415_v49 = vcombine.high %v523_v43, %v531_v44  ;;  %v8414_v61 = vcombine.low %v523_v43, %v531_v44  ;;  %v459_v22 = vld [vmem:[%s9465_s11 + $0x628] sm:$0xff] }
 0x2c6   : > { %v7035_v3 = vpop.f32.mrf.mxu1  ;;  %v6995_v5 = vpop.f32.mrf.mxu0  ;;  %7288 = vmatprep.subr.bf16.mxu0 %v8239_v56  ;;  %v515_v56 = vld [vmem:[%s9465_s11 + $0x7e8] sm:$0xff] }
 0x2c7   : > { %7328 = vmatpush1.bf16.msra.mxu1 %v8510_v55  ;;  %v507_v55 = vld [vmem:[%s9465_s11 + $0x7a8] sm:$0xff] }
 0x2c8   : > { %v7036_v8 = vpop.f32.mrf.mxu1  ;;  %7329 = vmatprep.subr.bf16.mxu1 %v8495_v60  ;;  %v763_v60 = vld [vmem:[%s9465_s11 + $0xfa8] sm:$0xff]  ;;  %v8399_v63 = vcombine.high %v507_v55, %v515_v56 }
 0x2c9   : > { %7289 = vmatpush1.bf16.msra.mxu0 %v8238_v4  ;;  %v8655_v2 = vcombine.high %v763_v60, %v771_v59  ;;  %v491_v3 = vld [vmem:[%s9465_s11 + $0x728] sm:$0xff]  ;;  %v8654_v8 = vcombine.low %v763_v60, %v771_v59 }
 0x2ca   : > { %7290 = vmatprep.subr.bf16.mxu0 %v8223_v7  ;;  %v499_v4 = vld [vmem:[%s9465_s11 + $0x768] sm:$0xff]  ;;  %v8398_v7 = vcombine.low %v507_v55, %v515_v56 }
 0x2cb   : > { %7330 = vmatpush1.bf16.msra.mxu1 %v8494_v6  ;;  %v747_v5 = vld [vmem:[%s9465_s11 + $0xf28] sm:$0xff] }
 0x2cc   : > { %7331 = vmatprep.subr.bf16.mxu1 %v8479_v9  ;;  %v755_v6 = vld [vmem:[%s9465_s11 + $0xf68] sm:$0xff]  ;;  %v8383_v9 = vcombine.high %v491_v3, %v499_v4 }
 0x2cd   : > { %7291 = vmatpush1.bf16.msra.mxu0 %v8222_v36  ;;  %v8639_v11 = vcombine.high %v747_v5, %v755_v6  ;;  %v739_v36 = vld [vmem:[%s9465_s11 + $0xee8] sm:$0xff] }
 0x2ce   : > { %7292 = vmatprep.subr.bf16.mxu0 %v8207_v18  ;;  %v8638_v18 = vcombine.low %v747_v5, %v755_v6  ;;  %v8623_v21 = vcombine.high %v731_v16, %v739_v36  ;;  %v467_v23 = vld [vmem:[%s9465_s11 + $0x668] sm:$0xff] }
 0x2cf   : > { %7332 = vmatpush1.bf16.msra.mxu1 %v8478_v17  ;;  %v8382_v17 = vcombine.low %v491_v3, %v499_v4  ;;  %v715_v39 = vld [vmem:[%s9465_s11 + $0xe28] sm:$0xff] }
 0x2d0   : > { %7333 = vmatprep.subr.bf16.mxu1 %v8463_v19  ;;  %v8367_v19 = vcombine.high %v475_v12, %v483_v15  ;;  %v443_v31 = vld [vmem:[%s9465_s11 + $0x5a8] sm:$0xff] }
 0x2d1   : > { %7293 = vmatpush1.bf16.msra.mxu0 %v8206_v25  ;;  %v723_v25 = vld [vmem:[%s9465_s11 + $0xe68] sm:$0xff] }
 0x2d2   : > { %7294 = vmatprep.subr.bf16.mxu0 %v8191_v27  ;;  %v8622_v27 = vcombine.low %v731_v16, %v739_v36  ;;  %v8607_v30 = vcombine.high %v715_v39, %v723_v25  ;;  %v451_v52 = vld [vmem:[%s9465_s11 + $0x5e8] sm:$0xff] }
 0x2d3   : > { %7334 = vmatpush1.bf16.msra.mxu1 %v8462_v26  ;;  %v8366_v26 = vcombine.low %v475_v12, %v483_v15  ;;  %v699_v29 = vld [vmem:[%s9465_s11 + $0xda8] sm:$0xff] }
 0x2d4   : > { %7335 = vmatprep.subr.bf16.mxu1 %v8447_v20  ;;  %v8351_v20 = vcombine.high %v459_v22, %v467_v23  ;;  %v427_v40 = vld [vmem:[%s9465_s11 + $0x528] sm:$0xff] }
 0x2d5   : > { %7295 = vmatpush1.bf16.msra.mxu0 %v8190_v34  ;;  %v707_v34 = vld [vmem:[%s9465_s11 + $0xde8] sm:$0xff] }
 0x2d6   : > { %7296 = vmatprep.subr.bf16.mxu0 %v8175_v37  ;;  %v8606_v37 = vcombine.low %v715_v39, %v723_v25  ;;  %v8591_v54 = vcombine.high %v699_v29, %v707_v34  ;;  %v435_v43 = vld [vmem:[%s9465_s11 + $0x568] sm:$0xff] }
 0x2d7   : > { %7336 = vmatpush1.bf16.msra.mxu1 %v8446_v35  ;;  %v8350_v35 = vcombine.low %v459_v22, %v467_v23  ;;  %v683_v44 = vld [vmem:[%s9465_s11 + $0xd28] sm:$0xff] }
 0x2d8   : > { %7337 = vmatprep.subr.bf16.mxu1 %v8431_v38  ;;  %v8335_v38 = vcombine.high %v443_v31, %v451_v52  ;;  %v411_v56 = vld [vmem:[%s9465_s11 + $0x4a8] sm:$0xff] }
 0x2d9   : > { %7297 = vmatpush1.bf16.msra.mxu0 %v8174_v46  ;;  %v691_v46 = vld [vmem:[%s9465_s11 + $0xd68] sm:$0xff] }
 0x2da   : > { %7298 = vmatprep.subr.bf16.mxu0 %v8159_v53  ;;  %v8590_v53 = vcombine.low %v699_v29, %v707_v34  ;;  %v8575_v55 = vcombine.high %v683_v44, %v691_v46  ;;  %v419_v60 = vld [vmem:[%s9465_s11 + $0x4e8] sm:$0xff] }
 0x2db   : > { %7338 = vmatpush1.bf16.msra.mxu1 %v8430_v48  ;;  %v8334_v48 = vcombine.low %v443_v31, %v451_v52  ;;  %v667_v59 = vld [vmem:[%s9465_s11 + $0xca8] sm:$0xff]  ;;  %v7032_v31 = vadd.f32 %v10277_v57, %v10272_v47 }
 0x2dc   : > { %7339 = vmatprep.subr.bf16.mxu1 %v8415_v49  ;;  %v8319_v49 = vcombine.high %v427_v40, %v435_v43  ;;  %v395_v4 = vld [vmem:[%s9465_s11 + $0x428] sm:$0xff] }
 0x2dd   : > { %7299 = vmatpush1.bf16.msra.mxu0 %v8158_v62  ;;  %v675_v62 = vld [vmem:[%s9465_s11 + $0xce8] sm:$0xff] }
 0x2de   : > { %7300 = vmatprep.subr.bf16.mxu0 %v8399_v63  ;;  %v8574_v63 = vcombine.low %v683_v44, %v691_v46  ;;  %v8559_v3 = vcombine.high %v667_v59, %v675_v62  ;;  %v403_v5 = vld [vmem:[%s9465_s11 + $0x468] sm:$0xff] }
 0x2df   : > { %7340 = vmatpush1.bf16.msra.mxu1 %v8414_v61  ;;  %v8318_v61 = vcombine.low %v427_v40, %v435_v43  ;;  %v651_v6 = vld [vmem:[%s9465_s11 + $0xc28] sm:$0xff] }
 0x2e0   : > { %7341 = vmatprep.subr.bf16.mxu1 %v8655_v2  ;;  %v8303_v2 = vcombine.high %v411_v56, %v419_v60  ;;  %v891_v15 = vld [vmem:[%s9465_s11 + $0x13a8] sm:$0xff] }
 0x2e1   : > { %7301 = vmatpush2.bf16.msra.mxu0 %v8398_v7  ;;  %v659_v7 = vld [vmem:[%s9465_s11 + $0xc68] sm:$0xff] }
 0x2e2   : > { %7302 = vmatprep.subr.bf16.mxu0 %v8383_v9  ;;  %v8558_v9 = vcombine.low %v667_v59, %v675_v62  ;;  %v8543_v12 = vcombine.high %v651_v6, %v659_v7  ;;  %v899_v16 = vld [vmem:[%s9465_s11 + $0x13e8] sm:$0xff] }
 0x2e3   : > { %7342 = vmatpush2.bf16.msra.mxu1 %v8654_v8  ;;  %v8302_v8 = vcombine.low %v411_v56, %v419_v60  ;;  %v1147_v36 = vld [vmem:[%s9465_s11 + $0x1ba8] sm:$0xff] }
 0x2e4   : > { %7343 = vmatprep.subr.bf16.mxu1 %v8639_v11  ;;  %v8287_v11 = vcombine.high %v395_v4, %v403_v5  ;;  %v875_v23 = vld [vmem:[%s9465_s11 + $0x1328] sm:$0xff] }
 0x2e5   : > { %7303 = vmatpush2.bf16.msra.mxu0 %v8382_v17  ;;  %v1155_v17 = vld [vmem:[%s9465_s11 + $0x1be8] sm:$0xff] }
 0x2e6   : > { %7304 = vmatprep.subr.bf16.mxu0 %v8367_v19  ;;  %v8542_v19 = vcombine.low %v651_v6, %v659_v7  ;;  %v9039_v22 = vcombine.high %v1147_v36, %v1155_v17  ;;  %v883_v39 = vld [vmem:[%s9465_s11 + $0x1368] sm:$0xff] }
 0x2e7   : > { %7344 = vmatpush2.bf16.msra.mxu1 %v8638_v18  ;;  %v8286_v18 = vcombine.low %v395_v4, %v403_v5  ;;  %v1131_v25 = vld [vmem:[%s9465_s11 + $0x1b28] sm:$0xff]  ;;  %v8766_v47 = vcombine.low %v875_v23, %v883_v39 }
 0x2e8   : > { %7345 = vmatprep.subr.bf16.mxu1 %v8623_v21  ;;  %v8783_v21 = vcombine.high %v891_v15, %v899_v16  ;;  %v859_v29 = vld [vmem:[%s9465_s11 + $0x12a8] sm:$0xff] }
 0x2e9   : > { %7305 = vmatpush2.bf16.msra.mxu0 %v8366_v26  ;;  %v1139_v26 = vld [vmem:[%s9465_s11 + $0x1b68] sm:$0xff] }
 0x2ea   : > { %7306 = vmatprep.subr.bf16.mxu0 %v8351_v20  ;;  %v9038_v20 = vcombine.low %v1147_v36, %v1155_v17  ;;  %v9023_v52 = vcombine.high %v1131_v25, %v1139_v26  ;;  %v867_v34 = vld [vmem:[%s9465_s11 + $0x12e8] sm:$0xff]  ;;  %v9022_v44 = vcombine.low %v1131_v25, %v1139_v26  ;;  %v258_v17 = vld [vmem:[#allocation2] sm:$0xff] }
 0x2eb   : > { %7346 = vmatpush2.bf16.msra.mxu1 %v8622_v27  ;;  %v8782_v27 = vcombine.low %v891_v15, %v899_v16  ;;  %v8751_v46 = vcombine.high %v859_v29, %v867_v34  ;;  %v1099_v56 = vld [vmem:[%s9465_s11 + $0x1a28] sm:$0xff]  ;;  %v7817_v15 = vrot.slane %v7809_v28, %v10059_v1 }
 0x2ec   : > { %7347 = vmatprep.subr.bf16.mxu1 %v8607_v30  ;;  %v8767_v30 = vcombine.high %v875_v23, %v883_v39  ;;  %v1107_v60 = vld [vmem:[%s9465_s11 + $0x1a68] sm:$0xff] }
 0x2ed   : > { %7307 = vmatpush2.bf16.msra.mxu0 %v8350_v35  ;;  %v8991_v7 = vcombine.high %v1099_v56, %v1107_v60  ;;  %v811_v23 = vld [vmem:[%s9465_s11 + $0x1128] sm:$0xff] }
 0x2ee   : > { %7308 = vmatprep.subr.bf16.mxu0 %v8335_v38  ;;  %v1123_v38 = vld [vmem:[%s9465_s11 + $0x1ae8] sm:$0xff] }
 0x2ef   : > { %7348 = vmatpush2.bf16.msra.mxu1 %v8606_v37  ;;  %v1115_v37 = vld [vmem:[%s9465_s11 + $0x1aa8] sm:$0xff] }
 0x2f0   : > { %7349 = vmatprep.subr.bf16.mxu1 %v8591_v54  ;;  %v7034_v54 = vadd.f32 %v10282_v58, %v10280_v50  ;;  %v851_v50 = vld [vmem:[%s9465_s11 + $0x1268] sm:$0xff] }
 0x2f1   : > { %7309 = vmatpush2.bf16.msra.mxu0 %v8334_v48  ;;  %v819_v39 = vld [vmem:[%s9465_s11 + $0x1168] sm:$0xff] }
 0x2f2   : > { %7310 = vmatprep.subr.bf16.mxu0 %v8319_v49  ;;  %v9007_v49 = vcombine.high %v1115_v37, %v1123_v38 }
 0x2f3   : > { %7350 = vmatpush2.bf16.msra.mxu1 %v8590_v53 }
 0x2f4   : > { %7351 = vmatprep.subr.bf16.mxu1 %v8575_v55  ;;  %v843_v55 = vld [vmem:[%s9465_s11 + $0x1228] sm:$0xff] }
 0x2f5   : > { %7311 = vmatpush2.bf16.msra.mxu0 %v8318_v61  ;;  %v8735_v4 = vcombine.high %v843_v55, %v851_v50  ;;  %v8734_v36 = vcombine.low %v843_v55, %v851_v50  ;;  %v1275_v55 = vld [vmem:[%s9465_s11 + $0x1fa8] sm:$0xff] }
 0x2f6   : > { %7312 = vmatprep.subr.bf16.mxu0 %v8303_v2  ;;  %v1283_v50 = vld [vmem:[%s9465_s11 + $0x1fe8] sm:$0xff] }
 0x2f7   : > { %7352 = vmatpush2.bf16.msra.mxu1 %v8574_v63  ;;  %v8750_v63 = vcombine.low %v859_v29, %v867_v34  ;;  %v1059_v29 = vld [vmem:[%s9465_s11 + $0x18e8] sm:$0xff]  ;;  %v8702_v34 = vcombine.low %v811_v23, %v819_v39 }
 0x2f8   : > { %7353 = vmatprep.subr.bf16.mxu1 %v8559_v3  ;;  %v9006_v3 = vcombine.low %v1115_v37, %v1123_v38 }
 0x2f9   : > { %7313 = vmatpush2.bf16.msra.mxu0 %v8302_v8  ;;  %v827_v8 = vld [vmem:[%s9465_s11 + $0x11a8] sm:$0xff] }
 0x2fa   : > { %7314 = vmatprep.subr.bf16.mxu0 %v8287_v11  ;;  %v1083_v11 = vld [vmem:[%s9465_s11 + $0x19a8] sm:$0xff] }
 0x2fb   : > { %7354 = vmatpush2.bf16.msra.mxu1 %v8558_v9  ;;  %v835_v9 = vld [vmem:[%s9465_s11 + $0x11e8] sm:$0xff] }
 0x2fc   : > { %7355 = vmatprep.subr.bf16.mxu1 %v8543_v12  ;;  %v1091_v12 = vld [vmem:[%s9465_s11 + $0x19e8] sm:$0xff]  ;;  %v8718_v25 = vcombine.low %v827_v8, %v835_v9 }
 0x2fd   : > { %7315 = vmatpush2.bf16.msra.mxu0 %v8286_v18  ;;  %v8990_v18 = vcombine.low %v1099_v56, %v1107_v60  ;;  %v8974_v26 = vcombine.low %v1083_v11, %v1091_v12 }
 0x2fe   : > { %7366 = vmatprep.subr.bf16.mxu0 %v8783_v21 }
 0x2ff   : > { %7356 = vmatpush2.bf16.msra.mxu1 %v8542_v19  ;;  %v8719_v19 = vcombine.high %v827_v8, %v835_v9  ;;  %v995_v8 = vld [vmem:[%s9465_s11 + $0x16e8] sm:$0xff] }
 0x300   : > { %7407 = vmatprep.subr.bf16.mxu1 %v9039_v22  ;;  %v7072_v35 = vpop.f32.mrf.mxu0  ;;  %7317 = vmatmul.mubr.bf16.vlgmr.msra.gmra.mxu0 %v9593_v24  ;;  %v8975_v22 = vcombine.high %v1083_v11, %v1091_v12  ;;  %v1243_v9 = vld [vmem:[%s9465_s11 + $0x1ea8] sm:$0xff] }
 0x301   : > { %v7073_v40 = vadd.f32 %v7072_v35, %v7032_v31  ;;  %7367 = vmatpush1.bf16.msra.mxu0 %v8782_v27  ;;  %7398 = vmatprep.mubr.bf16.mxu0 %v9600_v32  ;;  %v8703_v27 = vcombine.high %v811_v23, %v819_v39  ;;  %v803_v31 = vld [vmem:[%s9465_s11 + $0x10e8] sm:$0xff]  ;;  %v8958_v35 = vcombine.low %v1067_v13, %v1075_v42 }
 0x302   : > { %v7113_v43 = vpop.f32.mrf.mxu1  ;;  %7358 = vmatmul.mubr.bf16.vlgmr.msra.gmra.mxu1 %v9604_v0  ;;  %v7074_v57 = vpop.f32.mrf.mxu0  ;;  %7368 = vmatprep.subr.bf16.mxu0 %v8767_v30  ;;  %v795_v30 = vld [vmem:[%s9465_s11 + $0x10a8] sm:$0xff] }
 0x303   : > { %7408 = vmatpush1.bf16.msra.mxu1 %v9038_v20  ;;  %v7075_v48 = vadd.f32 %v7074_v57, %v7034_v54  ;;  %7439 = vmatprep.mubr.bf16.mxu1 %v9613_v41  ;;  %v7114_v59 = vadd.f32 %v7113_v43, %v7073_v40  ;;  %v8959_v20 = vcombine.high %v1067_v13, %v1075_v42  ;;  %v779_v54 = vld [vmem:[%s9465_s11 + $0x1028] sm:$0xff] }
 0x304   : > { %v7115_v53 = vpop.f32.mrf.mxu1  ;;  %7409 = vmatprep.subr.bf16.mxu1 %v9023_v52  ;;  %v7076_v58 = vpop.f32.mrf.mxu0  ;;  %v1051_v52 = vld [vmem:[%s9465_s11 + $0x18a8] sm:$0xff]  ;;  %v8687_v37 = vcombine.high %v795_v30, %v803_v31  ;;  %v8686_v57 = vcombine.low %v795_v30, %v803_v31 }
 0x305   : > { %v7116_v62 = vadd.f32 %v7115_v53, %v7075_v48  ;;  %7369 = vmatpush1.bf16.msra.mxu0 %v8766_v47  ;;  %v8943_v38 = vcombine.high %v1051_v52, %v1059_v29  ;;  %v787_v40 = vld [vmem:[%s9465_s11 + $0x1068] sm:$0xff] }
 0x306   : > { %v7117_v61 = vpop.f32.mrf.mxu1  ;;  %v7077_v2 = vpop.f32.mrf.mxu0  ;;  %7370 = vmatprep.subr.bf16.mxu0 %v8751_v46  ;;  %v1035_v43 = vld [vmem:[%s9465_s11 + $0x1828] sm:$0xff]  ;;  %v8671_v46 = vcombine.high %v779_v54, %v787_v40  ;;  %v8670_v58 = vcombine.low %v779_v54, %v787_v40 }
 0x307   : > { %7410 = vmatpush1.bf16.msra.mxu1 %v9022_v44  ;;  %v7810_v5 = vcombine.low %v7114_v59, %v7116_v62  ;;  %v1043_v47 = vld [vmem:[%s9465_s11 + $0x1868] sm:$0xff]  ;;  %v8942_v44 = vcombine.low %v1051_v52, %v1059_v29  ;;  %v9167_v59 = vcombine.high %v1275_v55, %v1283_v50 }
 0x308   : > { %v7118_v6 = vpop.f32.mrf.mxu1  ;;  %7411 = vmatprep.subr.bf16.mxu1 %v9007_v49  ;;  %v8927_v48 = vcombine.high %v1035_v43, %v1043_v47  ;;  %v1019_v53 = vld [vmem:[%s9465_s11 + $0x17a8] sm:$0xff]  ;;  %v8926_v56 = vcombine.low %v1035_v43, %v1043_v47 }
 0x309   : > { %v7824_v16 = vrot.slane %v7810_v5, %v10059_v1  ;;  %7371 = vmatpush1.bf16.msra.mxu0 %v8750_v63  ;;  %v1027_v49 = vld [vmem:[%s9465_s11 + $0x17e8] sm:$0xff] }
 0x30a   : > { %7372 = vmatprep.subr.bf16.mxu0 %v8735_v4  ;;  %v8911_v60 = vcombine.high %v1019_v53, %v1027_v49  ;;  %v1003_v62 = vld [vmem:[%s9465_s11 + $0x1728] sm:$0xff]  ;;  %v9166_v4 = vcombine.low %v1275_v55, %v1283_v50 }
 0x30b   : > { %7412 = vmatpush1.bf16.msra.mxu1 %v9006_v3  ;;  %v7825_v21 = vcombine.low %v7817_v15, %v7824_v16  ;;  %v1011_v61 = vld [vmem:[%s9465_s11 + $0x1768] sm:$0xff]  ;;  %v8910_v3 = vcombine.low %v1019_v53, %v1027_v49 }
 0x30c   : > { %7413 = vmatprep.subr.bf16.mxu1 %v8991_v7  ;;  %v1259_v63 = vld [vmem:[%s9465_s11 + $0x1f28] sm:$0xff]  ;;  %v8895_v5 = vcombine.high %v1003_v62, %v1011_v61  ;;  %v8894_v12 = vcombine.low %v1003_v62, %v1011_v61 }
 0x30d   : > { %v7865_v28 = vadd.f32 %v7825_v21, %v258_v17  ;;  %7373 = vmatpush1.bf16.msra.mxu0 %v8734_v36  ;;  %v1267_v2 = vld [vmem:[%s9465_s11 + $0x1f68] sm:$0xff] }
 0x30e   : > { %7374 = vmatprep.subr.bf16.mxu0 %v8719_v19  ;;  %v9151_v6 = vcombine.high %v1259_v63, %v1267_v2  ;;  %v987_v7 = vld [vmem:[%s9465_s11 + $0x16a8] sm:$0xff]  ;;  %v9150_v15 = vcombine.low %v1259_v63, %v1267_v2  ;;  %v380_v63 = vld [vmem:[%s9465_s11 + $0x3b0] sm:$0xff] }
 0x30f   : > { %7414 = vmatpush1.bf16.msra.mxu1 %v8990_v18  ;;  %7869 = vst [vmem:[#allocation2] sm:$0xff] %v7865_v28  ;;  %v1251_v11 = vld [vmem:[%s9465_s11 + $0x1ee8] sm:$0xff]  ;;  %v8879_v16 = vcombine.high %v987_v7, %v995_v8  ;;  %v388_v2 = vld [vmem:[%s9465_s11 + $0x3f0] sm:$0xff] }
 0x310   : > { %7415 = vmatprep.subr.bf16.mxu1 %v8975_v22  ;;  %v9135_v36 = vcombine.high %v1243_v9, %v1251_v11  ;;  %v971_v17 = vld [vmem:[%s9465_s11 + $0x1628] sm:$0xff]  ;;  %v8878_v22 = vcombine.low %v987_v7, %v995_v8  ;;  %v9134_v23 = vcombine.low %v1243_v9, %v1251_v11  ;;  %v8273_v7 = vcombine.high %v380_v63, %v388_v2  ;;  %v364_v9 = vld [vmem:[%s9465_s11 + $0x330] sm:$0xff] }
 0x311   : > { %7375 = vmatpush1.bf16.msra.mxu0 %v8718_v25  ;;  %v979_v18 = vld [vmem:[%s9465_s11 + $0x1668] sm:$0xff]  ;;  %v372_v11 = vld [vmem:[%s9465_s11 + $0x370] sm:$0xff] }
 0x312   : > { %7376 = vmatprep.subr.bf16.mxu0 %v8703_v27  ;;  %v1227_v19 = vld [vmem:[%s9465_s11 + $0x1e28] sm:$0xff]  ;;  %v8863_v39 = vcombine.high %v971_v17, %v979_v18  ;;  %v8862_v27 = vcombine.low %v971_v17, %v979_v18  ;;  %v8257_v17 = vcombine.high %v364_v9, %v372_v11 }
 0x313   : > { %7416 = vmatpush1.bf16.msra.mxu1 %v8974_v26  ;;  %v1235_v21 = vld [vmem:[%s9465_s11 + $0x1e68] sm:$0xff] }
 0x314   : > { %7417 = vmatprep.subr.bf16.mxu1 %v8959_v20  ;;  %v9119_v13 = vcombine.high %v1227_v19, %v1235_v21  ;;  %v955_v42 = vld [vmem:[%s9465_s11 + $0x15a8] sm:$0xff]  ;;  %v9118_v20 = vcombine.low %v1227_v19, %v1235_v21  ;;  %v348_v19 = vld [vmem:[%s9465_s11 + $0x2b0] sm:$0xff] }
 0x315   : > { %7377 = vmatpush1.bf16.msra.mxu0 %v8702_v34  ;;  %v963_v28 = vld [vmem:[%s9465_s11 + $0x15e8] sm:$0xff]  ;;  %v356_v21 = vld [vmem:[%s9465_s11 + $0x2f0] sm:$0xff] }
 0x316   : > { %7378 = vmatprep.subr.bf16.mxu0 %v8687_v37  ;;  %v1211_v25 = vld [vmem:[%s9465_s11 + $0x1da8] sm:$0xff]  ;;  %v8847_v30 = vcombine.high %v955_v42, %v963_v28  ;;  %v8846_v37 = vcombine.low %v955_v42, %v963_v28  ;;  %v8256_v42 = vcombine.low %v364_v9, %v372_v11 }
 0x317   : > { %7418 = vmatpush1.bf16.msra.mxu1 %v8958_v35  ;;  %v1219_v26 = vld [vmem:[%s9465_s11 + $0x1de8] sm:$0xff] }
 0x318   : > { %7419 = vmatprep.subr.bf16.mxu1 %v8943_v38  ;;  %v9103_v31 = vcombine.high %v1211_v25, %v1219_v26  ;;  %v939_v52 = vld [vmem:[%s9465_s11 + $0x1528] sm:$0xff]  ;;  %v9102_v38 = vcombine.low %v1211_v25, %v1219_v26 }
 0x319   : > { %7379 = vmatpush1.bf16.msra.mxu0 %v8686_v57  ;;  %v947_v29 = vld [vmem:[%s9465_s11 + $0x1568] sm:$0xff] }
 0x31a   : > { %7380 = vmatprep.subr.bf16.mxu0 %v8671_v46  ;;  %v1195_v34 = vld [vmem:[%s9465_s11 + $0x1d28] sm:$0xff]  ;;  %v8831_v54 = vcombine.high %v939_v52, %v947_v29  ;;  %v8830_v46 = vcombine.low %v939_v52, %v947_v29  ;;  %v340_v52 = vld [vmem:[%s9465_s11 + $0x270] sm:$0xff] }
 0x31b   : > { %7420 = vmatpush1.bf16.msra.mxu1 %v8942_v44  ;;  %v1203_v35 = vld [vmem:[%s9465_s11 + $0x1d68] sm:$0xff] }
 0x31c   : > { %7421 = vmatprep.subr.bf16.mxu1 %v8927_v48  ;;  %v9087_v40 = vcombine.high %v1195_v34, %v1203_v35  ;;  %v923_v43 = vld [vmem:[%s9465_s11 + $0x14a8] sm:$0xff]  ;;  %v9086_v48 = vcombine.low %v1195_v34, %v1203_v35  ;;  %v588_v35 = vld [vmem:[%s9465_s11 + $0xa30] sm:$0xff] }
 0x31d   : > { %7381 = vmatpush1.bf16.msra.mxu0 %v8670_v58  ;;  %v931_v47 = vld [vmem:[%s9465_s11 + $0x14e8] sm:$0xff] }
 0x31e   : > { %7382 = vmatprep.subr.bf16.mxu0 %v8911_v60  ;;  %v1179_v57 = vld [vmem:[%s9465_s11 + $0x1ca8] sm:$0xff]  ;;  %v8815_v53 = vcombine.high %v923_v43, %v931_v47  ;;  %v8814_v60 = vcombine.low %v923_v43, %v931_v47 }
 0x31f   : > { %7422 = vmatpush1.bf16.msra.mxu1 %v8926_v56  ;;  %v1187_v44 = vld [vmem:[%s9465_s11 + $0x1ce8] sm:$0xff] }
 0x320   : > { %7423 = vmatprep.subr.bf16.mxu1 %v9167_v59  ;;  %v9071_v49 = vcombine.high %v1179_v57, %v1187_v44  ;;  %v907_v55 = vld [vmem:[%s9465_s11 + $0x1428] sm:$0xff]  ;;  %v9070_v59 = vcombine.low %v1179_v57, %v1187_v44 }
 0x321   : > { %7383 = vmatpush2.bf16.msra.mxu0 %v8910_v3  ;;  %v915_v50 = vld [vmem:[%s9465_s11 + $0x1468] sm:$0xff]  ;;  %v636_v3 = vld [vmem:[%s9465_s11 + $0xbb0] sm:$0xff] }
 0x322   : > { %7384 = vmatprep.subr.bf16.mxu0 %v8895_v5  ;;  %v1163_v58 = vld [vmem:[%s9465_s11 + $0x1c28] sm:$0xff]  ;;  %v8799_v62 = vcombine.high %v907_v55, %v915_v50  ;;  %v8798_v5 = vcombine.low %v907_v55, %v915_v50 }
 0x323   : > { %7424 = vmatpush2.bf16.msra.mxu1 %v9166_v4  ;;  %v1171_v56 = vld [vmem:[%s9465_s11 + $0x1c68] sm:$0xff]  ;;  %v644_v4 = vld [vmem:[%s9465_s11 + $0xbf0] sm:$0xff] }
 0x324   : > { %7425 = vmatprep.subr.bf16.mxu1 %v9151_v6  ;;  %v9055_v61 = vcombine.high %v1163_v58, %v1171_v56  ;;  %v9054_v6 = vcombine.low %v1163_v58, %v1171_v56  ;;  %v8529_v8 = vcombine.high %v636_v3, %v644_v4 }
 0x325   : > { %7385 = vmatpush2.bf16.msra.mxu0 %v8894_v12  ;;  %v620_v12 = vld [vmem:[%s9465_s11 + $0xb30] sm:$0xff] }
 0x326   : > { %7386 = vmatprep.subr.bf16.mxu0 %v8879_v16  ;;  %v8272_v16 = vcombine.low %v380_v63, %v388_v2 }
 0x327   : > { %7426 = vmatpush2.bf16.msra.mxu1 %v9150_v15  ;;  %v628_v15 = vld [vmem:[%s9465_s11 + $0xb70] sm:$0xff] }
 0x328   : > { %7427 = vmatprep.subr.bf16.mxu1 %v9135_v36  ;;  %v8528_v36 = vcombine.low %v636_v3, %v644_v4  ;;  %v8513_v18 = vcombine.high %v620_v12, %v628_v15  ;;  %v8512_v26 = vcombine.low %v620_v12, %v628_v15 }
 0x329   : > { %7387 = vmatpush2.bf16.msra.mxu0 %v8878_v22 }
 0x32a   : > { %7388 = vmatprep.subr.bf16.mxu0 %v8863_v39  ;;  %v612_v39 = vld [vmem:[%s9465_s11 + $0xaf0] sm:$0xff] }
 0x32b   : > { %7428 = vmatpush2.bf16.msra.mxu1 %v9134_v23  ;;  %v604_v23 = vld [vmem:[%s9465_s11 + $0xab0] sm:$0xff] }
 0x32c   : > { %7429 = vmatprep.subr.bf16.mxu1 %v9119_v13  ;;  %v8496_v43 = vcombine.low %v604_v23, %v612_v39 }
 0x32d   : > { %7389 = vmatpush2.bf16.msra.mxu0 %v8862_v27  ;;  %v8241_v27 = vcombine.high %v348_v19, %v356_v21 }
 0x32e   : > { %7390 = vmatprep.subr.bf16.mxu0 %v8847_v30  ;;  %v8497_v30 = vcombine.high %v604_v23, %v612_v39  ;;  %v508_v39 = vld [vmem:[%s9465_s11 + $0x7b0] sm:$0xff] }
 0x32f   : > { %7430 = vmatpush2.bf16.msra.mxu1 %v9118_v20 }
 0x330   : > { %7431 = vmatprep.subr.bf16.mxu1 %v9103_v31  ;;  %v332_v31 = vld [vmem:[%s9465_s11 + $0x230] sm:$0xff] }
 0x331   : > { %7391 = vmatpush2.bf16.msra.mxu0 %v8846_v37  ;;  %v596_v37 = vld [vmem:[%s9465_s11 + $0xa70] sm:$0xff]  ;;  %v8225_v47 = vcombine.high %v332_v31, %v340_v52  ;;  %v8224_v55 = vcombine.low %v332_v31, %v340_v52 }
 0x332   : > { %7392 = vmatprep.subr.bf16.mxu0 %v8831_v54  ;;  %v8240_v54 = vcombine.low %v348_v19, %v356_v21  ;;  %v8481_v44 = vcombine.high %v588_v35, %v596_v37  ;;  %v8480_v50 = vcombine.low %v588_v35, %v596_v37  ;;  %v492_v31 = vld [vmem:[%s9465_s11 + $0x730] sm:$0xff] }
 0x333   : > { %7432 = vmatpush2.bf16.msra.mxu1 %v9102_v38  ;;  %v500_v52 = vld [vmem:[%s9465_s11 + $0x770] sm:$0xff] }
 0x334   : > { %7433 = vmatprep.subr.bf16.mxu1 %v9087_v40  ;;  %v756_v35 = vld [vmem:[%s9465_s11 + $0xf70] sm:$0xff] }
 0x335   : > { %7393 = vmatpush2.bf16.msra.mxu0 %v8830_v46  ;;  %v316_v46 = vld [vmem:[%s9465_s11 + $0x1b0] sm:$0xff] }
 0x336   : > { %7394 = vmatprep.subr.bf16.mxu0 %v8815_v53  ;;  %v572_v53 = vld [vmem:[%s9465_s11 + $0x9b0] sm:$0xff] }
 0x337   : > { %7434 = vmatpush2.bf16.msra.mxu1 %v9086_v48  ;;  %v324_v48 = vld [vmem:[%s9465_s11 + $0x1f0] sm:$0xff] }
 0x338   : > { %7435 = vmatprep.subr.bf16.mxu1 %v9071_v49  ;;  %v580_v49 = vld [vmem:[%s9465_s11 + $0x9f0] sm:$0xff]  ;;  %v8209_v58 = vcombine.high %v316_v46, %v324_v48  ;;  %v8208_v63 = vcombine.low %v316_v46, %v324_v48  ;;  %v8384_v46 = vcombine.low %v492_v31, %v500_v52 }
 0x339   : > { %7395 = vmatpush2.bf16.msra.mxu0 %v8814_v60  ;;  %v8465_v56 = vcombine.high %v572_v53, %v580_v49  ;;  %v300_v60 = vld [vmem:[%s9465_s11 + $0x130] sm:$0xff]  ;;  %v8464_v2 = vcombine.low %v572_v53, %v580_v49 }
 0x33a   : > { %7396 = vmatprep.subr.bf16.mxu0 %v8799_v62  ;;  %v556_v62 = vld [vmem:[%s9465_s11 + $0x930] sm:$0xff] }
 0x33b   : > { %7436 = vmatpush2.bf16.msra.mxu1 %v9070_v59  ;;  %v308_v59 = vld [vmem:[%s9465_s11 + $0x170] sm:$0xff] }
 0x33c   : > { %7437 = vmatprep.subr.bf16.mxu1 %v9055_v61  ;;  %v564_v61 = vld [vmem:[%s9465_s11 + $0x970] sm:$0xff]  ;;  %v8193_v3 = vcombine.high %v300_v60, %v308_v59  ;;  %v8192_v9 = vcombine.low %v300_v60, %v308_v59 }
 0x33d   : > { %7397 = vmatpush2.bf16.msra.mxu0 %v8798_v5  ;;  %v8449_v4 = vcombine.high %v556_v62, %v564_v61  ;;  %v284_v5 = vld [vmem:[%s9465_s11 + $0xb0] sm:$0xff]  ;;  %v8448_v11 = vcombine.low %v556_v62, %v564_v61 }
 0x33e   : > { %7448 = vmatprep.subr.bf16.mxu0 %v8273_v7  ;;  %v540_v7 = vld [vmem:[%s9465_s11 + $0x8b0] sm:$0xff] }
 0x33f   : > { %7438 = vmatpush2.bf16.msra.mxu1 %v9054_v6  ;;  %v292_v6 = vld [vmem:[%s9465_s11 + $0xf0] sm:$0xff] }
 0x340   : > { %7489 = vmatprep.subr.bf16.mxu1 %v8529_v8  ;;  %v7154_v22 = vpop.f32.mrf.mxu0  ;;  %7399 = vmatmul.mubr.bf16.vlgmr.msra.gmra.mxu0 %v9563_v33  ;;  %v548_v8 = vld [vmem:[%s9465_s11 + $0x8f0] sm:$0xff]  ;;  %v8177_v12 = vcombine.high %v284_v5, %v292_v6  ;;  %v8176_v19 = vcombine.low %v284_v5, %v292_v6 }
 0x341   : > { %7449 = vmatpush1.bf16.msra.mxu0 %v8272_v16  ;;  %7480 = vmatprep.mubr.bf16.mxu0 %v9540_v10  ;;  %v8433_v15 = vcombine.high %v540_v7, %v548_v8  ;;  %v268_v16 = vld [vmem:[%s9465_s11 + $0x30] sm:$0xff]  ;;  %v8432_v21 = vcombine.low %v540_v7, %v548_v8 }
 0x342   : > { %v7195_v13 = vpop.f32.mrf.mxu1  ;;  %7440 = vmatmul.mubr.bf16.vlgmr.msra.gmra.mxu1 %v9680_v51  ;;  %v7156_v25 = vpop.f32.mrf.mxu0  ;;  %7450 = vmatprep.subr.bf16.mxu0 %v8257_v17  ;;  %v524_v17 = vld [vmem:[%s9465_s11 + $0x830] sm:$0xff] }
 0x343   : > { %v10429_v28 = vadd.f32 %v7195_v13, %v7154_v22  ;;  %7490 = vmatpush1.bf16.msra.mxu1 %v8528_v36  ;;  %7521 = vmatprep.mubr.bf16.mxu1 %v9547_v14  ;;  %v276_v36 = vld [vmem:[%s9465_s11 + $0x70] sm:$0xff] }
 0x344   : > { %v7197_v20 = vpop.f32.mrf.mxu1  ;;  %7491 = vmatprep.subr.bf16.mxu1 %v8513_v18  ;;  %v7158_v34 = vpop.f32.mrf.mxu0  ;;  %v532_v18 = vld [vmem:[%s9465_s11 + $0x870] sm:$0xff]  ;;  %v8161_v22 = vcombine.high %v268_v16, %v276_v36 }
 0x345   : > { %v10434_v29 = vadd.f32 %v7197_v20, %v7156_v25  ;;  %7451 = vmatpush1.bf16.msra.mxu0 %v8256_v42  ;;  %v8417_v23 = vcombine.high %v524_v17, %v532_v18  ;;  %v516_v13 = vld [vmem:[%s9465_s11 + $0x7f0] sm:$0xff] }
 0x346   : > { %v7199_v38 = vpop.f32.mrf.mxu1  ;;  %v7159_v40 = vpop.f32.mrf.mxu0  ;;  %7452 = vmatprep.subr.bf16.mxu0 %v8241_v27  ;;  %v764_v42 = vld [vmem:[%s9465_s11 + $0xfb0] sm:$0xff]  ;;  %v8416_v27 = vcombine.low %v524_v17, %v532_v18  ;;  %v8401_v20 = vcombine.high %v508_v39, %v516_v13  ;;  %v8400_v37 = vcombine.low %v508_v39, %v516_v13 }
 0x347   : > { %7492 = vmatpush1.bf16.msra.mxu1 %v8512_v26  ;;  %v772_v25 = vld [vmem:[%s9465_s11 + $0xff0] sm:$0xff]  ;;  %v8160_v26 = vcombine.low %v268_v16, %v276_v36 }
 0x348   : > { %v7200_v57 = vpop.f32.mrf.mxu1  ;;  %7493 = vmatprep.subr.bf16.mxu1 %v8497_v30  ;;  %v8657_v30 = vcombine.high %v764_v42, %v772_v25  ;;  %v748_v34 = vld [vmem:[%s9465_s11 + $0xf30] sm:$0xff]  ;;  %v8656_v38 = vcombine.low %v764_v42, %v772_v25 }
 0x349   : > { %7453 = vmatpush1.bf16.msra.mxu0 %v8240_v54  ;;  %v8385_v54 = vcombine.high %v492_v31, %v500_v52  ;;  %v8641_v40 = vcombine.high %v748_v34, %v756_v35  ;;  %v732_v57 = vld [vmem:[%s9465_s11 + $0xeb0] sm:$0xff]  ;;  %v8640_v48 = vcombine.low %v748_v34, %v756_v35 }
 0x34a   : > { %7454 = vmatprep.subr.bf16.mxu0 %v8225_v47  ;;  %v484_v47 = vld [vmem:[%s9465_s11 + $0x6f0] sm:$0xff] }
 0x34b   : > { %7494 = vmatpush1.bf16.msra.mxu1 %v8496_v43  ;;  %v476_v43 = vld [vmem:[%s9465_s11 + $0x6b0] sm:$0xff] }
 0x34c   : > { %7495 = vmatprep.subr.bf16.mxu1 %v8481_v44  ;;  %v740_v44 = vld [vmem:[%s9465_s11 + $0xef0] sm:$0xff]  ;;  %v8369_v53 = vcombine.high %v476_v43, %v484_v47  ;;  %v8368_v60 = vcombine.low %v476_v43, %v484_v47 }
 0x34d   : > { %7455 = vmatpush1.bf16.msra.mxu0 %v8224_v55  ;;  %v8625_v49 = vcombine.high %v732_v57, %v740_v44  ;;  %v460_v55 = vld [vmem:[%s9465_s11 + $0x630] sm:$0xff]  ;;  %v8624_v59 = vcombine.low %v732_v57, %v740_v44 }
 0x34e   : > { %7456 = vmatprep.subr.bf16.mxu0 %v8209_v58  ;;  %v716_v58 = vld [vmem:[%s9465_s11 + $0xe30] sm:$0xff] }
 0x34f   : > { %7496 = vmatpush1.bf16.msra.mxu1 %v8480_v50  ;;  %v468_v50 = vld [vmem:[%s9465_s11 + $0x670] sm:$0xff] }
 0x350   : > { %7497 = vmatprep.subr.bf16.mxu1 %v8465_v56  ;;  %v724_v56 = vld [vmem:[%s9465_s11 + $0xe70] sm:$0xff]  ;;  %v8353_v62 = vcombine.high %v460_v55, %v468_v50  ;;  %v8352_v5 = vcombine.low %v460_v55, %v468_v50 }
 0x351   : > { %7457 = vmatpush1.bf16.msra.mxu0 %v8208_v63  ;;  %v8609_v61 = vcombine.high %v716_v58, %v724_v56  ;;  %v444_v63 = vld [vmem:[%s9465_s11 + $0x5b0] sm:$0xff]  ;;  %v8608_v6 = vcombine.low %v716_v58, %v724_v56 }
 0x352   : > { %7458 = vmatprep.subr.bf16.mxu0 %v8193_v3  ;;  %v700_v3 = vld [vmem:[%s9465_s11 + $0xdb0] sm:$0xff] }
 0x353   : > { %7498 = vmatpush1.bf16.msra.mxu1 %v8464_v2  ;;  %v452_v2 = vld [vmem:[%s9465_s11 + $0x5f0] sm:$0xff] }
 0x354   : > { %7499 = vmatprep.subr.bf16.mxu1 %v8449_v4  ;;  %v708_v4 = vld [vmem:[%s9465_s11 + $0xdf0] sm:$0xff]  ;;  %v8337_v7 = vcombine.high %v444_v63, %v452_v2  ;;  %v8336_v16 = vcombine.low %v444_v63, %v452_v2 }
 0x355   : > { %7459 = vmatpush1.bf16.msra.mxu0 %v8192_v9  ;;  %v8593_v8 = vcombine.high %v700_v3, %v708_v4  ;;  %v428_v9 = vld [vmem:[%s9465_s11 + $0x530] sm:$0xff]  ;;  %v8592_v36 = vcombine.low %v700_v3, %v708_v4 }
 0x356   : > { %7460 = vmatprep.subr.bf16.mxu0 %v8177_v12  ;;  %v684_v12 = vld [vmem:[%s9465_s11 + $0xd30] sm:$0xff] }
 0x357   : > { %7500 = vmatpush1.bf16.msra.mxu1 %v8448_v11  ;;  %v436_v11 = vld [vmem:[%s9465_s11 + $0x570] sm:$0xff] }
 0x358   : > { %7501 = vmatprep.subr.bf16.mxu1 %v8433_v15  ;;  %v692_v15 = vld [vmem:[%s9465_s11 + $0xd70] sm:$0xff]  ;;  %v8321_v17 = vcombine.high %v428_v9, %v436_v11  ;;  %v8320_v39 = vcombine.low %v428_v9, %v436_v11 }
 0x359   : > { %7461 = vmatpush1.bf16.msra.mxu0 %v8176_v19  ;;  %v8577_v18 = vcombine.high %v684_v12, %v692_v15  ;;  %v412_v19 = vld [vmem:[%s9465_s11 + $0x4b0] sm:$0xff]  ;;  %v8576_v13 = vcombine.low %v684_v12, %v692_v15 }
 0x35a   : > { %7462 = vmatprep.subr.bf16.mxu0 %v8161_v22  ;;  %v668_v22 = vld [vmem:[%s9465_s11 + $0xcb0] sm:$0xff] }
 0x35b   : > { %7502 = vmatpush1.bf16.msra.mxu1 %v8432_v21  ;;  %v420_v21 = vld [vmem:[%s9465_s11 + $0x4f0] sm:$0xff] }
 0x35c   : > { %7503 = vmatprep.subr.bf16.mxu1 %v8417_v23  ;;  %v676_v23 = vld [vmem:[%s9465_s11 + $0xcf0] sm:$0xff]  ;;  %v8305_v42 = vcombine.high %v412_v19, %v420_v21  ;;  %v8304_v31 = vcombine.low %v412_v19, %v420_v21 }
 0x35d   : > { %7463 = vmatpush1.bf16.msra.mxu0 %v8160_v26  ;;  %v8561_v25 = vcombine.high %v668_v22, %v676_v23  ;;  %v396_v26 = vld [vmem:[%s9465_s11 + $0x430] sm:$0xff]  ;;  %v8560_v52 = vcombine.low %v668_v22, %v676_v23 }
 0x35e   : > { %7464 = vmatprep.subr.bf16.mxu0 %v8401_v20  ;;  %v652_v20 = vld [vmem:[%s9465_s11 + $0xc30] sm:$0xff] }
 0x35f   : > { %7504 = vmatpush1.bf16.msra.mxu1 %v8416_v27  ;;  %v404_v27 = vld [vmem:[%s9465_s11 + $0x470] sm:$0xff] }
 0x360   : > { %7505 = vmatprep.subr.bf16.mxu1 %v8657_v30  ;;  %v660_v30 = vld [vmem:[%s9465_s11 + $0xc70] sm:$0xff]  ;;  %v8289_v34 = vcombine.high %v396_v26, %v404_v27  ;;  %v8288_v43 = vcombine.low %v396_v26, %v404_v27 }
 0x361   : > { %7465 = vmatpush2.bf16.msra.mxu0 %v8400_v37  ;;  %v8545_v35 = vcombine.high %v652_v20, %v660_v30  ;;  %v892_v37 = vld [vmem:[%s9465_s11 + $0x13b0] sm:$0xff]  ;;  %v8544_v47 = vcombine.low %v652_v20, %v660_v30 }
 0x362   : > { %7466 = vmatprep.subr.bf16.mxu0 %v8385_v54  ;;  %v1148_v54 = vld [vmem:[%s9465_s11 + $0x1bb0] sm:$0xff] }
 0x363   : > { %7506 = vmatpush2.bf16.msra.mxu1 %v8656_v38  ;;  %v900_v38 = vld [vmem:[%s9465_s11 + $0x13f0] sm:$0xff] }
 0x364   : > { %7507 = vmatprep.subr.bf16.mxu1 %v8641_v40  ;;  %v1156_v40 = vld [vmem:[%s9465_s11 + $0x1bf0] sm:$0xff]  ;;  %v8785_v57 = vcombine.high %v892_v37, %v900_v38  ;;  %v8784_v55 = vcombine.low %v892_v37, %v900_v38 }
 0x365   : > { %7467 = vmatpush2.bf16.msra.mxu0 %v8384_v46  ;;  %v9041_v44 = vcombine.high %v1148_v54, %v1156_v40  ;;  %v876_v46 = vld [vmem:[%s9465_s11 + $0x1330] sm:$0xff]  ;;  %v9040_v50 = vcombine.low %v1148_v54, %v1156_v40 }
 0x366   : > { %7468 = vmatprep.subr.bf16.mxu0 %v8369_v53  ;;  %v1132_v53 = vld [vmem:[%s9465_s11 + $0x1b30] sm:$0xff] }
 0x367   : > { %7508 = vmatpush2.bf16.msra.mxu1 %v8640_v48  ;;  %v884_v48 = vld [vmem:[%s9465_s11 + $0x1370] sm:$0xff] }
 0x368   : > { %7509 = vmatprep.subr.bf16.mxu1 %v8625_v49  ;;  %v1140_v49 = vld [vmem:[%s9465_s11 + $0x1b70] sm:$0xff]  ;;  %v8769_v58 = vcombine.high %v876_v46, %v884_v48  ;;  %v8768_v4 = vcombine.low %v876_v46, %v884_v48 }
 0x369   : > { %7469 = vmatpush2.bf16.msra.mxu0 %v8368_v60  ;;  %v9025_v56 = vcombine.high %v1132_v53, %v1140_v49  ;;  %v860_v60 = vld [vmem:[%s9465_s11 + $0x12b0] sm:$0xff] }
 0x36a   : > { %7470 = vmatprep.subr.bf16.mxu0 %v8353_v62  ;;  %v1124_v63 = vld [vmem:[%s9465_s11 + $0x1af0] sm:$0xff] }
 0x36b   : > { %7510 = vmatpush2.bf16.msra.mxu1 %v8624_v59  ;;  %v868_v59 = vld [vmem:[%s9465_s11 + $0x12f0] sm:$0xff] }
 0x36c   : > { %7511 = vmatprep.subr.bf16.mxu1 %v8609_v61  ;;  %v1116_v61 = vld [vmem:[%s9465_s11 + $0x1ab0] sm:$0xff] }
 0x36d   : > { %7471 = vmatpush2.bf16.msra.mxu0 %v8352_v5  ;;  %v844_v12 = vld [vmem:[%s9465_s11 + $0x1230] sm:$0xff]  ;;  %v9008_v22 = vcombine.low %v1116_v61, %v1124_v63 }
 0x36e   : > { %7472 = vmatprep.subr.bf16.mxu0 %v8337_v7  ;;  %v8753_v7 = vcombine.high %v860_v60, %v868_v59  ;;  %v852_v15 = vld [vmem:[%s9465_s11 + $0x1270] sm:$0xff] }
 0x36f   : > { %7512 = vmatpush2.bf16.msra.mxu1 %v8608_v6  ;;  %v9024_v6 = vcombine.low %v1132_v53, %v1140_v49  ;;  %v8737_v23 = vcombine.high %v844_v12, %v852_v15  ;;  %v836_v26 = vld [vmem:[%s9465_s11 + $0x11f0] sm:$0xff]  ;;  %v8736_v30 = vcombine.low %v844_v12, %v852_v15 }
 0x370   : > { %7513 = vmatprep.subr.bf16.mxu1 %v8593_v8  ;;  %v1084_v27 = vld [vmem:[%s9465_s11 + $0x19b0] sm:$0xff] }
 0x371   : > { %7473 = vmatpush2.bf16.msra.mxu0 %v8336_v16  ;;  %v1092_v20 = vld [vmem:[%s9465_s11 + $0x19f0] sm:$0xff] }
 0x372   : > { %7474 = vmatprep.subr.bf16.mxu0 %v8321_v17  ;;  %v1108_v17 = vld [vmem:[%s9465_s11 + $0x1a70] sm:$0xff] }
 0x373   : > { %7514 = vmatpush2.bf16.msra.mxu1 %v8592_v36  ;;  %v1100_v36 = vld [vmem:[%s9465_s11 + $0x1a30] sm:$0xff] }
 0x374   : > { %7515 = vmatprep.subr.bf16.mxu1 %v8577_v18  ;;  %v820_v37 = vld [vmem:[%s9465_s11 + $0x1170] sm:$0xff] }
 0x375   : > { %7475 = vmatpush2.bf16.msra.mxu0 %v8320_v39  ;;  %v1068_v38 = vld [vmem:[%s9465_s11 + $0x1930] sm:$0xff] }
 0x376   : > { %7476 = vmatprep.subr.bf16.mxu0 %v8305_v42  ;;  %v8993_v42 = vcombine.high %v1100_v36, %v1108_v17  ;;  %v1076_v54 = vld [vmem:[%s9465_s11 + $0x1970] sm:$0xff] }
 0x377   : > { %7516 = vmatpush2.bf16.msra.mxu1 %v8576_v13  ;;  %v804_v46 = vld [vmem:[%s9465_s11 + $0x10f0] sm:$0xff] }
 0x378   : > { %7517 = vmatprep.subr.bf16.mxu1 %v8561_v25  ;;  %v828_v25 = vld [vmem:[%s9465_s11 + $0x11b0] sm:$0xff] }
 0x379   : > { %7477 = vmatpush2.bf16.msra.mxu0 %v8304_v31  ;;  %v8992_v31 = vcombine.low %v1100_v36, %v1108_v17  ;;  %v8720_v40 = vcombine.low %v828_v25, %v836_v26  ;;  %v1052_v48 = vld [vmem:[%s9465_s11 + $0x18b0] sm:$0xff] }
 0x37a   : > { %7478 = vmatprep.subr.bf16.mxu0 %v8289_v34  ;;  %v8977_v34 = vcombine.high %v1084_v27, %v1092_v20  ;;  %v1060_v53 = vld [vmem:[%s9465_s11 + $0x18f0] sm:$0xff] }
 0x37b   : > { %7518 = vmatpush2.bf16.msra.mxu1 %v8560_v52  ;;  %v8721_v52 = vcombine.high %v828_v25, %v836_v26  ;;  %v1004_v15 = vld [vmem:[%s9465_s11 + $0x1730] sm:$0xff] }
 0x37c   : > { %7519 = vmatprep.subr.bf16.mxu1 %v8545_v35  ;;  %v812_v35 = vld [vmem:[%s9465_s11 + $0x1130] sm:$0xff] }
 0x37d   : > { %7479 = vmatpush2.bf16.msra.mxu0 %v8288_v43  ;;  %v8976_v43 = vcombine.low %v1084_v27, %v1092_v20  ;;  %v8704_v49 = vcombine.low %v812_v35, %v820_v37  ;;  %v1260_v36 = vld [vmem:[%s9465_s11 + $0x1f30] sm:$0xff] }
 0x37e   : > { %7530 = vmatprep.subr.bf16.mxu0 %v8785_v57  ;;  %v8961_v57 = vcombine.high %v1068_v38, %v1076_v54  ;;  %v1268_v17 = vld [vmem:[%s9465_s11 + $0x1f70] sm:$0xff] }
 0x37f   : > { %7520 = vmatpush2.bf16.msra.mxu1 %v8544_v47  ;;  %v8705_v47 = vcombine.high %v812_v35, %v820_v37  ;;  %v1252_v25 = vld [vmem:[%s9465_s11 + $0x1ef0] sm:$0xff]  ;;  %v9152_v27 = vcombine.low %v1260_v36, %v1268_v17 }
 0x380   : > { %7571 = vmatprep.subr.bf16.mxu1 %v9041_v44  ;;  %v7236_v62 = vpop.f32.mrf.mxu0  ;;  %7481 = vmatmul.mubr.bf16.vlgmr.msra.gmra.mxu0 %v9593_v24  ;;  %v796_v44 = vld [vmem:[%s9465_s11 + $0x10b0] sm:$0xff] }
 0x381   : > { %v7237_v2 = vadd.f32 %v7236_v62, %v10429_v28  ;;  %7531 = vmatpush1.bf16.msra.mxu0 %v8784_v55  ;;  %v9009_v28 = vcombine.high %v1116_v61, %v1124_v63  ;;  %7562 = vmatprep.mubr.bf16.mxu0 %v9600_v32  ;;  %v8960_v55 = vcombine.low %v1068_v38, %v1076_v54  ;;  %v1044_v62 = vld [vmem:[%s9465_s11 + $0x1870] sm:$0xff] }
 0x382   : > { %v7277_v3 = vpop.f32.mrf.mxu1  ;;  %7522 = vmatmul.mubr.bf16.vlgmr.msra.gmra.mxu1 %v9604_v0  ;;  %v7238_v5 = vpop.f32.mrf.mxu0  ;;  %7532 = vmatprep.subr.bf16.mxu0 %v8769_v58  ;;  %v8945_v58 = vcombine.high %v1052_v48, %v1060_v53  ;;  %v8688_v61 = vcombine.low %v796_v44, %v804_v46  ;;  %v8944_v63 = vcombine.low %v1052_v48, %v1060_v53  ;;  %v1236_v35 = vld [vmem:[%s9465_s11 + $0x1e70] sm:$0xff] }
 0x383   : > { %7572 = vmatpush1.bf16.msra.mxu1 %v9040_v50  ;;  %v10502_v8 = vadd.f32 %v7277_v3, %v7237_v2  ;;  %v7239_v9 = vadd.f32 %v7238_v5, %v10434_v29  ;;  %7603 = vmatprep.mubr.bf16.mxu1 %v9613_v41  ;;  %v8752_v29 = vcombine.low %v860_v60, %v868_v59  ;;  %v788_v60 = vld [vmem:[%s9465_s11 + $0x1070] sm:$0xff] }
 0x384   : > { %v7279_v11 = vpop.f32.mrf.mxu1  ;;  %7573 = vmatprep.subr.bf16.mxu1 %v9025_v56  ;;  %v7240_v16 = vpop.f32.mrf.mxu0  ;;  %v8689_v50 = vcombine.high %v796_v44, %v804_v46  ;;  %v780_v56 = vld [vmem:[%s9465_s11 + $0x1030] sm:$0xff] }
 0x385   : > { %v10511_v18 = vadd.f32 %v7279_v11, %v7239_v9  ;;  %7533 = vmatpush1.bf16.msra.mxu0 %v8768_v4  ;;  %v1036_v59 = vld [vmem:[%s9465_s11 + $0x1830] sm:$0xff]  ;;  %v8673_v2 = vcombine.high %v780_v56, %v788_v60  ;;  %v8672_v9 = vcombine.low %v780_v56, %v788_v60 }
 0x386   : > { %v7281_v19 = vpop.f32.mrf.mxu1  ;;  %v7241_v21 = vpop.f32.mrf.mxu0  ;;  %7534 = vmatprep.subr.bf16.mxu0 %v8753_v7  ;;  %v8929_v3 = vcombine.high %v1036_v59, %v1044_v62  ;;  %v1020_v4 = vld [vmem:[%s9465_s11 + $0x17b0] sm:$0xff]  ;;  %v8928_v11 = vcombine.low %v1036_v59, %v1044_v62 }
 0x387   : > { %7574 = vmatpush1.bf16.msra.mxu1 %v9024_v6  ;;  %v7826_v39 = vcombine.low %v10502_v8, %v10511_v18  ;;  %v1028_v5 = vld [vmem:[%s9465_s11 + $0x17f0] sm:$0xff]  ;;  %v1069_v8 = vld [vmem:[%s9465_s11 + $0x1938] sm:$0xff] }
 0x388   : > { %v7282_v13 = vpop.f32.mrf.mxu1  ;;  %7575 = vmatprep.subr.bf16.mxu1 %v9009_v28  ;;  %v1276_v6 = vld [vmem:[%s9465_s11 + $0x1fb0] sm:$0xff]  ;;  %v8913_v28 = vcombine.high %v1020_v4, %v1028_v5  ;;  %v8912_v19 = vcombine.low %v1020_v4, %v1028_v5  ;;  %v1077_v18 = vld [vmem:[%s9465_s11 + $0x1978] sm:$0xff] }
 0x389   : > { %7535 = vmatpush1.bf16.msra.mxu0 %v8752_v29  ;;  %v1284_v7 = vld [vmem:[%s9465_s11 + $0x1ff0] sm:$0xff] }
 0x38a   : > { %7536 = vmatprep.subr.bf16.mxu0 %v8737_v23  ;;  %v9169_v12 = vcombine.high %v1276_v6, %v1284_v7  ;;  %v1012_v16 = vld [vmem:[%s9465_s11 + $0x1770] sm:$0xff]  ;;  %v9168_v29 = vcombine.low %v1276_v6, %v1284_v7 }
 0x38b   : > { %7576 = vmatpush1.bf16.msra.mxu1 %v9008_v22  ;;  %v8897_v21 = vcombine.high %v1004_v15, %v1012_v16  ;;  %v9153_v22 = vcombine.high %v1260_v36, %v1268_v17  ;;  %v988_v23 = vld [vmem:[%s9465_s11 + $0x16b0] sm:$0xff]  ;;  %v8896_v26 = vcombine.low %v1004_v15, %v1012_v16 }
 0x38c   : > { %7577 = vmatprep.subr.bf16.mxu1 %v8993_v42  ;;  %v996_v13 = vld [vmem:[%s9465_s11 + $0x16f0] sm:$0xff] }
 0x38d   : > { %7537 = vmatpush1.bf16.msra.mxu0 %v8736_v30  ;;  %v1244_v42 = vld [vmem:[%s9465_s11 + $0x1eb0] sm:$0xff]  ;;  %v8881_v20 = vcombine.high %v988_v23, %v996_v13  ;;  %v8880_v37 = vcombine.low %v988_v23, %v996_v13  ;;  %v645_v23 = vld [vmem:[%s9465_s11 + $0xbf8] sm:$0xff] }
 0x38e   : > { %7538 = vmatprep.subr.bf16.mxu0 %v8721_v52  ;;  %v9137_v30 = vcombine.high %v1244_v42, %v1252_v25  ;;  %v980_v52 = vld [vmem:[%s9465_s11 + $0x1670] sm:$0xff]  ;;  %v9136_v38 = vcombine.low %v1244_v42, %v1252_v25 }
 0x38f   : > { %7578 = vmatpush1.bf16.msra.mxu1 %v8992_v31  ;;  %v972_v31 = vld [vmem:[%s9465_s11 + $0x1630] sm:$0xff] }
 0x390   : > { %7579 = vmatprep.subr.bf16.mxu1 %v8977_v34  ;;  %v1228_v34 = vld [vmem:[%s9465_s11 + $0x1e30] sm:$0xff]  ;;  %v8865_v54 = vcombine.high %v972_v31, %v980_v52  ;;  %v8864_v46 = vcombine.low %v972_v31, %v980_v52  ;;  %v629_v31 = vld [vmem:[%s9465_s11 + $0xb78] sm:$0xff] }
 0x391   : > { %7539 = vmatpush1.bf16.msra.mxu0 %v8720_v40  ;;  %v9121_v40 = vcombine.high %v1228_v34, %v1236_v35  ;;  %v1220_v44 = vld [vmem:[%s9465_s11 + $0x1df0] sm:$0xff]  ;;  %v9120_v48 = vcombine.low %v1228_v34, %v1236_v35 }
 0x392   : > { %7540 = vmatprep.subr.bf16.mxu0 %v8705_v47  ;;  %v964_v47 = vld [vmem:[%s9465_s11 + $0x15f0] sm:$0xff] }
 0x393   : > { %7580 = vmatpush1.bf16.msra.mxu1 %v8976_v43  ;;  %v956_v43 = vld [vmem:[%s9465_s11 + $0x15b0] sm:$0xff] }
 0x394   : > { %7581 = vmatprep.subr.bf16.mxu1 %v8961_v57  ;;  %v1212_v57 = vld [vmem:[%s9465_s11 + $0x1db0] sm:$0xff]  ;;  %v8849_v53 = vcombine.high %v956_v43, %v964_v47  ;;  %v8848_v60 = vcombine.low %v956_v43, %v964_v47  ;;  %v605_v43 = vld [vmem:[%s9465_s11 + $0xab8] sm:$0xff] }
 0x395   : > { %7541 = vmatpush1.bf16.msra.mxu0 %v8704_v49  ;;  %v9105_v49 = vcombine.high %v1212_v57, %v1220_v44  ;;  %v1204_v56 = vld [vmem:[%s9465_s11 + $0x1d70] sm:$0xff]  ;;  %v9104_v59 = vcombine.low %v1212_v57, %v1220_v44  ;;  %v613_v47 = vld [vmem:[%s9465_s11 + $0xaf8] sm:$0xff] }
 0x396   : > { %7542 = vmatprep.subr.bf16.mxu0 %v8689_v50  ;;  %v948_v50 = vld [vmem:[%s9465_s11 + $0x1570] sm:$0xff] }
 0x397   : > { %7582 = vmatpush1.bf16.msra.mxu1 %v8960_v55  ;;  %v940_v55 = vld [vmem:[%s9465_s11 + $0x1530] sm:$0xff] }
 0x398   : > { %7583 = vmatprep.subr.bf16.mxu1 %v8945_v58  ;;  %v1196_v58 = vld [vmem:[%s9465_s11 + $0x1d30] sm:$0xff]  ;;  %v8833_v62 = vcombine.high %v940_v55, %v948_v50  ;;  %v8832_v5 = vcombine.low %v940_v55, %v948_v50  ;;  %v8499_v55 = vcombine.high %v605_v43, %v613_v47  ;;  %v333_v50 = vld [vmem:[%s9465_s11 + $0x238] sm:$0xff] }
 0x399   : > { %7543 = vmatpush1.bf16.msra.mxu0 %v8688_v61  ;;  %v9089_v61 = vcombine.high %v1196_v58, %v1204_v56  ;;  %v1188_v4 = vld [vmem:[%s9465_s11 + $0x1cf0] sm:$0xff]  ;;  %v9088_v6 = vcombine.low %v1196_v58, %v1204_v56  ;;  %v341_v58 = vld [vmem:[%s9465_s11 + $0x278] sm:$0xff] }
 0x39a   : > { %7544 = vmatprep.subr.bf16.mxu0 %v8673_v2  ;;  %v932_v2 = vld [vmem:[%s9465_s11 + $0x14f0] sm:$0xff] }
 0x39b   : > { %7584 = vmatpush1.bf16.msra.mxu1 %v8944_v63  ;;  %v924_v63 = vld [vmem:[%s9465_s11 + $0x14b0] sm:$0xff] }
 0x39c   : > { %7585 = vmatprep.subr.bf16.mxu1 %v8929_v3  ;;  %v1180_v3 = vld [vmem:[%s9465_s11 + $0x1cb0] sm:$0xff]  ;;  %v8817_v7 = vcombine.high %v924_v63, %v932_v2  ;;  %v8816_v16 = vcombine.low %v924_v63, %v932_v2  ;;  %v8498_v2 = vcombine.low %v605_v43, %v613_v47  ;;  %v509_v47 = vld [vmem:[%s9465_s11 + $0x7b8] sm:$0xff] }
 0x39d   : > { %7545 = vmatpush1.bf16.msra.mxu0 %v8672_v9  ;;  %v9073_v9 = vcombine.high %v1180_v3, %v1188_v4  ;;  %v1172_v15 = vld [vmem:[%s9465_s11 + $0x1c70] sm:$0xff]  ;;  %v9072_v36 = vcombine.low %v1180_v3, %v1188_v4  ;;  %v8227_v3 = vcombine.high %v333_v50, %v341_v58 }
 0x39e   : > { %7546 = vmatprep.subr.bf16.mxu0 %v8913_v28  ;;  %v916_v28 = vld [vmem:[%s9465_s11 + $0x1470] sm:$0xff] }
 0x39f   : > { %7586 = vmatpush1.bf16.msra.mxu1 %v8928_v11  ;;  %v908_v11 = vld [vmem:[%s9465_s11 + $0x1430] sm:$0xff] }
 0x3a0   : > { %7587 = vmatprep.subr.bf16.mxu1 %v9169_v12  ;;  %v1164_v12 = vld [vmem:[%s9465_s11 + $0x1c30] sm:$0xff]  ;;  %v8801_v17 = vcombine.high %v908_v11, %v916_v28  ;;  %v8800_v13 = vcombine.low %v908_v11, %v916_v28 }
 0x3a1   : > { %7547 = vmatpush2.bf16.msra.mxu0 %v8912_v19  ;;  %v9057_v19 = vcombine.high %v1164_v12, %v1172_v15  ;;  %v9056_v42 = vcombine.low %v1164_v12, %v1172_v15  ;;  %v301_v15 = vld [vmem:[%s9465_s11 + $0x138] sm:$0xff] }
 0x3a2   : > { %7548 = vmatprep.subr.bf16.mxu0 %v8897_v21  ;;  %v389_v21 = vld [vmem:[%s9465_s11 + $0x3f8] sm:$0xff] }
 0x3a3   : > { %7588 = vmatpush2.bf16.msra.mxu1 %v9168_v29  ;;  %v381_v29 = vld [vmem:[%s9465_s11 + $0x3b8] sm:$0xff] }
 0x3a4   : > { %7589 = vmatprep.subr.bf16.mxu1 %v9153_v22  ;;  %v637_v22 = vld [vmem:[%s9465_s11 + $0xbb8] sm:$0xff]  ;;  %v8275_v25 = vcombine.high %v381_v29, %v389_v21  ;;  %v8274_v52 = vcombine.low %v381_v29, %v389_v21 }
 0x3a5   : > { %7549 = vmatpush2.bf16.msra.mxu0 %v8896_v26  ;;  %v8531_v26 = vcombine.high %v637_v22, %v645_v23  ;;  %v8530_v34 = vcombine.low %v637_v22, %v645_v23  ;;  %v285_v23 = vld [vmem:[%s9465_s11 + $0xb8] sm:$0xff] }
 0x3a6   : > { %7550 = vmatprep.subr.bf16.mxu0 %v8881_v20  ;;  %v373_v20 = vld [vmem:[%s9465_s11 + $0x378] sm:$0xff] }
 0x3a7   : > { %7590 = vmatpush2.bf16.msra.mxu1 %v9152_v27  ;;  %v365_v27 = vld [vmem:[%s9465_s11 + $0x338] sm:$0xff] }
 0x3a8   : > { %7591 = vmatprep.subr.bf16.mxu1 %v9137_v30  ;;  %v621_v30 = vld [vmem:[%s9465_s11 + $0xb38] sm:$0xff]  ;;  %v8259_v35 = vcombine.high %v365_v27, %v373_v20  ;;  %v8258_v44 = vcombine.low %v365_v27, %v373_v20 }
 0x3a9   : > { %7551 = vmatpush2.bf16.msra.mxu0 %v8880_v37  ;;  %v8515_v37 = vcombine.high %v621_v30, %v629_v31 }
 0x3aa   : > { %7552 = vmatprep.subr.bf16.mxu0 %v8865_v54  ;;  %v357_v54 = vld [vmem:[%s9465_s11 + $0x2f8] sm:$0xff] }
 0x3ab   : > { %7592 = vmatpush2.bf16.msra.mxu1 %v9136_v38  ;;  %v349_v38 = vld [vmem:[%s9465_s11 + $0x2b8] sm:$0xff] }
 0x3ac   : > { %7593 = vmatprep.subr.bf16.mxu1 %v9121_v40 }
 0x3ad   : > { %7553 = vmatpush2.bf16.msra.mxu0 %v8864_v46 }
 0x3ae   : > { %7554 = vmatprep.subr.bf16.mxu0 %v8849_v53  ;;  %v8243_v53 = vcombine.high %v349_v38, %v357_v54 }
 0x3af   : > { %7594 = vmatpush2.bf16.msra.mxu1 %v9120_v48  ;;  %v8514_v48 = vcombine.low %v621_v30, %v629_v31  ;;  %v269_v31 = vld [vmem:[%s9465_s11 + $0x38] sm:$0xff] }
 0x3b0   : > { %7595 = vmatprep.subr.bf16.mxu1 %v9105_v49 }
 0x3b1   : > { %7555 = vmatpush2.bf16.msra.mxu0 %v8848_v60  ;;  %v589_v60 = vld [vmem:[%s9465_s11 + $0xa38] sm:$0xff] }
 0x3b2   : > { %7556 = vmatprep.subr.bf16.mxu0 %v8833_v62 }
 0x3b3   : > { %7596 = vmatpush2.bf16.msra.mxu1 %v9104_v59  ;;  %v597_v59 = vld [vmem:[%s9465_s11 + $0xa78] sm:$0xff] }
 0x3b4   : > { %7597 = vmatprep.subr.bf16.mxu1 %v9089_v61  ;;  %v8242_v61 = vcombine.low %v349_v38, %v357_v54  ;;  %v8482_v11 = vcombine.low %v589_v60, %v597_v59 }
 0x3b5   : > { %7557 = vmatpush2.bf16.msra.mxu0 %v8832_v5  ;;  %v317_v5 = vld [vmem:[%s9465_s11 + $0x1b8] sm:$0xff] }
 0x3b6   : > { %7558 = vmatprep.subr.bf16.mxu0 %v8817_v7  ;;  %v573_v7 = vld [vmem:[%s9465_s11 + $0x9b8] sm:$0xff] }
 0x3b7   : > { %7598 = vmatpush2.bf16.msra.mxu1 %v9088_v6  ;;  %v325_v6 = vld [vmem:[%s9465_s11 + $0x1f8] sm:$0xff] }
 0x3b8   : > { %7599 = vmatprep.subr.bf16.mxu1 %v9073_v9  ;;  %v581_v9 = vld [vmem:[%s9465_s11 + $0x9f8] sm:$0xff]  ;;  %v8211_v28 = vcombine.high %v317_v5, %v325_v6 }
 0x3b9   : > { %7559 = vmatpush2.bf16.msra.mxu0 %v8816_v16  ;;  %v8467_v12 = vcombine.high %v573_v7, %v581_v9  ;;  %v309_v16 = vld [vmem:[%s9465_s11 + $0x178] sm:$0xff]  ;;  %v8466_v29 = vcombine.low %v573_v7, %v581_v9 }
 0x3ba   : > { %7560 = vmatprep.subr.bf16.mxu0 %v8801_v17  ;;  %v565_v17 = vld [vmem:[%s9465_s11 + $0x978] sm:$0xff]  ;;  %v8195_v21 = vcombine.high %v301_v15, %v309_v16 }
 0x3bb   : > { %7600 = vmatpush2.bf16.msra.mxu1 %v9072_v36  ;;  %v557_v36 = vld [vmem:[%s9465_s11 + $0x938] sm:$0xff] }
 0x3bc   : > { %7601 = vmatprep.subr.bf16.mxu1 %v9057_v19  ;;  %v8210_v19 = vcombine.low %v317_v5, %v325_v6  ;;  %v8451_v22 = vcombine.high %v557_v36, %v565_v17  ;;  %v8450_v27 = vcombine.low %v557_v36, %v565_v17  ;;  %v485_v5 = vld [vmem:[%s9465_s11 + $0x6f8] sm:$0xff] }
 0x3bd   : > { %7561 = vmatpush2.bf16.msra.mxu0 %v8800_v13  ;;  %v293_v13 = vld [vmem:[%s9465_s11 + $0xf8] sm:$0xff] }
 0x3be   : > { %7612 = vmatprep.subr.bf16.mxu0 %v8275_v25  ;;  %v549_v25 = vld [vmem:[%s9465_s11 + $0x8f8] sm:$0xff]  ;;  %v8179_v20 = vcombine.high %v285_v23, %v293_v13 }
 0x3bf   : > { %7602 = vmatpush2.bf16.msra.mxu1 %v9056_v42  ;;  %v541_v42 = vld [vmem:[%s9465_s11 + $0x8b8] sm:$0xff] }
 0x3c0   : > { %7653 = vmatprep.subr.bf16.mxu1 %v8531_v26  ;;  %v10573_v40 = vpop.f32.mrf.mxu0  ;;  %7563 = vmatmul.mubr.bf16.vlgmr.msra.gmra.mxu0 %v9563_v33  ;;  %v8194_v26 = vcombine.low %v301_v15, %v309_v16  ;;  %v8435_v30 = vcombine.high %v541_v42, %v549_v25  ;;  %v8434_v38 = vcombine.low %v541_v42, %v549_v25  ;;  %v733_v6 = vld [vmem:[%s9465_s11 + $0xeb8] sm:$0xff] }
 0x3c1   : > { %7613 = vmatpush1.bf16.msra.mxu0 %v8274_v52  ;;  %7644 = vmatprep.mubr.bf16.mxu0 %v9540_v10  ;;  %v8483_v10 = vcombine.high %v589_v60, %v597_v59  ;;  %v277_v52 = vld [vmem:[%s9465_s11 + $0x78] sm:$0xff] }
 0x3c2   : > { %v10578_v57 = vpop.f32.mrf.mxu1  ;;  %7604 = vmatmul.mubr.bf16.vlgmr.msra.gmra.mxu1 %v9680_v51  ;;  %v10581_v46 = vpop.f32.mrf.mxu0  ;;  %7614 = vmatprep.subr.bf16.mxu0 %v8259_v35  ;;  %v533_v35 = vld [vmem:[%s9465_s11 + $0x878] sm:$0xff]  ;;  %v8163_v54 = vcombine.high %v269_v31, %v277_v52 }
 0x3c3   : > { %7654 = vmatpush1.bf16.msra.mxu1 %v8530_v34  ;;  %7685 = vmatprep.mubr.bf16.mxu1 %v9547_v14  ;;  %v8226_v14 = vcombine.low %v333_v50, %v341_v58  ;;  %v525_v34 = vld [vmem:[%s9465_s11 + $0x838] sm:$0xff] }
 0x3c4   : > { %v10583_v49 = vpop.f32.mrf.mxu1  ;;  %7655 = vmatprep.subr.bf16.mxu1 %v8515_v37  ;;  %v7322_v56 = vpop.f32.mrf.mxu0  ;;  %v8178_v37 = vcombine.low %v285_v23, %v293_v13  ;;  %v8419_v43 = vcombine.high %v525_v34, %v533_v35  ;;  %v8418_v50 = vcombine.low %v525_v34, %v533_v35  ;;  %v493_v60 = vld [vmem:[%s9465_s11 + $0x738] sm:$0xff] }
 0x3c5   : > { %7615 = vmatpush1.bf16.msra.mxu0 %v8258_v44  ;;  %v517_v44 = vld [vmem:[%s9465_s11 + $0x7f8] sm:$0xff] }
 0x3c6   : > { %v7363_v62 = vpop.f32.mrf.mxu1  ;;  %v7323_v63 = vpop.f32.mrf.mxu0  ;;  %7616 = vmatprep.subr.bf16.mxu0 %v8243_v53  ;;  %v773_v53 = vld [vmem:[%s9465_s11 + $0xff8] sm:$0xff]  ;;  %v8403_v58 = vcombine.high %v509_v47, %v517_v44 }
 0x3c7   : > { %7656 = vmatpush1.bf16.msra.mxu1 %v8514_v48  ;;  %v765_v48 = vld [vmem:[%s9465_s11 + $0xfb8] sm:$0xff]  ;;  %v8402_v63 = vcombine.low %v509_v47, %v517_v44 }
 0x3c8   : > { %v7364_v4 = vpop.f32.mrf.mxu1  ;;  %7657 = vmatprep.subr.bf16.mxu1 %v8499_v55  ;;  %v8162_v55 = vcombine.low %v269_v31, %v277_v52  ;;  %v8659_v56 = vcombine.high %v765_v48, %v773_v53  ;;  %v501_v59 = vld [vmem:[%s9465_s11 + $0x778] sm:$0xff] }
 0x3c9   : > { %7617 = vmatpush1.bf16.msra.mxu0 %v8242_v61  ;;  %v749_v62 = vld [vmem:[%s9465_s11 + $0xf38] sm:$0xff]  ;;  %v8386_v9 = vcombine.low %v493_v60, %v501_v59 }
 0x3ca   : > { %7618 = vmatprep.subr.bf16.mxu0 %v8227_v3  ;;  %v757_v61 = vld [vmem:[%s9465_s11 + $0xf78] sm:$0xff]  ;;  %v8387_v3 = vcombine.high %v493_v60, %v501_v59 }
 0x3cb   : > { %7658 = vmatpush1.bf16.msra.mxu1 %v8498_v2  ;;  %v8658_v2 = vcombine.low %v765_v48, %v773_v53  ;;  %v8643_v4 = vcombine.high %v749_v62, %v757_v61  ;;  %v741_v7 = vld [vmem:[%s9465_s11 + $0xef8] sm:$0xff] }
 0x3cc   : > { %7659 = vmatprep.subr.bf16.mxu1 %v8483_v10  ;;  %v477_v10 = vld [vmem:[%s9465_s11 + $0x6b8] sm:$0xff] }
 0x3cd   : > { %7619 = vmatpush1.bf16.msra.mxu0 %v8226_v14  ;;  %v8642_v14 = vcombine.low %v749_v62, %v757_v61  ;;  %v469_v15 = vld [vmem:[%s9465_s11 + $0x678] sm:$0xff]  ;;  %v8370_v17 = vcombine.low %v477_v10, %v485_v5 }
 0x3ce   : > { %7620 = vmatprep.subr.bf16.mxu0 %v8211_v28  ;;  %v8627_v28 = vcombine.high %v733_v6, %v741_v7  ;;  %v717_v16 = vld [vmem:[%s9465_s11 + $0xe38] sm:$0xff] }
 0x3cf   : > { %7660 = vmatpush1.bf16.msra.mxu1 %v8482_v11  ;;  %v8371_v11 = vcombine.high %v477_v10, %v485_v5  ;;  %v725_v36 = vld [vmem:[%s9465_s11 + $0xe78] sm:$0xff] }
 0x3d0   : > { %7661 = vmatprep.subr.bf16.mxu1 %v8467_v12  ;;  %v461_v12 = vld [vmem:[%s9465_s11 + $0x638] sm:$0xff] }
 0x3d1   : > { %7621 = vmatpush1.bf16.msra.mxu0 %v8210_v19  ;;  %v8626_v19 = vcombine.low %v733_v6, %v741_v7  ;;  %v453_v23 = vld [vmem:[%s9465_s11 + $0x5f8] sm:$0xff]  ;;  %v8354_v25 = vcombine.low %v461_v12, %v469_v15 }
 0x3d2   : > { %7622 = vmatprep.subr.bf16.mxu0 %v8195_v21  ;;  %v8611_v21 = vcombine.high %v717_v16, %v725_v36  ;;  %v701_v13 = vld [vmem:[%s9465_s11 + $0xdb8] sm:$0xff] }
 0x3d3   : > { %7662 = vmatpush1.bf16.msra.mxu1 %v8466_v29  ;;  %v8355_v29 = vcombine.high %v461_v12, %v469_v15  ;;  %v709_v42 = vld [vmem:[%s9465_s11 + $0xdf8] sm:$0xff] }
 0x3d4   : > { %7663 = vmatprep.subr.bf16.mxu1 %v8451_v22  ;;  %v445_v22 = vld [vmem:[%s9465_s11 + $0x5b8] sm:$0xff] }
 0x3d5   : > { %7623 = vmatpush1.bf16.msra.mxu0 %v8194_v26  ;;  %v8610_v26 = vcombine.low %v717_v16, %v725_v36  ;;  %v437_v31 = vld [vmem:[%s9465_s11 + $0x578] sm:$0xff]  ;;  %v8338_v35 = vcombine.low %v445_v22, %v453_v23 }
 0x3d6   : > { %7624 = vmatprep.subr.bf16.mxu0 %v8179_v20  ;;  %v8595_v20 = vcombine.high %v701_v13, %v709_v42  ;;  %v685_v52 = vld [vmem:[%s9465_s11 + $0xd38] sm:$0xff] }
 0x3d7   : > { %7664 = vmatpush1.bf16.msra.mxu1 %v8450_v27  ;;  %v8339_v27 = vcombine.high %v445_v22, %v453_v23  ;;  %v693_v34 = vld [vmem:[%s9465_s11 + $0xd78] sm:$0xff] }
 0x3d8   : > { %7665 = vmatprep.subr.bf16.mxu1 %v8435_v30  ;;  %v429_v30 = vld [vmem:[%s9465_s11 + $0x538] sm:$0xff] }
 0x3d9   : > { %7625 = vmatpush1.bf16.msra.mxu0 %v8178_v37  ;;  %v8594_v37 = vcombine.low %v701_v13, %v709_v42  ;;  %v421_v47 = vld [vmem:[%s9465_s11 + $0x4f8] sm:$0xff]  ;;  %v8322_v53 = vcombine.low %v429_v30, %v437_v31 }
 0x3da   : > { %7626 = vmatprep.subr.bf16.mxu0 %v8163_v54  ;;  %v8579_v54 = vcombine.high %v685_v52, %v693_v34  ;;  %v669_v44 = vld [vmem:[%s9465_s11 + $0xcb8] sm:$0xff] }
 0x3db   : > { %7666 = vmatpush1.bf16.msra.mxu1 %v8434_v38  ;;  %v8323_v38 = vcombine.high %v429_v30, %v437_v31  ;;  %v677_v48 = vld [vmem:[%s9465_s11 + $0xcf8] sm:$0xff] }
 0x3dc   : > { %7667 = vmatprep.subr.bf16.mxu1 %v8419_v43  ;;  %v413_v43 = vld [vmem:[%s9465_s11 + $0x4b8] sm:$0xff] }
 0x3dd   : > { %7627 = vmatpush1.bf16.msra.mxu0 %v8162_v55  ;;  %v8578_v55 = vcombine.low %v685_v52, %v693_v34  ;;  %v405_v60 = vld [vmem:[%s9465_s11 + $0x478] sm:$0xff]  ;;  %v8306_v61 = vcombine.low %v413_v43, %v421_v47 }
 0x3de   : > { %7628 = vmatprep.subr.bf16.mxu0 %v8403_v58  ;;  %v8563_v58 = vcombine.high %v669_v44, %v677_v48  ;;  %v653_v59 = vld [vmem:[%s9465_s11 + $0xc38] sm:$0xff] }
 0x3df   : > { %7668 = vmatpush1.bf16.msra.mxu1 %v8418_v50  ;;  %v8307_v50 = vcombine.high %v413_v43, %v421_v47  ;;  %v661_v62 = vld [vmem:[%s9465_s11 + $0xc78] sm:$0xff] }
 0x3e0   : > { %7669 = vmatprep.subr.bf16.mxu1 %v8659_v56  ;;  %v397_v56 = vld [vmem:[%s9465_s11 + $0x438] sm:$0xff] }
 0x3e1   : > { %7629 = vmatpush2.bf16.msra.mxu0 %v8402_v63  ;;  %v8562_v63 = vcombine.low %v669_v44, %v677_v48  ;;  %v901_v10 = vld [vmem:[%s9465_s11 + $0x13f8] sm:$0xff]  ;;  %v8290_v7 = vcombine.low %v397_v56, %v405_v60 }
 0x3e2   : > { %7630 = vmatprep.subr.bf16.mxu0 %v8387_v3  ;;  %v8547_v3 = vcombine.high %v653_v59, %v661_v62  ;;  %v1149_v5 = vld [vmem:[%s9465_s11 + $0x1bb8] sm:$0xff] }
 0x3e3   : > { %7670 = vmatpush2.bf16.msra.mxu1 %v8658_v2  ;;  %v8291_v2 = vcombine.high %v397_v56, %v405_v60  ;;  %v1157_v6 = vld [vmem:[%s9465_s11 + $0x1bf8] sm:$0xff] }
 0x3e4   : > { %7671 = vmatprep.subr.bf16.mxu1 %v8643_v4  ;;  %v893_v4 = vld [vmem:[%s9465_s11 + $0x13b8] sm:$0xff] }
 0x3e5   : > { %7631 = vmatpush2.bf16.msra.mxu0 %v8386_v9  ;;  %v8546_v9 = vcombine.low %v653_v59, %v661_v62  ;;  %v885_v12 = vld [vmem:[%s9465_s11 + $0x1378] sm:$0xff]  ;;  %v8786_v36 = vcombine.low %v893_v4, %v901_v10  ;;  %v7834_v59 = vrot.slane %v7826_v39, %v10059_v1 }
 0x3e6   : > { %7632 = vmatprep.subr.bf16.mxu0 %v8371_v11  ;;  %v9043_v11 = vcombine.high %v1149_v5, %v1157_v6  ;;  %v1133_v15 = vld [vmem:[%s9465_s11 + $0x1b38] sm:$0xff] }
 0x3e7   : > { %7672 = vmatpush2.bf16.msra.mxu1 %v8642_v14  ;;  %v8787_v14 = vcombine.high %v893_v4, %v901_v10  ;;  %v1141_v16 = vld [vmem:[%s9465_s11 + $0x1b78] sm:$0xff] }
 0x3e8   : > { %7673 = vmatprep.subr.bf16.mxu1 %v8627_v28  ;;  %v877_v28 = vld [vmem:[%s9465_s11 + $0x1338] sm:$0xff]  ;;  %v9026_v30 = vcombine.low %v1133_v15, %v1141_v16 }
 0x3e9   : > { %7633 = vmatpush2.bf16.msra.mxu0 %v8370_v17  ;;  %v9042_v17 = vcombine.low %v1149_v5, %v1157_v6  ;;  %v861_v22 = vld [vmem:[%s9465_s11 + $0x12b8] sm:$0xff] }
 0x3ea   : > { %7634 = vmatprep.subr.bf16.mxu0 %v8355_v29  ;;  %v7360_v29 = vadd.f32 %v10578_v57, %v10573_v40  ;;  %v869_v23 = vld [vmem:[%s9465_s11 + $0x12f8] sm:$0xff]  ;;  %v8770_v40 = vcombine.low %v877_v28, %v885_v12 }
 0x3eb   : > { %7674 = vmatpush2.bf16.msra.mxu1 %v8626_v19  ;;  %v8771_v19 = vcombine.high %v877_v28, %v885_v12  ;;  %v1117_v42 = vld [vmem:[%s9465_s11 + $0x1ab8] sm:$0xff]  ;;  %v8754_v47 = vcombine.low %v861_v22, %v869_v23 }
 0x3ec   : > { %7675 = vmatprep.subr.bf16.mxu1 %v8611_v21  ;;  %v9027_v21 = vcombine.high %v1133_v15, %v1141_v16  ;;  %v1085_v56 = vld [vmem:[%s9465_s11 + $0x19b8] sm:$0xff] }
 0x3ed   : > { %7635 = vmatpush2.bf16.msra.mxu0 %v8354_v25  ;;  %v1125_v25 = vld [vmem:[%s9465_s11 + $0x1af8] sm:$0xff] }
 0x3ee   : > { %7636 = vmatprep.subr.bf16.mxu0 %v8339_v27  ;;  %v9011_v34 = vcombine.high %v1117_v42, %v1125_v25  ;;  %v9010_v48 = vcombine.low %v1117_v42, %v1125_v25  ;;  %v1093_v60 = vld [vmem:[%s9465_s11 + $0x19f8] sm:$0xff] }
 0x3ef   : > { %7676 = vmatpush2.bf16.msra.mxu1 %v8610_v26  ;;  %v7362_v26 = vadd.f32 %v10583_v49, %v10581_v46  ;;  %v853_v46 = vld [vmem:[%s9465_s11 + $0x1278] sm:$0xff]  ;;  %v8979_v10 = vcombine.high %v1085_v56, %v1093_v60 }
 0x3f0   : > { %7677 = vmatprep.subr.bf16.mxu1 %v8595_v20  ;;  %v813_v5 = vld [vmem:[%s9465_s11 + $0x1138] sm:$0xff] }
 0x3f1   : > { %7637 = vmatpush2.bf16.msra.mxu0 %v8338_v35  ;;  %v845_v35 = vld [vmem:[%s9465_s11 + $0x1238] sm:$0xff] }
 0x3f2   : > { %7638 = vmatprep.subr.bf16.mxu0 %v8323_v38  ;;  %v821_v6 = vld [vmem:[%s9465_s11 + $0x1178] sm:$0xff] }
 0x3f3   : > { %7678 = vmatpush2.bf16.msra.mxu1 %v8594_v37  ;;  %v1101_v37 = vld [vmem:[%s9465_s11 + $0x1a38] sm:$0xff] }
 0x3f4   : > { %7679 = vmatprep.subr.bf16.mxu1 %v8579_v54  ;;  %v797_v28 = vld [vmem:[%s9465_s11 + $0x10b8] sm:$0xff] }
 0x3f5   : > { %7639 = vmatpush2.bf16.msra.mxu0 %v8322_v53  ;;  %v8739_v53 = vcombine.high %v845_v35, %v853_v46  ;;  %v805_v12 = vld [vmem:[%s9465_s11 + $0x10f8] sm:$0xff] }
 0x3f6   : > { %7640 = vmatprep.subr.bf16.mxu0 %v8307_v50  ;;  %v1053_v15 = vld [vmem:[%s9465_s11 + $0x18b8] sm:$0xff]  ;;  %v8690_v42 = vcombine.low %v797_v28, %v805_v12 }
 0x3f7   : > { %7680 = vmatpush2.bf16.msra.mxu1 %v8578_v55  ;;  %v1061_v16 = vld [vmem:[%s9465_s11 + $0x18f8] sm:$0xff] }
 0x3f8   : > { %7681 = vmatprep.subr.bf16.mxu1 %v8563_v58  ;;  %v829_v58 = vld [vmem:[%s9465_s11 + $0x11b8] sm:$0xff]  ;;  %v8946_v25 = vcombine.low %v1053_v15, %v1061_v16 }
 0x3f9   : > { %7641 = vmatpush2.bf16.msra.mxu0 %v8306_v61  ;;  %v8738_v61 = vcombine.low %v845_v35, %v853_v46  ;;  %v1005_v35 = vld [vmem:[%s9465_s11 + $0x1738] sm:$0xff] }
 0x3fa   : > { %7642 = vmatprep.subr.bf16.mxu0 %v8291_v2  ;;  %v1013_v46 = vld [vmem:[%s9465_s11 + $0x1778] sm:$0xff] }
 0x3fb   : > { %7682 = vmatpush2.bf16.msra.mxu1 %v8562_v63  ;;  %v259_v63 = vld [vmem:[#allocation2 + $0x18] sm:$0xff] }
 0x3fc   : > { %7683 = vmatprep.subr.bf16.mxu1 %v8547_v3 }
 0x3fd   : > { %7643 = vmatpush2.bf16.msra.mxu0 %v8290_v7 }
 0x3fe   : > { %7694 = vmatprep.subr.bf16.mxu0 %v8787_v14  ;;  %v8707_v14 = vcombine.high %v813_v5, %v821_v6 }
 0x3ff   : > { %7684 = vmatpush2.bf16.msra.mxu1 %v8546_v9  ;;  %v8978_v9 = vcombine.low %v1085_v56, %v1093_v60  ;;  %v981_v56 = vld [vmem:[%s9465_s11 + $0x1678] sm:$0xff] }
 0x400   : > { %7735 = vmatprep.subr.bf16.mxu1 %v9043_v11  ;;  %v7400_v13 = vpop.f32.mrf.mxu0  ;;  %7645 = vmatmul.mubr.bf16.vlgmr.msra.gmra.mxu0 %v9593_v24  ;;  %v8755_v24 = vcombine.high %v861_v22, %v869_v23  ;;  %v8963_v11 = vcombine.high %v1069_v8, %v1077_v18  ;;  %v789_v22 = vld [vmem:[%s9465_s11 + $0x1078] sm:$0xff] }
 0x401   : > { %v7401_v27 = vadd.f32 %v7400_v13, %v7360_v29  ;;  %7695 = vmatpush1.bf16.msra.mxu0 %v8786_v36  ;;  %7726 = vmatprep.mubr.bf16.mxu0 %v9600_v32  ;;  %v8706_v36 = vcombine.low %v813_v5, %v821_v6  ;;  %v8947_v29 = vcombine.high %v1053_v15, %v1061_v16  ;;  %v1037_v23 = vld [vmem:[%s9465_s11 + $0x1838] sm:$0xff] }
 0x402   : > { %v7441_v20 = vpop.f32.mrf.mxu1  ;;  %7686 = vmatmul.mubr.bf16.vlgmr.msra.gmra.mxu1 %v9604_v0  ;;  %v7402_v57 = vpop.f32.mrf.mxu0  ;;  %7696 = vmatprep.subr.bf16.mxu0 %v8771_v19  ;;  %v1109_v0 = vld [vmem:[%s9465_s11 + $0x1a78] sm:$0xff]  ;;  %v8691_v19 = vcombine.high %v797_v28, %v805_v12 }
 0x403   : > { %7736 = vmatpush1.bf16.msra.mxu1 %v9042_v17  ;;  %v7403_v31 = vadd.f32 %v7402_v57, %v7362_v26  ;;  %7767 = vmatprep.mubr.bf16.mxu1 %v9613_v41  ;;  %v7442_v38 = vadd.f32 %v7441_v20, %v7401_v27  ;;  %v8995_v50 = vcombine.high %v1101_v37, %v1109_v0  ;;  %v837_v41 = vld [vmem:[%s9465_s11 + $0x11f8] sm:$0xff] }
 0x404   : > { %v7443_v52 = vpop.f32.mrf.mxu1  ;;  %7737 = vmatprep.subr.bf16.mxu1 %v9027_v21  ;;  %v7404_v49 = vpop.f32.mrf.mxu0  ;;  %v8994_v2 = vcombine.low %v1101_v37, %v1109_v0  ;;  %v8723_v3 = vcombine.high %v829_v58, %v837_v41  ;;  %v8722_v7 = vcombine.low %v829_v58, %v837_v41  ;;  %v8962_v17 = vcombine.low %v1069_v8, %v1077_v18  ;;  %v781_v21 = vld [vmem:[%s9465_s11 + $0x1038] sm:$0xff] }
 0x405   : > { %v7444_v54 = vadd.f32 %v7443_v52, %v7403_v31  ;;  %7697 = vmatpush1.bf16.msra.mxu0 %v8770_v40  ;;  %v1045_v13 = vld [vmem:[%s9465_s11 + $0x1878] sm:$0xff]  ;;  %v8675_v26 = vcombine.high %v781_v21, %v789_v22 }
 0x406   : > { %v7445_v43 = vpop.f32.mrf.mxu1  ;;  %v7405_v44 = vpop.f32.mrf.mxu0  ;;  %7698 = vmatprep.subr.bf16.mxu0 %v8755_v24  ;;  %v8931_v27 = vcombine.high %v1037_v23, %v1045_v13  ;;  %v1021_v20 = vld [vmem:[%s9465_s11 + $0x17b8] sm:$0xff]  ;;  %v8674_v24 = vcombine.low %v781_v21, %v789_v22  ;;  %v8930_v31 = vcombine.low %v1037_v23, %v1045_v13 }
 0x407   : > { %7738 = vmatpush1.bf16.msra.mxu1 %v9026_v30  ;;  %v7827_v32 = vcombine.low %v7442_v38, %v7444_v54  ;;  %v1029_v40 = vld [vmem:[%s9465_s11 + $0x17f8] sm:$0xff]  ;;  %v8899_v54 = vcombine.high %v1005_v35, %v1013_v46 }
 0x408   : > { %v7446_v55 = vpop.f32.mrf.mxu1  ;;  %7739 = vmatprep.subr.bf16.mxu1 %v9011_v34  ;;  %v1277_v57 = vld [vmem:[%s9465_s11 + $0x1fb8] sm:$0xff]  ;;  %v8915_v52 = vcombine.high %v1021_v20, %v1029_v40  ;;  %v8914_v0 = vcombine.low %v1021_v20, %v1029_v40 }
 0x409   : > { %v7841_v62 = vrot.slane %v7827_v32, %v10059_v1  ;;  %7699 = vmatpush1.bf16.msra.mxu0 %v8754_v47  ;;  %v1285_v30 = vld [vmem:[%s9465_s11 + $0x1ff8] sm:$0xff]  ;;  %v8898_v32 = vcombine.low %v1005_v35, %v1013_v46 }
 0x40a   : > { %7700 = vmatprep.subr.bf16.mxu0 %v8739_v53  ;;  %v9171_v34 = vcombine.high %v1277_v57, %v1285_v30  ;;  %v1261_v49 = vld [vmem:[%s9465_s11 + $0x1f38] sm:$0xff]  ;;  %v9170_v38 = vcombine.low %v1277_v57, %v1285_v30 }
 0x40b   : > { %7740 = vmatpush1.bf16.msra.mxu1 %v9010_v48  ;;  %v7842_v4 = vcombine.low %v7834_v59, %v7841_v62  ;;  %v1269_v37 = vld [vmem:[%s9465_s11 + $0x1f78] sm:$0xff] }
 0x40c   : > { %7741 = vmatprep.subr.bf16.mxu1 %v8995_v50  ;;  %v9155_v43 = vcombine.high %v1261_v49, %v1269_v37  ;;  %v989_v47 = vld [vmem:[%s9465_s11 + $0x16b8] sm:$0xff]  ;;  %v9154_v55 = vcombine.low %v1261_v49, %v1269_v37 }
 0x40d   : > { %v7866_v39 = vadd.f32 %v7842_v4, %v259_v63  ;;  %7701 = vmatpush1.bf16.msra.mxu0 %v8738_v61  ;;  %v997_v44 = vld [vmem:[%s9465_s11 + $0x16f8] sm:$0xff] }
 0x40e   : > { %7702 = vmatprep.subr.bf16.mxu0 %v8723_v3  ;;  %v1245_v48 = vld [vmem:[%s9465_s11 + $0x1eb8] sm:$0xff]  ;;  %v8883_v50 = vcombine.high %v989_v47, %v997_v44  ;;  %v8882_v62 = vcombine.low %v989_v47, %v997_v44 }
 0x40f   : > { %7742 = vmatpush1.bf16.msra.mxu1 %v8994_v2  ;;  %7870 = vst [vmem:[#allocation2 + $0x18] sm:$0xff] %v7866_v39  ;;  %v1253_v53 = vld [vmem:[%s9465_s11 + $0x1ef8] sm:$0xff] }
 0x410   : > { %7743 = vmatprep.subr.bf16.mxu1 %v8979_v10  ;;  %v9139_v58 = vcombine.high %v1245_v48, %v1253_v53  ;;  %v973_v41 = vld [vmem:[%s9465_s11 + $0x1638] sm:$0xff]  ;;  %v9138_v61 = vcombine.low %v1245_v48, %v1253_v53 }
 0x411   : > { %7703 = vmatpush1.bf16.msra.mxu0 %v8722_v7  ;;  %v1229_v60 = vld [vmem:[%s9465_s11 + $0x1e38] sm:$0xff]  ;;  %v8867_v63 = vcombine.high %v973_v41, %v981_v56  ;;  %v8866_v6 = vcombine.low %v973_v41, %v981_v56 }
 0x412   : > { %7704 = vmatprep.subr.bf16.mxu0 %v8707_v14  ;;  %v1237_v59 = vld [vmem:[%s9465_s11 + $0x1e78] sm:$0xff] }
 0x413   : > { %7744 = vmatpush1.bf16.msra.mxu1 %v8978_v9  ;;  %v9123_v2 = vcombine.high %v1229_v60, %v1237_v59  ;;  %v957_v3 = vld [vmem:[%s9465_s11 + $0x15b8] sm:$0xff]  ;;  %v9122_v8 = vcombine.low %v1229_v60, %v1237_v59 }
 0x414   : > { %7745 = vmatprep.subr.bf16.mxu1 %v8963_v11  ;;  %v965_v4 = vld [vmem:[%s9465_s11 + $0x15f8] sm:$0xff] }
 0x415   : > { %7705 = vmatpush1.bf16.msra.mxu0 %v8706_v36  ;;  %v1213_v10 = vld [vmem:[%s9465_s11 + $0x1db8] sm:$0xff]  ;;  %v8851_v18 = vcombine.high %v957_v3, %v965_v4  ;;  %v8850_v28 = vcombine.low %v957_v3, %v965_v4 }
 0x416   : > { %7706 = vmatprep.subr.bf16.mxu0 %v8691_v19  ;;  %v1221_v5 = vld [vmem:[%s9465_s11 + $0x1df8] sm:$0xff] }
 0x417   : > { %7746 = vmatpush1.bf16.msra.mxu1 %v8962_v17  ;;  %v9107_v39 = vcombine.high %v1213_v10, %v1221_v5  ;;  %v941_v7 = vld [vmem:[%s9465_s11 + $0x1538] sm:$0xff]  ;;  %v9106_v12 = vcombine.low %v1213_v10, %v1221_v5 }
 0x418   : > { %7747 = vmatprep.subr.bf16.mxu1 %v8947_v29  ;;  %v949_v9 = vld [vmem:[%s9465_s11 + $0x1578] sm:$0xff] }
 0x419   : > { %7707 = vmatpush1.bf16.msra.mxu0 %v8690_v42  ;;  %v1197_v14 = vld [vmem:[%s9465_s11 + $0x1d38] sm:$0xff]  ;;  %v8835_v15 = vcombine.high %v941_v7, %v949_v9  ;;  %v8834_v21 = vcombine.low %v941_v7, %v949_v9 }
 0x41a   : > { %7708 = vmatprep.subr.bf16.mxu0 %v8675_v26  ;;  %v1205_v11 = vld [vmem:[%s9465_s11 + $0x1d78] sm:$0xff] }
 0x41b   : > { %7748 = vmatpush1.bf16.msra.mxu1 %v8946_v25  ;;  %v9091_v16 = vcombine.high %v1197_v14, %v1205_v11  ;;  %v925_v36 = vld [vmem:[%s9465_s11 + $0x14b8] sm:$0xff]  ;;  %v9090_v22 = vcombine.low %v1197_v14, %v1205_v11 }
 0x41c   : > { %7749 = vmatprep.subr.bf16.mxu1 %v8931_v27  ;;  %v933_v17 = vld [vmem:[%s9465_s11 + $0x14f8] sm:$0xff] }
 0x41d   : > { %7709 = vmatpush1.bf16.msra.mxu0 %v8674_v24  ;;  %v1181_v19 = vld [vmem:[%s9465_s11 + $0x1cb8] sm:$0xff]  ;;  %v8819_v23 = vcombine.high %v925_v36, %v933_v17  ;;  %v8818_v20 = vcombine.low %v925_v36, %v933_v17 }
 0x41e   : > { %7710 = vmatprep.subr.bf16.mxu0 %v8915_v52  ;;  %v1189_v29 = vld [vmem:[%s9465_s11 + $0x1cf8] sm:$0xff] }
 0x41f   : > { %7750 = vmatpush1.bf16.msra.mxu1 %v8930_v31  ;;  %v9075_v13 = vcombine.high %v1181_v19, %v1189_v29  ;;  %v909_v42 = vld [vmem:[%s9465_s11 + $0x1438] sm:$0xff]  ;;  %v9074_v40 = vcombine.low %v1181_v19, %v1189_v29 }
 0x420   : > { %7751 = vmatprep.subr.bf16.mxu1 %v9171_v34  ;;  %v917_v25 = vld [vmem:[%s9465_s11 + $0x1478] sm:$0xff] }
 0x421   : > { %7711 = vmatpush2.bf16.msra.mxu0 %v8914_v0  ;;  %v1165_v26 = vld [vmem:[%s9465_s11 + $0x1c38] sm:$0xff]  ;;  %v8803_v57 = vcombine.high %v909_v42, %v917_v25  ;;  %v8802_v24 = vcombine.low %v909_v42, %v917_v25 }
 0x422   : > { %7712 = vmatprep.subr.bf16.mxu0 %v8899_v54  ;;  %v1173_v27 = vld [vmem:[%s9465_s11 + $0x1c78] sm:$0xff] }
 0x423   : > { %7752 = vmatpush2.bf16.msra.mxu1 %v9170_v38  ;;  %v9059_v30 = vcombine.high %v1165_v26, %v1173_v27  ;;  %v9058_v31 = vcombine.low %v1165_v26, %v1173_v27 }
 0x424   : > { %7753 = vmatprep.subr.bf16.mxu1 %v9155_v43 }
 0x425   : > { %7713 = vmatpush2.bf16.msra.mxu0 %v8898_v32 }
 0x426   : > { %7714 = vmatprep.subr.bf16.mxu0 %v8883_v50 }
 0x427   : > { %7754 = vmatpush2.bf16.msra.mxu1 %v9154_v55 }
 0x428   : > { %7755 = vmatprep.subr.bf16.mxu1 %v9139_v58 }
 0x429   : > { %7715 = vmatpush2.bf16.msra.mxu0 %v8882_v62 }
 0x42a   : > { %7716 = vmatprep.subr.bf16.mxu0 %v8867_v63 }
 0x42b   : > { %7756 = vmatpush2.bf16.msra.mxu1 %v9138_v61 }
 0x42c   : > { %7757 = vmatprep.subr.bf16.mxu1 %v9123_v2 }
 0x42d   : > { %7717 = vmatpush2.bf16.msra.mxu0 %v8866_v6 }
 0x42e   : > { %7718 = vmatprep.subr.bf16.mxu0 %v8851_v18 }
 0x42f   : > { %7758 = vmatpush2.bf16.msra.mxu1 %v9122_v8 }
 0x430   : > { %7759 = vmatprep.subr.bf16.mxu1 %v9107_v39 }
 0x431   : > { %7719 = vmatpush2.bf16.msra.mxu0 %v8850_v28 }
 0x432   : > { %7720 = vmatprep.subr.bf16.mxu0 %v8835_v15 }
 0x433   : > { %7760 = vmatpush2.bf16.msra.mxu1 %v9106_v12 }
 0x434   : > { %7761 = vmatprep.subr.bf16.mxu1 %v9091_v16 }
 0x435   : > { %7721 = vmatpush2.bf16.msra.mxu0 %v8834_v21  ;;  %v260_v21 = vld [vmem:[#allocation2 + $0x8] sm:$0xff] }
 0x436   : > { %7722 = vmatprep.subr.bf16.mxu0 %v8819_v23 }
 0x437   : > { %7762 = vmatpush2.bf16.msra.mxu1 %v9090_v22 }
 0x438   : > { %7763 = vmatprep.subr.bf16.mxu1 %v9075_v13 }
 0x439   : > { %7723 = vmatpush2.bf16.msra.mxu0 %v8818_v20 }
 0x43a   : > { %7724 = vmatprep.subr.bf16.mxu0 %v8803_v57 }
 0x43b   : > { %7764 = vmatpush2.bf16.msra.mxu1 %v9074_v40 }
 0x43c   : > { %7765 = vmatprep.subr.bf16.mxu1 %v9059_v30 }
 0x43d   : > { %7725 = vmatpush2.bf16.msra.mxu0 %v8802_v24 }
 0x43f   : > { %7766 = vmatpush2.bf16.msra.mxu1 %v9058_v31 }
 0x440   : > { %v7482_v52 = vpop.f32.mrf.mxu0  ;;  %7727 = vmatmul.mubr.bf16.vlgmr.msra.gmra.mxu0 %v9563_v33 }
 0x442   : > { %v7523_v34 = vpop.f32.mrf.mxu1  ;;  %7768 = vmatmul.mubr.bf16.vlgmr.msra.gmra.mxu1 %v9680_v51  ;;  %v7484_v46 = vpop.f32.mrf.mxu0 }
 0x443   : > { %v7524_v35 = vadd.f32 %v7523_v34, %v7482_v52 }
 0x444   : > { %v7525_v49 = vpop.f32.mrf.mxu1  ;;  %v7486_v0 = vpop.f32.mrf.mxu0 }
 0x445   : > { %v7526_v37 = vadd.f32 %v7525_v49, %v7484_v46 }
 0x446   : > { %v7527_v38 = vpop.f32.mrf.mxu1  ;;  %v7487_v54 = vpop.f32.mrf.mxu0 }
 0x448   : > { %v7528_v43 = vpop.f32.mrf.mxu1 }
 0x480   : > { %v7564_v47 = vpop.f32.mrf.mxu0 }
 0x481   : > { %v7565_v44 = vadd.f32 %v7564_v47, %v7524_v35 }
 0x482   : > { %v7605_v48 = vpop.f32.mrf.mxu1  ;;  %v7566_v53 = vpop.f32.mrf.mxu0 }
 0x483   : > { %v7606_v32 = vadd.f32 %v7605_v48, %v7565_v44  ;;  %v7567_v55 = vadd.f32 %v7566_v53, %v7526_v37 }
 0x484   : > { %v7607_v50 = vpop.f32.mrf.mxu1  ;;  %v7568_v58 = vpop.f32.mrf.mxu0 }
 0x485   : > { %v7608_v33 = vadd.f32 %v7607_v50, %v7567_v55 }
 0x486   : > { %v7609_v41 = vpop.f32.mrf.mxu1  ;;  %v7569_v56 = vpop.f32.mrf.mxu0 }
 0x487   : > { %v7843_v51 = vcombine.low %v7606_v32, %v7608_v33 }
 0x488   : > { %v7610_v60 = vpop.f32.mrf.mxu1 }
 0x489   : > { %v7851_v19 = vrot.slane %v7843_v51, %v10059_v1 }
 0x4c0   : > { %v7646_v59 = vpop.f32.mrf.mxu0 }
 0x4c2   : > { %v7687_v62 = vpop.f32.mrf.mxu1  ;;  %v7648_v61 = vpop.f32.mrf.mxu0 }
 0x4c3   : > { %v7688_v5 = vadd.f32 %v7687_v62, %v7646_v59 }
 0x4c4   : > { %v7689_v63 = vpop.f32.mrf.mxu1  ;;  %v7650_v2 = vpop.f32.mrf.mxu0 }
 0x4c5   : > { %v7690_v8 = vadd.f32 %v7689_v63, %v7648_v61 }
 0x4c6   : > { %v7691_v3 = vpop.f32.mrf.mxu1  ;;  %v7651_v4 = vpop.f32.mrf.mxu0 }
 0x4c8   : > { %v7692_v10 = vpop.f32.mrf.mxu1 }
 0x500   : > { %v7728_v6 = vpop.f32.mrf.mxu0 }
 0x501   : > { %v7729_v18 = vadd.f32 %v7728_v6, %v7688_v5 }
 0x502   : > { %v7769_v39 = vpop.f32.mrf.mxu1  ;;  %v7730_v7 = vpop.f32.mrf.mxu0 }
 0x503   : > { %v7731_v9 = vadd.f32 %v7730_v7, %v7690_v8  ;;  %v7770_v28 = vadd.f32 %v7769_v39, %v7729_v18 }
 0x504   : > { %v7771_v14 = vpop.f32.mrf.mxu1  ;;  %v7732_v11 = vpop.f32.mrf.mxu0 }
 0x505   : > { %v7772_v12 = vadd.f32 %v7771_v14, %v7731_v9 }
 0x506   : > { %v7773_v15 = vpop.f32.mrf.mxu1  ;;  %v7733_v16 = vpop.f32.mrf.mxu0 }
 0x507   : > { %v7844_v36 = vcombine.low %v7770_v28, %v7772_v12 }
 0x508   : > { %v7774_v17 = vpop.f32.mrf.mxu1 }
 0x509   : > { %v7858_v29 = vrot.slane %v7844_v36, %v10059_v1 }
 0x50b   : > { %v7859_v22 = vcombine.low %v7851_v19, %v7858_v29  ;;  %7875 = sbr.rel (%p9172_p11) target bundleno = 1317 (0x525), region = 44 }
 0x50d   : > { %v7867_v23 = vadd.f32 %v7859_v22, %v260_v21 }
 0x50f   : > { %7871 = vst [vmem:[#allocation2 + $0x8] sm:$0xff] %v7867_v23 }
 0x510   : > { %v7880_v13 = vld [vmem:[%s9482_s30] sm:$0xff]  ;;  %v7886_v42 = vsub.s32 0, %v9512_v45  ;;  %v7890_v25 = vsub.s32 1, %v9512_v45  ;;  %v7894_v26 = vsub.s32 2, %v9512_v45  ;;  %v7898_v27 = vsub.s32 3, %v9512_v45  ;;  %v7881_v35 = vld [vmem:[%s9482_s30 + $0x8] sm:$0xff] }
 0x511   : > { %v7902_v20 = vsub.s32 4, %v9512_v45  ;;  %v7906_v40 = vsub.s32 5, %v9512_v45  ;;  %v7910_v57 = vsub.s32 6, %v9512_v45  ;;  %v7914_v30 = vsub.s32 7, %v9512_v45  ;;  %v7876_v33 = vld [vmem:[#allocation2 + $0x10] sm:$0xff]  ;;  %v7877_v62 = vld [vmem:[#allocation2] sm:$0xff] }
 0x512   : > { %v7887_v24 = vrot.slane %v7880_v13, %v7886_v42  ;;  %v7891_v31 = vrot.slane %v7880_v13, %v7890_v25  ;;  %v7895_v52 = vrot.slane %v7880_v13, %v7894_v26  ;;  %v7899_v34 = vrot.slane %v7880_v13, %v7898_v27  ;;  %v7878_v6 = vld [vmem:[#allocation2 + $0x18] sm:$0xff] }
 0x513   : > { %v7903_v46 = vrot.slane %v7880_v13, %v7902_v20  ;;  %v7907_v49 = vrot.slane %v7880_v13, %v7906_v40  ;;  %v7911_v37 = vrot.slane %v7880_v13, %v7910_v57  ;;  %v7915_v0 = vrot.slane %v7880_v13, %v7914_v30 }
 0x514   : > { %v7948_v38 = vcombine.low %v7887_v24, %v7891_v31  ;;  %v7949_v54 = vcombine.low %v7895_v52, %v7899_v34  ;;  %v7919_v43 = vrot.slane %v7881_v35, %v7886_v42  ;;  %v7923_v47 = vrot.slane %v7881_v35, %v7890_v25 }
 0x515   : > { %v7965_v44 = vcombine.low %v7903_v46, %v7907_v49  ;;  %v7966_v48 = vcombine.low %v7911_v37, %v7915_v0  ;;  %v7927_v53 = vrot.slane %v7881_v35, %v7894_v26  ;;  %v7931_v32 = vrot.slane %v7881_v35, %v7898_v27 }
 0x516   : > { %v7956_v55 = vrot.slane %v7948_v38, %v10059_v1  ;;  %v7963_v45 = vrot.slane %v7949_v54, %v10059_v1  ;;  %v7982_v50 = vcombine.low %v7919_v43, %v7923_v47  ;;  %v7935_v58 = vrot.slane %v7881_v35, %v7902_v20  ;;  %v7879_v12 = vld [vmem:[#allocation2 + $0x8] sm:$0xff] }
 0x517   : > { %v7973_v41 = vrot.slane %v7965_v44, %v10059_v1  ;;  %v7980_v56 = vrot.slane %v7966_v48, %v10059_v1  ;;  %v7983_v51 = vcombine.low %v7927_v53, %v7931_v32  ;;  %v7939_v60 = vrot.slane %v7881_v35, %v7906_v40 }
 0x518   : > { %v7964_v59 = vcombine.low %v7956_v55, %v7963_v45  ;;  %v7990_v61 = vrot.slane %v7982_v50, %v10059_v1  ;;  %v7943_v63 = vrot.slane %v7881_v35, %v7910_v57  ;;  %v7947_v2 = vrot.slane %v7881_v35, %v7914_v30 }
 0x519   : > { %v7981_v3 = vcombine.low %v7973_v41, %v7980_v56  ;;  %v7997_v4 = vrot.slane %v7983_v51, %v10059_v1  ;;  %v7999_v10 = vcombine.low %v7935_v58, %v7939_v60 }
 0x51a   : > { %v8020_v5 = vadd.f32 %v7964_v59, %v7876_v33  ;;  %v8000_v8 = vcombine.low %v7943_v63, %v7947_v2 }
 0x51b   : > { %v8021_v18 = vadd.f32 %v7981_v3, %v7877_v62  ;;  %v7998_v39 = vcombine.low %v7990_v61, %v7997_v4  ;;  %v8007_v7 = vrot.slane %v7999_v10, %v10059_v1 }
 0x51c   : > { %v8024_v9 = vmax.f32 %v8020_v5, 0.0  ;;  %v8014_v14 = vrot.slane %v8000_v8, %v10059_v1 }
 0x51d   : > { %v8025_v11 = vmax.f32 %v8021_v18, 0.0  ;;  %v8022_v28 = vadd.f32 %v7998_v39, %v7878_v6 }
 0x51e   : > { %8028 = vst [vmem:[%s9487_s16] sm:$0xff] %v8024_v9  ;;  %v8015_v15 = vcombine.low %v8007_v7, %v8014_v14 }
 0x51f   : > { %8029 = vst [vmem:[%s9487_s16 + $0x8] sm:$0xff] %v8025_v11  ;;  %v8026_v16 = vmax.f32 %v8022_v28, 0.0 }
 0x520   : > { %v8023_v36 = vadd.f32 %v8015_v15, %v7879_v12 }
 0x521   : > { %8030 = vst [vmem:[%s9487_s16 + $0x10] sm:$0xff] %v8026_v16 }
 0x522   : > { %v8027_v17 = vmax.f32 %v8023_v36, 0.0 }
 0x524   : > { %8031 = vst [vmem:[%s9487_s16 + $0x18] sm:$0xff] %v8027_v17 }
 0x525 PF: > { %s16_s19 = sadd.s32 1, %s9348_s19   ;;  %s10774_s12 = smov %s9324_s13 }
 0x526   : > { %p13_p12 = scmp.ge.s32.totalorder %s16_s19, 44   ;;  %s10775_s13 = smov %s9328_s14 }
 0x527   : > { %s10776_s14 = smov %s9444_s5  ;;  %s10777_s15 = smov %s9340_s17 }
 0x528   : > { %s10778_s16 = smov %s9344_s18  ;;  %s10779_s17 = smov %s10782_s21 }
 0x529   : > { %s10780_s18 = smov %s10786_s22  ;;  %15 = sbr.rel (!%p13_p12) target bundleno = 5 (0x5), region = 86 }
 0x52e   :  { %8054 = vsyncpa [#allocation4], 1 }
 0x52f   :  { %8056 = vsyncpa [#allocation4 + $0x1], 1 }

</bundles_post_ra>
